<compile_context>
chip_gen: v6e
topology: v6e:2x2x1
jax: 0.10.0
libtpu: 0.0.40
codegen_flags: <defaults>
</compile_context>

<pallas_src>
import jax
import jax.numpy as jnp
from jax.experimental import pallas as pl
from jax.experimental.pallas import tpu as pltpu


# --------------------------- in-kernel layer helpers ---------------------------

def _conv3x3_s2_relu(x, w_ref, b_ref, pad_ref):
    """3x3 / stride 2 / pad 1 conv + bias + ReLU, patches read from a VMEM halo scratch.

    x:       (1, H, W, Cin) value
    w_ref:   (9, Cin, Cout) per-tap weights, tap = dy*3 + dx
    b_ref:   (1, Cout)
    pad_ref: (1, H+2, W+2, Cin) VMEM scratch (zero border)
    returns  (1, H//2, W//2, Cout)
    """
    _, H, W, Cin = x.shape
    Cout = w_ref.shape[-1]
    pad_ref[...] = jnp.zeros(pad_ref.shape, pad_ref.dtype)
    pad_ref[:, 1:H + 1, 1:W + 1, :] = x

    M = H * W
    acc = jnp.zeros((M, Cout), jnp.float32)
    for dy in range(3):
        for dx in range(3):
            tap = pad_ref[:, dy:dy + H, dx:dx + W, :].reshape(M, Cin)
            wt = w_ref[dy * 3 + dx, :, :]                       # (Cin, Cout)
            if Cin == 1:
                # K=1 contraction: keep it on the VPU (broadcast multiply-add),
                # the MXU would be <2% utilized here.
                acc = acc + tap * wt
            else:
                acc = acc + jnp.dot(tap, wt, preferred_element_type=jnp.float32)
    acc = jnp.maximum(acc + b_ref[...], 0.0)
    # stride 2: computed at full resolution (MACs negligible at these sizes), keep the
    # even rows / even cols via a free leading-dim reshape + static slice.
    return acc.reshape(1, H // 2, 2, W // 2, 2, Cout)[:, :, 0, :, 0, :]


def _convT3x3_s2(x, w_ref, b_ref, pad_ref, shuf_ref, act):
    """3x3 / stride 2 / pad 1 / output_pad 1 ConvTranspose + bias + activation.

    Sub-pixel decomposition: for output phase (py, px),
        out[2i+py, 2j+px] = sum_{ty,tx valid} x[i+ty, j+tx] @ W[:, :, py+1-2ty, px+1-2tx]
    The pixel-shuffle is fused by storing each phase into a (h, 2, w, 2, C) VMEM scratch
    window; the interleaved (2h, 2w, C) layout is then a free reshape.

    x:        (1, h, w, Cin) value
    w_ref:    (2, 2, 2, 2, Cin, Cout) indexed [py, px, ty, tx]
    b_ref:    (1, Cout)
    pad_ref:  (1, h+1, w+1, Cin)  VMEM scratch (zero high-side border)
    shuf_ref: (1, h, 2, w, 2, Cout) VMEM scratch (pixel-shuffle buffer)
    returns   (1, 2h, 2w, Cout)
    """
    _, h, w, Cin = x.shape
    Cout = w_ref.shape[-1]
    pad_ref[...] = jnp.zeros(pad_ref.shape, pad_ref.dtype)
    pad_ref[:, 0:h, 0:w, :] = x

    M = h * w
    for py in range(2):
        for px in range(2):
            acc = jnp.zeros((M, Cout), jnp.float32)
            for ty in range(2):
                if not 0 <= py + 1 - 2 * ty < 3:
                    continue
                for tx in range(2):
                    if not 0 <= px + 1 - 2 * tx < 3:
                        continue
                    tap = pad_ref[:, ty:ty + h, tx:tx + w, :].reshape(M, Cin)
                    acc = acc + jnp.dot(tap, w_ref[py, px, ty, tx, :, :],
                                        preferred_element_type=jnp.float32)
            acc = acc + b_ref[...]
            if act == "relu":
                acc = jnp.maximum(acc, 0.0)
            else:
                # exact sigmoid (exp on the EUP + fp32 divide on a tiny tensor) so the
                # output matches torch.sigmoid within f32 rounding.
                acc = 1.0 / (1.0 + jnp.exp(-acc))
            shuf_ref[:, :, py, :, px, :] = acc.reshape(1, h, w, Cout)
    return shuf_ref[...].reshape(1, 2 * h, 2 * w, Cout)


def _autoencoder_kernel(x_ref,
                        we1, be1, we2, be2, we3, be3,
                        wd1, bd1, wd2, bd2, wd3, bd3,
                        out_ref,
                        pad1, pad2, pad3, padt1, padt2, padt3,
                        shuf1, shuf2, shuf3):
    a = x_ref[...]                                              # (1, H, W, 1)
    # encoder
    a = _conv3x3_s2_relu(a, we1, be1, pad1)                     # (1, H/2, W/2, 16)
    a = _conv3x3_s2_relu(a, we2, be2, pad2)                     # (1, H/4, W/4, 32)
    a = _conv3x3_s2_relu(a, we3, be3, pad3)                     # (1, H/8, W/8, 64)
    # decoder
    a = _convT3x3_s2(a, wd1, bd1, padt1, shuf1, "relu")         # (1, H/4, W/4, 32)
    a = _convT3x3_s2(a, wd2, bd2, padt2, shuf2, "relu")         # (1, H/2, W/2, 16)
    a = _convT3x3_s2(a, wd3, bd3, padt3, shuf3, "sigmoid")      # (1, H,   W,   1)
    out_ref[...] = a


# ------------------------------- host wrapper ----------------------------------

def pack_params(params):
    """One-time weight re-layout (runs eagerly, OUTSIDE the jitted forward)."""
    enc = []
    for w, b in params["enc"]:                       # w: (Cout, Cin, 3, 3)
        cout, cin, k, _ = w.shape
        wt = jnp.transpose(w, (2, 3, 1, 0)).reshape(k * k, cin, cout)   # [dy*3+dx, Cin, Cout]
        enc.append((wt, b.reshape(1, cout)))
    dec = []
    for w, b in params["dec"]:                       # w: (Cin, Cout, 3, 3)
        cin, cout, k, _ = w.shape
        taps = []
        for py in range(2):
            for px in range(2):
                for ty in range(2):
                    for tx in range(2):
                        ky, kx = py + 1 - 2 * ty, px + 1 - 2 * tx
                        if 0 <= ky < k and 0 <= kx < k:
                            taps.append(w[:, :, ky, kx])
                        else:
                            taps.append(jnp.zeros((cin, cout), w.dtype))
        wt = jnp.stack(taps).reshape(2, 2, 2, 2, cin, cout)             # [py, px, ty, tx]
        dec.append((wt, b.reshape(1, cout)))
    return {"enc": enc, "dec": dec}


def autoencoder_forward(x_nchw, packed):
    n, c, h, w = x_nchw.shape
    assert c == 1 and h % 8 == 0 and w % 8 == 0
    x = jnp.transpose(x_nchw, (0, 2, 3, 1))          # NCHW -> NHWC (C=1: near-free)

    (we1, be1), (we2, be2), (we3, be3) = packed["enc"]
    (wd1, bd1), (wd2, bd2), (wd3, bd3) = packed["dec"]
    weights = [we1, be1, we2, be2, we3, be3, wd1, bd1, wd2, bd2, wd3, bd3]

    c1, c2, c3 = we1.shape[-1], we2.shape[-1], we3.shape[-1]     # 16, 32, 64
    d1, d2, d3 = wd1.shape[-1], wd2.shape[-1], wd3.shape[-1]     # 32, 16, 1
    h1, w1 = h // 2, w // 2
    h2, w2 = h // 4, w // 4
    h3, w3 = h // 8, w // 8

    scratch = [
        pltpu.VMEM((1, h + 2, w + 2, 1), jnp.float32),      # conv1 halo
        pltpu.VMEM((1, h1 + 2, w1 + 2, c1), jnp.float32),   # conv2 halo
        pltpu.VMEM((1, h2 + 2, w2 + 2, c2), jnp.float32),   # conv3 halo
        pltpu.VMEM((1, h3 + 1, w3 + 1, c3), jnp.float32),   # convT1 halo
        pltpu.VMEM((1, h2 + 1, w2 + 1, d1), jnp.float32),   # convT2 halo
        pltpu.VMEM((1, h1 + 1, w1 + 1, d2), jnp.float32),   # convT3 halo
        pltpu.VMEM((1, h3, 2, w3, 2, d1), jnp.float32),     # convT1 pixel-shuffle
        pltpu.VMEM((1, h2, 2, w2, 2, d2), jnp.float32),     # convT2 pixel-shuffle
        pltpu.VMEM((1, h1, 2, w1, 2, d3), jnp.float32),     # convT3 pixel-shuffle
    ]

    in_specs = [pl.BlockSpec((1, h, w, 1), lambda b: (b, 0, 0, 0))]
    for a in weights:   # weights/biases: whole array resident, constant block index
        in_specs.append(pl.BlockSpec(a.shape, lambda b, _nd=a.ndim: (0,) * _nd))

    flops = 2 * n * (h * w * 9 * 1 * c1 + h1 * w1 * 9 * c1 * c2 + h2 * w2 * 9 * c2 * c3
                     + h3 * w3 * 9 * c3 * d1 + h2 * w2 * 9 * d1 * d2 + h1 * w1 * 9 * d2 * d3)
    bytes_acc = 4 * (x.size + sum(a.size for a in weights) + n * h * w)
    cost = pl.CostEstimate(flops=flops, transcendentals=n * h * w, bytes_accessed=bytes_acc)

    out = pl.pallas_call(
        _autoencoder_kernel,
        out_shape=jax.ShapeDtypeStruct((n, h, w, 1), jnp.float32),
        grid=(n,),
        in_specs=in_specs,
        out_specs=pl.BlockSpec((1, h, w, 1), lambda b: (b, 0, 0, 0)),
        scratch_shapes=scratch,
        compiler_params=pltpu.CompilerParams(dimension_semantics=("parallel",)),
        cost_estimate=cost,
    )(x, *weights)

    return jnp.transpose(out, (0, 3, 1, 2))          # NHWC -> NCHW


# --------------------------------- params --------------------------------------

def init_params(key):
    # deterministic PyTorch-style uniform(-1/sqrt(fan_in), 1/sqrt(fan_in)) init
    def u(k, shape, fan_in):
        bound = 1.0 / float(fan_in) ** 0.5
        return jax.random.uniform(k, shape, jnp.float32, -bound, bound)

    keys = jax.random.split(key, 12)
    enc_shapes = [(16, 1, 3, 3), (32, 16, 3, 3), (64, 32, 3, 3)]     # (Cout, Cin, k, k)
    dec_shapes = [(64, 32, 3, 3), (32, 16, 3, 3), (16, 1, 3, 3)]     # (Cin, Cout, k, k)
    enc, dec = [], []
    ki = 0
    for co, ci, k, _ in enc_shapes:
        fan_in = ci * k * k
        enc.append((u(keys[ki], (co, ci, k, k), fan_in), u(keys[ki + 1], (co,), fan_in)))
        ki += 2
    for ci, co, k, _ in dec_shapes:
        fan_in = co * k * k  # PyTorch ConvTranspose fan_in uses weight.size(1)*k*k
        dec.append((u(keys[ki], (ci, co, k, k), fan_in), u(keys[ki + 1], (co,), fan_in)))
        ki += 2
    return {"enc": enc, "dec": dec}


# ------------------------- pure-JAX reference (check) ---------------------------

def reference_forward(x_nchw, params):
    dn = ("NCHW", "OIHW", "NCHW")
    y = x_nchw
    for w, b in params["enc"]:
        y = jax.lax.conv_general_dilated(
            y, w, (2, 2), ((1, 1), (1, 1)), dimension_numbers=dn,
            precision=jax.lax.Precision.HIGHEST)
        y = jnp.maximum(y + b.reshape(1, -1, 1, 1), 0.0)
    for i, (w, b) in enumerate(params["dec"]):
        w_conv = jnp.transpose(jnp.flip(w, axis=(2, 3)), (1, 0, 2, 3))
        y = jax.lax.conv_general_dilated(
            y, w_conv, (1, 1), ((1, 2), (1, 2)), lhs_dilation=(2, 2),
            dimension_numbers=dn, precision=jax.lax.Precision.HIGHEST)
        y = y + b.reshape(1, -1, 1, 1)
        y = jnp.maximum(y, 0.0) if i < 2 else jax.nn.sigmoid(y)
    return y


# ----------------------------------- main ---------------------------------------

if __name__ == "__main__":
    key = jax.random.PRNGKey(0)
    pkey, xkey = jax.random.split(key)
    params = init_params(pkey)
    packed = pack_params(params)        # one-time weight packing, outside the jitted forward

    # small MNIST-like input: batch=2, 1 channel, 16x16 (NCHW, like PyTorch)
    x = jax.random.uniform(xkey, (2, 1, 16, 16), jnp.float32)

    fwd = jax.jit(autoencoder_forward)
    out = jax.block_until_ready(fwd(x, packed))
    assert out.shape == (2, 1, 16, 16), out.shape

    ref = reference_forward(x, params)
    err = float(jnp.max(jnp.abs(out - ref)))
    assert jnp.allclose(out, ref, atol=1e-4, rtol=1e-4), f"max abs err {err}"

    print("KERNEL_OK")
</pallas_src>

<mosaic_0001>
module attributes {stable_mosaic.version = 11 : i64} {
  func.func @_autoencoder_kernel(%arg0: i32, %arg1: memref<1x16x16x1xf32, #tpu.memory_space<vmem>>, %arg2: memref<9x1x16xf32, #tpu.memory_space<vmem>>, %arg3: memref<1x16xf32, #tpu.memory_space<vmem>>, %arg4: memref<9x16x32xf32, #tpu.memory_space<vmem>>, %arg5: memref<1x32xf32, #tpu.memory_space<vmem>>, %arg6: memref<9x32x64xf32, #tpu.memory_space<vmem>>, %arg7: memref<1x64xf32, #tpu.memory_space<vmem>>, %arg8: memref<2x2x2x2x64x32xf32, #tpu.memory_space<vmem>>, %arg9: memref<1x32xf32, #tpu.memory_space<vmem>>, %arg10: memref<2x2x2x2x32x16xf32, #tpu.memory_space<vmem>>, %arg11: memref<1x16xf32, #tpu.memory_space<vmem>>, %arg12: memref<2x2x2x2x16x1xf32, #tpu.memory_space<vmem>>, %arg13: memref<1x1xf32, #tpu.memory_space<vmem>>, %arg14: memref<1x16x16x1xf32, #tpu.memory_space<vmem>>, %arg15: memref<1x18x18x1xf32, #tpu.memory_space<vmem>>, %arg16: memref<1x10x10x16xf32, #tpu.memory_space<vmem>>, %arg17: memref<1x6x6x32xf32, #tpu.memory_space<vmem>>, %arg18: memref<1x3x3x64xf32, #tpu.memory_space<vmem>>, %arg19: memref<1x5x5x32xf32, #tpu.memory_space<vmem>>, %arg20: memref<1x9x9x16xf32, #tpu.memory_space<vmem>>, %arg21: memref<1x2x2x2x2x32xf32, #tpu.memory_space<vmem>>, %arg22: memref<1x4x2x4x2x16xf32, #tpu.memory_space<vmem>>, %arg23: memref<1x8x2x8x2x1xf32, #tpu.memory_space<vmem>>) attributes {dimension_semantics = [#tpu.dimension_semantics<parallel>], iteration_bounds = array<i64: 2>, scalar_prefetch = 0 : i64, scratch_operands = 9 : i64, tpu.core_type = #tpu.core_type<tc>, window_params = [{transform_indices = @transform_0, window_bounds = array<i64: 1, 16, 16, 1>}, {pipeline_mode = #tpu.pipeline_mode<synchronous>, transform_indices = @transform_1, window_bounds = array<i64: 9, 1, 16>}, {pipeline_mode = #tpu.pipeline_mode<synchronous>, transform_indices = @transform_2, window_bounds = array<i64: 1, 16>}, {pipeline_mode = #tpu.pipeline_mode<synchronous>, transform_indices = @transform_3, window_bounds = array<i64: 9, 16, 32>}, {pipeline_mode = #tpu.pipeline_mode<synchronous>, transform_indices = @transform_4, window_bounds = array<i64: 1, 32>}, {pipeline_mode = #tpu.pipeline_mode<synchronous>, transform_indices = @transform_5, window_bounds = array<i64: 9, 32, 64>}, {pipeline_mode = #tpu.pipeline_mode<synchronous>, transform_indices = @transform_6, window_bounds = array<i64: 1, 64>}, {pipeline_mode = #tpu.pipeline_mode<synchronous>, transform_indices = @transform_7, window_bounds = array<i64: 2, 2, 2, 2, 64, 32>}, {pipeline_mode = #tpu.pipeline_mode<synchronous>, transform_indices = @transform_8, window_bounds = array<i64: 1, 32>}, {pipeline_mode = #tpu.pipeline_mode<synchronous>, transform_indices = @transform_9, window_bounds = array<i64: 2, 2, 2, 2, 32, 16>}, {pipeline_mode = #tpu.pipeline_mode<synchronous>, transform_indices = @transform_10, window_bounds = array<i64: 1, 16>}, {pipeline_mode = #tpu.pipeline_mode<synchronous>, transform_indices = @transform_11, window_bounds = array<i64: 2, 2, 2, 2, 16, 1>}, {pipeline_mode = #tpu.pipeline_mode<synchronous>, transform_indices = @transform_12, window_bounds = array<i64: 1, 1>}, {transform_indices = @transform_13, window_bounds = array<i64: 1, 16, 16, 1>}]} {
    %c0 = arith.constant 0 : index
    %c0_0 = arith.constant 0 : index
    %c0_1 = arith.constant 0 : index
    %c0_2 = arith.constant 0 : index
    %0 = vector.load %arg1[%c0, %c0_0, %c0_1, %c0_2] : memref<1x16x16x1xf32, #tpu.memory_space<vmem>>, vector<1x16x16x1xf32>
    %cst = arith.constant 0.000000e+00 : f32
    %1 = vector.broadcast %cst : f32 to vector<1x18x18x1xf32>
    %c0_3 = arith.constant 0 : index
    %c0_4 = arith.constant 0 : index
    %c0_5 = arith.constant 0 : index
    %c0_6 = arith.constant 0 : index
    %2 = vector.load %arg15[%c0_3, %c0_4, %c0_5, %c0_6] : memref<1x18x18x1xf32, #tpu.memory_space<vmem>>, vector<1x18x18x1xf32>
    tpu.vector_store %arg15[%c0_3, %c0_4, %c0_5, %c0_6], %1 {strides = array<i32>} : memref<1x18x18x1xf32, #tpu.memory_space<vmem>>, vector<1x18x18x1xf32>,
    %c0_7 = arith.constant 0 : index
    %c1 = arith.constant 1 : index
    %c1_8 = arith.constant 1 : index
    %c0_9 = arith.constant 0 : index
    %3 = vector.load %arg15[%c0_7, %c1, %c1_8, %c0_9] : memref<1x18x18x1xf32, #tpu.memory_space<vmem>>, vector<1x16x16x1xf32>
    tpu.vector_store %arg15[%c0_7, %c1, %c1_8, %c0_9], %0 {strides = array<i32>} : memref<1x18x18x1xf32, #tpu.memory_space<vmem>>, vector<1x16x16x1xf32>,
    %cst_10 = arith.constant 0.000000e+00 : f32
    %4 = vector.broadcast %cst_10 : f32 to vector<256x16xf32>
    %c0_11 = arith.constant 0 : index
    %c0_12 = arith.constant 0 : index
    %c0_13 = arith.constant 0 : index
    %c0_14 = arith.constant 0 : index
    %5 = vector.load %arg15[%c0_11, %c0_12, %c0_13, %c0_14] : memref<1x18x18x1xf32, #tpu.memory_space<vmem>>, vector<1x16x16x1xf32>
    %6 = vector.shape_cast %5 : vector<1x16x16x1xf32> to vector<256x1xf32>
    %c0_15 = arith.constant 0 : index
    %c0_16 = arith.constant 0 : index
    %c0_17 = arith.constant 0 : index
    %7 = vector.load %arg2[%c0_15, %c0_16, %c0_17] : memref<9x1x16xf32, #tpu.memory_space<vmem>>, vector<1x1x16xf32>
    %8 = vector.shape_cast %7 : vector<1x1x16xf32> to vector<1x16xf32>
    %9 = vector.broadcast %6 : vector<256x1xf32> to vector<256x16xf32>
    %10 = vector.broadcast %8 : vector<1x16xf32> to vector<256x16xf32>
    %11 = arith.mulf %9, %10 : vector<256x16xf32>
    %12 = arith.addf %4, %11 : vector<256x16xf32>
    %c0_18 = arith.constant 0 : index
    %c0_19 = arith.constant 0 : index
    %c1_20 = arith.constant 1 : index
    %c0_21 = arith.constant 0 : index
    %13 = vector.load %arg15[%c0_18, %c0_19, %c1_20, %c0_21] : memref<1x18x18x1xf32, #tpu.memory_space<vmem>>, vector<1x16x16x1xf32>
    %14 = vector.shape_cast %13 : vector<1x16x16x1xf32> to vector<256x1xf32>
    %c1_22 = arith.constant 1 : index
    %c0_23 = arith.constant 0 : index
    %c0_24 = arith.constant 0 : index
    %15 = vector.load %arg2[%c1_22, %c0_23, %c0_24] : memref<9x1x16xf32, #tpu.memory_space<vmem>>, vector<1x1x16xf32>
    %16 = vector.shape_cast %15 : vector<1x1x16xf32> to vector<1x16xf32>
    %17 = vector.broadcast %14 : vector<256x1xf32> to vector<256x16xf32>
    %18 = vector.broadcast %16 : vector<1x16xf32> to vector<256x16xf32>
    %19 = arith.mulf %17, %18 : vector<256x16xf32>
    %20 = arith.addf %12, %19 : vector<256x16xf32>
    %c0_25 = arith.constant 0 : index
    %c0_26 = arith.constant 0 : index
    %c2 = arith.constant 2 : index
    %c0_27 = arith.constant 0 : index
    %21 = vector.load %arg15[%c0_25, %c0_26, %c2, %c0_27] : memref<1x18x18x1xf32, #tpu.memory_space<vmem>>, vector<1x16x16x1xf32>
    %22 = vector.shape_cast %21 : vector<1x16x16x1xf32> to vector<256x1xf32>
    %c2_28 = arith.constant 2 : index
    %c0_29 = arith.constant 0 : index
    %c0_30 = arith.constant 0 : index
    %23 = vector.load %arg2[%c2_28, %c0_29, %c0_30] : memref<9x1x16xf32, #tpu.memory_space<vmem>>, vector<1x1x16xf32>
    %24 = vector.shape_cast %23 : vector<1x1x16xf32> to vector<1x16xf32>
    %25 = vector.broadcast %22 : vector<256x1xf32> to vector<256x16xf32>
    %26 = vector.broadcast %24 : vector<1x16xf32> to vector<256x16xf32>
    %27 = arith.mulf %25, %26 : vector<256x16xf32>
    %28 = arith.addf %20, %27 : vector<256x16xf32>
    %c0_31 = arith.constant 0 : index
    %c1_32 = arith.constant 1 : index
    %c0_33 = arith.constant 0 : index
    %c0_34 = arith.constant 0 : index
    %29 = vector.load %arg15[%c0_31, %c1_32, %c0_33, %c0_34] : memref<1x18x18x1xf32, #tpu.memory_space<vmem>>, vector<1x16x16x1xf32>
    %30 = vector.shape_cast %29 : vector<1x16x16x1xf32> to vector<256x1xf32>
    %c3 = arith.constant 3 : index
    %c0_35 = arith.constant 0 : index
    %c0_36 = arith.constant 0 : index
    %31 = vector.load %arg2[%c3, %c0_35, %c0_36] : memref<9x1x16xf32, #tpu.memory_space<vmem>>, vector<1x1x16xf32>
    %32 = vector.shape_cast %31 : vector<1x1x16xf32> to vector<1x16xf32>
    %33 = vector.broadcast %30 : vector<256x1xf32> to vector<256x16xf32>
    %34 = vector.broadcast %32 : vector<1x16xf32> to vector<256x16xf32>
    %35 = arith.mulf %33, %34 : vector<256x16xf32>
    %36 = arith.addf %28, %35 : vector<256x16xf32>
    %c0_37 = arith.constant 0 : index
    %c1_38 = arith.constant 1 : index
    %c1_39 = arith.constant 1 : index
    %c0_40 = arith.constant 0 : index
    %37 = vector.load %arg15[%c0_37, %c1_38, %c1_39, %c0_40] : memref<1x18x18x1xf32, #tpu.memory_space<vmem>>, vector<1x16x16x1xf32>
    %38 = vector.shape_cast %37 : vector<1x16x16x1xf32> to vector<256x1xf32>
    %c4 = arith.constant 4 : index
    %c0_41 = arith.constant 0 : index
    %c0_42 = arith.constant 0 : index
    %39 = vector.load %arg2[%c4, %c0_41, %c0_42] : memref<9x1x16xf32, #tpu.memory_space<vmem>>, vector<1x1x16xf32>
    %40 = vector.shape_cast %39 : vector<1x1x16xf32> to vector<1x16xf32>
    %41 = vector.broadcast %38 : vector<256x1xf32> to vector<256x16xf32>
    %42 = vector.broadcast %40 : vector<1x16xf32> to vector<256x16xf32>
    %43 = arith.mulf %41, %42 : vector<256x16xf32>
    %44 = arith.addf %36, %43 : vector<256x16xf32>
    %c0_43 = arith.constant 0 : index
    %c1_44 = arith.constant 1 : index
    %c2_45 = arith.constant 2 : index
    %c0_46 = arith.constant 0 : index
    %45 = vector.load %arg15[%c0_43, %c1_44, %c2_45, %c0_46] : memref<1x18x18x1xf32, #tpu.memory_space<vmem>>, vector<1x16x16x1xf32>
    %46 = vector.shape_cast %45 : vector<1x16x16x1xf32> to vector<256x1xf32>
    %c5 = arith.constant 5 : index
    %c0_47 = arith.constant 0 : index
    %c0_48 = arith.constant 0 : index
    %47 = vector.load %arg2[%c5, %c0_47, %c0_48] : memref<9x1x16xf32, #tpu.memory_space<vmem>>, vector<1x1x16xf32>
    %48 = vector.shape_cast %47 : vector<1x1x16xf32> to vector<1x16xf32>
    %49 = vector.broadcast %46 : vector<256x1xf32> to vector<256x16xf32>
    %50 = vector.broadcast %48 : vector<1x16xf32> to vector<256x16xf32>
    %51 = arith.mulf %49, %50 : vector<256x16xf32>
    %52 = arith.addf %44, %51 : vector<256x16xf32>
    %c0_49 = arith.constant 0 : index
    %c2_50 = arith.constant 2 : index
    %c0_51 = arith.constant 0 : index
    %c0_52 = arith.constant 0 : index
    %53 = vector.load %arg15[%c0_49, %c2_50, %c0_51, %c0_52] : memref<1x18x18x1xf32, #tpu.memory_space<vmem>>, vector<1x16x16x1xf32>
    %54 = vector.shape_cast %53 : vector<1x16x16x1xf32> to vector<256x1xf32>
    %c6 = arith.constant 6 : index
    %c0_53 = arith.constant 0 : index
    %c0_54 = arith.constant 0 : index
    %55 = vector.load %arg2[%c6, %c0_53, %c0_54] : memref<9x1x16xf32, #tpu.memory_space<vmem>>, vector<1x1x16xf32>
    %56 = vector.shape_cast %55 : vector<1x1x16xf32> to vector<1x16xf32>
    %57 = vector.broadcast %54 : vector<256x1xf32> to vector<256x16xf32>
    %58 = vector.broadcast %56 : vector<1x16xf32> to vector<256x16xf32>
    %59 = arith.mulf %57, %58 : vector<256x16xf32>
    %60 = arith.addf %52, %59 : vector<256x16xf32>
    %c0_55 = arith.constant 0 : index
    %c2_56 = arith.constant 2 : index
    %c1_57 = arith.constant 1 : index
    %c0_58 = arith.constant 0 : index
    %61 = vector.load %arg15[%c0_55, %c2_56, %c1_57, %c0_58] : memref<1x18x18x1xf32, #tpu.memory_space<vmem>>, vector<1x16x16x1xf32>
    %62 = vector.shape_cast %61 : vector<1x16x16x1xf32> to vector<256x1xf32>
    %c7 = arith.constant 7 : index
    %c0_59 = arith.constant 0 : index
    %c0_60 = arith.constant 0 : index
    %63 = vector.load %arg2[%c7, %c0_59, %c0_60] : memref<9x1x16xf32, #tpu.memory_space<vmem>>, vector<1x1x16xf32>
    %64 = vector.shape_cast %63 : vector<1x1x16xf32> to vector<1x16xf32>
    %65 = vector.broadcast %62 : vector<256x1xf32> to vector<256x16xf32>
    %66 = vector.broadcast %64 : vector<1x16xf32> to vector<256x16xf32>
    %67 = arith.mulf %65, %66 : vector<256x16xf32>
    %68 = arith.addf %60, %67 : vector<256x16xf32>
    %c0_61 = arith.constant 0 : index
    %c2_62 = arith.constant 2 : index
    %c2_63 = arith.constant 2 : index
    %c0_64 = arith.constant 0 : index
    %69 = vector.load %arg15[%c0_61, %c2_62, %c2_63, %c0_64] : memref<1x18x18x1xf32, #tpu.memory_space<vmem>>, vector<1x16x16x1xf32>
    %70 = vector.shape_cast %69 : vector<1x16x16x1xf32> to vector<256x1xf32>
    %c8 = arith.constant 8 : index
    %c0_65 = arith.constant 0 : index
    %c0_66 = arith.constant 0 : index
    %71 = vector.load %arg2[%c8, %c0_65, %c0_66] : memref<9x1x16xf32, #tpu.memory_space<vmem>>, vector<1x1x16xf32>
    %72 = vector.shape_cast %71 : vector<1x1x16xf32> to vector<1x16xf32>
    %73 = vector.broadcast %70 : vector<256x1xf32> to vector<256x16xf32>
    %74 = vector.broadcast %72 : vector<1x16xf32> to vector<256x16xf32>
    %75 = arith.mulf %73, %74 : vector<256x16xf32>
    %76 = arith.addf %68, %75 : vector<256x16xf32>
    %c0_67 = arith.constant 0 : index
    %c0_68 = arith.constant 0 : index
    %77 = vector.load %arg3[%c0_67, %c0_68] : memref<1x16xf32, #tpu.memory_space<vmem>>, vector<1x16xf32>
    %78 = vector.broadcast %77 : vector<1x16xf32> to vector<256x16xf32>
    %79 = arith.addf %76, %78 : vector<256x16xf32>
    %cst_69 = arith.constant 0.000000e+00 : f32
    %80 = vector.broadcast %cst_69 : f32 to vector<256x16xf32>
    %81 = arith.maximumf %79, %80 : vector<256x16xf32>
    %82 = vector.shape_cast %81 : vector<256x16xf32> to vector<1x8x2x8x2x16xf32>
    %83 = vector.extract_strided_slice %82 {offsets = [0, 0, 0, 0, 0, 0], sizes = [1, 8, 1, 8, 1, 16], strides = [1, 1, 1, 1, 1, 1]} : vector<1x8x2x8x2x16xf32> to vector<1x8x1x8x1x16xf32>
    %84 = vector.shape_cast %83 : vector<1x8x1x8x1x16xf32> to vector<1x8x8x16xf32>
    %cst_70 = arith.constant 0.000000e+00 : f32
    %85 = vector.broadcast %cst_70 : f32 to vector<1x10x10x16xf32>
    %c0_71 = arith.constant 0 : index
    %c0_72 = arith.constant 0 : index
    %c0_73 = arith.constant 0 : index
    %c0_74 = arith.constant 0 : index
    %86 = vector.load %arg16[%c0_71, %c0_72, %c0_73, %c0_74] : memref<1x10x10x16xf32, #tpu.memory_space<vmem>>, vector<1x10x10x16xf32>
    tpu.vector_store %arg16[%c0_71, %c0_72, %c0_73, %c0_74], %85 {strides = array<i32>} : memref<1x10x10x16xf32, #tpu.memory_space<vmem>>, vector<1x10x10x16xf32>,
    %c0_75 = arith.constant 0 : index
    %c1_76 = arith.constant 1 : index
    %c1_77 = arith.constant 1 : index
    %c0_78 = arith.constant 0 : index
    %87 = vector.load %arg16[%c0_75, %c1_76, %c1_77, %c0_78] : memref<1x10x10x16xf32, #tpu.memory_space<vmem>>, vector<1x8x8x16xf32>
    tpu.vector_store %arg16[%c0_75, %c1_76, %c1_77, %c0_78], %84 {strides = array<i32>} : memref<1x10x10x16xf32, #tpu.memory_space<vmem>>, vector<1x8x8x16xf32>,
    %cst_79 = arith.constant 0.000000e+00 : f32
    %88 = vector.broadcast %cst_79 : f32 to vector<64x32xf32>
    %c0_80 = arith.constant 0 : index
    %c0_81 = arith.constant 0 : index
    %c0_82 = arith.constant 0 : index
    %c0_83 = arith.constant 0 : index
    %89 = vector.load %arg16[%c0_80, %c0_81, %c0_82, %c0_83] : memref<1x10x10x16xf32, #tpu.memory_space<vmem>>, vector<1x8x8x16xf32>
    %90 = vector.shape_cast %89 : vector<1x8x8x16xf32> to vector<64x16xf32>
    %c0_84 = arith.constant 0 : index
    %c0_85 = arith.constant 0 : index
    %c0_86 = arith.constant 0 : index
    %91 = vector.load %arg4[%c0_84, %c0_85, %c0_86] : memref<9x16x32xf32, #tpu.memory_space<vmem>>, vector<1x16x32xf32>
    %92 = vector.shape_cast %91 : vector<1x16x32xf32> to vector<16x32xf32>
    %cst_87 = arith.constant dense<0.000000e+00> : vector<64x32xf32>
    %93 = tpu.matmul %90, %92, %cst_87 {dimension_numbers = #tpu.dot_dimension_numbers<[1], [0], [0], [1], [0, 0, 1, 1], [], []>} : vector<64x16xf32>, vector<16x32xf32>, vector<64x32xf32> -> vector<64x32xf32>
    %94 = arith.addf %88, %93 : vector<64x32xf32>
    %c0_88 = arith.constant 0 : index
    %c0_89 = arith.constant 0 : index
    %c1_90 = arith.constant 1 : index
    %c0_91 = arith.constant 0 : index
    %95 = vector.load %arg16[%c0_88, %c0_89, %c1_90, %c0_91] : memref<1x10x10x16xf32, #tpu.memory_space<vmem>>, vector<1x8x8x16xf32>
    %96 = vector.shape_cast %95 : vector<1x8x8x16xf32> to vector<64x16xf32>
    %c1_92 = arith.constant 1 : index
    %c0_93 = arith.constant 0 : index
    %c0_94 = arith.constant 0 : index
    %97 = vector.load %arg4[%c1_92, %c0_93, %c0_94] : memref<9x16x32xf32, #tpu.memory_space<vmem>>, vector<1x16x32xf32>
    %98 = vector.shape_cast %97 : vector<1x16x32xf32> to vector<16x32xf32>
    %cst_95 = arith.constant dense<0.000000e+00> : vector<64x32xf32>
    %99 = tpu.matmul %96, %98, %cst_95 {dimension_numbers = #tpu.dot_dimension_numbers<[1], [0], [0], [1], [0, 0, 1, 1], [], []>} : vector<64x16xf32>, vector<16x32xf32>, vector<64x32xf32> -> vector<64x32xf32>
    %100 = arith.addf %94, %99 : vector<64x32xf32>
    %c0_96 = arith.constant 0 : index
    %c0_97 = arith.constant 0 : index
    %c2_98 = arith.constant 2 : index
    %c0_99 = arith.constant 0 : index
    %101 = vector.load %arg16[%c0_96, %c0_97, %c2_98, %c0_99] : memref<1x10x10x16xf32, #tpu.memory_space<vmem>>, vector<1x8x8x16xf32>
    %102 = vector.shape_cast %101 : vector<1x8x8x16xf32> to vector<64x16xf32>
    %c2_100 = arith.constant 2 : index
    %c0_101 = arith.constant 0 : index
    %c0_102 = arith.constant 0 : index
    %103 = vector.load %arg4[%c2_100, %c0_101, %c0_102] : memref<9x16x32xf32, #tpu.memory_space<vmem>>, vector<1x16x32xf32>
    %104 = vector.shape_cast %103 : vector<1x16x32xf32> to vector<16x32xf32>
    %cst_103 = arith.constant dense<0.000000e+00> : vector<64x32xf32>
    %105 = tpu.matmul %102, %104, %cst_103 {dimension_numbers = #tpu.dot_dimension_numbers<[1], [0], [0], [1], [0, 0, 1, 1], [], []>} : vector<64x16xf32>, vector<16x32xf32>, vector<64x32xf32> -> vector<64x32xf32>
    %106 = arith.addf %100, %105 : vector<64x32xf32>
    %c0_104 = arith.constant 0 : index
    %c1_105 = arith.constant 1 : index
    %c0_106 = arith.constant 0 : index
    %c0_107 = arith.constant 0 : index
    %107 = vector.load %arg16[%c0_104, %c1_105, %c0_106, %c0_107] : memref<1x10x10x16xf32, #tpu.memory_space<vmem>>, vector<1x8x8x16xf32>
    %108 = vector.shape_cast %107 : vector<1x8x8x16xf32> to vector<64x16xf32>
    %c3_108 = arith.constant 3 : index
    %c0_109 = arith.constant 0 : index
    %c0_110 = arith.constant 0 : index
    %109 = vector.load %arg4[%c3_108, %c0_109, %c0_110] : memref<9x16x32xf32, #tpu.memory_space<vmem>>, vector<1x16x32xf32>
    %110 = vector.shape_cast %109 : vector<1x16x32xf32> to vector<16x32xf32>
    %cst_111 = arith.constant dense<0.000000e+00> : vector<64x32xf32>
    %111 = tpu.matmul %108, %110, %cst_111 {dimension_numbers = #tpu.dot_dimension_numbers<[1], [0], [0], [1], [0, 0, 1, 1], [], []>} : vector<64x16xf32>, vector<16x32xf32>, vector<64x32xf32> -> vector<64x32xf32>
    %112 = arith.addf %106, %111 : vector<64x32xf32>
    %c0_112 = arith.constant 0 : index
    %c1_113 = arith.constant 1 : index
    %c1_114 = arith.constant 1 : index
    %c0_115 = arith.constant 0 : index
    %113 = vector.load %arg16[%c0_112, %c1_113, %c1_114, %c0_115] : memref<1x10x10x16xf32, #tpu.memory_space<vmem>>, vector<1x8x8x16xf32>
    %114 = vector.shape_cast %113 : vector<1x8x8x16xf32> to vector<64x16xf32>
    %c4_116 = arith.constant 4 : index
    %c0_117 = arith.constant 0 : index
    %c0_118 = arith.constant 0 : index
    %115 = vector.load %arg4[%c4_116, %c0_117, %c0_118] : memref<9x16x32xf32, #tpu.memory_space<vmem>>, vector<1x16x32xf32>
    %116 = vector.shape_cast %115 : vector<1x16x32xf32> to vector<16x32xf32>
    %cst_119 = arith.constant dense<0.000000e+00> : vector<64x32xf32>
    %117 = tpu.matmul %114, %116, %cst_119 {dimension_numbers = #tpu.dot_dimension_numbers<[1], [0], [0], [1], [0, 0, 1, 1], [], []>} : vector<64x16xf32>, vector<16x32xf32>, vector<64x32xf32> -> vector<64x32xf32>
    %118 = arith.addf %112, %117 : vector<64x32xf32>
    %c0_120 = arith.constant 0 : index
    %c1_121 = arith.constant 1 : index
    %c2_122 = arith.constant 2 : index
    %c0_123 = arith.constant 0 : index
    %119 = vector.load %arg16[%c0_120, %c1_121, %c2_122, %c0_123] : memref<1x10x10x16xf32, #tpu.memory_space<vmem>>, vector<1x8x8x16xf32>
    %120 = vector.shape_cast %119 : vector<1x8x8x16xf32> to vector<64x16xf32>
    %c5_124 = arith.constant 5 : index
    %c0_125 = arith.constant 0 : index
    %c0_126 = arith.constant 0 : index
    %121 = vector.load %arg4[%c5_124, %c0_125, %c0_126] : memref<9x16x32xf32, #tpu.memory_space<vmem>>, vector<1x16x32xf32>
    %122 = vector.shape_cast %121 : vector<1x16x32xf32> to vector<16x32xf32>
    %cst_127 = arith.constant dense<0.000000e+00> : vector<64x32xf32>
    %123 = tpu.matmul %120, %122, %cst_127 {dimension_numbers = #tpu.dot_dimension_numbers<[1], [0], [0], [1], [0, 0, 1, 1], [], []>} : vector<64x16xf32>, vector<16x32xf32>, vector<64x32xf32> -> vector<64x32xf32>
    %124 = arith.addf %118, %123 : vector<64x32xf32>
    %c0_128 = arith.constant 0 : index
    %c2_129 = arith.constant 2 : index
    %c0_130 = arith.constant 0 : index
    %c0_131 = arith.constant 0 : index
    %125 = vector.load %arg16[%c0_128, %c2_129, %c0_130, %c0_131] : memref<1x10x10x16xf32, #tpu.memory_space<vmem>>, vector<1x8x8x16xf32>
    %126 = vector.shape_cast %125 : vector<1x8x8x16xf32> to vector<64x16xf32>
    %c6_132 = arith.constant 6 : index
    %c0_133 = arith.constant 0 : index
    %c0_134 = arith.constant 0 : index
    %127 = vector.load %arg4[%c6_132, %c0_133, %c0_134] : memref<9x16x32xf32, #tpu.memory_space<vmem>>, vector<1x16x32xf32>
    %128 = vector.shape_cast %127 : vector<1x16x32xf32> to vector<16x32xf32>
    %cst_135 = arith.constant dense<0.000000e+00> : vector<64x32xf32>
    %129 = tpu.matmul %126, %128, %cst_135 {dimension_numbers = #tpu.dot_dimension_numbers<[1], [0], [0], [1], [0, 0, 1, 1], [], []>} : vector<64x16xf32>, vector<16x32xf32>, vector<64x32xf32> -> vector<64x32xf32>
    %130 = arith.addf %124, %129 : vector<64x32xf32>
    %c0_136 = arith.constant 0 : index
    %c2_137 = arith.constant 2 : index
    %c1_138 = arith.constant 1 : index
    %c0_139 = arith.constant 0 : index
    %131 = vector.load %arg16[%c0_136, %c2_137, %c1_138, %c0_139] : memref<1x10x10x16xf32, #tpu.memory_space<vmem>>, vector<1x8x8x16xf32>
    %132 = vector.shape_cast %131 : vector<1x8x8x16xf32> to vector<64x16xf32>
    %c7_140 = arith.constant 7 : index
    %c0_141 = arith.constant 0 : index
    %c0_142 = arith.constant 0 : index
    %133 = vector.load %arg4[%c7_140, %c0_141, %c0_142] : memref<9x16x32xf32, #tpu.memory_space<vmem>>, vector<1x16x32xf32>
    %134 = vector.shape_cast %133 : vector<1x16x32xf32> to vector<16x32xf32>
    %cst_143 = arith.constant dense<0.000000e+00> : vector<64x32xf32>
    %135 = tpu.matmul %132, %134, %cst_143 {dimension_numbers = #tpu.dot_dimension_numbers<[1], [0], [0], [1], [0, 0, 1, 1], [], []>} : vector<64x16xf32>, vector<16x32xf32>, vector<64x32xf32> -> vector<64x32xf32>
    %136 = arith.addf %130, %135 : vector<64x32xf32>
    %c0_144 = arith.constant 0 : index
    %c2_145 = arith.constant 2 : index
    %c2_146 = arith.constant 2 : index
    %c0_147 = arith.constant 0 : index
    %137 = vector.load %arg16[%c0_144, %c2_145, %c2_146, %c0_147] : memref<1x10x10x16xf32, #tpu.memory_space<vmem>>, vector<1x8x8x16xf32>
    %138 = vector.shape_cast %137 : vector<1x8x8x16xf32> to vector<64x16xf32>
    %c8_148 = arith.constant 8 : index
    %c0_149 = arith.constant 0 : index
    %c0_150 = arith.constant 0 : index
    %139 = vector.load %arg4[%c8_148, %c0_149, %c0_150] : memref<9x16x32xf32, #tpu.memory_space<vmem>>, vector<1x16x32xf32>
    %140 = vector.shape_cast %139 : vector<1x16x32xf32> to vector<16x32xf32>
    %cst_151 = arith.constant dense<0.000000e+00> : vector<64x32xf32>
    %141 = tpu.matmul %138, %140, %cst_151 {dimension_numbers = #tpu.dot_dimension_numbers<[1], [0], [0], [1], [0, 0, 1, 1], [], []>} : vector<64x16xf32>, vector<16x32xf32>, vector<64x32xf32> -> vector<64x32xf32>
    %142 = arith.addf %136, %141 : vector<64x32xf32>
    %c0_152 = arith.constant 0 : index
    %c0_153 = arith.constant 0 : index
    %143 = vector.load %arg5[%c0_152, %c0_153] : memref<1x32xf32, #tpu.memory_space<vmem>>, vector<1x32xf32>
    %144 = vector.broadcast %143 : vector<1x32xf32> to vector<64x32xf32>
    %145 = arith.addf %142, %144 : vector<64x32xf32>
    %cst_154 = arith.constant 0.000000e+00 : f32
    %146 = vector.broadcast %cst_154 : f32 to vector<64x32xf32>
    %147 = arith.maximumf %145, %146 : vector<64x32xf32>
    %148 = vector.shape_cast %147 : vector<64x32xf32> to vector<1x4x2x4x2x32xf32>
    %149 = vector.extract_strided_slice %148 {offsets = [0, 0, 0, 0, 0, 0], sizes = [1, 4, 1, 4, 1, 32], strides = [1, 1, 1, 1, 1, 1]} : vector<1x4x2x4x2x32xf32> to vector<1x4x1x4x1x32xf32>
    %150 = vector.shape_cast %149 : vector<1x4x1x4x1x32xf32> to vector<1x4x4x32xf32>
    %cst_155 = arith.constant 0.000000e+00 : f32
    %151 = vector.broadcast %cst_155 : f32 to vector<1x6x6x32xf32>
    %c0_156 = arith.constant 0 : index
    %c0_157 = arith.constant 0 : index
    %c0_158 = arith.constant 0 : index
    %c0_159 = arith.constant 0 : index
    %152 = vector.load %arg17[%c0_156, %c0_157, %c0_158, %c0_159] : memref<1x6x6x32xf32, #tpu.memory_space<vmem>>, vector<1x6x6x32xf32>
    tpu.vector_store %arg17[%c0_156, %c0_157, %c0_158, %c0_159], %151 {strides = array<i32>} : memref<1x6x6x32xf32, #tpu.memory_space<vmem>>, vector<1x6x6x32xf32>,
    %c0_160 = arith.constant 0 : index
    %c1_161 = arith.constant 1 : index
    %c1_162 = arith.constant 1 : index
    %c0_163 = arith.constant 0 : index
    %153 = vector.load %arg17[%c0_160, %c1_161, %c1_162, %c0_163] : memref<1x6x6x32xf32, #tpu.memory_space<vmem>>, vector<1x4x4x32xf32>
    tpu.vector_store %arg17[%c0_160, %c1_161, %c1_162, %c0_163], %150 {strides = array<i32>} : memref<1x6x6x32xf32, #tpu.memory_space<vmem>>, vector<1x4x4x32xf32>,
    %cst_164 = arith.constant 0.000000e+00 : f32
    %154 = vector.broadcast %cst_164 : f32 to vector<16x64xf32>
    %c0_165 = arith.constant 0 : index
    %c0_166 = arith.constant 0 : index
    %c0_167 = arith.constant 0 : index
    %c0_168 = arith.constant 0 : index
    %155 = vector.load %arg17[%c0_165, %c0_166, %c0_167, %c0_168] : memref<1x6x6x32xf32, #tpu.memory_space<vmem>>, vector<1x4x4x32xf32>
    %156 = vector.shape_cast %155 : vector<1x4x4x32xf32> to vector<16x32xf32>
    %c0_169 = arith.constant 0 : index
    %c0_170 = arith.constant 0 : index
    %c0_171 = arith.constant 0 : index
    %157 = vector.load %arg6[%c0_169, %c0_170, %c0_171] : memref<9x32x64xf32, #tpu.memory_space<vmem>>, vector<1x32x64xf32>
    %158 = vector.shape_cast %157 : vector<1x32x64xf32> to vector<32x64xf32>
    %cst_172 = arith.constant dense<0.000000e+00> : vector<16x64xf32>
    %159 = tpu.matmul %156, %158, %cst_172 {dimension_numbers = #tpu.dot_dimension_numbers<[1], [0], [0], [1], [0, 0, 1, 1], [], []>} : vector<16x32xf32>, vector<32x64xf32>, vector<16x64xf32> -> vector<16x64xf32>
    %160 = arith.addf %154, %159 : vector<16x64xf32>
    %c0_173 = arith.constant 0 : index
    %c0_174 = arith.constant 0 : index
    %c1_175 = arith.constant 1 : index
    %c0_176 = arith.constant 0 : index
    %161 = vector.load %arg17[%c0_173, %c0_174, %c1_175, %c0_176] : memref<1x6x6x32xf32, #tpu.memory_space<vmem>>, vector<1x4x4x32xf32>
    %162 = vector.shape_cast %161 : vector<1x4x4x32xf32> to vector<16x32xf32>
    %c1_177 = arith.constant 1 : index
    %c0_178 = arith.constant 0 : index
    %c0_179 = arith.constant 0 : index
    %163 = vector.load %arg6[%c1_177, %c0_178, %c0_179] : memref<9x32x64xf32, #tpu.memory_space<vmem>>, vector<1x32x64xf32>
    %164 = vector.shape_cast %163 : vector<1x32x64xf32> to vector<32x64xf32>
    %cst_180 = arith.constant dense<0.000000e+00> : vector<16x64xf32>
    %165 = tpu.matmul %162, %164, %cst_180 {dimension_numbers = #tpu.dot_dimension_numbers<[1], [0], [0], [1], [0, 0, 1, 1], [], []>} : vector<16x32xf32>, vector<32x64xf32>, vector<16x64xf32> -> vector<16x64xf32>
    %166 = arith.addf %160, %165 : vector<16x64xf32>
    %c0_181 = arith.constant 0 : index
    %c0_182 = arith.constant 0 : index
    %c2_183 = arith.constant 2 : index
    %c0_184 = arith.constant 0 : index
    %167 = vector.load %arg17[%c0_181, %c0_182, %c2_183, %c0_184] : memref<1x6x6x32xf32, #tpu.memory_space<vmem>>, vector<1x4x4x32xf32>
    %168 = vector.shape_cast %167 : vector<1x4x4x32xf32> to vector<16x32xf32>
    %c2_185 = arith.constant 2 : index
    %c0_186 = arith.constant 0 : index
    %c0_187 = arith.constant 0 : index
    %169 = vector.load %arg6[%c2_185, %c0_186, %c0_187] : memref<9x32x64xf32, #tpu.memory_space<vmem>>, vector<1x32x64xf32>
    %170 = vector.shape_cast %169 : vector<1x32x64xf32> to vector<32x64xf32>
    %cst_188 = arith.constant dense<0.000000e+00> : vector<16x64xf32>
    %171 = tpu.matmul %168, %170, %cst_188 {dimension_numbers = #tpu.dot_dimension_numbers<[1], [0], [0], [1], [0, 0, 1, 1], [], []>} : vector<16x32xf32>, vector<32x64xf32>, vector<16x64xf32> -> vector<16x64xf32>
    %172 = arith.addf %166, %171 : vector<16x64xf32>
    %c0_189 = arith.constant 0 : index
    %c1_190 = arith.constant 1 : index
    %c0_191 = arith.constant 0 : index
    %c0_192 = arith.constant 0 : index
    %173 = vector.load %arg17[%c0_189, %c1_190, %c0_191, %c0_192] : memref<1x6x6x32xf32, #tpu.memory_space<vmem>>, vector<1x4x4x32xf32>
    %174 = vector.shape_cast %173 : vector<1x4x4x32xf32> to vector<16x32xf32>
    %c3_193 = arith.constant 3 : index
    %c0_194 = arith.constant 0 : index
    %c0_195 = arith.constant 0 : index
    %175 = vector.load %arg6[%c3_193, %c0_194, %c0_195] : memref<9x32x64xf32, #tpu.memory_space<vmem>>, vector<1x32x64xf32>
    %176 = vector.shape_cast %175 : vector<1x32x64xf32> to vector<32x64xf32>
    %cst_196 = arith.constant dense<0.000000e+00> : vector<16x64xf32>
    %177 = tpu.matmul %174, %176, %cst_196 {dimension_numbers = #tpu.dot_dimension_numbers<[1], [0], [0], [1], [0, 0, 1, 1], [], []>} : vector<16x32xf32>, vector<32x64xf32>, vector<16x64xf32> -> vector<16x64xf32>
    %178 = arith.addf %172, %177 : vector<16x64xf32>
    %c0_197 = arith.constant 0 : index
    %c1_198 = arith.constant 1 : index
    %c1_199 = arith.constant 1 : index
    %c0_200 = arith.constant 0 : index
    %179 = vector.load %arg17[%c0_197, %c1_198, %c1_199, %c0_200] : memref<1x6x6x32xf32, #tpu.memory_space<vmem>>, vector<1x4x4x32xf32>
    %180 = vector.shape_cast %179 : vector<1x4x4x32xf32> to vector<16x32xf32>
    %c4_201 = arith.constant 4 : index
    %c0_202 = arith.constant 0 : index
    %c0_203 = arith.constant 0 : index
    %181 = vector.load %arg6[%c4_201, %c0_202, %c0_203] : memref<9x32x64xf32, #tpu.memory_space<vmem>>, vector<1x32x64xf32>
    %182 = vector.shape_cast %181 : vector<1x32x64xf32> to vector<32x64xf32>
    %cst_204 = arith.constant dense<0.000000e+00> : vector<16x64xf32>
    %183 = tpu.matmul %180, %182, %cst_204 {dimension_numbers = #tpu.dot_dimension_numbers<[1], [0], [0], [1], [0, 0, 1, 1], [], []>} : vector<16x32xf32>, vector<32x64xf32>, vector<16x64xf32> -> vector<16x64xf32>
    %184 = arith.addf %178, %183 : vector<16x64xf32>
    %c0_205 = arith.constant 0 : index
    %c1_206 = arith.constant 1 : index
    %c2_207 = arith.constant 2 : index
    %c0_208 = arith.constant 0 : index
    %185 = vector.load %arg17[%c0_205, %c1_206, %c2_207, %c0_208] : memref<1x6x6x32xf32, #tpu.memory_space<vmem>>, vector<1x4x4x32xf32>
    %186 = vector.shape_cast %185 : vector<1x4x4x32xf32> to vector<16x32xf32>
    %c5_209 = arith.constant 5 : index
    %c0_210 = arith.constant 0 : index
    %c0_211 = arith.constant 0 : index
    %187 = vector.load %arg6[%c5_209, %c0_210, %c0_211] : memref<9x32x64xf32, #tpu.memory_space<vmem>>, vector<1x32x64xf32>
    %188 = vector.shape_cast %187 : vector<1x32x64xf32> to vector<32x64xf32>
    %cst_212 = arith.constant dense<0.000000e+00> : vector<16x64xf32>
    %189 = tpu.matmul %186, %188, %cst_212 {dimension_numbers = #tpu.dot_dimension_numbers<[1], [0], [0], [1], [0, 0, 1, 1], [], []>} : vector<16x32xf32>, vector<32x64xf32>, vector<16x64xf32> -> vector<16x64xf32>
    %190 = arith.addf %184, %189 : vector<16x64xf32>
    %c0_213 = arith.constant 0 : index
    %c2_214 = arith.constant 2 : index
    %c0_215 = arith.constant 0 : index
    %c0_216 = arith.constant 0 : index
    %191 = vector.load %arg17[%c0_213, %c2_214, %c0_215, %c0_216] : memref<1x6x6x32xf32, #tpu.memory_space<vmem>>, vector<1x4x4x32xf32>
    %192 = vector.shape_cast %191 : vector<1x4x4x32xf32> to vector<16x32xf32>
    %c6_217 = arith.constant 6 : index
    %c0_218 = arith.constant 0 : index
    %c0_219 = arith.constant 0 : index
    %193 = vector.load %arg6[%c6_217, %c0_218, %c0_219] : memref<9x32x64xf32, #tpu.memory_space<vmem>>, vector<1x32x64xf32>
    %194 = vector.shape_cast %193 : vector<1x32x64xf32> to vector<32x64xf32>
    %cst_220 = arith.constant dense<0.000000e+00> : vector<16x64xf32>
    %195 = tpu.matmul %192, %194, %cst_220 {dimension_numbers = #tpu.dot_dimension_numbers<[1], [0], [0], [1], [0, 0, 1, 1], [], []>} : vector<16x32xf32>, vector<32x64xf32>, vector<16x64xf32> -> vector<16x64xf32>
    %196 = arith.addf %190, %195 : vector<16x64xf32>
    %c0_221 = arith.constant 0 : index
    %c2_222 = arith.constant 2 : index
    %c1_223 = arith.constant 1 : index
    %c0_224 = arith.constant 0 : index
    %197 = vector.load %arg17[%c0_221, %c2_222, %c1_223, %c0_224] : memref<1x6x6x32xf32, #tpu.memory_space<vmem>>, vector<1x4x4x32xf32>
    %198 = vector.shape_cast %197 : vector<1x4x4x32xf32> to vector<16x32xf32>
    %c7_225 = arith.constant 7 : index
    %c0_226 = arith.constant 0 : index
    %c0_227 = arith.constant 0 : index
    %199 = vector.load %arg6[%c7_225, %c0_226, %c0_227] : memref<9x32x64xf32, #tpu.memory_space<vmem>>, vector<1x32x64xf32>
    %200 = vector.shape_cast %199 : vector<1x32x64xf32> to vector<32x64xf32>
    %cst_228 = arith.constant dense<0.000000e+00> : vector<16x64xf32>
    %201 = tpu.matmul %198, %200, %cst_228 {dimension_numbers = #tpu.dot_dimension_numbers<[1], [0], [0], [1], [0, 0, 1, 1], [], []>} : vector<16x32xf32>, vector<32x64xf32>, vector<16x64xf32> -> vector<16x64xf32>
    %202 = arith.addf %196, %201 : vector<16x64xf32>
    %c0_229 = arith.constant 0 : index
    %c2_230 = arith.constant 2 : index
    %c2_231 = arith.constant 2 : index
    %c0_232 = arith.constant 0 : index
    %203 = vector.load %arg17[%c0_229, %c2_230, %c2_231, %c0_232] : memref<1x6x6x32xf32, #tpu.memory_space<vmem>>, vector<1x4x4x32xf32>
    %204 = vector.shape_cast %203 : vector<1x4x4x32xf32> to vector<16x32xf32>
    %c8_233 = arith.constant 8 : index
    %c0_234 = arith.constant 0 : index
    %c0_235 = arith.constant 0 : index
    %205 = vector.load %arg6[%c8_233, %c0_234, %c0_235] : memref<9x32x64xf32, #tpu.memory_space<vmem>>, vector<1x32x64xf32>
    %206 = vector.shape_cast %205 : vector<1x32x64xf32> to vector<32x64xf32>
    %cst_236 = arith.constant dense<0.000000e+00> : vector<16x64xf32>
    %207 = tpu.matmul %204, %206, %cst_236 {dimension_numbers = #tpu.dot_dimension_numbers<[1], [0], [0], [1], [0, 0, 1, 1], [], []>} : vector<16x32xf32>, vector<32x64xf32>, vector<16x64xf32> -> vector<16x64xf32>
    %208 = arith.addf %202, %207 : vector<16x64xf32>
    %c0_237 = arith.constant 0 : index
    %c0_238 = arith.constant 0 : index
    %209 = vector.load %arg7[%c0_237, %c0_238] : memref<1x64xf32, #tpu.memory_space<vmem>>, vector<1x64xf32>
    %210 = vector.broadcast %209 : vector<1x64xf32> to vector<16x64xf32>
    %211 = arith.addf %208, %210 : vector<16x64xf32>
    %cst_239 = arith.constant 0.000000e+00 : f32
    %212 = vector.broadcast %cst_239 : f32 to vector<16x64xf32>
    %213 = arith.maximumf %211, %212 : vector<16x64xf32>
    %214 = vector.shape_cast %213 : vector<16x64xf32> to vector<1x2x2x2x2x64xf32>
    %215 = vector.extract_strided_slice %214 {offsets = [0, 0, 0, 0, 0, 0], sizes = [1, 2, 1, 2, 1, 64], strides = [1, 1, 1, 1, 1, 1]} : vector<1x2x2x2x2x64xf32> to vector<1x2x1x2x1x64xf32>
    %216 = vector.shape_cast %215 : vector<1x2x1x2x1x64xf32> to vector<1x2x2x64xf32>
    %cst_240 = arith.constant 0.000000e+00 : f32
    %217 = vector.broadcast %cst_240 : f32 to vector<1x3x3x64xf32>
    %c0_241 = arith.constant 0 : index
    %c0_242 = arith.constant 0 : index
    %c0_243 = arith.constant 0 : index
    %c0_244 = arith.constant 0 : index
    %218 = vector.load %arg18[%c0_241, %c0_242, %c0_243, %c0_244] : memref<1x3x3x64xf32, #tpu.memory_space<vmem>>, vector<1x3x3x64xf32>
    tpu.vector_store %arg18[%c0_241, %c0_242, %c0_243, %c0_244], %217 {strides = array<i32>} : memref<1x3x3x64xf32, #tpu.memory_space<vmem>>, vector<1x3x3x64xf32>,
    %c0_245 = arith.constant 0 : index
    %c0_246 = arith.constant 0 : index
    %c0_247 = arith.constant 0 : index
    %c0_248 = arith.constant 0 : index
    %219 = vector.load %arg18[%c0_245, %c0_246, %c0_247, %c0_248] : memref<1x3x3x64xf32, #tpu.memory_space<vmem>>, vector<1x2x2x64xf32>
    tpu.vector_store %arg18[%c0_245, %c0_246, %c0_247, %c0_248], %216 {strides = array<i32>} : memref<1x3x3x64xf32, #tpu.memory_space<vmem>>, vector<1x2x2x64xf32>,
    %cst_249 = arith.constant 0.000000e+00 : f32
    %220 = vector.broadcast %cst_249 : f32 to vector<4x32xf32>
    %c0_250 = arith.constant 0 : index
    %c0_251 = arith.constant 0 : index
    %c0_252 = arith.constant 0 : index
    %c0_253 = arith.constant 0 : index
    %221 = vector.load %arg18[%c0_250, %c0_251, %c0_252, %c0_253] : memref<1x3x3x64xf32, #tpu.memory_space<vmem>>, vector<1x2x2x64xf32>
    %222 = vector.shape_cast %221 : vector<1x2x2x64xf32> to vector<4x64xf32>
    %c0_254 = arith.constant 0 : index
    %c0_255 = arith.constant 0 : index
    %c0_256 = arith.constant 0 : index
    %c0_257 = arith.constant 0 : index
    %c0_258 = arith.constant 0 : index
    %c0_259 = arith.constant 0 : index
    %223 = vector.load %arg8[%c0_254, %c0_255, %c0_256, %c0_257, %c0_258, %c0_259] : memref<2x2x2x2x64x32xf32, #tpu.memory_space<vmem>>, vector<1x1x1x1x64x32xf32>
    %224 = vector.shape_cast %223 : vector<1x1x1x1x64x32xf32> to vector<64x32xf32>
    %cst_260 = arith.constant dense<0.000000e+00> : vector<4x32xf32>
    %225 = tpu.matmul %222, %224, %cst_260 {dimension_numbers = #tpu.dot_dimension_numbers<[1], [0], [0], [1], [0, 0, 1, 1], [], []>} : vector<4x64xf32>, vector<64x32xf32>, vector<4x32xf32> -> vector<4x32xf32>
    %226 = arith.addf %220, %225 : vector<4x32xf32>
    %c0_261 = arith.constant 0 : index
    %c0_262 = arith.constant 0 : index
    %227 = vector.load %arg9[%c0_261, %c0_262] : memref<1x32xf32, #tpu.memory_space<vmem>>, vector<1x32xf32>
    %228 = vector.broadcast %227 : vector<1x32xf32> to vector<4x32xf32>
    %229 = arith.addf %226, %228 : vector<4x32xf32>
    %cst_263 = arith.constant 0.000000e+00 : f32
    %230 = vector.broadcast %cst_263 : f32 to vector<4x32xf32>
    %231 = arith.maximumf %229, %230 : vector<4x32xf32>
    %232 = vector.shape_cast %231 : vector<4x32xf32> to vector<1x2x2x32xf32>
    %c0_264 = arith.constant 0 : index
    %c0_265 = arith.constant 0 : index
    %c0_266 = arith.constant 0 : index
    %c0_267 = arith.constant 0 : index
    %c0_268 = arith.constant 0 : index
    %c0_269 = arith.constant 0 : index
    %233 = vector.load %arg21[%c0_264, %c0_265, %c0_266, %c0_267, %c0_268, %c0_269] : memref<1x2x2x2x2x32xf32, #tpu.memory_space<vmem>>, vector<1x2x1x2x1x32xf32>
    %234 = vector.shape_cast %233 : vector<1x2x1x2x1x32xf32> to vector<1x2x2x32xf32>
    %235 = vector.shape_cast %232 : vector<1x2x2x32xf32> to vector<1x2x1x2x1x32xf32>
    tpu.vector_store %arg21[%c0_264, %c0_265, %c0_266, %c0_267, %c0_268, %c0_269], %235 {strides = array<i32>} : memref<1x2x2x2x2x32xf32, #tpu.memory_space<vmem>>, vector<1x2x1x2x1x32xf32>,
    %cst_270 = arith.constant 0.000000e+00 : f32
    %236 = vector.broadcast %cst_270 : f32 to vector<4x32xf32>
    %c0_271 = arith.constant 0 : index
    %c0_272 = arith.constant 0 : index
    %c0_273 = arith.constant 0 : index
    %c0_274 = arith.constant 0 : index
    %237 = vector.load %arg18[%c0_271, %c0_272, %c0_273, %c0_274] : memref<1x3x3x64xf32, #tpu.memory_space<vmem>>, vector<1x2x2x64xf32>
    %238 = vector.shape_cast %237 : vector<1x2x2x64xf32> to vector<4x64xf32>
    %c0_275 = arith.constant 0 : index
    %c1_276 = arith.constant 1 : index
    %c0_277 = arith.constant 0 : index
    %c0_278 = arith.constant 0 : index
    %c0_279 = arith.constant 0 : index
    %c0_280 = arith.constant 0 : index
    %239 = vector.load %arg8[%c0_275, %c1_276, %c0_277, %c0_278, %c0_279, %c0_280] : memref<2x2x2x2x64x32xf32, #tpu.memory_space<vmem>>, vector<1x1x1x1x64x32xf32>
    %240 = vector.shape_cast %239 : vector<1x1x1x1x64x32xf32> to vector<64x32xf32>
    %cst_281 = arith.constant dense<0.000000e+00> : vector<4x32xf32>
    %241 = tpu.matmul %238, %240, %cst_281 {dimension_numbers = #tpu.dot_dimension_numbers<[1], [0], [0], [1], [0, 0, 1, 1], [], []>} : vector<4x64xf32>, vector<64x32xf32>, vector<4x32xf32> -> vector<4x32xf32>
    %242 = arith.addf %236, %241 : vector<4x32xf32>
    %c0_282 = arith.constant 0 : index
    %c0_283 = arith.constant 0 : index
    %c1_284 = arith.constant 1 : index
    %c0_285 = arith.constant 0 : index
    %243 = vector.load %arg18[%c0_282, %c0_283, %c1_284, %c0_285] : memref<1x3x3x64xf32, #tpu.memory_space<vmem>>, vector<1x2x2x64xf32>
    %244 = vector.shape_cast %243 : vector<1x2x2x64xf32> to vector<4x64xf32>
    %c0_286 = arith.constant 0 : index
    %c1_287 = arith.constant 1 : index
    %c0_288 = arith.constant 0 : index
    %c1_289 = arith.constant 1 : index
    %c0_290 = arith.constant 0 : index
    %c0_291 = arith.constant 0 : index
    %245 = vector.load %arg8[%c0_286, %c1_287, %c0_288, %c1_289, %c0_290, %c0_291] : memref<2x2x2x2x64x32xf32, #tpu.memory_space<vmem>>, vector<1x1x1x1x64x32xf32>
    %246 = vector.shape_cast %245 : vector<1x1x1x1x64x32xf32> to vector<64x32xf32>
    %cst_292 = arith.constant dense<0.000000e+00> : vector<4x32xf32>
    %247 = tpu.matmul %244, %246, %cst_292 {dimension_numbers = #tpu.dot_dimension_numbers<[1], [0], [0], [1], [0, 0, 1, 1], [], []>} : vector<4x64xf32>, vector<64x32xf32>, vector<4x32xf32> -> vector<4x32xf32>
    %248 = arith.addf %242, %247 : vector<4x32xf32>
    %c0_293 = arith.constant 0 : index
    %c0_294 = arith.constant 0 : index
    %249 = vector.load %arg9[%c0_293, %c0_294] : memref<1x32xf32, #tpu.memory_space<vmem>>, vector<1x32xf32>
    %250 = vector.broadcast %249 : vector<1x32xf32> to vector<4x32xf32>
    %251 = arith.addf %248, %250 : vector<4x32xf32>
    %cst_295 = arith.constant 0.000000e+00 : f32
    %252 = vector.broadcast %cst_295 : f32 to vector<4x32xf32>
    %253 = arith.maximumf %251, %252 : vector<4x32xf32>
    %254 = vector.shape_cast %253 : vector<4x32xf32> to vector<1x2x2x32xf32>
    %c0_296 = arith.constant 0 : index
    %c0_297 = arith.constant 0 : index
    %c0_298 = arith.constant 0 : index
    %c0_299 = arith.constant 0 : index
    %c1_300 = arith.constant 1 : index
    %c0_301 = arith.constant 0 : index
    %255 = vector.load %arg21[%c0_296, %c0_297, %c0_298, %c0_299, %c1_300, %c0_301] : memref<1x2x2x2x2x32xf32, #tpu.memory_space<vmem>>, vector<1x2x1x2x1x32xf32>
    %256 = vector.shape_cast %255 : vector<1x2x1x2x1x32xf32> to vector<1x2x2x32xf32>
    %257 = vector.shape_cast %254 : vector<1x2x2x32xf32> to vector<1x2x1x2x1x32xf32>
    tpu.vector_store %arg21[%c0_296, %c0_297, %c0_298, %c0_299, %c1_300, %c0_301], %257 {strides = array<i32>} : memref<1x2x2x2x2x32xf32, #tpu.memory_space<vmem>>, vector<1x2x1x2x1x32xf32>,
    %cst_302 = arith.constant 0.000000e+00 : f32
    %258 = vector.broadcast %cst_302 : f32 to vector<4x32xf32>
    %c0_303 = arith.constant 0 : index
    %c0_304 = arith.constant 0 : index
    %c0_305 = arith.constant 0 : index
    %c0_306 = arith.constant 0 : index
    %259 = vector.load %arg18[%c0_303, %c0_304, %c0_305, %c0_306] : memref<1x3x3x64xf32, #tpu.memory_space<vmem>>, vector<1x2x2x64xf32>
    %260 = vector.shape_cast %259 : vector<1x2x2x64xf32> to vector<4x64xf32>
    %c1_307 = arith.constant 1 : index
    %c0_308 = arith.constant 0 : index
    %c0_309 = arith.constant 0 : index
    %c0_310 = arith.constant 0 : index
    %c0_311 = arith.constant 0 : index
    %c0_312 = arith.constant 0 : index
    %261 = vector.load %arg8[%c1_307, %c0_308, %c0_309, %c0_310, %c0_311, %c0_312] : memref<2x2x2x2x64x32xf32, #tpu.memory_space<vmem>>, vector<1x1x1x1x64x32xf32>
    %262 = vector.shape_cast %261 : vector<1x1x1x1x64x32xf32> to vector<64x32xf32>
    %cst_313 = arith.constant dense<0.000000e+00> : vector<4x32xf32>
    %263 = tpu.matmul %260, %262, %cst_313 {dimension_numbers = #tpu.dot_dimension_numbers<[1], [0], [0], [1], [0, 0, 1, 1], [], []>} : vector<4x64xf32>, vector<64x32xf32>, vector<4x32xf32> -> vector<4x32xf32>
    %264 = arith.addf %258, %263 : vector<4x32xf32>
    %c0_314 = arith.constant 0 : index
    %c1_315 = arith.constant 1 : index
    %c0_316 = arith.constant 0 : index
    %c0_317 = arith.constant 0 : index
    %265 = vector.load %arg18[%c0_314, %c1_315, %c0_316, %c0_317] : memref<1x3x3x64xf32, #tpu.memory_space<vmem>>, vector<1x2x2x64xf32>
    %266 = vector.shape_cast %265 : vector<1x2x2x64xf32> to vector<4x64xf32>
    %c1_318 = arith.constant 1 : index
    %c0_319 = arith.constant 0 : index
    %c1_320 = arith.constant 1 : index
    %c0_321 = arith.constant 0 : index
    %c0_322 = arith.constant 0 : index
    %c0_323 = arith.constant 0 : index
    %267 = vector.load %arg8[%c1_318, %c0_319, %c1_320, %c0_321, %c0_322, %c0_323] : memref<2x2x2x2x64x32xf32, #tpu.memory_space<vmem>>, vector<1x1x1x1x64x32xf32>
    %268 = vector.shape_cast %267 : vector<1x1x1x1x64x32xf32> to vector<64x32xf32>
    %cst_324 = arith.constant dense<0.000000e+00> : vector<4x32xf32>
    %269 = tpu.matmul %266, %268, %cst_324 {dimension_numbers = #tpu.dot_dimension_numbers<[1], [0], [0], [1], [0, 0, 1, 1], [], []>} : vector<4x64xf32>, vector<64x32xf32>, vector<4x32xf32> -> vector<4x32xf32>
    %270 = arith.addf %264, %269 : vector<4x32xf32>
    %c0_325 = arith.constant 0 : index
    %c0_326 = arith.constant 0 : index
    %271 = vector.load %arg9[%c0_325, %c0_326] : memref<1x32xf32, #tpu.memory_space<vmem>>, vector<1x32xf32>
    %272 = vector.broadcast %271 : vector<1x32xf32> to vector<4x32xf32>
    %273 = arith.addf %270, %272 : vector<4x32xf32>
    %cst_327 = arith.constant 0.000000e+00 : f32
    %274 = vector.broadcast %cst_327 : f32 to vector<4x32xf32>
    %275 = arith.maximumf %273, %274 : vector<4x32xf32>
    %276 = vector.shape_cast %275 : vector<4x32xf32> to vector<1x2x2x32xf32>
    %c0_328 = arith.constant 0 : index
    %c0_329 = arith.constant 0 : index
    %c1_330 = arith.constant 1 : index
    %c0_331 = arith.constant 0 : index
    %c0_332 = arith.constant 0 : index
    %c0_333 = arith.constant 0 : index
    %277 = vector.load %arg21[%c0_328, %c0_329, %c1_330, %c0_331, %c0_332, %c0_333] : memref<1x2x2x2x2x32xf32, #tpu.memory_space<vmem>>, vector<1x2x1x2x1x32xf32>
    %278 = vector.shape_cast %277 : vector<1x2x1x2x1x32xf32> to vector<1x2x2x32xf32>
    %279 = vector.shape_cast %276 : vector<1x2x2x32xf32> to vector<1x2x1x2x1x32xf32>
    tpu.vector_store %arg21[%c0_328, %c0_329, %c1_330, %c0_331, %c0_332, %c0_333], %279 {strides = array<i32>} : memref<1x2x2x2x2x32xf32, #tpu.memory_space<vmem>>, vector<1x2x1x2x1x32xf32>,
    %cst_334 = arith.constant 0.000000e+00 : f32
    %280 = vector.broadcast %cst_334 : f32 to vector<4x32xf32>
    %c0_335 = arith.constant 0 : index
    %c0_336 = arith.constant 0 : index
    %c0_337 = arith.constant 0 : index
    %c0_338 = arith.constant 0 : index
    %281 = vector.load %arg18[%c0_335, %c0_336, %c0_337, %c0_338] : memref<1x3x3x64xf32, #tpu.memory_space<vmem>>, vector<1x2x2x64xf32>
    %282 = vector.shape_cast %281 : vector<1x2x2x64xf32> to vector<4x64xf32>
    %c1_339 = arith.constant 1 : index
    %c1_340 = arith.constant 1 : index
    %c0_341 = arith.constant 0 : index
    %c0_342 = arith.constant 0 : index
    %c0_343 = arith.constant 0 : index
    %c0_344 = arith.constant 0 : index
    %283 = vector.load %arg8[%c1_339, %c1_340, %c0_341, %c0_342, %c0_343, %c0_344] : memref<2x2x2x2x64x32xf32, #tpu.memory_space<vmem>>, vector<1x1x1x1x64x32xf32>
    %284 = vector.shape_cast %283 : vector<1x1x1x1x64x32xf32> to vector<64x32xf32>
    %cst_345 = arith.constant dense<0.000000e+00> : vector<4x32xf32>
    %285 = tpu.matmul %282, %284, %cst_345 {dimension_numbers = #tpu.dot_dimension_numbers<[1], [0], [0], [1], [0, 0, 1, 1], [], []>} : vector<4x64xf32>, vector<64x32xf32>, vector<4x32xf32> -> vector<4x32xf32>
    %286 = arith.addf %280, %285 : vector<4x32xf32>
    %c0_346 = arith.constant 0 : index
    %c0_347 = arith.constant 0 : index
    %c1_348 = arith.constant 1 : index
    %c0_349 = arith.constant 0 : index
    %287 = vector.load %arg18[%c0_346, %c0_347, %c1_348, %c0_349] : memref<1x3x3x64xf32, #tpu.memory_space<vmem>>, vector<1x2x2x64xf32>
    %288 = vector.shape_cast %287 : vector<1x2x2x64xf32> to vector<4x64xf32>
    %c1_350 = arith.constant 1 : index
    %c1_351 = arith.constant 1 : index
    %c0_352 = arith.constant 0 : index
    %c1_353 = arith.constant 1 : index
    %c0_354 = arith.constant 0 : index
    %c0_355 = arith.constant 0 : index
    %289 = vector.load %arg8[%c1_350, %c1_351, %c0_352, %c1_353, %c0_354, %c0_355] : memref<2x2x2x2x64x32xf32, #tpu.memory_space<vmem>>, vector<1x1x1x1x64x32xf32>
    %290 = vector.shape_cast %289 : vector<1x1x1x1x64x32xf32> to vector<64x32xf32>
    %cst_356 = arith.constant dense<0.000000e+00> : vector<4x32xf32>
    %291 = tpu.matmul %288, %290, %cst_356 {dimension_numbers = #tpu.dot_dimension_numbers<[1], [0], [0], [1], [0, 0, 1, 1], [], []>} : vector<4x64xf32>, vector<64x32xf32>, vector<4x32xf32> -> vector<4x32xf32>
    %292 = arith.addf %286, %291 : vector<4x32xf32>
    %c0_357 = arith.constant 0 : index
    %c1_358 = arith.constant 1 : index
    %c0_359 = arith.constant 0 : index
    %c0_360 = arith.constant 0 : index
    %293 = vector.load %arg18[%c0_357, %c1_358, %c0_359, %c0_360] : memref<1x3x3x64xf32, #tpu.memory_space<vmem>>, vector<1x2x2x64xf32>
    %294 = vector.shape_cast %293 : vector<1x2x2x64xf32> to vector<4x64xf32>
    %c1_361 = arith.constant 1 : index
    %c1_362 = arith.constant 1 : index
    %c1_363 = arith.constant 1 : index
    %c0_364 = arith.constant 0 : index
    %c0_365 = arith.constant 0 : index
    %c0_366 = arith.constant 0 : index
    %295 = vector.load %arg8[%c1_361, %c1_362, %c1_363, %c0_364, %c0_365, %c0_366] : memref<2x2x2x2x64x32xf32, #tpu.memory_space<vmem>>, vector<1x1x1x1x64x32xf32>
    %296 = vector.shape_cast %295 : vector<1x1x1x1x64x32xf32> to vector<64x32xf32>
    %cst_367 = arith.constant dense<0.000000e+00> : vector<4x32xf32>
    %297 = tpu.matmul %294, %296, %cst_367 {dimension_numbers = #tpu.dot_dimension_numbers<[1], [0], [0], [1], [0, 0, 1, 1], [], []>} : vector<4x64xf32>, vector<64x32xf32>, vector<4x32xf32> -> vector<4x32xf32>
    %298 = arith.addf %292, %297 : vector<4x32xf32>
    %c0_368 = arith.constant 0 : index
    %c1_369 = arith.constant 1 : index
    %c1_370 = arith.constant 1 : index
    %c0_371 = arith.constant 0 : index
    %299 = vector.load %arg18[%c0_368, %c1_369, %c1_370, %c0_371] : memref<1x3x3x64xf32, #tpu.memory_space<vmem>>, vector<1x2x2x64xf32>
    %300 = vector.shape_cast %299 : vector<1x2x2x64xf32> to vector<4x64xf32>
    %c1_372 = arith.constant 1 : index
    %c1_373 = arith.constant 1 : index
    %c1_374 = arith.constant 1 : index
    %c1_375 = arith.constant 1 : index
    %c0_376 = arith.constant 0 : index
    %c0_377 = arith.constant 0 : index
    %301 = vector.load %arg8[%c1_372, %c1_373, %c1_374, %c1_375, %c0_376, %c0_377] : memref<2x2x2x2x64x32xf32, #tpu.memory_space<vmem>>, vector<1x1x1x1x64x32xf32>
    %302 = vector.shape_cast %301 : vector<1x1x1x1x64x32xf32> to vector<64x32xf32>
    %cst_378 = arith.constant dense<0.000000e+00> : vector<4x32xf32>
    %303 = tpu.matmul %300, %302, %cst_378 {dimension_numbers = #tpu.dot_dimension_numbers<[1], [0], [0], [1], [0, 0, 1, 1], [], []>} : vector<4x64xf32>, vector<64x32xf32>, vector<4x32xf32> -> vector<4x32xf32>
    %304 = arith.addf %298, %303 : vector<4x32xf32>
    %c0_379 = arith.constant 0 : index
    %c0_380 = arith.constant 0 : index
    %305 = vector.load %arg9[%c0_379, %c0_380] : memref<1x32xf32, #tpu.memory_space<vmem>>, vector<1x32xf32>
    %306 = vector.broadcast %305 : vector<1x32xf32> to vector<4x32xf32>
    %307 = arith.addf %304, %306 : vector<4x32xf32>
    %cst_381 = arith.constant 0.000000e+00 : f32
    %308 = vector.broadcast %cst_381 : f32 to vector<4x32xf32>
    %309 = arith.maximumf %307, %308 : vector<4x32xf32>
    %310 = vector.shape_cast %309 : vector<4x32xf32> to vector<1x2x2x32xf32>
    %c0_382 = arith.constant 0 : index
    %c0_383 = arith.constant 0 : index
    %c1_384 = arith.constant 1 : index
    %c0_385 = arith.constant 0 : index
    %c1_386 = arith.constant 1 : index
    %c0_387 = arith.constant 0 : index
    %311 = vector.load %arg21[%c0_382, %c0_383, %c1_384, %c0_385, %c1_386, %c0_387] : memref<1x2x2x2x2x32xf32, #tpu.memory_space<vmem>>, vector<1x2x1x2x1x32xf32>
    %312 = vector.shape_cast %311 : vector<1x2x1x2x1x32xf32> to vector<1x2x2x32xf32>
    %313 = vector.shape_cast %310 : vector<1x2x2x32xf32> to vector<1x2x1x2x1x32xf32>
    tpu.vector_store %arg21[%c0_382, %c0_383, %c1_384, %c0_385, %c1_386, %c0_387], %313 {strides = array<i32>} : memref<1x2x2x2x2x32xf32, #tpu.memory_space<vmem>>, vector<1x2x1x2x1x32xf32>,
    %c0_388 = arith.constant 0 : index
    %c0_389 = arith.constant 0 : index
    %c0_390 = arith.constant 0 : index
    %c0_391 = arith.constant 0 : index
    %c0_392 = arith.constant 0 : index
    %c0_393 = arith.constant 0 : index
    %314 = vector.load %arg21[%c0_388, %c0_389, %c0_390, %c0_391, %c0_392, %c0_393] : memref<1x2x2x2x2x32xf32, #tpu.memory_space<vmem>>, vector<1x2x2x2x2x32xf32>
    %315 = vector.shape_cast %314 : vector<1x2x2x2x2x32xf32> to vector<1x4x4x32xf32>
    %cst_394 = arith.constant 0.000000e+00 : f32
    %316 = vector.broadcast %cst_394 : f32 to vector<1x5x5x32xf32>
    %c0_395 = arith.constant 0 : index
    %c0_396 = arith.constant 0 : index
    %c0_397 = arith.constant 0 : index
    %c0_398 = arith.constant 0 : index
    %317 = vector.load %arg19[%c0_395, %c0_396, %c0_397, %c0_398] : memref<1x5x5x32xf32, #tpu.memory_space<vmem>>, vector<1x5x5x32xf32>
    tpu.vector_store %arg19[%c0_395, %c0_396, %c0_397, %c0_398], %316 {strides = array<i32>} : memref<1x5x5x32xf32, #tpu.memory_space<vmem>>, vector<1x5x5x32xf32>,
    %c0_399 = arith.constant 0 : index
    %c0_400 = arith.constant 0 : index
    %c0_401 = arith.constant 0 : index
    %c0_402 = arith.constant 0 : index
    %318 = vector.load %arg19[%c0_399, %c0_400, %c0_401, %c0_402] : memref<1x5x5x32xf32, #tpu.memory_space<vmem>>, vector<1x4x4x32xf32>
    tpu.vector_store %arg19[%c0_399, %c0_400, %c0_401, %c0_402], %315 {strides = array<i32>} : memref<1x5x5x32xf32, #tpu.memory_space<vmem>>, vector<1x4x4x32xf32>,
    %cst_403 = arith.constant 0.000000e+00 : f32
    %319 = vector.broadcast %cst_403 : f32 to vector<16x16xf32>
    %c0_404 = arith.constant 0 : index
    %c0_405 = arith.constant 0 : index
    %c0_406 = arith.constant 0 : index
    %c0_407 = arith.constant 0 : index
    %320 = vector.load %arg19[%c0_404, %c0_405, %c0_406, %c0_407] : memref<1x5x5x32xf32, #tpu.memory_space<vmem>>, vector<1x4x4x32xf32>
    %321 = vector.shape_cast %320 : vector<1x4x4x32xf32> to vector<16x32xf32>
    %c0_408 = arith.constant 0 : index
    %c0_409 = arith.constant 0 : index
    %c0_410 = arith.constant 0 : index
    %c0_411 = arith.constant 0 : index
    %c0_412 = arith.constant 0 : index
    %c0_413 = arith.constant 0 : index
    %322 = vector.load %arg10[%c0_408, %c0_409, %c0_410, %c0_411, %c0_412, %c0_413] : memref<2x2x2x2x32x16xf32, #tpu.memory_space<vmem>>, vector<1x1x1x1x32x16xf32>
    %323 = vector.shape_cast %322 : vector<1x1x1x1x32x16xf32> to vector<32x16xf32>
    %cst_414 = arith.constant dense<0.000000e+00> : vector<16x16xf32>
    %324 = tpu.matmul %321, %323, %cst_414 {dimension_numbers = #tpu.dot_dimension_numbers<[1], [0], [0], [1], [0, 0, 1, 1], [], []>} : vector<16x32xf32>, vector<32x16xf32>, vector<16x16xf32> -> vector<16x16xf32>
    %325 = arith.addf %319, %324 : vector<16x16xf32>
    %c0_415 = arith.constant 0 : index
    %c0_416 = arith.constant 0 : index
    %326 = vector.load %arg11[%c0_415, %c0_416] : memref<1x16xf32, #tpu.memory_space<vmem>>, vector<1x16xf32>
    %327 = vector.broadcast %326 : vector<1x16xf32> to vector<16x16xf32>
    %328 = arith.addf %325, %327 : vector<16x16xf32>
    %cst_417 = arith.constant 0.000000e+00 : f32
    %329 = vector.broadcast %cst_417 : f32 to vector<16x16xf32>
    %330 = arith.maximumf %328, %329 : vector<16x16xf32>
    %331 = vector.shape_cast %330 : vector<16x16xf32> to vector<1x4x4x16xf32>
    %c0_418 = arith.constant 0 : index
    %c0_419 = arith.constant 0 : index
    %c0_420 = arith.constant 0 : index
    %c0_421 = arith.constant 0 : index
    %c0_422 = arith.constant 0 : index
    %c0_423 = arith.constant 0 : index
    %332 = vector.load %arg22[%c0_418, %c0_419, %c0_420, %c0_421, %c0_422, %c0_423] : memref<1x4x2x4x2x16xf32, #tpu.memory_space<vmem>>, vector<1x4x1x4x1x16xf32>
    %333 = vector.shape_cast %332 : vector<1x4x1x4x1x16xf32> to vector<1x4x4x16xf32>
    %334 = vector.shape_cast %331 : vector<1x4x4x16xf32> to vector<1x4x1x4x1x16xf32>
    tpu.vector_store %arg22[%c0_418, %c0_419, %c0_420, %c0_421, %c0_422, %c0_423], %334 {strides = array<i32>} : memref<1x4x2x4x2x16xf32, #tpu.memory_space<vmem>>, vector<1x4x1x4x1x16xf32>,
    %cst_424 = arith.constant 0.000000e+00 : f32
    %335 = vector.broadcast %cst_424 : f32 to vector<16x16xf32>
    %c0_425 = arith.constant 0 : index
    %c0_426 = arith.constant 0 : index
    %c0_427 = arith.constant 0 : index
    %c0_428 = arith.constant 0 : index
    %336 = vector.load %arg19[%c0_425, %c0_426, %c0_427, %c0_428] : memref<1x5x5x32xf32, #tpu.memory_space<vmem>>, vector<1x4x4x32xf32>
    %337 = vector.shape_cast %336 : vector<1x4x4x32xf32> to vector<16x32xf32>
    %c0_429 = arith.constant 0 : index
    %c1_430 = arith.constant 1 : index
    %c0_431 = arith.constant 0 : index
    %c0_432 = arith.constant 0 : index
    %c0_433 = arith.constant 0 : index
    %c0_434 = arith.constant 0 : index
    %338 = vector.load %arg10[%c0_429, %c1_430, %c0_431, %c0_432, %c0_433, %c0_434] : memref<2x2x2x2x32x16xf32, #tpu.memory_space<vmem>>, vector<1x1x1x1x32x16xf32>
    %339 = vector.shape_cast %338 : vector<1x1x1x1x32x16xf32> to vector<32x16xf32>
    %cst_435 = arith.constant dense<0.000000e+00> : vector<16x16xf32>
    %340 = tpu.matmul %337, %339, %cst_435 {dimension_numbers = #tpu.dot_dimension_numbers<[1], [0], [0], [1], [0, 0, 1, 1], [], []>} : vector<16x32xf32>, vector<32x16xf32>, vector<16x16xf32> -> vector<16x16xf32>
    %341 = arith.addf %335, %340 : vector<16x16xf32>
    %c0_436 = arith.constant 0 : index
    %c0_437 = arith.constant 0 : index
    %c1_438 = arith.constant 1 : index
    %c0_439 = arith.constant 0 : index
    %342 = vector.load %arg19[%c0_436, %c0_437, %c1_438, %c0_439] : memref<1x5x5x32xf32, #tpu.memory_space<vmem>>, vector<1x4x4x32xf32>
    %343 = vector.shape_cast %342 : vector<1x4x4x32xf32> to vector<16x32xf32>
    %c0_440 = arith.constant 0 : index
    %c1_441 = arith.constant 1 : index
    %c0_442 = arith.constant 0 : index
    %c1_443 = arith.constant 1 : index
    %c0_444 = arith.constant 0 : index
    %c0_445 = arith.constant 0 : index
    %344 = vector.load %arg10[%c0_440, %c1_441, %c0_442, %c1_443, %c0_444, %c0_445] : memref<2x2x2x2x32x16xf32, #tpu.memory_space<vmem>>, vector<1x1x1x1x32x16xf32>
    %345 = vector.shape_cast %344 : vector<1x1x1x1x32x16xf32> to vector<32x16xf32>
    %cst_446 = arith.constant dense<0.000000e+00> : vector<16x16xf32>
    %346 = tpu.matmul %343, %345, %cst_446 {dimension_numbers = #tpu.dot_dimension_numbers<[1], [0], [0], [1], [0, 0, 1, 1], [], []>} : vector<16x32xf32>, vector<32x16xf32>, vector<16x16xf32> -> vector<16x16xf32>
    %347 = arith.addf %341, %346 : vector<16x16xf32>
    %c0_447 = arith.constant 0 : index
    %c0_448 = arith.constant 0 : index
    %348 = vector.load %arg11[%c0_447, %c0_448] : memref<1x16xf32, #tpu.memory_space<vmem>>, vector<1x16xf32>
    %349 = vector.broadcast %348 : vector<1x16xf32> to vector<16x16xf32>
    %350 = arith.addf %347, %349 : vector<16x16xf32>
    %cst_449 = arith.constant 0.000000e+00 : f32
    %351 = vector.broadcast %cst_449 : f32 to vector<16x16xf32>
    %352 = arith.maximumf %350, %351 : vector<16x16xf32>
    %353 = vector.shape_cast %352 : vector<16x16xf32> to vector<1x4x4x16xf32>
    %c0_450 = arith.constant 0 : index
    %c0_451 = arith.constant 0 : index
    %c0_452 = arith.constant 0 : index
    %c0_453 = arith.constant 0 : index
    %c1_454 = arith.constant 1 : index
    %c0_455 = arith.constant 0 : index
    %354 = vector.load %arg22[%c0_450, %c0_451, %c0_452, %c0_453, %c1_454, %c0_455] : memref<1x4x2x4x2x16xf32, #tpu.memory_space<vmem>>, vector<1x4x1x4x1x16xf32>
    %355 = vector.shape_cast %354 : vector<1x4x1x4x1x16xf32> to vector<1x4x4x16xf32>
    %356 = vector.shape_cast %353 : vector<1x4x4x16xf32> to vector<1x4x1x4x1x16xf32>
    tpu.vector_store %arg22[%c0_450, %c0_451, %c0_452, %c0_453, %c1_454, %c0_455], %356 {strides = array<i32>} : memref<1x4x2x4x2x16xf32, #tpu.memory_space<vmem>>, vector<1x4x1x4x1x16xf32>,
    %cst_456 = arith.constant 0.000000e+00 : f32
    %357 = vector.broadcast %cst_456 : f32 to vector<16x16xf32>
    %c0_457 = arith.constant 0 : index
    %c0_458 = arith.constant 0 : index
    %c0_459 = arith.constant 0 : index
    %c0_460 = arith.constant 0 : index
    %358 = vector.load %arg19[%c0_457, %c0_458, %c0_459, %c0_460] : memref<1x5x5x32xf32, #tpu.memory_space<vmem>>, vector<1x4x4x32xf32>
    %359 = vector.shape_cast %358 : vector<1x4x4x32xf32> to vector<16x32xf32>
    %c1_461 = arith.constant 1 : index
    %c0_462 = arith.constant 0 : index
    %c0_463 = arith.constant 0 : index
    %c0_464 = arith.constant 0 : index
    %c0_465 = arith.constant 0 : index
    %c0_466 = arith.constant 0 : index
    %360 = vector.load %arg10[%c1_461, %c0_462, %c0_463, %c0_464, %c0_465, %c0_466] : memref<2x2x2x2x32x16xf32, #tpu.memory_space<vmem>>, vector<1x1x1x1x32x16xf32>
    %361 = vector.shape_cast %360 : vector<1x1x1x1x32x16xf32> to vector<32x16xf32>
    %cst_467 = arith.constant dense<0.000000e+00> : vector<16x16xf32>
    %362 = tpu.matmul %359, %361, %cst_467 {dimension_numbers = #tpu.dot_dimension_numbers<[1], [0], [0], [1], [0, 0, 1, 1], [], []>} : vector<16x32xf32>, vector<32x16xf32>, vector<16x16xf32> -> vector<16x16xf32>
    %363 = arith.addf %357, %362 : vector<16x16xf32>
    %c0_468 = arith.constant 0 : index
    %c1_469 = arith.constant 1 : index
    %c0_470 = arith.constant 0 : index
    %c0_471 = arith.constant 0 : index
    %364 = vector.load %arg19[%c0_468, %c1_469, %c0_470, %c0_471] : memref<1x5x5x32xf32, #tpu.memory_space<vmem>>, vector<1x4x4x32xf32>
    %365 = vector.shape_cast %364 : vector<1x4x4x32xf32> to vector<16x32xf32>
    %c1_472 = arith.constant 1 : index
    %c0_473 = arith.constant 0 : index
    %c1_474 = arith.constant 1 : index
    %c0_475 = arith.constant 0 : index
    %c0_476 = arith.constant 0 : index
    %c0_477 = arith.constant 0 : index
    %366 = vector.load %arg10[%c1_472, %c0_473, %c1_474, %c0_475, %c0_476, %c0_477] : memref<2x2x2x2x32x16xf32, #tpu.memory_space<vmem>>, vector<1x1x1x1x32x16xf32>
    %367 = vector.shape_cast %366 : vector<1x1x1x1x32x16xf32> to vector<32x16xf32>
    %cst_478 = arith.constant dense<0.000000e+00> : vector<16x16xf32>
    %368 = tpu.matmul %365, %367, %cst_478 {dimension_numbers = #tpu.dot_dimension_numbers<[1], [0], [0], [1], [0, 0, 1, 1], [], []>} : vector<16x32xf32>, vector<32x16xf32>, vector<16x16xf32> -> vector<16x16xf32>
    %369 = arith.addf %363, %368 : vector<16x16xf32>
    %c0_479 = arith.constant 0 : index
    %c0_480 = arith.constant 0 : index
    %370 = vector.load %arg11[%c0_479, %c0_480] : memref<1x16xf32, #tpu.memory_space<vmem>>, vector<1x16xf32>
    %371 = vector.broadcast %370 : vector<1x16xf32> to vector<16x16xf32>
    %372 = arith.addf %369, %371 : vector<16x16xf32>
    %cst_481 = arith.constant 0.000000e+00 : f32
    %373 = vector.broadcast %cst_481 : f32 to vector<16x16xf32>
    %374 = arith.maximumf %372, %373 : vector<16x16xf32>
    %375 = vector.shape_cast %374 : vector<16x16xf32> to vector<1x4x4x16xf32>
    %c0_482 = arith.constant 0 : index
    %c0_483 = arith.constant 0 : index
    %c1_484 = arith.constant 1 : index
    %c0_485 = arith.constant 0 : index
    %c0_486 = arith.constant 0 : index
    %c0_487 = arith.constant 0 : index
    %376 = vector.load %arg22[%c0_482, %c0_483, %c1_484, %c0_485, %c0_486, %c0_487] : memref<1x4x2x4x2x16xf32, #tpu.memory_space<vmem>>, vector<1x4x1x4x1x16xf32>
    %377 = vector.shape_cast %376 : vector<1x4x1x4x1x16xf32> to vector<1x4x4x16xf32>
    %378 = vector.shape_cast %375 : vector<1x4x4x16xf32> to vector<1x4x1x4x1x16xf32>
    tpu.vector_store %arg22[%c0_482, %c0_483, %c1_484, %c0_485, %c0_486, %c0_487], %378 {strides = array<i32>} : memref<1x4x2x4x2x16xf32, #tpu.memory_space<vmem>>, vector<1x4x1x4x1x16xf32>,
    %cst_488 = arith.constant 0.000000e+00 : f32
    %379 = vector.broadcast %cst_488 : f32 to vector<16x16xf32>
    %c0_489 = arith.constant 0 : index
    %c0_490 = arith.constant 0 : index
    %c0_491 = arith.constant 0 : index
    %c0_492 = arith.constant 0 : index
    %380 = vector.load %arg19[%c0_489, %c0_490, %c0_491, %c0_492] : memref<1x5x5x32xf32, #tpu.memory_space<vmem>>, vector<1x4x4x32xf32>
    %381 = vector.shape_cast %380 : vector<1x4x4x32xf32> to vector<16x32xf32>
    %c1_493 = arith.constant 1 : index
    %c1_494 = arith.constant 1 : index
    %c0_495 = arith.constant 0 : index
    %c0_496 = arith.constant 0 : index
    %c0_497 = arith.constant 0 : index
    %c0_498 = arith.constant 0 : index
    %382 = vector.load %arg10[%c1_493, %c1_494, %c0_495, %c0_496, %c0_497, %c0_498] : memref<2x2x2x2x32x16xf32, #tpu.memory_space<vmem>>, vector<1x1x1x1x32x16xf32>
    %383 = vector.shape_cast %382 : vector<1x1x1x1x32x16xf32> to vector<32x16xf32>
    %cst_499 = arith.constant dense<0.000000e+00> : vector<16x16xf32>
    %384 = tpu.matmul %381, %383, %cst_499 {dimension_numbers = #tpu.dot_dimension_numbers<[1], [0], [0], [1], [0, 0, 1, 1], [], []>} : vector<16x32xf32>, vector<32x16xf32>, vector<16x16xf32> -> vector<16x16xf32>
    %385 = arith.addf %379, %384 : vector<16x16xf32>
    %c0_500 = arith.constant 0 : index
    %c0_501 = arith.constant 0 : index
    %c1_502 = arith.constant 1 : index
    %c0_503 = arith.constant 0 : index
    %386 = vector.load %arg19[%c0_500, %c0_501, %c1_502, %c0_503] : memref<1x5x5x32xf32, #tpu.memory_space<vmem>>, vector<1x4x4x32xf32>
    %387 = vector.shape_cast %386 : vector<1x4x4x32xf32> to vector<16x32xf32>
    %c1_504 = arith.constant 1 : index
    %c1_505 = arith.constant 1 : index
    %c0_506 = arith.constant 0 : index
    %c1_507 = arith.constant 1 : index
    %c0_508 = arith.constant 0 : index
    %c0_509 = arith.constant 0 : index
    %388 = vector.load %arg10[%c1_504, %c1_505, %c0_506, %c1_507, %c0_508, %c0_509] : memref<2x2x2x2x32x16xf32, #tpu.memory_space<vmem>>, vector<1x1x1x1x32x16xf32>
    %389 = vector.shape_cast %388 : vector<1x1x1x1x32x16xf32> to vector<32x16xf32>
    %cst_510 = arith.constant dense<0.000000e+00> : vector<16x16xf32>
    %390 = tpu.matmul %387, %389, %cst_510 {dimension_numbers = #tpu.dot_dimension_numbers<[1], [0], [0], [1], [0, 0, 1, 1], [], []>} : vector<16x32xf32>, vector<32x16xf32>, vector<16x16xf32> -> vector<16x16xf32>
    %391 = arith.addf %385, %390 : vector<16x16xf32>
    %c0_511 = arith.constant 0 : index
    %c1_512 = arith.constant 1 : index
    %c0_513 = arith.constant 0 : index
    %c0_514 = arith.constant 0 : index
    %392 = vector.load %arg19[%c0_511, %c1_512, %c0_513, %c0_514] : memref<1x5x5x32xf32, #tpu.memory_space<vmem>>, vector<1x4x4x32xf32>
    %393 = vector.shape_cast %392 : vector<1x4x4x32xf32> to vector<16x32xf32>
    %c1_515 = arith.constant 1 : index
    %c1_516 = arith.constant 1 : index
    %c1_517 = arith.constant 1 : index
    %c0_518 = arith.constant 0 : index
    %c0_519 = arith.constant 0 : index
    %c0_520 = arith.constant 0 : index
    %394 = vector.load %arg10[%c1_515, %c1_516, %c1_517, %c0_518, %c0_519, %c0_520] : memref<2x2x2x2x32x16xf32, #tpu.memory_space<vmem>>, vector<1x1x1x1x32x16xf32>
    %395 = vector.shape_cast %394 : vector<1x1x1x1x32x16xf32> to vector<32x16xf32>
    %cst_521 = arith.constant dense<0.000000e+00> : vector<16x16xf32>
    %396 = tpu.matmul %393, %395, %cst_521 {dimension_numbers = #tpu.dot_dimension_numbers<[1], [0], [0], [1], [0, 0, 1, 1], [], []>} : vector<16x32xf32>, vector<32x16xf32>, vector<16x16xf32> -> vector<16x16xf32>
    %397 = arith.addf %391, %396 : vector<16x16xf32>
    %c0_522 = arith.constant 0 : index
    %c1_523 = arith.constant 1 : index
    %c1_524 = arith.constant 1 : index
    %c0_525 = arith.constant 0 : index
    %398 = vector.load %arg19[%c0_522, %c1_523, %c1_524, %c0_525] : memref<1x5x5x32xf32, #tpu.memory_space<vmem>>, vector<1x4x4x32xf32>
    %399 = vector.shape_cast %398 : vector<1x4x4x32xf32> to vector<16x32xf32>
    %c1_526 = arith.constant 1 : index
    %c1_527 = arith.constant 1 : index
    %c1_528 = arith.constant 1 : index
    %c1_529 = arith.constant 1 : index
    %c0_530 = arith.constant 0 : index
    %c0_531 = arith.constant 0 : index
    %400 = vector.load %arg10[%c1_526, %c1_527, %c1_528, %c1_529, %c0_530, %c0_531] : memref<2x2x2x2x32x16xf32, #tpu.memory_space<vmem>>, vector<1x1x1x1x32x16xf32>
    %401 = vector.shape_cast %400 : vector<1x1x1x1x32x16xf32> to vector<32x16xf32>
    %cst_532 = arith.constant dense<0.000000e+00> : vector<16x16xf32>
    %402 = tpu.matmul %399, %401, %cst_532 {dimension_numbers = #tpu.dot_dimension_numbers<[1], [0], [0], [1], [0, 0, 1, 1], [], []>} : vector<16x32xf32>, vector<32x16xf32>, vector<16x16xf32> -> vector<16x16xf32>
    %403 = arith.addf %397, %402 : vector<16x16xf32>
    %c0_533 = arith.constant 0 : index
    %c0_534 = arith.constant 0 : index
    %404 = vector.load %arg11[%c0_533, %c0_534] : memref<1x16xf32, #tpu.memory_space<vmem>>, vector<1x16xf32>
    %405 = vector.broadcast %404 : vector<1x16xf32> to vector<16x16xf32>
    %406 = arith.addf %403, %405 : vector<16x16xf32>
    %cst_535 = arith.constant 0.000000e+00 : f32
    %407 = vector.broadcast %cst_535 : f32 to vector<16x16xf32>
    %408 = arith.maximumf %406, %407 : vector<16x16xf32>
    %409 = vector.shape_cast %408 : vector<16x16xf32> to vector<1x4x4x16xf32>
    %c0_536 = arith.constant 0 : index
    %c0_537 = arith.constant 0 : index
    %c1_538 = arith.constant 1 : index
    %c0_539 = arith.constant 0 : index
    %c1_540 = arith.constant 1 : index
    %c0_541 = arith.constant 0 : index
    %410 = vector.load %arg22[%c0_536, %c0_537, %c1_538, %c0_539, %c1_540, %c0_541] : memref<1x4x2x4x2x16xf32, #tpu.memory_space<vmem>>, vector<1x4x1x4x1x16xf32>
    %411 = vector.shape_cast %410 : vector<1x4x1x4x1x16xf32> to vector<1x4x4x16xf32>
    %412 = vector.shape_cast %409 : vector<1x4x4x16xf32> to vector<1x4x1x4x1x16xf32>
    tpu.vector_store %arg22[%c0_536, %c0_537, %c1_538, %c0_539, %c1_540, %c0_541], %412 {strides = array<i32>} : memref<1x4x2x4x2x16xf32, #tpu.memory_space<vmem>>, vector<1x4x1x4x1x16xf32>,
    %c0_542 = arith.constant 0 : index
    %c0_543 = arith.constant 0 : index
    %c0_544 = arith.constant 0 : index
    %c0_545 = arith.constant 0 : index
    %c0_546 = arith.constant 0 : index
    %c0_547 = arith.constant 0 : index
    %413 = vector.load %arg22[%c0_542, %c0_543, %c0_544, %c0_545, %c0_546, %c0_547] : memref<1x4x2x4x2x16xf32, #tpu.memory_space<vmem>>, vector<1x4x2x4x2x16xf32>
    %414 = vector.shape_cast %413 : vector<1x4x2x4x2x16xf32> to vector<1x8x8x16xf32>
    %cst_548 = arith.constant 0.000000e+00 : f32
    %415 = vector.broadcast %cst_548 : f32 to vector<1x9x9x16xf32>
    %c0_549 = arith.constant 0 : index
    %c0_550 = arith.constant 0 : index
    %c0_551 = arith.constant 0 : index
    %c0_552 = arith.constant 0 : index
    %416 = vector.load %arg20[%c0_549, %c0_550, %c0_551, %c0_552] : memref<1x9x9x16xf32, #tpu.memory_space<vmem>>, vector<1x9x9x16xf32>
    tpu.vector_store %arg20[%c0_549, %c0_550, %c0_551, %c0_552], %415 {strides = array<i32>} : memref<1x9x9x16xf32, #tpu.memory_space<vmem>>, vector<1x9x9x16xf32>,
    %c0_553 = arith.constant 0 : index
    %c0_554 = arith.constant 0 : index
    %c0_555 = arith.constant 0 : index
    %c0_556 = arith.constant 0 : index
    %417 = vector.load %arg20[%c0_553, %c0_554, %c0_555, %c0_556] : memref<1x9x9x16xf32, #tpu.memory_space<vmem>>, vector<1x8x8x16xf32>
    tpu.vector_store %arg20[%c0_553, %c0_554, %c0_555, %c0_556], %414 {strides = array<i32>} : memref<1x9x9x16xf32, #tpu.memory_space<vmem>>, vector<1x8x8x16xf32>,
    %cst_557 = arith.constant 0.000000e+00 : f32
    %418 = vector.broadcast %cst_557 : f32 to vector<64x1xf32>
    %c0_558 = arith.constant 0 : index
    %c0_559 = arith.constant 0 : index
    %c0_560 = arith.constant 0 : index
    %c0_561 = arith.constant 0 : index
    %419 = vector.load %arg20[%c0_558, %c0_559, %c0_560, %c0_561] : memref<1x9x9x16xf32, #tpu.memory_space<vmem>>, vector<1x8x8x16xf32>
    %420 = vector.shape_cast %419 : vector<1x8x8x16xf32> to vector<64x16xf32>
    %c0_562 = arith.constant 0 : index
    %c0_563 = arith.constant 0 : index
    %c0_564 = arith.constant 0 : index
    %c0_565 = arith.constant 0 : index
    %c0_566 = arith.constant 0 : index
    %c0_567 = arith.constant 0 : index
    %421 = vector.load %arg12[%c0_562, %c0_563, %c0_564, %c0_565, %c0_566, %c0_567] : memref<2x2x2x2x16x1xf32, #tpu.memory_space<vmem>>, vector<1x1x1x1x16x1xf32>
    %422 = vector.shape_cast %421 : vector<1x1x1x1x16x1xf32> to vector<16x1xf32>
    %cst_568 = arith.constant dense<0.000000e+00> : vector<64x1xf32>
    %423 = tpu.matmul %420, %422, %cst_568 {dimension_numbers = #tpu.dot_dimension_numbers<[1], [0], [0], [1], [0, 0, 1, 1], [], []>} : vector<64x16xf32>, vector<16x1xf32>, vector<64x1xf32> -> vector<64x1xf32>
    %424 = arith.addf %418, %423 : vector<64x1xf32>
    %c0_569 = arith.constant 0 : index
    %c0_570 = arith.constant 0 : index
    %425 = vector.load %arg13[%c0_569, %c0_570] : memref<1x1xf32, #tpu.memory_space<vmem>>, vector<1x1xf32>
    %426 = vector.broadcast %425 : vector<1x1xf32> to vector<64x1xf32>
    %427 = arith.addf %424, %426 : vector<64x1xf32>
    %cst_571 = arith.constant 0.000000e+00 : f32
    %428 = vector.broadcast %cst_571 : f32 to vector<64x1xf32>
    %429 = arith.subf %428, %427 : vector<64x1xf32>
    %430 = math.exp %429 : vector<64x1xf32>
    %cst_572 = arith.constant 1.000000e+00 : f32
    %431 = vector.broadcast %cst_572 : f32 to vector<64x1xf32>
    %432 = arith.addf %431, %430 : vector<64x1xf32>
    %cst_573 = arith.constant 1.000000e+00 : f32
    %433 = vector.broadcast %cst_573 : f32 to vector<64x1xf32>
    %434 = arith.divf %433, %432 : vector<64x1xf32>
    %435 = vector.shape_cast %434 : vector<64x1xf32> to vector<1x8x8x1xf32>
    %c0_574 = arith.constant 0 : index
    %c0_575 = arith.constant 0 : index
    %c0_576 = arith.constant 0 : index
    %c0_577 = arith.constant 0 : index
    %c0_578 = arith.constant 0 : index
    %c0_579 = arith.constant 0 : index
    %436 = vector.load %arg23[%c0_574, %c0_575, %c0_576, %c0_577, %c0_578, %c0_579] : memref<1x8x2x8x2x1xf32, #tpu.memory_space<vmem>>, vector<1x8x1x8x1x1xf32>
    %437 = vector.shape_cast %436 : vector<1x8x1x8x1x1xf32> to vector<1x8x8x1xf32>
    %438 = vector.shape_cast %435 : vector<1x8x8x1xf32> to vector<1x8x1x8x1x1xf32>
    tpu.vector_store %arg23[%c0_574, %c0_575, %c0_576, %c0_577, %c0_578, %c0_579], %438 {strides = array<i32>} : memref<1x8x2x8x2x1xf32, #tpu.memory_space<vmem>>, vector<1x8x1x8x1x1xf32>,
    %cst_580 = arith.constant 0.000000e+00 : f32
    %439 = vector.broadcast %cst_580 : f32 to vector<64x1xf32>
    %c0_581 = arith.constant 0 : index
    %c0_582 = arith.constant 0 : index
    %c0_583 = arith.constant 0 : index
    %c0_584 = arith.constant 0 : index
    %440 = vector.load %arg20[%c0_581, %c0_582, %c0_583, %c0_584] : memref<1x9x9x16xf32, #tpu.memory_space<vmem>>, vector<1x8x8x16xf32>
    %441 = vector.shape_cast %440 : vector<1x8x8x16xf32> to vector<64x16xf32>
    %c0_585 = arith.constant 0 : index
    %c1_586 = arith.constant 1 : index
    %c0_587 = arith.constant 0 : index
    %c0_588 = arith.constant 0 : index
    %c0_589 = arith.constant 0 : index
    %c0_590 = arith.constant 0 : index
    %442 = vector.load %arg12[%c0_585, %c1_586, %c0_587, %c0_588, %c0_589, %c0_590] : memref<2x2x2x2x16x1xf32, #tpu.memory_space<vmem>>, vector<1x1x1x1x16x1xf32>
    %443 = vector.shape_cast %442 : vector<1x1x1x1x16x1xf32> to vector<16x1xf32>
    %cst_591 = arith.constant dense<0.000000e+00> : vector<64x1xf32>
    %444 = tpu.matmul %441, %443, %cst_591 {dimension_numbers = #tpu.dot_dimension_numbers<[1], [0], [0], [1], [0, 0, 1, 1], [], []>} : vector<64x16xf32>, vector<16x1xf32>, vector<64x1xf32> -> vector<64x1xf32>
    %445 = arith.addf %439, %444 : vector<64x1xf32>
    %c0_592 = arith.constant 0 : index
    %c0_593 = arith.constant 0 : index
    %c1_594 = arith.constant 1 : index
    %c0_595 = arith.constant 0 : index
    %446 = vector.load %arg20[%c0_592, %c0_593, %c1_594, %c0_595] : memref<1x9x9x16xf32, #tpu.memory_space<vmem>>, vector<1x8x8x16xf32>
    %447 = vector.shape_cast %446 : vector<1x8x8x16xf32> to vector<64x16xf32>
    %c0_596 = arith.constant 0 : index
    %c1_597 = arith.constant 1 : index
    %c0_598 = arith.constant 0 : index
    %c1_599 = arith.constant 1 : index
    %c0_600 = arith.constant 0 : index
    %c0_601 = arith.constant 0 : index
    %448 = vector.load %arg12[%c0_596, %c1_597, %c0_598, %c1_599, %c0_600, %c0_601] : memref<2x2x2x2x16x1xf32, #tpu.memory_space<vmem>>, vector<1x1x1x1x16x1xf32>
    %449 = vector.shape_cast %448 : vector<1x1x1x1x16x1xf32> to vector<16x1xf32>
    %cst_602 = arith.constant dense<0.000000e+00> : vector<64x1xf32>
    %450 = tpu.matmul %447, %449, %cst_602 {dimension_numbers = #tpu.dot_dimension_numbers<[1], [0], [0], [1], [0, 0, 1, 1], [], []>} : vector<64x16xf32>, vector<16x1xf32>, vector<64x1xf32> -> vector<64x1xf32>
    %451 = arith.addf %445, %450 : vector<64x1xf32>
    %c0_603 = arith.constant 0 : index
    %c0_604 = arith.constant 0 : index
    %452 = vector.load %arg13[%c0_603, %c0_604] : memref<1x1xf32, #tpu.memory_space<vmem>>, vector<1x1xf32>
    %453 = vector.broadcast %452 : vector<1x1xf32> to vector<64x1xf32>
    %454 = arith.addf %451, %453 : vector<64x1xf32>
    %cst_605 = arith.constant 0.000000e+00 : f32
    %455 = vector.broadcast %cst_605 : f32 to vector<64x1xf32>
    %456 = arith.subf %455, %454 : vector<64x1xf32>
    %457 = math.exp %456 : vector<64x1xf32>
    %cst_606 = arith.constant 1.000000e+00 : f32
    %458 = vector.broadcast %cst_606 : f32 to vector<64x1xf32>
    %459 = arith.addf %458, %457 : vector<64x1xf32>
    %cst_607 = arith.constant 1.000000e+00 : f32
    %460 = vector.broadcast %cst_607 : f32 to vector<64x1xf32>
    %461 = arith.divf %460, %459 : vector<64x1xf32>
    %462 = vector.shape_cast %461 : vector<64x1xf32> to vector<1x8x8x1xf32>
    %c0_608 = arith.constant 0 : index
    %c0_609 = arith.constant 0 : index
    %c0_610 = arith.constant 0 : index
    %c0_611 = arith.constant 0 : index
    %c1_612 = arith.constant 1 : index
    %c0_613 = arith.constant 0 : index
    %463 = vector.load %arg23[%c0_608, %c0_609, %c0_610, %c0_611, %c1_612, %c0_613] : memref<1x8x2x8x2x1xf32, #tpu.memory_space<vmem>>, vector<1x8x1x8x1x1xf32>
    %464 = vector.shape_cast %463 : vector<1x8x1x8x1x1xf32> to vector<1x8x8x1xf32>
    %465 = vector.shape_cast %462 : vector<1x8x8x1xf32> to vector<1x8x1x8x1x1xf32>
    tpu.vector_store %arg23[%c0_608, %c0_609, %c0_610, %c0_611, %c1_612, %c0_613], %465 {strides = array<i32>} : memref<1x8x2x8x2x1xf32, #tpu.memory_space<vmem>>, vector<1x8x1x8x1x1xf32>,
    %cst_614 = arith.constant 0.000000e+00 : f32
    %466 = vector.broadcast %cst_614 : f32 to vector<64x1xf32>
    %c0_615 = arith.constant 0 : index
    %c0_616 = arith.constant 0 : index
    %c0_617 = arith.constant 0 : index
    %c0_618 = arith.constant 0 : index
    %467 = vector.load %arg20[%c0_615, %c0_616, %c0_617, %c0_618] : memref<1x9x9x16xf32, #tpu.memory_space<vmem>>, vector<1x8x8x16xf32>
    %468 = vector.shape_cast %467 : vector<1x8x8x16xf32> to vector<64x16xf32>
    %c1_619 = arith.constant 1 : index
    %c0_620 = arith.constant 0 : index
    %c0_621 = arith.constant 0 : index
    %c0_622 = arith.constant 0 : index
    %c0_623 = arith.constant 0 : index
    %c0_624 = arith.constant 0 : index
    %469 = vector.load %arg12[%c1_619, %c0_620, %c0_621, %c0_622, %c0_623, %c0_624] : memref<2x2x2x2x16x1xf32, #tpu.memory_space<vmem>>, vector<1x1x1x1x16x1xf32>
    %470 = vector.shape_cast %469 : vector<1x1x1x1x16x1xf32> to vector<16x1xf32>
    %cst_625 = arith.constant dense<0.000000e+00> : vector<64x1xf32>
    %471 = tpu.matmul %468, %470, %cst_625 {dimension_numbers = #tpu.dot_dimension_numbers<[1], [0], [0], [1], [0, 0, 1, 1], [], []>} : vector<64x16xf32>, vector<16x1xf32>, vector<64x1xf32> -> vector<64x1xf32>
    %472 = arith.addf %466, %471 : vector<64x1xf32>
    %c0_626 = arith.constant 0 : index
    %c1_627 = arith.constant 1 : index
    %c0_628 = arith.constant 0 : index
    %c0_629 = arith.constant 0 : index
    %473 = vector.load %arg20[%c0_626, %c1_627, %c0_628, %c0_629] : memref<1x9x9x16xf32, #tpu.memory_space<vmem>>, vector<1x8x8x16xf32>
    %474 = vector.shape_cast %473 : vector<1x8x8x16xf32> to vector<64x16xf32>
    %c1_630 = arith.constant 1 : index
    %c0_631 = arith.constant 0 : index
    %c1_632 = arith.constant 1 : index
    %c0_633 = arith.constant 0 : index
    %c0_634 = arith.constant 0 : index
    %c0_635 = arith.constant 0 : index
    %475 = vector.load %arg12[%c1_630, %c0_631, %c1_632, %c0_633, %c0_634, %c0_635] : memref<2x2x2x2x16x1xf32, #tpu.memory_space<vmem>>, vector<1x1x1x1x16x1xf32>
    %476 = vector.shape_cast %475 : vector<1x1x1x1x16x1xf32> to vector<16x1xf32>
    %cst_636 = arith.constant dense<0.000000e+00> : vector<64x1xf32>
    %477 = tpu.matmul %474, %476, %cst_636 {dimension_numbers = #tpu.dot_dimension_numbers<[1], [0], [0], [1], [0, 0, 1, 1], [], []>} : vector<64x16xf32>, vector<16x1xf32>, vector<64x1xf32> -> vector<64x1xf32>
    %478 = arith.addf %472, %477 : vector<64x1xf32>
    %c0_637 = arith.constant 0 : index
    %c0_638 = arith.constant 0 : index
    %479 = vector.load %arg13[%c0_637, %c0_638] : memref<1x1xf32, #tpu.memory_space<vmem>>, vector<1x1xf32>
    %480 = vector.broadcast %479 : vector<1x1xf32> to vector<64x1xf32>
    %481 = arith.addf %478, %480 : vector<64x1xf32>
    %cst_639 = arith.constant 0.000000e+00 : f32
    %482 = vector.broadcast %cst_639 : f32 to vector<64x1xf32>
    %483 = arith.subf %482, %481 : vector<64x1xf32>
    %484 = math.exp %483 : vector<64x1xf32>
    %cst_640 = arith.constant 1.000000e+00 : f32
    %485 = vector.broadcast %cst_640 : f32 to vector<64x1xf32>
    %486 = arith.addf %485, %484 : vector<64x1xf32>
    %cst_641 = arith.constant 1.000000e+00 : f32
    %487 = vector.broadcast %cst_641 : f32 to vector<64x1xf32>
    %488 = arith.divf %487, %486 : vector<64x1xf32>
    %489 = vector.shape_cast %488 : vector<64x1xf32> to vector<1x8x8x1xf32>
    %c0_642 = arith.constant 0 : index
    %c0_643 = arith.constant 0 : index
    %c1_644 = arith.constant 1 : index
    %c0_645 = arith.constant 0 : index
    %c0_646 = arith.constant 0 : index
    %c0_647 = arith.constant 0 : index
    %490 = vector.load %arg23[%c0_642, %c0_643, %c1_644, %c0_645, %c0_646, %c0_647] : memref<1x8x2x8x2x1xf32, #tpu.memory_space<vmem>>, vector<1x8x1x8x1x1xf32>
    %491 = vector.shape_cast %490 : vector<1x8x1x8x1x1xf32> to vector<1x8x8x1xf32>
    %492 = vector.shape_cast %489 : vector<1x8x8x1xf32> to vector<1x8x1x8x1x1xf32>
    tpu.vector_store %arg23[%c0_642, %c0_643, %c1_644, %c0_645, %c0_646, %c0_647], %492 {strides = array<i32>} : memref<1x8x2x8x2x1xf32, #tpu.memory_space<vmem>>, vector<1x8x1x8x1x1xf32>,
    %cst_648 = arith.constant 0.000000e+00 : f32
    %493 = vector.broadcast %cst_648 : f32 to vector<64x1xf32>
    %c0_649 = arith.constant 0 : index
    %c0_650 = arith.constant 0 : index
    %c0_651 = arith.constant 0 : index
    %c0_652 = arith.constant 0 : index
    %494 = vector.load %arg20[%c0_649, %c0_650, %c0_651, %c0_652] : memref<1x9x9x16xf32, #tpu.memory_space<vmem>>, vector<1x8x8x16xf32>
    %495 = vector.shape_cast %494 : vector<1x8x8x16xf32> to vector<64x16xf32>
    %c1_653 = arith.constant 1 : index
    %c1_654 = arith.constant 1 : index
    %c0_655 = arith.constant 0 : index
    %c0_656 = arith.constant 0 : index
    %c0_657 = arith.constant 0 : index
    %c0_658 = arith.constant 0 : index
    %496 = vector.load %arg12[%c1_653, %c1_654, %c0_655, %c0_656, %c0_657, %c0_658] : memref<2x2x2x2x16x1xf32, #tpu.memory_space<vmem>>, vector<1x1x1x1x16x1xf32>
    %497 = vector.shape_cast %496 : vector<1x1x1x1x16x1xf32> to vector<16x1xf32>
    %cst_659 = arith.constant dense<0.000000e+00> : vector<64x1xf32>
    %498 = tpu.matmul %495, %497, %cst_659 {dimension_numbers = #tpu.dot_dimension_numbers<[1], [0], [0], [1], [0, 0, 1, 1], [], []>} : vector<64x16xf32>, vector<16x1xf32>, vector<64x1xf32> -> vector<64x1xf32>
    %499 = arith.addf %493, %498 : vector<64x1xf32>
    %c0_660 = arith.constant 0 : index
    %c0_661 = arith.constant 0 : index
    %c1_662 = arith.constant 1 : index
    %c0_663 = arith.constant 0 : index
    %500 = vector.load %arg20[%c0_660, %c0_661, %c1_662, %c0_663] : memref<1x9x9x16xf32, #tpu.memory_space<vmem>>, vector<1x8x8x16xf32>
    %501 = vector.shape_cast %500 : vector<1x8x8x16xf32> to vector<64x16xf32>
    %c1_664 = arith.constant 1 : index
    %c1_665 = arith.constant 1 : index
    %c0_666 = arith.constant 0 : index
    %c1_667 = arith.constant 1 : index
    %c0_668 = arith.constant 0 : index
    %c0_669 = arith.constant 0 : index
    %502 = vector.load %arg12[%c1_664, %c1_665, %c0_666, %c1_667, %c0_668, %c0_669] : memref<2x2x2x2x16x1xf32, #tpu.memory_space<vmem>>, vector<1x1x1x1x16x1xf32>
    %503 = vector.shape_cast %502 : vector<1x1x1x1x16x1xf32> to vector<16x1xf32>
    %cst_670 = arith.constant dense<0.000000e+00> : vector<64x1xf32>
    %504 = tpu.matmul %501, %503, %cst_670 {dimension_numbers = #tpu.dot_dimension_numbers<[1], [0], [0], [1], [0, 0, 1, 1], [], []>} : vector<64x16xf32>, vector<16x1xf32>, vector<64x1xf32> -> vector<64x1xf32>
    %505 = arith.addf %499, %504 : vector<64x1xf32>
    %c0_671 = arith.constant 0 : index
    %c1_672 = arith.constant 1 : index
    %c0_673 = arith.constant 0 : index
    %c0_674 = arith.constant 0 : index
    %506 = vector.load %arg20[%c0_671, %c1_672, %c0_673, %c0_674] : memref<1x9x9x16xf32, #tpu.memory_space<vmem>>, vector<1x8x8x16xf32>
    %507 = vector.shape_cast %506 : vector<1x8x8x16xf32> to vector<64x16xf32>
    %c1_675 = arith.constant 1 : index
    %c1_676 = arith.constant 1 : index
    %c1_677 = arith.constant 1 : index
    %c0_678 = arith.constant 0 : index
    %c0_679 = arith.constant 0 : index
    %c0_680 = arith.constant 0 : index
    %508 = vector.load %arg12[%c1_675, %c1_676, %c1_677, %c0_678, %c0_679, %c0_680] : memref<2x2x2x2x16x1xf32, #tpu.memory_space<vmem>>, vector<1x1x1x1x16x1xf32>
    %509 = vector.shape_cast %508 : vector<1x1x1x1x16x1xf32> to vector<16x1xf32>
    %cst_681 = arith.constant dense<0.000000e+00> : vector<64x1xf32>
    %510 = tpu.matmul %507, %509, %cst_681 {dimension_numbers = #tpu.dot_dimension_numbers<[1], [0], [0], [1], [0, 0, 1, 1], [], []>} : vector<64x16xf32>, vector<16x1xf32>, vector<64x1xf32> -> vector<64x1xf32>
    %511 = arith.addf %505, %510 : vector<64x1xf32>
    %c0_682 = arith.constant 0 : index
    %c1_683 = arith.constant 1 : index
    %c1_684 = arith.constant 1 : index
    %c0_685 = arith.constant 0 : index
    %512 = vector.load %arg20[%c0_682, %c1_683, %c1_684, %c0_685] : memref<1x9x9x16xf32, #tpu.memory_space<vmem>>, vector<1x8x8x16xf32>
    %513 = vector.shape_cast %512 : vector<1x8x8x16xf32> to vector<64x16xf32>
    %c1_686 = arith.constant 1 : index
    %c1_687 = arith.constant 1 : index
    %c1_688 = arith.constant 1 : index
    %c1_689 = arith.constant 1 : index
    %c0_690 = arith.constant 0 : index
    %c0_691 = arith.constant 0 : index
    %514 = vector.load %arg12[%c1_686, %c1_687, %c1_688, %c1_689, %c0_690, %c0_691] : memref<2x2x2x2x16x1xf32, #tpu.memory_space<vmem>>, vector<1x1x1x1x16x1xf32>
    %515 = vector.shape_cast %514 : vector<1x1x1x1x16x1xf32> to vector<16x1xf32>
    %cst_692 = arith.constant dense<0.000000e+00> : vector<64x1xf32>
    %516 = tpu.matmul %513, %515, %cst_692 {dimension_numbers = #tpu.dot_dimension_numbers<[1], [0], [0], [1], [0, 0, 1, 1], [], []>} : vector<64x16xf32>, vector<16x1xf32>, vector<64x1xf32> -> vector<64x1xf32>
    %517 = arith.addf %511, %516 : vector<64x1xf32>
    %c0_693 = arith.constant 0 : index
    %c0_694 = arith.constant 0 : index
    %518 = vector.load %arg13[%c0_693, %c0_694] : memref<1x1xf32, #tpu.memory_space<vmem>>, vector<1x1xf32>
    %519 = vector.broadcast %518 : vector<1x1xf32> to vector<64x1xf32>
    %520 = arith.addf %517, %519 : vector<64x1xf32>
    %cst_695 = arith.constant 0.000000e+00 : f32
    %521 = vector.broadcast %cst_695 : f32 to vector<64x1xf32>
    %522 = arith.subf %521, %520 : vector<64x1xf32>
    %523 = math.exp %522 : vector<64x1xf32>
    %cst_696 = arith.constant 1.000000e+00 : f32
    %524 = vector.broadcast %cst_696 : f32 to vector<64x1xf32>
    %525 = arith.addf %524, %523 : vector<64x1xf32>
    %cst_697 = arith.constant 1.000000e+00 : f32
    %526 = vector.broadcast %cst_697 : f32 to vector<64x1xf32>
    %527 = arith.divf %526, %525 : vector<64x1xf32>
    %528 = vector.shape_cast %527 : vector<64x1xf32> to vector<1x8x8x1xf32>
    %c0_698 = arith.constant 0 : index
    %c0_699 = arith.constant 0 : index
    %c1_700 = arith.constant 1 : index
    %c0_701 = arith.constant 0 : index
    %c1_702 = arith.constant 1 : index
    %c0_703 = arith.constant 0 : index
    %529 = vector.load %arg23[%c0_698, %c0_699, %c1_700, %c0_701, %c1_702, %c0_703] : memref<1x8x2x8x2x1xf32, #tpu.memory_space<vmem>>, vector<1x8x1x8x1x1xf32>
    %530 = vector.shape_cast %529 : vector<1x8x1x8x1x1xf32> to vector<1x8x8x1xf32>
    %531 = vector.shape_cast %528 : vector<1x8x8x1xf32> to vector<1x8x1x8x1x1xf32>
    tpu.vector_store %arg23[%c0_698, %c0_699, %c1_700, %c0_701, %c1_702, %c0_703], %531 {strides = array<i32>} : memref<1x8x2x8x2x1xf32, #tpu.memory_space<vmem>>, vector<1x8x1x8x1x1xf32>,
    %c0_704 = arith.constant 0 : index
    %c0_705 = arith.constant 0 : index
    %c0_706 = arith.constant 0 : index
    %c0_707 = arith.constant 0 : index
    %c0_708 = arith.constant 0 : index
    %c0_709 = arith.constant 0 : index
    %532 = vector.load %arg23[%c0_704, %c0_705, %c0_706, %c0_707, %c0_708, %c0_709] : memref<1x8x2x8x2x1xf32, #tpu.memory_space<vmem>>, vector<1x8x2x8x2x1xf32>
    %533 = vector.shape_cast %532 : vector<1x8x2x8x2x1xf32> to vector<1x16x16x1xf32>
    %c0_710 = arith.constant 0 : index
    %c0_711 = arith.constant 0 : index
    %c0_712 = arith.constant 0 : index
    %c0_713 = arith.constant 0 : index
    %534 = vector.load %arg14[%c0_710, %c0_711, %c0_712, %c0_713] : memref<1x16x16x1xf32, #tpu.memory_space<vmem>>, vector<1x16x16x1xf32>
    tpu.vector_store %arg14[%c0_710, %c0_711, %c0_712, %c0_713], %533 {strides = array<i32>} : memref<1x16x16x1xf32, #tpu.memory_space<vmem>>, vector<1x16x16x1xf32>,
    return
  }
  func.func @transform_0(%arg0: i32) -> (i32, i32, i32, i32) {
    %c0_i32 = arith.constant 0 : i32
    %c0_i32_0 = arith.constant 0 : i32
    %c0_i32_1 = arith.constant 0 : i32
    %c0_i32_2 = arith.constant 0 : i32
    return %arg0, %c0_i32, %c0_i32_0, %c0_i32_1 : i32, i32, i32, i32
  }
  func.func @transform_1(%arg0: i32) -> (i32, i32, i32) {
    %c0_i32 = arith.constant 0 : i32
    %c0_i32_0 = arith.constant 0 : i32
    %c0_i32_1 = arith.constant 0 : i32
    %c0_i32_2 = arith.constant 0 : i32
    return %c0_i32, %c0_i32_0, %c0_i32_1 : i32, i32, i32
  }
  func.func @transform_2(%arg0: i32) -> (i32, i32) {
    %c0_i32 = arith.constant 0 : i32
    %c0_i32_0 = arith.constant 0 : i32
    %c0_i32_1 = arith.constant 0 : i32
    return %c0_i32, %c0_i32_0 : i32, i32
  }
  func.func @transform_3(%arg0: i32) -> (i32, i32, i32) {
    %c0_i32 = arith.constant 0 : i32
    %c0_i32_0 = arith.constant 0 : i32
    %c0_i32_1 = arith.constant 0 : i32
    %c0_i32_2 = arith.constant 0 : i32
    return %c0_i32, %c0_i32_0, %c0_i32_1 : i32, i32, i32
  }
  func.func @transform_4(%arg0: i32) -> (i32, i32) {
    %c0_i32 = arith.constant 0 : i32
    %c0_i32_0 = arith.constant 0 : i32
    %c0_i32_1 = arith.constant 0 : i32
    return %c0_i32, %c0_i32_0 : i32, i32
  }
  func.func @transform_5(%arg0: i32) -> (i32, i32, i32) {
    %c0_i32 = arith.constant 0 : i32
    %c0_i32_0 = arith.constant 0 : i32
    %c0_i32_1 = arith.constant 0 : i32
    %c0_i32_2 = arith.constant 0 : i32
    return %c0_i32, %c0_i32_0, %c0_i32_1 : i32, i32, i32
  }
  func.func @transform_6(%arg0: i32) -> (i32, i32) {
    %c0_i32 = arith.constant 0 : i32
    %c0_i32_0 = arith.constant 0 : i32
    %c0_i32_1 = arith.constant 0 : i32
    return %c0_i32, %c0_i32_0 : i32, i32
  }
  func.func @transform_7(%arg0: i32) -> (i32, i32, i32, i32, i32, i32) {
    %c0_i32 = arith.constant 0 : i32
    %c0_i32_0 = arith.constant 0 : i32
    %c0_i32_1 = arith.constant 0 : i32
    %c0_i32_2 = arith.constant 0 : i32
    %c0_i32_3 = arith.constant 0 : i32
    %c0_i32_4 = arith.constant 0 : i32
    %c0_i32_5 = arith.constant 0 : i32
    return %c0_i32, %c0_i32_0, %c0_i32_1, %c0_i32_2, %c0_i32_3, %c0_i32_4 : i32, i32, i32, i32, i32, i32
  }
  func.func @transform_8(%arg0: i32) -> (i32, i32) {
    %c0_i32 = arith.constant 0 : i32
    %c0_i32_0 = arith.constant 0 : i32
    %c0_i32_1 = arith.constant 0 : i32
    return %c0_i32, %c0_i32_0 : i32, i32
  }
  func.func @transform_9(%arg0: i32) -> (i32, i32, i32, i32, i32, i32) {
    %c0_i32 = arith.constant 0 : i32
    %c0_i32_0 = arith.constant 0 : i32
    %c0_i32_1 = arith.constant 0 : i32
    %c0_i32_2 = arith.constant 0 : i32
    %c0_i32_3 = arith.constant 0 : i32
    %c0_i32_4 = arith.constant 0 : i32
    %c0_i32_5 = arith.constant 0 : i32
    return %c0_i32, %c0_i32_0, %c0_i32_1, %c0_i32_2, %c0_i32_3, %c0_i32_4 : i32, i32, i32, i32, i32, i32
  }
  func.func @transform_10(%arg0: i32) -> (i32, i32) {
    %c0_i32 = arith.constant 0 : i32
    %c0_i32_0 = arith.constant 0 : i32
    %c0_i32_1 = arith.constant 0 : i32
    return %c0_i32, %c0_i32_0 : i32, i32
  }
  func.func @transform_11(%arg0: i32) -> (i32, i32, i32, i32, i32, i32) {
    %c0_i32 = arith.constant 0 : i32
    %c0_i32_0 = arith.constant 0 : i32
    %c0_i32_1 = arith.constant 0 : i32
    %c0_i32_2 = arith.constant 0 : i32
    %c0_i32_3 = arith.constant 0 : i32
    %c0_i32_4 = arith.constant 0 : i32
    %c0_i32_5 = arith.constant 0 : i32
    return %c0_i32, %c0_i32_0, %c0_i32_1, %c0_i32_2, %c0_i32_3, %c0_i32_4 : i32, i32, i32, i32, i32, i32
  }
  func.func @transform_12(%arg0: i32) -> (i32, i32) {
    %c0_i32 = arith.constant 0 : i32
    %c0_i32_0 = arith.constant 0 : i32
    %c0_i32_1 = arith.constant 0 : i32
    return %c0_i32, %c0_i32_0 : i32, i32
  }
  func.func @transform_13(%arg0: i32) -> (i32, i32, i32, i32) {
    %c0_i32 = arith.constant 0 : i32
    %c0_i32_0 = arith.constant 0 : i32
    %c0_i32_1 = arith.constant 0 : i32
    %c0_i32_2 = arith.constant 0 : i32
    return %arg0, %c0_i32, %c0_i32_0, %c0_i32_1 : i32, i32, i32, i32
  }
}

</mosaic_0001>

<bundles_post_ra>
// kernel: autoencoder_forward.1
= control target key start
LH: loop header
LB: loop body
LE: loop exit
PB: predicated region body
PF: predicated region fallthrough
CT: control target
= control target key end

     0   :  { %s14538_s27 = smov 0   ;;  %s17938_s0 = inlined_call_operand.vmem [shape: f32[2,16,16,1], index: 0, kind: input, shape index: {}]   ;;  %s17939_s1 = inlined_call_operand.vmem [shape: f32[9,1,16], index: 1, kind: input, shape index: {}]   ;;  %s17940_s2 = inlined_call_operand.vmem [shape: f32[1,16], index: 2, kind: input, shape index: {}]   ;;  %s17941_s3 = inlined_call_operand.vmem [shape: f32[9,16,32], index: 3, kind: input, shape index: {}]   ;;  %s17942_s4 = inlined_call_operand.vmem [shape: f32[1,32], index: 4, kind: input, shape index: {}]   ;;  %s17943_s5 = inlined_call_operand.vmem [shape: f32[9,32,64], index: 5, kind: input, shape index: {}]   ;;  %s17944_s6 = inlined_call_operand.vmem [shape: f32[1,64], index: 6, kind: input, shape index: {}]   ;;  %s17945_s7 = inlined_call_operand.vmem [shape: f32[2,2,2,2,64,32], index: 7, kind: input, shape index: {}]   ;;  %s17946_s8 = inlined_call_operand.vmem [shape: f32[1,32], index: 8, kind: input, shape index: {}]   ;;  %s17947_s9 = inlined_call_operand.vmem [shape: f32[2,2,2,2,32,16], index: 9, kind: input, shape index: {}]   ;;  %s17948_s10 = inlined_call_operand.vmem [shape: f32[1,16], index: 10, kind: input, shape index: {}]   ;;  %s17949_s11 = inlined_call_operand.vmem [shape: f32[2,2,2,2,16,1], index: 11, kind: input, shape index: {}]   ;;  %s17950_s12 = inlined_call_operand.<no memory space> [shape: f32[1,1], index: 12, kind: input, shape index: {}]   ;;  %s17951_s13 = inlined_call_operand.vmem [shape: f32[2,16,16,1], index: 13, kind: output, shape index: {}]  }
   0x1   :  { %v18_v0 = vstv %s17950_s12 }
   0x2   :  { %19 = vst [vmem:[#allocation11] sm:$0x1] %v18_v0 }
   0x3 LB: > { %s12822_s28 = sadd.s32 4294967295, %s14458_s27   ;;  %p12826_p0 = scmp.ge.s32.totalorder %s14458_s27, 1  ;;  %s14458_s27 = sphi %s14538_s27, %s25_s27  }
   0x4   : > { %p389_p1 = scmp.lt.s32.totalorder %s14458_s27, 3 }
   0x6   : > { %p390_p2 = pnand %p12826_p0, %p389_p1 }
   0x8   : > { %393 = sbr.rel (%p390_p2) target bundleno = 2013 (0x7dd), region = 72 }
   0xd   : > { %vm475_vm0 = vcmask 7168   ;;  %p14548_p3 = scmp.lt.s32.totalorder %s12822_s28, 1  ;;  %vm478_vm1 = vcmask 1024   ;;  %v14460_v1 = vmov 0   ;;  %v17952_v2 = vmov 0.0  }
   0xe   : > { %14260 = vset.pattern.permute.xlu0 %v14460_v1  ;;  %14259 = vset.pattern.permute.xlu1 %v14460_v1  ;;  %476 = vst.msk [vmem:[#allocation2] sm:$0xff] %vm475_vm0, %v17952_v2  ;;  %477 = vst.msk [vmem:[#allocation2 + $0x8] sm:$0xff] %vm475_vm0, %v17952_v2  ;;  %vm2835_vm2 = vcmask 130048   ;;  %vm2837_vm3 = vcmask 123904   ;;  %vm3113_vm4 = vcmask 1041409   ;;  %vm3115_vm5 = vcmask 1042434  }
   0xf   : > { %480 = vst.msk [vmem:[#allocation2 + $0x18] sm:$0xff] %vm475_vm0, %v17952_v2  ;;  %481 = vst.msk [vmem:[#allocation2 + $0x20] sm:$0xff] %vm475_vm0, %v17952_v2  ;;  %s17994_s28 = smov (!%p14548_p3, %s12822_s28), 1  ;;  %vm3117_vm6 = vcmask 1043459   ;;  %vm3119_vm7 = vcmask 1044484   ;;  %vm3121_vm8 = vcmask 1045509  }
  0x10   : > { %483 = vst.msk [vmem:[#allocation2 + $0x30] sm:$0xff] %vm475_vm0, %v17952_v2  ;;  %484 = vst.msk [vmem:[#allocation2 + $0x38] sm:$0xff] %vm475_vm0, %v17952_v2  ;;  %s13214_s29 = sshll.u32 %s17994_s28, 8  ;;  %vm3123_vm9 = vcmask 1046534   ;;  %vm3125_vm10 = vcmask 1047559   ;;  %vm4532_vm11 = vcmask 259072  }
  0x11   : > { %486 = vst.msk [vmem:[#allocation2 + $0x48] sm:$0xff] %vm475_vm0, %v17952_v2  ;;  %487 = vst.msk [vmem:[#allocation2 + $0x50] sm:$0xff] %vm475_vm0, %v17952_v2  ;;  %s14666_s15 = scalar_lea.vmem %s17938_s0, %s13214_s29  ;;  %vm4620_vm12 = vcmask 257024   ;;  %vm4648_vm13 = vcmask 261120   ;;  %vm5515_vm14 = vcmask 518144   ;;  %vm14463_vm15 = vmmov 0   ;;  %s17385_s17 = scalar_lea.vmem %s17951_s13, %s13214_s29 }
  0x12   : > { %489 = vst.msk [vmem:[#allocation2 + $0x60] sm:$0xff] %vm475_vm0, %v17952_v2  ;;  %490 = vst.msk [vmem:[#allocation2 + $0x68] sm:$0xff] %vm475_vm0, %v17952_v2  ;;  %v457_v3 = vld [vmem:[%s14666_s15 + $0x70] sm:$0xff]  ;;  %v458_v5 = vld [vmem:[%s14666_s15 + $0x78] sm:$0xff] }
  0x13   : > { %492 = vst.msk [vmem:[#allocation2 + $0x78] sm:$0xff] %vm475_vm0, %v17952_v2  ;;  %493 = vst.msk [vmem:[#allocation2 + $0x80] sm:$0xff] %vm475_vm0, %v17952_v2  ;;  %v453_v4 = vld [vmem:[%s14666_s15 + $0x50] sm:$0xff]  ;;  %v454_v6 = vld [vmem:[%s14666_s15 + $0x58] sm:$0xff] }
  0x14   : > { %495 = vst.msk [vmem:[#allocation2 + $0x90] sm:$0xff] %vm475_vm0, %v17952_v2  ;;  %496 = vst.msk [vmem:[#allocation2 + $0x98] sm:$0xff] %vm475_vm0, %v17952_v2  ;;  %v461_v7 = vld [vmem:[%s14666_s15 + $0x90] sm:$0xff]  ;;  %v455_v8 = vld [vmem:[%s14666_s15 + $0x60] sm:$0xff] }
  0x15   : > { %498 = vst.msk [vmem:[#allocation2 + $0xa8] sm:$0xff] %vm475_vm0, %v17952_v2  ;;  %499 = vst.msk [vmem:[#allocation2 + $0xb0] sm:$0xff] %vm475_vm0, %v17952_v2  ;;  %v779_v9 = vld [vmem:[#allocation2 + $0x1] sm:$0xff]  ;;  %v465_v11 = vld [vmem:[%s14666_s15 + $0xb0] sm:$0xff] }
  0x16   : > { %501 = vst.msk [vmem:[#allocation2 + $0xc0] sm:$0xff] %vm475_vm0, %v17952_v2  ;;  %502 = vst.msk [vmem:[#allocation2 + $0xc8] sm:$0xff] %vm475_vm0, %v17952_v2  ;;  %v564_v10 = vld [vmem:[#allocation2] sm:$0xff]  ;;  %815 = vperm.xlu0 %14260, %v779_v9   ;;  %v445_v13 = vld [vmem:[%s14666_s15 + $0x10] sm:$0xff] }
  0x17   : > { %504 = vst.msk [vmem:[#allocation2 + $0xd8] sm:$0xff] %vm475_vm0, %v17952_v2  ;;  %505 = vst.msk [vmem:[#allocation2 + $0xe0] sm:$0xff] %vm475_vm0, %v17952_v2  ;;  %599 = vperm.xlu1 %14259, %v564_v10   ;;  %v459_v12 = vld [vmem:[%s14666_s15 + $0x80] sm:$0xff]  ;;  %v462_v14 = vld [vmem:[%s14666_s15 + $0x98] sm:$0xff] }
  0x18   : > { %507 = vst.msk [vmem:[#allocation2 + $0xf0] sm:$0xff] %vm475_vm0, %v17952_v2  ;;  %508 = vst.msk [vmem:[#allocation2 + $0xf8] sm:$0xff] %vm475_vm0, %v17952_v2  ;;  %v449_v15 = vld [vmem:[%s14666_s15 + $0x30] sm:$0xff]  ;;  %v466_v16 = vld [vmem:[%s14666_s15 + $0xb8] sm:$0xff] }
  0x19   : > { %510 = vst.msk [vmem:[#allocation2 + $0x108] sm:$0xff] %vm475_vm0, %v17952_v2  ;;  %511 = vst.msk [vmem:[#allocation2 + $0x110] sm:$0xff] %vm475_vm0, %v17952_v2  ;;  %v443_v17 = vld [vmem:[%s14666_s15] sm:$0xff]  ;;  %v456_v18 = vld [vmem:[%s14666_s15 + $0x68] sm:$0xff] }
  0x1a   : > { %513 = vst.msk [vmem:[#allocation2 + $0x120] sm:$0xff] %vm475_vm0, %v17952_v2  ;;  %514 = vst.msk [vmem:[#allocation2 + $0x128] sm:$0xff] %vm475_vm0, %v17952_v2  ;;  %v446_v19 = vld [vmem:[%s14666_s15 + $0x18] sm:$0xff]  ;;  %v463_v20 = vld [vmem:[%s14666_s15 + $0xa0] sm:$0xff] }
  0x1b   : > { %516 = vst.msk [vmem:[#allocation2 + $0x138] sm:$0xff] %vm475_vm0, %v17952_v2  ;;  %517 = vst.msk [vmem:[#allocation2 + $0x140] sm:$0xff] %vm475_vm0, %v17952_v2  ;;  %v450_v21 = vld [vmem:[%s14666_s15 + $0x38] sm:$0xff]  ;;  %v467_v22 = vld [vmem:[%s14666_s15 + $0xc0] sm:$0xff] }
  0x1c   : > { %519 = vst.msk [vmem:[#allocation2 + $0x150] sm:$0xff] %vm475_vm0, %v17952_v2  ;;  %520 = vst.msk [vmem:[#allocation2 + $0x158] sm:$0xff] %vm475_vm0, %v17952_v2  ;;  %v460_v31 = vld [vmem:[%s14666_s15 + $0x88] sm:$0xff]  ;;  %v447_v32 = vld [vmem:[%s14666_s15 + $0x20] sm:$0xff] }
  0x1d   : > { %522 = vst.msk [vmem:[#allocation2 + $0x168] sm:$0xff] %vm475_vm0, %v17952_v2  ;;  %523 = vst.msk [vmem:[#allocation2 + $0x170] sm:$0xff] %vm475_vm0, %v17952_v2  ;;  %v451_v35 = vld [vmem:[%s14666_s15 + $0x40] sm:$0xff]  ;;  %v444_v36 = vld [vmem:[%s14666_s15 + $0x8] sm:$0xff] }
  0x1e   : > { %525 = vst.msk [vmem:[#allocation2 + $0x180] sm:$0xff] %vm475_vm0, %v17952_v2  ;;  %526 = vst.msk [vmem:[#allocation2 + $0x188] sm:$0xff] %vm475_vm0, %v17952_v2  ;;  %v464_v37 = vld [vmem:[%s14666_s15 + $0xa8] sm:$0xff]  ;;  %v469_v49 = vld [vmem:[%s14666_s15 + $0xd0] sm:$0xff] }
  0x1f   : > { %503 = vst.msk [vmem:[#allocation2 + $0xd0] sm:$0x3] %vm478_vm1, %v17952_v2  ;;  %479 = vst.msk [vmem:[#allocation2 + $0x10] sm:$0x3] %vm478_vm1, %v17952_v2  ;;  %v468_v40 = vld [vmem:[%s14666_s15 + $0xc8] sm:$0xff]  ;;  %v470_v9 = vld [vmem:[%s14666_s15 + $0xd8] sm:$0xff] }
  0x20   : > { %482 = vst.msk [vmem:[#allocation2 + $0x28] sm:$0x3] %vm478_vm1, %v17952_v2  ;;  %485 = vst.msk [vmem:[#allocation2 + $0x40] sm:$0x3] %vm478_vm1, %v17952_v2  ;;  %v448_v41 = vld [vmem:[%s14666_s15 + $0x28] sm:$0xff] }
  0x21   : > { %488 = vst.msk [vmem:[#allocation2 + $0x58] sm:$0x3] %vm478_vm1, %v17952_v2  ;;  %491 = vst.msk [vmem:[#allocation2 + $0x70] sm:$0x3] %vm478_vm1, %v17952_v2  ;;  %v995_v44 = vld [vmem:[#allocation2 + $0x2] sm:$0xff] }
  0x22   : > { %494 = vst.msk [vmem:[#allocation2 + $0x88] sm:$0x3] %vm478_vm1, %v17952_v2  ;;  %497 = vst.msk [vmem:[#allocation2 + $0xa0] sm:$0x3] %vm478_vm1, %v17952_v2  ;;  %v452_v46 = vld [vmem:[%s14666_s15 + $0x48] sm:$0xff] }
  0x23   : > { %500 = vst.msk [vmem:[#allocation2 + $0xb8] sm:$0x3] %vm478_vm1, %v17952_v2  ;;  %506 = vst.msk [vmem:[#allocation2 + $0xe8] sm:$0x3] %vm478_vm1, %v17952_v2  ;;  %v565_v54 = vld [vmem:[#allocation2 + $0x8] sm:$0xff] }
  0x24   : > { %509 = vst.msk [vmem:[#allocation2 + $0x100] sm:$0x3] %vm478_vm1, %v17952_v2  ;;  %512 = vst.msk [vmem:[#allocation2 + $0x118] sm:$0x3] %vm478_vm1, %v17952_v2 }
  0x25   : > { %515 = vst.msk [vmem:[#allocation2 + $0x130] sm:$0x3] %vm478_vm1, %v17952_v2  ;;  %518 = vst.msk [vmem:[#allocation2 + $0x148] sm:$0x3] %vm478_vm1, %v17952_v2 }
  0x26   : > { %521 = vst.msk [vmem:[#allocation2 + $0x160] sm:$0x3] %vm478_vm1, %v17952_v2  ;;  %524 = vst.msk [vmem:[#allocation2 + $0x178] sm:$0x3] %vm478_vm1, %v17952_v2  ;;  %v780_v56 = vld [vmem:[#allocation2 + $0x9] sm:$0xff] }
  0x27   : > { %527 = vst.msk [vmem:[#allocation2 + $0x190] sm:$0x3] %vm478_vm1, %v17952_v2  ;;  %vm5539_vm1 = vcmask 517120  }
  0x28   : > { %546 = vst.msk [vmem:[#allocation2 + $0xc1] sm:$0xff] %vm475_vm0, %v457_v3  ;;  %542 = vst.msk [vmem:[#allocation2 + $0x91] sm:$0xff] %vm475_vm0, %v453_v4 }
  0x29   : > { %547 = vst.msk [vmem:[#allocation2 + $0xc9] sm:$0xff] %vm475_vm0, %v458_v5  ;;  %543 = vst.msk [vmem:[#allocation2 + $0x99] sm:$0xff] %vm475_vm0, %v454_v6 }
  0x2a   : > { %550 = vst.msk [vmem:[#allocation2 + $0xf1] sm:$0xff] %vm475_vm0, %v461_v7  ;;  %544 = vst.msk [vmem:[#allocation2 + $0xa9] sm:$0xff] %vm475_vm0, %v455_v8  ;;  %v996_v8 = vld [vmem:[#allocation2 + $0xa] sm:$0xff] }
  0x2b   : > { %554 = vst.msk [vmem:[#allocation2 + $0x121] sm:$0xff] %vm475_vm0, %v465_v11  ;;  %548 = vst.msk [vmem:[#allocation2 + $0xd9] sm:$0xff] %vm475_vm0, %v459_v12 }
  0x2c   : > { %534 = vst.msk [vmem:[#allocation2 + $0x31] sm:$0xff] %vm475_vm0, %v445_v13  ;;  %551 = vst.msk [vmem:[#allocation2 + $0xf9] sm:$0xff] %vm475_vm0, %v462_v14 }
  0x2d   : > { %538 = vst.msk [vmem:[#allocation2 + $0x61] sm:$0xff] %vm475_vm0, %v449_v15  ;;  %555 = vst.msk [vmem:[#allocation2 + $0x129] sm:$0xff] %vm475_vm0, %v466_v16 }
  0x2e   : > { %532 = vst.msk [vmem:[#allocation2 + $0x19] sm:$0xff] %vm475_vm0, %v443_v17  ;;  %545 = vst.msk [vmem:[#allocation2 + $0xb1] sm:$0xff] %vm475_vm0, %v456_v18 }
  0x2f   : > { %535 = vst.msk [vmem:[#allocation2 + $0x39] sm:$0xff] %vm475_vm0, %v446_v19  ;;  %552 = vst.msk [vmem:[#allocation2 + $0x109] sm:$0xff] %vm475_vm0, %v463_v20  ;;  %v14702_v23 = vld [vmem:[#allocation2 + $0xc0] sm:$0xff]  ;;  %v14704_v24 = vld [vmem:[#allocation2 + $0x90] sm:$0xff] }
  0x30   : > { %539 = vst.msk [vmem:[#allocation2 + $0x69] sm:$0xff] %vm475_vm0, %v450_v21  ;;  %556 = vst.msk [vmem:[#allocation2 + $0x139] sm:$0xff] %vm475_vm0, %v467_v22  ;;  %671 = vperm.xlu1 %14259, %v14702_v23   ;;  %653 = vperm.xlu0 %14260, %v14704_v24   ;;  %v14710_v25 = vld [vmem:[#allocation2 + $0xc1] sm:$0xff]  ;;  %v14712_v26 = vld [vmem:[#allocation2 + $0x91] sm:$0xff] }
  0x31   : > { %v14716_v27 = vld [vmem:[#allocation2 + $0xc2] sm:$0xff]  ;;  %v14718_v28 = vld [vmem:[#allocation2 + $0x92] sm:$0xff]  ;;  %549 = vst.msk [vmem:[#allocation2 + $0xe1] sm:$0xff] %vm475_vm0, %v460_v31  ;;  %536 = vst.msk [vmem:[#allocation2 + $0x49] sm:$0xff] %vm475_vm0, %v447_v32 }
  0x32   : > { %v14722_v29 = vld [vmem:[#allocation2 + $0xf0] sm:$0xff]  ;;  %v14724_v30 = vld [vmem:[#allocation2 + $0x98] sm:$0xff]  ;;  %540 = vst.msk [vmem:[#allocation2 + $0x79] sm:$0xff] %vm475_vm0, %v451_v35  ;;  %533 = vst.msk [vmem:[#allocation2 + $0x21] sm:$0xff] %vm475_vm0, %v444_v36 }
  0x33   : > { %v14731_v33 = vld [vmem:[#allocation2 + $0xf1] sm:$0xff]  ;;  %v14733_v34 = vld [vmem:[#allocation2 + $0x99] sm:$0xff]  ;;  %v14743_v38 = vld [vmem:[#allocation2 + $0xc8] sm:$0xff]  ;;  %553 = vst.msk [vmem:[#allocation2 + $0x111] sm:$0xff] %vm475_vm0, %v464_v37 }
  0x34   : > { %887 = vperm.xlu1 %14259, %v14710_v25   ;;  %869 = vperm.xlu0 %14260, %v14712_v26   ;;  %v1223_v39 = vld [vmem:[#allocation2 + $0xa8] sm:$0xff]  ;;  %557 = vst.msk [vmem:[#allocation2 + $0x141] sm:$0xff] %vm475_vm0, %v468_v40  ;;  %537 = vst.msk [vmem:[#allocation2 + $0x51] sm:$0xff] %vm475_vm0, %v448_v41  ;;  %v14753_v43 = vld [vmem:[#allocation2 + $0x120] sm:$0xff] }
  0x35   : > { %v14751_v42 = vld [vmem:[#allocation2 + $0xc9] sm:$0xff]  ;;  %v14757_v45 = vld [vmem:[#allocation2 + $0x121] sm:$0xff]  ;;  %541 = vst.msk [vmem:[#allocation2 + $0x81] sm:$0xff] %vm475_vm0, %v452_v46  ;;  %v1227_v47 = vld [vmem:[#allocation2 + $0xd8] sm:$0xff] }
  0x36   : > { %v14762_v48 = vld [vmem:[#allocation2 + $0x30] sm:$0xff]  ;;  %558 = vst.msk [vmem:[#allocation2 + $0x151] sm:$0xff] %vm475_vm0, %v469_v49  ;;  %v14769_v51 = vld [vmem:[#allocation2 + $0x9a] sm:$0xff]  ;;  %v14784_v59 = vld [vmem:[#allocation2 + $0x122] sm:$0xff] }
  0x37   : > { %v14767_v50 = vld [vmem:[#allocation2 + $0x31] sm:$0xff]  ;;  %v1439_v53 = vld [vmem:[#allocation2 + $0xa9] sm:$0xff]  ;;  %v14776_v55 = vld [vmem:[#allocation2 + $0x60] sm:$0xff]  ;;  %559 = vst.msk [vmem:[#allocation2 + $0x159] sm:$0xff] %vm475_vm0, %v470_v9 }
  0x38   : > { %1103 = vperm.xlu1 %14259, %v14716_v27   ;;  %1085 = vperm.xlu0 %14260, %v14718_v28   ;;  %v14773_v52 = vld [vmem:[#allocation2 + $0xf2] sm:$0xff]  ;;  %v14779_v57 = vld [vmem:[#allocation2 + $0x61] sm:$0xff]  ;;  %v14782_v58 = vld [vmem:[#allocation2 + $0xca] sm:$0xff] }
  0x39   : > { %v1443_v60 = vld [vmem:[#allocation2 + $0xd9] sm:$0xff]  ;;  %v1224_v0 = vld [vmem:[#allocation2 + $0xb0] sm:$0xff]  ;;  %v1231_v4 = vld [vmem:[#allocation2 + $0x108] sm:$0xff] }
  0x3a   : > { %v1211_v61 = vld [vmem:[#allocation2 + $0x18] sm:$0xff]  ;;  %v1655_v3 = vld [vmem:[#allocation2 + $0xaa] sm:$0xff]  ;;  %v14803_v7 = vld [vmem:[#allocation2 + $0x62] sm:$0xff] }
  0x3b   : > { %v14788_v62 = vld [vmem:[#allocation2 + $0xf9] sm:$0xff]  ;;  %v14797_v5 = vld [vmem:[#allocation2 + $0x129] sm:$0xff]  ;;  %v1440_v19 = vld [vmem:[#allocation2 + $0xb1] sm:$0xff] }
  0x3c   : > { %689 = vperm.xlu1 %14259, %v14722_v29   ;;  %658 = vperm.xlu0 %14260, %v14724_v30   ;;  %v14790_v63 = vld [vmem:[#allocation2 + $0xf8] sm:$0xff]  ;;  %v14799_v6 = vld [vmem:[#allocation2 + $0x128] sm:$0xff]  ;;  %v1228_v11 = vld [vmem:[#allocation2 + $0xe0] sm:$0xff] }
  0x3d   : > { %v14794_v1 = vld [vmem:[#allocation2 + $0x32] sm:$0xff]  ;;  %v1659_v12 = vld [vmem:[#allocation2 + $0xda] sm:$0xff]  ;;  %v1215_v16 = vld [vmem:[#allocation2 + $0x48] sm:$0xff] }
  0x3e   : > { %v1235_v10 = vld [vmem:[#allocation2 + $0x138] sm:$0xff]  ;;  %v1447_v18 = vld [vmem:[#allocation2 + $0x109] sm:$0xff]  ;;  %v1212_v32 = vld [vmem:[#allocation2 + $0x20] sm:$0xff] }
  0x3f   : > { %v1427_v13 = vld [vmem:[#allocation2 + $0x19] sm:$0xff]  ;;  %v14817_v20 = vld [vmem:[#allocation2 + $0x68] sm:$0xff]  ;;  %v1232_v40 = vld [vmem:[#allocation2 + $0x110] sm:$0xff] }
  0x40   : > { %905 = vperm.xlu1 %14259, %v14731_v33   ;;  %874 = vperm.xlu0 %14260, %v14733_v34   ;;  %v14808_v14 = vld [vmem:[#allocation2 + $0x39] sm:$0xff]  ;;  %v14821_v21 = vld [vmem:[#allocation2 + $0x12a] sm:$0xff]  ;;  %v1444_v36 = vld [vmem:[#allocation2 + $0xe1] sm:$0xff] }
  0x41   : > { %v14810_v15 = vld [vmem:[#allocation2 + $0x38] sm:$0xff]  ;;  %v14823_v22 = vld [vmem:[#allocation2 + $0x69] sm:$0xff] }
  0x42   : > { %v14814_v17 = vld [vmem:[#allocation2 + $0xfa] sm:$0xff]  ;;  %v1656_v46 = vld [vmem:[#allocation2 + $0xb2] sm:$0xff]  ;;  %v1668_v2 = vld [vmem:[#allocation2 + $0x142] sm:$0xff] }
  0x43   : > { %v1219_v31 = vld [vmem:[#allocation2 + $0x78] sm:$0xff] }
  0x44   : > { %676 = vperm.xlu1 %14259, %v14743_v38   ;;  %1301 = vperm.xlu0 %14260, %v1223_v39   ;;  %v1451_v35 = vld [vmem:[#allocation2 + $0x139] sm:$0xff] }
  0x45   : > { %v1643_v37 = vld [vmem:[#allocation2 + $0x1a] sm:$0xff] }
  0x46   : > { %v14832_v41 = vld [vmem:[#allocation2 + $0x3a] sm:$0xff] }
  0x47   : > { %v1435_v9 = vld [vmem:[#allocation2 + $0x79] sm:$0xff] }
  0x48   : > { %892 = vperm.xlu1 %14259, %v14751_v42   ;;  %707 = vperm.xlu0 %14260, %v14753_v43  }
  0x4c   : > { %1031 = vperm.xlu1 %14259, %v995_v44   ;;  %923 = vperm.xlu0 %14260, %v14757_v45   ;;  %v471_v44 = vld [vmem:[%s14666_s15 + $0xe0] sm:$0xff] }
  0x4d   : > { %560 = vst.msk [vmem:[#allocation2 + $0x169] sm:$0xff] %vm475_vm0, %v471_v44  ;;  %v1647_v44 = vld [vmem:[#allocation2 + $0x4a] sm:$0xff] }
  0x50   : > { %1319 = vperm.xlu0 %14260, %v1227_v47   ;;  %617 = vperm.xlu1 %14259, %v14762_v48   ;;  %v1431_v47 = vld [vmem:[#allocation2 + $0x49] sm:$0xff] }
  0x54   : > { %833 = vperm.xlu0 %14260, %v14767_v50   ;;  %1090 = vperm.xlu1 %14259, %v14769_v51  }
  0x58   : > { %1121 = vperm.xlu0 %14260, %v14773_v52   ;;  %1517 = vperm.xlu1 %14259, %v1439_v53   ;;  %v1663_v53 = vld [vmem:[#allocation2 + $0x10a] sm:$0xff] }
  0x5c   : > { %604 = vperm.xlu0 %14260, %v565_v54   ;;  %635 = vperm.xlu1 %14259, %v14776_v55  }
  0x60   : > { %820 = vperm.xlu0 %14260, %v780_v56   ;;  %851 = vperm.xlu1 %14259, %v14779_v57  }
  0x64   : > { %1108 = vperm.xlu0 %14260, %v14782_v58   ;;  %1139 = vperm.xlu1 %14259, %v14784_v59  }
  0x68   : > { %1535 = vperm.xlu1 %14259, %v1443_v60   ;;  %1247 = vperm.xlu0 %14260, %v1211_v61   ;;  %v472_v60 = vld [vmem:[%s14666_s15 + $0xe8] sm:$0xff]  ;;  %v1236_v61 = vld [vmem:[#allocation2 + $0x140] sm:$0xff] }
  0x69   : > { %561 = vst.msk [vmem:[#allocation2 + $0x171] sm:$0xff] %vm475_vm0, %v472_v60  ;;  %v1220_v60 = vld [vmem:[#allocation2 + $0x80] sm:$0xff] }
  0x6c   : > { %910 = vperm.xlu1 %14259, %v14788_v62   ;;  %694 = vperm.xlu0 %14260, %v14790_v63  }
  0x70   : > { %1306 = vperm.xlu1 %14259, %v1224_v0   ;;  %1049 = vperm.xlu0 %14260, %v14794_v1   ;;  %v14848_v0 = vld [vmem:[#allocation2 + $0x6a] sm:$0xff] }
  0x74   : > { %1733 = vperm.xlu1 %14259, %v1655_v3   ;;  %1337 = vperm.xlu0 %14260, %v1231_v4  }
  0x78   : > { %928 = vperm.xlu1 %14259, %v14797_v5   ;;  %712 = vperm.xlu0 %14260, %v14799_v6  }
  0x7c   : > { %1067 = vperm.xlu1 %14259, %v14803_v7   ;;  %1036 = vperm.xlu0 %14260, %v996_v8   ;;  %v473_v8 = vld [vmem:[%s14666_s15 + $0xf0] sm:$0xff] }
  0x7d   : > { %562 = vst.msk [vmem:[#allocation2 + $0x181] sm:$0xff] %vm475_vm0, %v473_v8 }
  0x80   : > { %1355 = vperm.xlu1 %14259, %v1235_v10   ;;  %1324 = vperm.xlu0 %14260, %v1228_v11   ;;  %v1428_v10 = vld [vmem:[#allocation2 + $0x21] sm:$0xff] }
  0x84   : > { %1751 = vperm.xlu1 %14259, %v1659_v12   ;;  %1463 = vperm.xlu0 %14260, %v1427_v13   ;;  %v1667_v12 = vld [vmem:[#allocation2 + $0x13a] sm:$0xff]  ;;  %v1660_v13 = vld [vmem:[#allocation2 + $0xe2] sm:$0xff] }
  0x88   : > { %838 = vperm.xlu1 %14259, %v14808_v14   ;;  %622 = vperm.xlu0 %14260, %v14810_v15  }
  0x8c   : > { %1265 = vperm.xlu1 %14259, %v1215_v16   ;;  %1126 = vperm.xlu0 %14260, %v14814_v17  }
  0x90   : > { %1553 = vperm.xlu1 %14259, %v1447_v18   ;;  %1522 = vperm.xlu0 %14260, %v1440_v19   ;;  %v474_v19 = vld [vmem:[%s14666_s15 + $0xf8] sm:$0xff] }
  0x91   : > { %563 = vst.msk [vmem:[#allocation2 + $0x189] sm:$0xff] %vm475_vm0, %v474_v19 }
  0x92   : > { %v14830_v39 = vpop.permute.xlu1 %599 }
  0x94   : > { %640 = vperm.xlu1 %14259, %v14817_v20   ;;  %1950 = vperm.xlu0 %14260, %v14702_v23   ;;  %v14828_v23 = vpop.permute.xlu0 %815 }
  0x98   : > { %1144 = vperm.xlu1 %14259, %v14821_v21   ;;  %856 = vperm.xlu0 %14260, %v14823_v22  }
  0x9c   : > { %1283 = vperm.xlu1 %14259, %v1219_v31   ;;  %1252 = vperm.xlu0 %14260, %v1212_v32  }
  0xa0   : > { %1571 = vperm.xlu1 %14259, %v1451_v35   ;;  %1540 = vperm.xlu0 %14260, %v1444_v36   ;;  %v1448_v35 = vld [vmem:[#allocation2 + $0x111] sm:$0xff] }
  0xa1   : > { %v1216_v36 = vld [vmem:[#allocation2 + $0x50] sm:$0xff] }
  0xa4   : > { %1968 = vperm.xlu1 %14259, %v14722_v29   ;;  %1679 = vperm.xlu0 %14260, %v1643_v37  }
  0xa8   : > { %1342 = vperm.xlu1 %14259, %v1232_v40   ;;  %1054 = vperm.xlu0 %14260, %v14832_v41  }
  0xab   : > { %v14837_v49 = vpop.permute.xlu1 %671  ;;  %v14839_v29 = vpop.permute.xlu0 %653 }
  0xac   : > { %1738 = vperm.xlu1 %14259, %v1656_v46   ;;  %1481 = vperm.xlu0 %14260, %v1431_v47  }
  0xaf   : > { %v14841_v54 = vpop.permute.xlu1 %887  ;;  %v14843_v56 = vpop.permute.xlu0 %869 }
  0xb0   : > { %2166 = vperm.xlu1 %14259, %v14710_v25   ;;  %1769 = vperm.xlu0 %14260, %v1663_v53  }
  0xb3   : > { %v14850_v3 = vpop.permute.xlu1 %1103  ;;  %v14852_v4 = vpop.permute.xlu0 %1085 }
  0xb4   : > { %1360 = vperm.xlu1 %14259, %v1236_v61   ;;  %1072 = vperm.xlu0 %14260, %v14848_v0  }
  0xb7   : > { %v14857_v25 = vpop.permute.xlu1 %689  ;;  %v14859_v11 = vpop.permute.xlu0 %658 }
  0xb8   : > { %1499 = vperm.xlu1 %14259, %v1435_v9   ;;  %1468 = vperm.xlu0 %14260, %v1428_v10   ;;  %v1651_v9 = vld [vmem:[#allocation2 + $0x7a] sm:$0xff]  ;;  %v1644_v10 = vld [vmem:[#allocation2 + $0x22] sm:$0xff] }
  0xbb   : > { %v14861_v16 = vpop.permute.xlu1 %905  ;;  %v14863_v18 = vpop.permute.xlu0 %874 }
  0xbc   : > { %1787 = vperm.xlu1 %14259, %v1667_v12   ;;  %1756 = vperm.xlu0 %14260, %v1660_v13   ;;  %v14896_v13 = vld [vmem:[#allocation2 + $0x150] sm:$0xff] }
  0xbf   : > { %v14867_v31 = vpop.permute.xlu1 %676  ;;  %v14869_v32 = vpop.permute.xlu0 %1301 }
  0xc0   : > { %2184 = vperm.xlu1 %14259, %v14731_v33   ;;  %1896 = vperm.xlu0 %14260, %v14762_v48   ;;  %v1452_v48 = vld [vmem:[#allocation2 + $0x141] sm:$0xff] }
  0xc3   : > { %v14873_v37 = vpop.permute.xlu1 %892  ;;  %v14875_v40 = vpop.permute.xlu0 %707 }
  0xc4   : > { %1558 = vperm.xlu1 %14259, %v1448_v35   ;;  %1270 = vperm.xlu0 %14260, %v1216_v36   ;;  %v1664_v36 = vld [vmem:[#allocation2 + $0x112] sm:$0xff] }
  0xc7   : > { %v14877_v46 = vpop.permute.xlu1 %1031  ;;  %v14879_v47 = vpop.permute.xlu0 %923 }
  0xc8   : > { %1955 = vperm.xlu1 %14259, %v14743_v38   ;;  %1697 = vperm.xlu0 %14260, %v1647_v44   ;;  %v1432_v44 = vld [vmem:[#allocation2 + $0x51] sm:$0xff] }
  0xcb   : > { %v14882_v53 = vpop.permute.xlu0 %1319  ;;  %v14884_v33 = vpop.permute.xlu1 %617 }
  0xcc   : > { %2382 = vperm.xlu1 %14259, %v14716_v27   ;;  %1986 = vperm.xlu0 %14260, %v14753_v43  }
  0xcf   : > { %v14888_v61 = vpop.permute.xlu0 %833  ;;  %v14890_v8 = vpop.permute.xlu1 %1090 }
  0xd0   : > { %1576 = vperm.xlu1 %14259, %v1452_v48   ;;  %1288 = vperm.xlu0 %14260, %v1220_v60  }
  0xd3   : > { %v14892_v38 = vpop.permute.xlu0 %1121  ;;  %v14894_v12 = vpop.permute.xlu1 %1517 }
  0xd4   : > { %1715 = vperm.xlu1 %14259, %v1651_v9   ;;  %1684 = vperm.xlu0 %14260, %v1644_v10  }
  0xd7   : > { %v14898_v27 = vpop.permute.xlu0 %604  ;;  %v14900_v43 = vpop.permute.xlu1 %635 }
  0xd8   : > { %17959 = vst [vmem:[#allocation12_spill] sm:$0xff] %v14900_v43  ;;  %2004 = vperm.xlu1 %14259, %v14896_v13   ;;  %1973 = vperm.xlu0 %14260, %v14790_v63   ;;  %v1436_v63 = vld [vmem:[#allocation2 + $0x81] sm:$0xff] }
  0xdb   : > { %v14904_v19 = vpop.permute.xlu0 %820  ;;  %v14906_v35 = vpop.permute.xlu1 %851 }
  0xdc   : > { %2400 = vperm.xlu1 %14259, %v14773_v52   ;;  %2112 = vperm.xlu0 %14260, %v14767_v50  }
  0xdf   : > { %v14910_v48 = vpop.permute.xlu0 %1108  ;;  %v14912_v60 = vpop.permute.xlu1 %1139 }
  0xe0   : > { %17960 = vst [vmem:[#allocation13_spill] sm:$0xff] %v14912_v60  ;;  %1774 = vperm.xlu1 %14259, %v1664_v36   ;;  %1486 = vperm.xlu0 %14260, %v1432_v44  }
  0xe3   : > { %v14914_v9 = vpop.permute.xlu1 %1535  ;;  %v14916_v10 = vpop.permute.xlu0 %1247 }
  0xe4   : > { %17961 = vst [vmem:[#allocation14_spill] sm:$0xff] %v14914_v9  ;;  %17962 = vst [vmem:[#allocation15_spill] sm:$0xff] %v14916_v10  ;;  %2171 = vperm.xlu1 %14259, %v14751_v42   ;;  %1914 = vperm.xlu0 %14260, %v14776_v55   ;;  %v14936_v55 = vld [vmem:[#allocation2 + $0x151] sm:$0xff]  ;;  %v1652_v9 = vld [vmem:[#allocation2 + $0x82] sm:$0xff] }
  0xe7   : > { %v14920_v52 = vpop.permute.xlu1 %910  ;;  %v14922_v50 = vpop.permute.xlu0 %694 }
  0xe8   : > { %1504 = vperm.xlu1 %14259, %v1436_v63   ;;  %2202 = vperm.xlu0 %14260, %v14757_v45  }
  0xeb   : > { %v14925_v60 = vpop.permute.xlu1 %1306  ;;  %v14927_v36 = vpop.permute.xlu0 %1049 }
  0xec   : > { %1901 = vperm.xlu1 %14259, %v14810_v15   ;;  %1792 = vperm.xlu0 %14260, %v1668_v2   ;;  %v1648_v15 = vld [vmem:[#allocation2 + $0x52] sm:$0xff] }
  0xef   : > { %v14930_v44 = vpop.permute.xlu1 %1733  ;;  %v14932_v42 = vpop.permute.xlu0 %1337 }
  0xf0   : > { %2189 = vperm.xlu1 %14259, %v14788_v62   ;;  %1932 = vperm.xlu0 %14260, %v14704_v24  }
  0xf3   : > { %v14938_v63 = vpop.permute.xlu1 %928  ;;  %v14940_v45 = vpop.permute.xlu0 %712 }
  0xf4   : > { %2328 = vperm.xlu1 %14259, %v14794_v1   ;;  %2220 = vperm.xlu0 %14260, %v14936_v55  }
  0xf7   : > { %v14944_v2 = vpop.permute.xlu1 %1067  ;;  %v14946_v10 = vpop.permute.xlu0 %1036 }
  0xf8   : > { %17963 = vst [vmem:[#allocation16_spill] sm:$0xff] %v14944_v2  ;;  %17964 = vst [vmem:[#allocation17_spill] sm:$0xff] %v14946_v10  ;;  %1991 = vperm.xlu1 %14259, %v14799_v6   ;;  %1702 = vperm.xlu0 %14260, %v1648_v15   ;;  %v17969_v6 = vmov 0.0   ;;  %v15042_v10 = vld [vmem:[#allocation2 + $0x152] sm:$0xff] }
  0xf9   : > { %2845 = vst.msk [vmem:[#allocation3 + $0x40] sm:$0xff] %vm2835_vm2, %v17969_v6  ;;  %2836 = vst.msk [vmem:[#allocation3] sm:$0xff] %vm2835_vm2, %v17969_v6 }
  0xfa   : > { %2846 = vst.msk [vmem:[#allocation3 + $0x48] sm:$0x3] %vm2837_vm3, %v17969_v6  ;;  %2838 = vst.msk [vmem:[#allocation3 + $0x8] sm:$0x3] %vm2837_vm3, %v17969_v6 }
  0xfb   : > { %v14949_v62 = vpop.permute.xlu1 %1355  ;;  %v14951_v24 = vpop.permute.xlu0 %1324  ;;  %2839 = vst.msk [vmem:[#allocation3 + $0x10] sm:$0xff] %vm2835_vm2, %v17969_v6  ;;  %2841 = vst.msk [vmem:[#allocation3 + $0x20] sm:$0xff] %vm2835_vm2, %v17969_v6 }
  0xfc   : > { %17965 = vst [vmem:[#allocation18_spill] sm:$0xff] %v14949_v62  ;;  %17966 = vst [vmem:[#allocation19_spill] sm:$0xff] %v14951_v24  ;;  %2387 = vperm.xlu1 %14259, %v14782_v58   ;;  %2130 = vperm.xlu0 %14260, %v14779_v57   ;;  %v15018_v57 = vld [vmem:[#allocation2 + $0x158] sm:$0xff]  ;;  %v15023_v58 = vld [vmem:[%s17939_s1 + $0x1] ss:$0 sm:$0xff] }
  0xfd   : > { %2840 = vst.msk [vmem:[#allocation3 + $0x18] sm:$0x3] %vm2837_vm3, %v17969_v6  ;;  %2842 = vst.msk [vmem:[#allocation3 + $0x28] sm:$0x3] %vm2837_vm3, %v17969_v6 }
  0xfe   : > { %2843 = vst.msk [vmem:[#allocation3 + $0x30] sm:$0xff] %vm2835_vm2, %v17969_v6  ;;  %2847 = vst.msk [vmem:[#allocation3 + $0x50] sm:$0xff] %vm2835_vm2, %v17969_v6 }
  0xff   : > { %v14955_v1 = vpop.permute.xlu1 %1751  ;;  %v14957_v43 = vpop.permute.xlu0 %1463  ;;  %2844 = vst.msk [vmem:[#allocation3 + $0x38] sm:$0x3] %vm2837_vm3, %v17969_v6  ;;  %2848 = vst.msk [vmem:[#allocation3 + $0x58] sm:$0x3] %vm2837_vm3, %v17969_v6 }
 0x100   : > { %17967 = vst [vmem:[#allocation20_spill] sm:$0xff] %v14955_v1  ;;  %17968 = vst [vmem:[#allocation21_spill] sm:$0xff] %v14957_v43  ;;  %1720 = vperm.xlu1 %14259, %v1652_v9   ;;  %2418 = vperm.xlu0 %14260, %v14784_v59   ;;  %v15028_v59 = vld [vmem:[%s17939_s1] ss:$0 sm:$0xff] }
 0x101   : > { %2849 = vst.msk [vmem:[#allocation3 + $0x60] sm:$0xff] %vm2835_vm2, %v17969_v6  ;;  %2851 = vst.msk [vmem:[#allocation3 + $0x70] sm:$0xff] %vm2835_vm2, %v17969_v6 }
 0x102   : > { %2850 = vst.msk [vmem:[#allocation3 + $0x68] sm:$0x3] %vm2837_vm3, %v17969_v6  ;;  %2852 = vst.msk [vmem:[#allocation3 + $0x78] sm:$0x3] %vm2837_vm3, %v17969_v6 }
 0x103   : > { %2853 = vst.msk [vmem:[#allocation3 + $0x80] sm:$0xff] %vm2835_vm2, %v17969_v6  ;;  %2855 = vst.msk [vmem:[#allocation3 + $0x90] sm:$0xff] %vm2835_vm2, %v17969_v6  ;;  %v839_v9 = vpop.permute.xlu1 %838  ;;  %v623_v15 = vpop.permute.xlu0 %622 }
 0x104   : > { %2854 = vst.msk [vmem:[#allocation3 + $0x88] sm:$0x3] %vm2837_vm3, %v17969_v6  ;;  %2856 = vst.msk [vmem:[#allocation3 + $0x98] sm:$0x3] %vm2837_vm3, %v17969_v6  ;;  %v966_v43 = vmul.f32 %v15023_v58, %v839_v9  ;;  %v750_v1 = vmul.f32 %v15028_v59, %v623_v15  ;;  %2117 = vperm.xlu1 %14259, %v14808_v14   ;;  %2009 = vperm.xlu0 %14260, %v15018_v57   ;;  %v15061_v15 = vld [vmem:[%s17939_s1 + $0x2] ss:$0 sm:$0xff] }
 0x105   : > { %8067 = vst.msk [vmem:[#allocation7] sm:$0xff] %vm2835_vm2, %v17969_v6  ;;  %8069 = vst.msk [vmem:[#allocation7 + $0x10] sm:$0xff] %vm2835_vm2, %v17969_v6  ;;  %vm5569_vm3 = vcmask 523264  }
 0x106   : > { %8071 = vst.msk [vmem:[#allocation7 + $0x20] sm:$0xff] %vm2835_vm2, %v17969_v6  ;;  %8073 = vst.msk [vmem:[#allocation7 + $0x30] sm:$0xff] %vm2835_vm2, %v17969_v6 }
 0x107   : > { %8075 = vst.msk [vmem:[#allocation7 + $0x40] sm:$0xff] %vm2835_vm2, %v17969_v6  ;;  %8077 = vst.msk [vmem:[#allocation7 + $0x50] sm:$0xff] %vm2835_vm2, %v17969_v6  ;;  %v15036_v24 = vpop.permute.xlu1 %1265  ;;  %v15038_v62 = vpop.permute.xlu0 %1126 }
 0x108   : > { %8079 = vst.msk [vmem:[#allocation7 + $0x60] sm:$0xff] %vm2835_vm2, %v17969_v6  ;;  %8081 = vst.msk [vmem:[#allocation7 + $0x70] sm:$0xff] %vm2835_vm2, %v17969_v6  ;;  %2405 = vperm.xlu1 %14259, %v14814_v17   ;;  %2148 = vperm.xlu0 %14260, %v14712_v26   ;;  %v15054_v17 = vld [vmem:[#allocation2 + $0x159] sm:$0xff] }
 0x109   : > { %8083 = vst.msk [vmem:[#allocation7 + $0x80] sm:$0xff] %vm2835_vm2, %v17969_v6  ;;  %17970 = vst [vmem:[#allocation22_spill] sm:$0xff] %v15018_v57  ;;  %v15034_v6 = vadd.f32 %v966_v43, %v750_v1  ;;  %v971_v57 = vmul.f32 %v15023_v58, %v14841_v54 }
 0x10a   : > { %17971 = vst [vmem:[#allocation23_spill] sm:$0xff] %v15042_v10  ;;  %17972 = vst [vmem:[#allocation24_spill] sm:$0xff] %v15054_v17 }
 0x10b   : > { %v15044_v2 = vpop.permute.xlu1 %1553  ;;  %v15046_v9 = vpop.permute.xlu0 %1522 }
 0x10c   : > { %1919 = vperm.xlu1 %14259, %v14817_v20   ;;  %2436 = vperm.xlu0 %14260, %v15042_v10  }
 0x10f   : > { %v641_v14 = vpop.permute.xlu1 %640  ;;  %v15050_v43 = vpop.permute.xlu0 %1950 }
 0x110   : > { %2346 = vperm.xlu1 %14259, %v14803_v7   ;;  %2207 = vperm.xlu0 %14260, %v14797_v5   ;;  %v752_v20 = vmul.f32 %v15028_v59, %v641_v14  ;;  %v969_v5 = vmul.f32 %v15023_v58, %v14843_v56  ;;  %v963_v7 = vmul.f32 %v15023_v58, %v14828_v23 }
 0x111   : > { %v753_v56 = vmul.f32 %v15028_v59, %v14839_v29  ;;  %v1185_v23 = vmul.f32 %v15061_v15, %v14852_v4 }
 0x113   : > { %v15056_v26 = vpop.permute.xlu1 %1144  ;;  %v857_v1 = vpop.permute.xlu0 %856 }
 0x114   : > { %17973 = vst [vmem:[#allocation25_spill] sm:$0xff] %v15056_v26  ;;  %v968_v10 = vmul.f32 %v15023_v58, %v857_v1  ;;  %2225 = vperm.xlu1 %14259, %v15054_v17   ;;  %1937 = vperm.xlu0 %14260, %v14724_v30   ;;  %v15076_v26 = vld [vmem:[%s17939_s1 + $0x3] ss:$0 sm:$0xff]  ;;  %v747_v1 = vmul.f32 %v15028_v59, %v14830_v39 }
 0x115   : > { %v755_v30 = vmul.f32 %v15028_v59, %v14837_v49  ;;  %v970_v39 = vmul.f32 %v15023_v58, %v14863_v18  ;;  %v985_v49 = vadd.f32 %v969_v5, %v753_v56  ;;  %v1401_v29 = vmul.f32 %v15076_v26, %v14869_v32 }
 0x116   : > { %v15078_v14 = vadd.f32 %v968_v10, %v752_v20  ;;  %v1187_v10 = vmul.f32 %v15061_v15, %v14850_v3  ;;  %v973_v20 = vmul.f32 %v15023_v58, %v14861_v16  ;;  %v754_v3 = vmul.f32 %v15028_v59, %v14859_v11 }
 0x117   : > { %v15088_v54 = vpop.permute.xlu1 %1283  ;;  %v15090_v17 = vpop.permute.xlu0 %1252  ;;  %v987_v4 = vadd.f32 %v971_v57, %v755_v30  ;;  %v1201_v16 = vadd.f32 %v1185_v23, %v985_v49  ;;  %v972_v18 = vmul.f32 %v15023_v58, %v14873_v37  ;;  %v756_v11 = vmul.f32 %v15028_v59, %v14867_v31  ;;  %v12849_v31 = vld [vmem:[%s17941_s3 + $0x10] sm:$0xff] }
 0x118   : > { %17974 = vst [vmem:[#allocation26_spill] sm:$0xff] %v15078_v14  ;;  %17975 = vst [vmem:[#allocation27_spill] sm:$0xff] %v15090_v17  ;;  %2364 = vperm.xlu1 %14259, %v14718_v28   ;;  %2333 = vperm.xlu0 %14260, %v14832_v41   ;;  %v757_v14 = vmul.f32 %v15028_v59, %v14857_v25  ;;  %v15106_v17 = vadd.f32 %v963_v7, %v747_v1  ;;  %v12850_v25 = vld [vmem:[%s17941_s3 + $0x18] sm:$0xff] }
 0x119   : > { %v1203_v5 = vadd.f32 %v1187_v10, %v987_v4  ;;  %v986_v32 = vadd.f32 %v970_v39, %v754_v3  ;;  %v1417_v57 = vadd.f32 %v1401_v29, %v1201_v16  ;;  %v975_v37 = vmul.f32 %v15023_v58, %v14879_v47  ;;  %v15123_v7 = vld [vmem:[#allocation2 + $0x15a] sm:$0xff]  ;;  %14242 = vmatprep.subr.mxu1 %v12850_v25 }
 0x11a   : > { %v989_v56 = vadd.f32 %v973_v20, %v757_v14  ;;  %13585 = vmatprep.subr.mxu0 %v12850_v25  ;;  %v758_v14 = vmul.f32 %v15028_v59, %v14922_v50  ;;  %14244 = vmatpush3.msra.mxu1 %v12850_v25  ;;  %v15134_v47 = vadd.f32 %v972_v18, %v756_v11 }
 0x11b   : > { %v15110_v28 = vpop.permute.xlu1 %1571  ;;  %v15112_v41 = vpop.permute.xlu0 %1540  ;;  %13586 = vmatpush3.msra.mxu0 %v12850_v25  ;;  %v759_v1 = vmul.f32 %v15028_v59, %v14875_v40  ;;  %14243 = vmatprep.subr.mxu1 %v12849_v31  ;;  %v15146_v50 = vmul.f32 %v15061_v15, %v14877_v46  ;;  %v749_v23 = vmul.f32 %v15028_v59, %v14884_v33  ;;  %v15153_v40 = vld [vmem:[%s17939_s1 + $0x4] ss:$0 sm:$0xff] }
 0x11c   : > { %2423 = vperm.xlu1 %14259, %v14821_v21   ;;  %2135 = vperm.xlu0 %14260, %v14823_v22   ;;  %v965_v21 = vmul.f32 %v15023_v58, %v14888_v61  ;;  %v974_v22 = vmul.f32 %v15023_v58, %v14920_v52  ;;  %v1186_v61 = vmul.f32 %v15061_v15, %v14890_v8 }
 0x11d   : > { %13587 = vmatprep.subr.mxu0 %v12849_v31  ;;  %v1190_v8 = vmul.f32 %v15061_v15, %v15038_v62  ;;  %v1403_v10 = vmul.f32 %v15076_v26, %v14882_v53  ;;  %v1402_v46 = vmul.f32 %v15076_v26, %v14925_v60  ;;  %v1181_v33 = vmul.f32 %v15061_v15, %v14927_v36  ;;  %v15174_v53 = vld [vmem:[%s17939_s1 + $0x5] ss:$0 sm:$0xff] }
 0x11e   : > { %14245 = vmatpush3.msra.mxu1 %v12849_v31  ;;  %13588 = vmatpush3.msra.mxu0 %v12849_v31  ;;  %v15165_v20 = vadd.f32 %v975_v37, %v759_v1  ;;  %v981_v39 = vadd.f32 %v965_v21, %v749_v23  ;;  %v1189_v62 = vmul.f32 %v15061_v15, %v14892_v38 }
 0x11f   : > { %v15140_v30 = vpop.permute.xlu1 %1968  ;;  %v15142_v52 = vpop.permute.xlu0 %1679  ;;  %v990_v49 = vadd.f32 %v974_v22, %v758_v14  ;;  %v1202_v29 = vadd.f32 %v1186_v61, %v986_v32  ;;  %v1397_v60 = vmul.f32 %v15076_v26, %v15036_v24  ;;  %v1618_v36 = vmul.f32 %v15153_v40, %v15046_v9  ;;  %v15191_v9 = vld [vmem:[%s17939_s1 + $0x6] ss:$0 sm:$0xff] }
 0x120   : > { %2441 = vperm.xlu1 %14259, %v15123_v7   ;;  %2153 = vperm.xlu0 %14260, %v14733_v34   ;;  %v1617_v34 = vmul.f32 %v15153_v40, %v14894_v12  ;;  %v15184_v12 = vadd.f32 %v1403_v10, %v1203_v5  ;;  %v1197_v25 = vadd.f32 %v1181_v33, %v981_v39  ;;  %v17976_v10 = vld [vmem:[#allocation25_spill] sm:$0xff] }
 0x121   : > { %v1206_v16 = vadd.f32 %v1190_v8, %v990_v49  ;;  %v1418_v32 = vadd.f32 %v1402_v46, %v1202_v29  ;;  %v1405_v24 = vmul.f32 %v15076_v26, %v14932_v42  ;;  %v1205_v11 = vadd.f32 %v1189_v62, %v989_v56  ;;  %v17977_v29 = vld [vmem:[#allocation22_spill] sm:$0xff] }
 0x122   : > { %v1833_v37 = vmul.f32 %v15174_v53, %v14930_v44  ;;  %v1413_v5 = vadd.f32 %v1397_v60, %v1197_v25  ;;  %v1621_v22 = vmul.f32 %v15153_v40, %v15044_v2  ;;  %v2050_v1 = vmul.f32 %v15191_v9, %v15050_v43  ;;  %v15217_v43 = vld [vmem:[%s17939_s1 + $0x7] ss:$0 sm:$0xff]  ;;  %v17979_v60 = vld [vmem:[#allocation12_spill] sm:$0xff] }
 0x123   : > { %v1343_v4 = vpop.permute.xlu1 %1342  ;;  %v1055_v3 = vpop.permute.xlu0 %1054  ;;  %v1634_v42 = vadd.f32 %v1618_v36, %v1418_v32  ;;  %v976_v2 = vmul.f32 %v15023_v58, %v14938_v63  ;;  %v760_v61 = vmul.f32 %v15028_v59, %v14940_v45  ;;  %v1188_v63 = vmul.f32 %v15061_v15, %v14910_v48 }
 0x124   : > { %v1406_v38 = vmul.f32 %v15076_v26, %v1343_v4  ;;  %v1182_v18 = vmul.f32 %v15061_v15, %v1055_v3  ;;  %2369 = vperm.xlu1 %14259, %v14769_v51   ;;  %2351 = vperm.xlu0 %14260, %v14848_v0   ;;  %v1633_v0 = vadd.f32 %v1617_v34, %v1417_v57  ;;  %v17978_v34 = vld [vmem:[#allocation23_spill] sm:$0xff]  ;;  %v17981_v4 = vld [vmem:[#allocation16_spill] sm:$0xff] }
 0x125   : > { %v1421_v57 = vadd.f32 %v1405_v24, %v1205_v11  ;;  %v1192_v46 = vmul.f32 %v15061_v15, %v17976_v10  ;;  %v992_v36 = vadd.f32 %v976_v2, %v760_v61  ;;  %v1183_v3 = vmul.f32 %v15061_v15, %v17981_v4  ;;  %v17986_v2 = vld [vmem:[#allocation19_spill] sm:$0xff] }
 0x126   : > { %v15195_v21 = vadd.f32 %v1406_v38, %v1206_v16  ;;  %v15198_v51 = vadd.f32 %v1182_v18, %v15034_v6  ;;  %v748_v6 = vmul.f32 %v15028_v59, %v14898_v27  ;;  %v1849_v23 = vadd.f32 %v1833_v37, %v1633_v0  ;;  %v1239_v16 = vld [vmem:[#allocation2 + $0x168] sm:$0xff]  ;;  %v17982_v18 = vld [vmem:[#allocation17_spill] sm:$0xff]  ;;  %v3203_v4 = vld [vmem:[#allocation3 + $0x1] sm:$0xff] }
 0x127   : > { %v1739_v14 = vpop.permute.xlu1 %1738  ;;  %v1482_v31 = vpop.permute.xlu0 %1481  ;;  %v967_v27 = vmul.f32 %v15023_v58, %v14906_v35  ;;  %v1637_v45 = vadd.f32 %v1621_v22, %v1421_v57  ;;  %v751_v35 = vmul.f32 %v15028_v59, %v17979_v60  ;;  %v1180_v32 = vmul.f32 %v15061_v15, %v17982_v18  ;;  %v1455_v61 = vld [vmem:[#allocation2 + $0x169] sm:$0xff]  ;;  %13589 = vmatprep.mubr.msk.f32.mxu0 %vm2835_vm2, %v3203_v4 }
 0x128   : > { %v1834_v56 = vmul.f32 %v15174_v53, %v1739_v14  ;;  %v1613_v44 = vmul.f32 %v15153_v40, %v1482_v31  ;;  %941 = vperm.xlu1 %14259, %v14936_v55   ;;  %725 = vperm.xlu0 %14260, %v14896_v13   ;;  %v964_v55 = vmul.f32 %v15023_v58, %v14904_v19  ;;  %v17980_v58 = vld [vmem:[#allocation13_spill] sm:$0xff]  ;;  %v17989_v10 = vld [vmem:[#allocation15_spill] sm:$0xff] }
 0x129   : > { %v2066_v62 = vadd.f32 %v2050_v1, %v1849_v23  ;;  %v1191_v48 = vmul.f32 %v15061_v15, %v17980_v58  ;;  %v983_v11 = vadd.f32 %v967_v27, %v751_v35  ;;  %v1204_v37 = vadd.f32 %v1188_v63, %v15134_v47  ;;  %v17985_v47 = vld [vmem:[#allocation18_spill] sm:$0xff] }
 0x12a   : > { %v15221_v13 = vadd.f32 %v1834_v56, %v1634_v42  ;;  %v15223_v8 = vadd.f32 %v1613_v44, %v1413_v5  ;;  %v980_v38 = vadd.f32 %v964_v55, %v748_v6  ;;  %v1208_v59 = vadd.f32 %v1192_v46, %v992_v36  ;;  %v17983_v42 = vld [vmem:[#allocation27_spill] sm:$0xff]  ;;  %v17984_v56 = vld [vmem:[#allocation24_spill] sm:$0xff]  ;;  %v17987_v55 = vld [vmem:[#allocation14_spill] sm:$0xff] }
 0x12b   : > { %v2167_v33 = vpop.permute.xlu1 %2166  ;;  %v1770_v39 = vpop.permute.xlu0 %1769  ;;  %v1399_v0 = vmul.f32 %v15076_v26, %v15088_v54  ;;  %v1396_v14 = vmul.f32 %v15076_v26, %v17983_v42  ;;  %v1207_v44 = vadd.f32 %v1191_v48, %v15165_v20  ;;  %v1199_v6 = vadd.f32 %v1183_v3, %v983_v11  ;;  %v17990_v48 = vld [vmem:[#allocation20_spill] sm:$0xff]  ;;  %v1671_v36 = vld [vmem:[#allocation2 + $0x16a] sm:$0xff]  ;;  %v1888_v42 = vld [vmem:[#allocation2 + $0x180] sm:$0xff] }
 0x12c   : > { %v2266_v19 = vmul.f32 %v15217_v43, %v2167_v33  ;;  %v1837_v49 = vmul.f32 %v15174_v53, %v1770_v39  ;;  %730 = vperm.xlu1 %14259, %v17977_v29   ;;  %1157 = vperm.xlu0 %14260, %v17978_v34   ;;  %v1407_v57 = vmul.f32 %v15076_v26, %v17985_v47 }
 0x12d   : > { %v1404_v54 = vmul.f32 %v15076_v26, %v17986_v2  ;;  %v1619_v23 = vmul.f32 %v15153_v40, %v17987_v55  ;;  %v1196_v27 = vadd.f32 %v1180_v32, %v980_v38  ;;  %v1395_v20 = vmul.f32 %v15076_v26, %v17989_v10 }
 0x12e   : > { %v15243_v25 = vadd.f32 %v2266_v19, %v2066_v62  ;;  %v15245_v24 = vadd.f32 %v1837_v49, %v1637_v45  ;;  %v1415_v46 = vadd.f32 %v1399_v0, %v1199_v6  ;;  %v1623_v33 = vmul.f32 %v15153_v40, %v15110_v28 }
 0x12f   : > { %v1361_v5 = vpop.permute.xlu1 %1360  ;;  %v1073_v22 = vpop.permute.xlu0 %1072  ;;  %v1620_v39 = vmul.f32 %v15153_v40, %v15112_v41  ;;  %v1412_v49 = vadd.f32 %v1396_v14, %v1196_v27  ;;  %v1195_v60 = vadd.f32 %v15146_v50, %v15106_v17  ;;  %v1423_v35 = vadd.f32 %v1407_v57, %v1207_v44  ;;  %v1240_v41 = vld [vmem:[#allocation2 + $0x170] sm:$0xff] }
 0x130   : > { %v1408_v31 = vmul.f32 %v15076_v26, %v1361_v5  ;;  %v1184_v1 = vmul.f32 %v15061_v15, %v1073_v22  ;;  %1373 = vperm.xlu1 %14259, %v1239_v16   ;;  %946 = vperm.xlu0 %14260, %v17984_v56   ;;  %v17988_v15 = vld [vmem:[#allocation26_spill] sm:$0xff]  ;;  %v1420_v58 = vadd.f32 %v1404_v54, %v1204_v37  ;;  %v17991_v16 = vld [vmem:[#allocation21_spill] sm:$0xff]  ;;  %v1456_v14 = vld [vmem:[#allocation2 + $0x171] sm:$0xff] }
 0x131   : > { %v1835_v28 = vmul.f32 %v15174_v53, %v17990_v48  ;;  %v1635_v3 = vadd.f32 %v1619_v23, %v15184_v12  ;;  %v1611_v38 = vmul.f32 %v15153_v40, %v17991_v16  ;;  %v1411_v17 = vadd.f32 %v1395_v20, %v1195_v60  ;;  %v2104_v54 = vld [vmem:[#allocation2 + $0x181] sm:$0xff]  ;;  %v2321_v60 = vld [vmem:[#allocation2 + $0x18a] sm:$0xff] }
 0x132   : > { %v15262_v63 = vadd.f32 %v1408_v31, %v1208_v59  ;;  %v15265_v45 = vadd.f32 %v1184_v1, %v17988_v15  ;;  %v1636_v50 = vadd.f32 %v1620_v39, %v1420_v58  ;;  %v2052_v11 = vmul.f32 %v15191_v9, %v15140_v30 }
 0x133   : > { %v1500_v62 = vpop.permute.xlu1 %1499  ;;  %v1469_v19 = vpop.permute.xlu0 %1468  ;;  %v1827_v12 = vmul.f32 %v15174_v53, %v15142_v52  ;;  %v1851_v22 = vadd.f32 %v1835_v28, %v1635_v3  ;;  %v1627_v31 = vadd.f32 %v1611_v38, %v1411_v17  ;;  %v15299_v52 = vld [vmem:[%s17941_s3 + $0x8] sm:$0xff] }
 0x134   : > { %v1615_v29 = vmul.f32 %v15153_v40, %v1500_v62  ;;  %v1612_v34 = vmul.f32 %v15153_v40, %v1469_v19  ;;  %1589 = vperm.xlu1 %14259, %v1455_v61   ;;  %1162 = vperm.xlu0 %14260, %v15123_v7   ;;  %v1639_v7 = vadd.f32 %v1623_v33, %v1423_v35  ;;  %v1672_v61 = vld [vmem:[#allocation2 + $0x172] sm:$0xff]  ;;  %v1889_v33 = vld [vmem:[#allocation2 + $0x188] sm:$0xff] }
 0x135   : > { %v2068_v44 = vadd.f32 %v2052_v11, %v1851_v22  ;;  %v1843_v47 = vadd.f32 %v1827_v12, %v1627_v31  ;;  %13601 = vmatprep.subr.mxu1 %v15299_v52  ;;  %v2105_v35 = vld [vmem:[#allocation2 + $0x189] sm:$0xff] }
 0x136   : > { %v15283_v18 = vadd.f32 %v1615_v29, %v1415_v46  ;;  %v15285_v32 = vadd.f32 %v1612_v34, %v1412_v49  ;;  %v2320_v46 = vld [vmem:[#allocation2 + $0x182] sm:$0xff] }
 0x137   : > { %v1788_v37 = vpop.permute.xlu1 %1787  ;;  %v1757_v59 = vpop.permute.xlu0 %1756  ;;  %v15317_v29 = vld [vmem:[%s17941_s3 + $0x28] sm:$0xff] }
 0x138   : > { %v1839_v0 = vmul.f32 %v15174_v53, %v1788_v37  ;;  %v1836_v5 = vmul.f32 %v15174_v53, %v1757_v59  ;;  %1805 = vperm.xlu1 %14259, %v1671_v36   ;;  %1378 = vperm.xlu0 %14260, %v1240_v41  }
 0x139   : > { %13617 = vmatprep.subr.mxu0 %v15317_v29 }
 0x13a   : > { %v1855_v1 = vadd.f32 %v1839_v0, %v1639_v7  ;;  %v15294_v56 = vadd.f32 %v1836_v5, %v1636_v50 }
 0x13b   : > { %v2185_v30 = vpop.permute.xlu1 %2184  ;;  %v1897_v6 = vpop.permute.xlu0 %1896 }
 0x13c   : > { %v2268_v57 = vmul.f32 %v15217_v43, %v2185_v30  ;;  %v2044_v2 = vmul.f32 %v15191_v9, %v1897_v6  ;;  %2022 = vperm.xlu1 %14259, %v1888_v42   ;;  %1594 = vperm.xlu0 %14260, %v1456_v14   ;;  %v14462_v14 = vmov 1983009808   ;;  %v15363_v6 = vld [vmem:[%s17940_s2] ss:$0 sm:$0xff] }
 0x13d   : > { %v2565_v31 = vunpack.c.l.s4 %v14462_v14 }
 0x13e   : > { %v2284_v55 = vadd.f32 %v2268_v57, %v2068_v44  ;;  %v15304_v23 = vadd.f32 %v2044_v2, %v1843_v47 }
 0x13f   : > { %v1559_v27 = vpop.permute.xlu1 %1558  ;;  %v1271_v15 = vpop.permute.xlu0 %1270 }
 0x140   : > { %v1622_v10 = vmul.f32 %v15153_v40, %v1559_v27  ;;  %v1398_v20 = vmul.f32 %v15076_v26, %v1271_v15  ;;  %2238 = vperm.xlu1 %14259, %v2104_v54   ;;  %1810 = vperm.xlu0 %14260, %v1672_v61   ;;  %v2566_v61 = vunpack.c.0.s8 %v2565_v31 }
 0x142   : > { %v15309_v39 = vadd.f32 %v1622_v10, %v15195_v21  ;;  %v1414_v62 = vadd.f32 %v1398_v20, %v15198_v51 }
 0x143   : > { %v15312_v19 = vpop.permute.xlu1 %1955  ;;  %v1698_v49 = vpop.permute.xlu0 %1697 }
 0x144   : > { %v1829_v34 = vmul.f32 %v15174_v53, %v1698_v49  ;;  %2454 = vperm.xlu1 %14259, %v2320_v46   ;;  %2027 = vperm.xlu0 %14260, %v1889_v33  }
 0x146   : > { %v1845_v21 = vadd.f32 %v1829_v34, %v15223_v8 }
 0x147   : > { %v2383_v58 = vpop.permute.xlu1 %2382  ;;  %v1987_v51 = vpop.permute.xlu0 %1986 }
 0x148   : > { %v2054_v48 = vmul.f32 %v15191_v9, %v1987_v51  ;;  %2459 = vperm.xlu1 %14259, %v2321_v60   ;;  %2243 = vperm.xlu0 %14260, %v2105_v35  }
 0x14a   : > { %v15324_v28 = vadd.f32 %v2054_v48, %v15245_v24 }
 0x14b   : > { %v1577_v36 = vpop.permute.xlu1 %1576  ;;  %v1289_v41 = vpop.permute.xlu0 %1288 }
 0x14c   : > { %v1624_v4 = vmul.f32 %v15153_v40, %v1577_v36  ;;  %v1400_v3 = vmul.f32 %v15076_v26, %v1289_v41 }
 0x14e   : > { %v15329_v16 = vadd.f32 %v1624_v4, %v15262_v63  ;;  %v15332_v8 = vadd.f32 %v1400_v3, %v15265_v45  ;;  %v15350_v45 = vld [vmem:[%s17939_s1 + $0x8] ss:$0 sm:$0xff] }
 0x14f   : > { %v1716_v38 = vpop.permute.xlu1 %1715  ;;  %v1685_v17 = vpop.permute.xlu0 %1684 }
 0x150   : > { %v1831_v7 = vmul.f32 %v15174_v53, %v1716_v38  ;;  %v1828_v50 = vmul.f32 %v15174_v53, %v1685_v17 }
 0x152   : > { %v15337_v24 = vadd.f32 %v1831_v7, %v15283_v18  ;;  %v15340_v11 = vadd.f32 %v1828_v50, %v15285_v32  ;;  %v2482_v18 = vmul.f32 %v15350_v45, %v2383_v58 }
 0x153   : > { %v2005_v37 = vpop.permute.xlu1 %2004  ;;  %v15342_v26 = vpop.permute.xlu0 %1973 }
 0x154   : > { %v2056_v63 = vmul.f32 %v15191_v9, %v2005_v37  ;;  %v2498_v44 = vadd.f32 %v2482_v18, %v15243_v25 }
 0x156   : > { %v15345_v59 = vadd.f32 %v2056_v63, %v1855_v1  ;;  %v2567_v1 = vlaneseq  ;;  %v2521_v15 = vadd.f32 %v15363_v6, %v2498_v44  ;;  %v2051_v63 = vmul.f32 %v15191_v9, %v15312_v19 }
 0x157   : > { %v2401_v12 = vpop.permute.xlu1 %2400  ;;  %v2113_v0 = vpop.permute.xlu0 %2112 }
 0x158   : > { %v2484_v42 = vmul.f32 %v15350_v45, %v2401_v12  ;;  %v15366_v27 = vshrl.u32 %v2567_v1, 7  ;;  %v2260_v51 = vmul.f32 %v15217_v43, %v2113_v0  ;;  %v2067_v44 = vadd.f32 %v2051_v63, %v15221_v13 }
 0x15a   : > { %v2500_v54 = vadd.f32 %v2484_v42, %v2284_v55  ;;  %v15373_v33 = vsub.s32 %v2566_v61, %v15366_v27  ;;  %v15381_v38 = vsub.s32 0, %v15366_v27  ;;  %v2276_v17 = vadd.f32 %v2260_v51, %v15304_v23 }
 0x15b   : > { %v15353_v5 = vpop.permute.xlu1 %1774  ;;  %v1487_v32 = vpop.permute.xlu0 %1486 }
 0x15c   : > { %v1614_v22 = vmul.f32 %v15153_v40, %v1487_v32  ;;  %v2523_v46 = vadd.f32 %v15363_v6, %v2500_v54  ;;  %v2053_v54 = vmul.f32 %v15191_v9, %v15342_v26 }
 0x15e   : > { %v15358_v30 = vadd.f32 %v1614_v22, %v1414_v62  ;;  %v2537_v62 = vmax.f32 %v2521_v15, 0.0  ;;  %v2539_v60 = vmax.f32 %v2523_v46, 0.0 }
 0x15f   : > { %v2172_v47 = vpop.permute.xlu1 %2171  ;;  %v1915_v57 = vpop.permute.xlu0 %1914 }
 0x160   : > { %v2046_v2 = vmul.f32 %v15191_v9, %v1915_v57  ;;  %v2672_v55 = vrot.slane %v2537_v62, %v15373_v33  ;;  %v2665_v48 = vcombine.high %v2537_v62, %v2537_v62  ;;  %v2699_v41 = vcombine.high %v2539_v60, %v2539_v60 }
 0x161   : > { %v2267_v42 = vmul.f32 %v15217_v43, %v2172_v47 }
 0x162   : > { %v15369_v10 = vadd.f32 %v2046_v2, %v1845_v21  ;;  %v2706_v21 = vrot.slane %v2539_v60, %v15373_v33  ;;  %v2680_v36 = vcombine.high %v2672_v55, %v2672_v55  ;;  %v2679_v50 = vrot.slane %v2665_v48, %v15373_v33 }
 0x163   : > { %v1505_v25 = vpop.permute.xlu1 %1504  ;;  %v2203_v20 = vpop.permute.xlu0 %2202  ;;  %v2713_v18 = vrot.slane %v2699_v41, %v15373_v33  ;;  %v2956_v23 = vrot.slane %v2672_v55, %v15381_v38  ;;  %v2283_v60 = vadd.f32 %v2267_v42, %v2067_v44 }
 0x164   : > { %v2714_v37 = vcombine.high %v2706_v21, %v2706_v21  ;;  %v2960_v12 = vrot.slane %v2680_v36, %v15381_v38  ;;  %v2681_v31 = vcombine.high %v2679_v50, %v2679_v50  ;;  %v2964_v1 = vrot.slane %v2679_v50, %v15381_v38 }
 0x165   : > { %v2715_v61 = vcombine.high %v2713_v18, %v2713_v18  ;;  %v2988_v15 = vrot.slane %v2706_v21, %v15381_v38  ;;  %v2996_v62 = vrot.slane %v2713_v18, %v15381_v38  ;;  %v2270_v26 = vmul.f32 %v15217_v43, %v2203_v20 }
 0x166   : > { %v2992_v19 = vrot.slane %v2714_v37, %v15381_v38  ;;  %v3141_v57 = vsel %vm3113_vm4, %v2960_v12, %v2956_v23  ;;  %v2968_v13 = vrot.slane %v2681_v31, %v15381_v38  ;;  %v1838_v21 = vmul.f32 %v15174_v53, %v15353_v5 }
 0x167   : > { %v1902_v49 = vpop.permute.xlu1 %1901  ;;  %v1793_v34 = vpop.permute.xlu0 %1792  ;;  %v3142_v51 = vsel %vm3115_vm5, %v2964_v1, %v3141_v57  ;;  %v1616_v36 = vmul.f32 %v15153_v40, %v1505_v25  ;;  %v2286_v25 = vadd.f32 %v2270_v26, %v15324_v28 }
 0x168   : > { %v3148_v48 = vsel %vm3113_vm4, %v2992_v19, %v2988_v15  ;;  %v2045_v50 = vmul.f32 %v15191_v9, %v1902_v49  ;;  %v3143_v49 = vsel %vm3117_vm6, %v2968_v13, %v3142_v51  ;;  %v1854_v23 = vadd.f32 %v1838_v21, %v15309_v39 }
 0x169   : > { %v3149_v20 = vsel %vm3115_vm5, %v2996_v62, %v3148_v48  ;;  %v1632_v42 = vadd.f32 %v1616_v36, %v15332_v8 }
 0x16b   : > { %v2190_v35 = vpop.permute.xlu1 %2189  ;;  %v1933_v58 = vpop.permute.xlu0 %1932 }
 0x16c   : > { %v2269_v5 = vmul.f32 %v15217_v43, %v2190_v35  ;;  %v15430_v35 = vadd.f32 %v2045_v50, %v15340_v11 }
 0x16f   : > { %v2329_v4 = vpop.permute.xlu1 %2328  ;;  %v15378_v3 = vpop.permute.xlu0 %2220 }
 0x170   : > { %v2476_v7 = vmul.f32 %v15350_v45, %v2329_v4  ;;  %v2272_v11 = vmul.f32 %v15217_v43, %v15378_v3 }
 0x172   : > { %v2492_v0 = vadd.f32 %v2476_v7, %v2276_v17  ;;  %v2069_v17 = vadd.f32 %v2053_v54, %v15294_v56  ;;  %v3000_v7 = vrot.slane %v2715_v61, %v15381_v38  ;;  %v2048_v56 = vmul.f32 %v15191_v9, %v1933_v58 }
 0x173   : > { %v15390_v32 = vpop.permute.xlu1 %1991  ;;  %v15392_v22 = vpop.permute.xlu0 %1702 }
 0x174   : > { %v2515_v14 = vadd.f32 %v15363_v6, %v2492_v0  ;;  %v1840_v0 = vmul.f32 %v15174_v53, %v1793_v34  ;;  %v15434_v58 = vsel %vm3117_vm6, %v3000_v7, %v3149_v20  ;;  %v2285_v57 = vadd.f32 %v2269_v5, %v2069_v17 }
 0x175   : > { %v2055_v54 = vmul.f32 %v15191_v9, %v15390_v32 }
 0x176   : > { %v2531_v2 = vmax.f32 %v2515_v14, 0.0  ;;  %v15437_v44 = vadd.f32 %v1840_v0, %v15329_v16 }
 0x177   : > { %v2388_v47 = vpop.permute.xlu1 %2387  ;;  %v15404_v46 = vpop.permute.xlu0 %2130 }
 0x178   : > { %v2483_v55 = vmul.f32 %v15350_v45, %v2388_v47  ;;  %v2570_v41 = vrot.slane %v2531_v2, %v15373_v33  ;;  %v2563_v37 = vcombine.high %v2531_v2, %v2531_v2  ;;  %v15441_v2 = vadd.f32 %v2048_v56, %v15337_v24 }
 0x179   : > { %v1830_v24 = vmul.f32 %v15174_v53, %v15392_v22 }
 0x17a   : > { %v2499_v4 = vadd.f32 %v2483_v55, %v2283_v60  ;;  %v2578_v14 = vcombine.high %v2570_v41, %v2570_v41  ;;  %v2577_v31 = vrot.slane %v2563_v37, %v15373_v33  ;;  %v2860_v55 = vrot.slane %v2570_v41, %v15381_v38 }
 0x17b   : > { %v1721_v63 = vpop.permute.xlu1 %1720  ;;  %v2419_v12 = vpop.permute.xlu0 %2418  ;;  %v2262_v37 = vmul.f32 %v15217_v43, %v15404_v46 }
 0x17c   : > { %v2522_v40 = vadd.f32 %v15363_v6, %v2499_v4  ;;  %v2486_v18 = vmul.f32 %v15350_v45, %v2419_v12  ;;  %v2864_v15 = vrot.slane %v2578_v14, %v15381_v38  ;;  %v2579_v60 = vcombine.high %v2577_v31, %v2577_v31 }
 0x17d   : > { %v2868_v36 = vrot.slane %v2577_v31, %v15381_v38  ;;  %v2288_v12 = vadd.f32 %v2272_v11, %v15345_v59  ;;  %v1832_v0 = vmul.f32 %v15174_v53, %v1721_v63  ;;  %v1846_v63 = vadd.f32 %v1830_v24, %v15358_v30 }
 0x17e   : > { %v2538_v34 = vmax.f32 %v2522_v40, 0.0  ;;  %v2502_v1 = vadd.f32 %v2486_v18, %v2286_v25  ;;  %v3114_v7 = vsel %vm3113_vm4, %v2864_v15, %v2860_v55  ;;  %v2872_v56 = vrot.slane %v2579_v60, %v15381_v38 }
 0x17f   : > { %v2118_v28 = vpop.permute.xlu1 %2117  ;;  %v2010_v19 = vpop.permute.xlu0 %2009  ;;  %v2278_v31 = vadd.f32 %v2262_v37, %v15369_v10 }
 0x180   : > { %v2682_v39 = vcombine.high %v2538_v34, %v2538_v34  ;;  %v2689_v8 = vrot.slane %v2538_v34, %v15373_v33  ;;  %v2525_v61 = vadd.f32 %v15363_v6, %v2502_v1  ;;  %v3116_v34 = vsel %vm3115_vm5, %v2868_v36, %v3114_v7 }
 0x181   : > { %v2261_v46 = vmul.f32 %v15217_v43, %v2118_v28  ;;  %v15488_v10 = vsel %vm3117_vm6, %v2872_v56, %v3116_v34 }
 0x182   : > { %v2696_v16 = vrot.slane %v2682_v39, %v15373_v33  ;;  %v2697_v47 = vcombine.high %v2689_v8, %v2689_v8  ;;  %v2972_v62 = vrot.slane %v2689_v8, %v15381_v38  ;;  %v2541_v13 = vmax.f32 %v2525_v61, 0.0 }
 0x183   : > { %v2406_v3 = vpop.permute.xlu1 %2405  ;;  %v2149_v51 = vpop.permute.xlu0 %2148  ;;  %v15481_v39 = vadd.f32 %v1832_v0, %v1632_v42  ;;  %v2277_v42 = vadd.f32 %v2261_v46, %v15430_v35 }
 0x184   : > { %v2698_v48 = vcombine.high %v2696_v16, %v2696_v16  ;;  %v2976_v32 = vrot.slane %v2697_v47, %v15381_v38  ;;  %v2980_v26 = vrot.slane %v2696_v16, %v15381_v38  ;;  %v3144_v21 = vsel %vm3119_vm7, %v2972_v62, %v3143_v49 }
 0x185   : > { %v2733_v4 = vcombine.high %v2541_v13, %v2541_v13  ;;  %v2740_v17 = vrot.slane %v2541_v13, %v15373_v33  ;;  %v2485_v41 = vmul.f32 %v15350_v45, %v2406_v3  ;;  %v15469_v49 = vadd.f32 %v2055_v54, %v1854_v23 }
 0x186   : > { %v2984_v22 = vrot.slane %v2698_v48, %v15381_v38  ;;  %v3145_v50 = vsel %vm3121_vm8, %v2976_v32, %v3144_v21  ;;  %v2264_v8 = vmul.f32 %v15217_v43, %v2149_v51 }
 0x187   : > { %v3146_v20 = vsel %vm3123_vm9, %v2980_v26, %v3145_v50  ;;  %v2748_v5 = vcombine.high %v2740_v17, %v2740_v17  ;;  %v1920_v40 = vpop.permute.xlu1 %1919  ;;  %v2437_v25 = vpop.permute.xlu0 %2436  ;;  %v2501_v14 = vadd.f32 %v2485_v41, %v2285_v57  ;;  %v2747_v59 = vrot.slane %v2733_v4, %v15373_v33 }
 0x188   : > { %v3147_v18 = vsel %vm3125_vm10, %v2984_v22, %v3146_v20  ;;  %v2488_v53 = vmul.f32 %v15350_v45, %v2437_v25  ;;  %v2057_v57 = vmul.f32 %v15191_v9, %v2010_v19  ;;  %v3020_v28 = vrot.slane %v2740_v17, %v15381_v38 }
 0x189   : > { %3188 = vst.msk [vmem:[#allocation3 + $0x41] sm:$0xff] %vm2835_vm2, %v3147_v18  ;;  %v3024_v23 = vrot.slane %v2748_v5, %v15381_v38  ;;  %v2524_v1 = vadd.f32 %v15363_v6, %v2501_v14  ;;  %v2749_v16 = vcombine.high %v2747_v59, %v2747_v59  ;;  %v3028_v47 = vrot.slane %v2747_v59, %v15381_v38 }
 0x18a   : > { %v2504_v11 = vadd.f32 %v2488_v53, %v2288_v12  ;;  %v2073_v13 = vadd.f32 %v2057_v57, %v15437_v44  ;;  %v2280_v3 = vadd.f32 %v2264_v8, %v15441_v2  ;;  %v2047_v51 = vmul.f32 %v15191_v9, %v1920_v40 }
 0x18b   : > { %v2347_v54 = vpop.permute.xlu1 %2346  ;;  %v2208_v61 = vpop.permute.xlu0 %2207  ;;  %v2540_v15 = vmax.f32 %v2524_v1, 0.0  ;;  %v3155_v62 = vsel %vm3113_vm4, %v3024_v23, %v3020_v28  ;;  %v3032_v41 = vrot.slane %v2749_v16, %v15381_v38 }
 0x18c   : > { %v2478_v30 = vmul.f32 %v15350_v45, %v2347_v54  ;;  %v2527_v19 = vadd.f32 %v15363_v6, %v2504_v11  ;;  %v3156_v44 = vsel %vm3115_vm5, %v3028_v47, %v3155_v62  ;;  %v2271_v40 = vmul.f32 %v15217_v43, %v2208_v61 }
 0x18d   : > { %v2716_v60 = vcombine.high %v2540_v15, %v2540_v15  ;;  %v2723_v55 = vrot.slane %v2540_v15, %v15373_v33  ;;  %v2063_v11 = vadd.f32 %v2047_v51, %v1846_v63  ;;  %v15528_v28 = vsel %vm3117_vm6, %v3032_v41, %v3156_v44 }
 0x18e   : > { %v2494_v24 = vadd.f32 %v2478_v30, %v2278_v31  ;;  %v2543_v48 = vmax.f32 %v2527_v19, 0.0  ;;  %v2287_v19 = vadd.f32 %v2271_v40, %v15469_v49 }
 0x18f   : > { %v2226_v32 = vpop.permute.xlu1 %2225  ;;  %v1938_v26 = vpop.permute.xlu0 %1937  ;;  %v2730_v21 = vrot.slane %v2716_v60, %v15373_v33  ;;  %v2731_v35 = vcombine.high %v2723_v55, %v2723_v55  ;;  %v3004_v36 = vrot.slane %v2723_v55, %v15381_v38 }
 0x190   : > { %v2517_v4 = vadd.f32 %v15363_v6, %v2494_v24  ;;  %v15501_v17 = vld [vmem:[#allocation3 + $0x41] sm:$0xff]  ;;  %v2767_v7 = vcombine.high %v2543_v48, %v2543_v48  ;;  %v2774_v2 = vrot.slane %v2543_v48, %v15373_v33  ;;  %v2273_v34 = vmul.f32 %v15217_v43, %v2226_v32 }
 0x191   : > { %13595 = vmatprep.mubr.msk.f32.mxu1 %vm2835_vm2, %v15501_v17  ;;  %v2732_v22 = vcombine.high %v2730_v21, %v2730_v21  ;;  %v3008_v50 = vrot.slane %v2731_v35, %v15381_v38  ;;  %v3012_v37 = vrot.slane %v2730_v21, %v15381_v38  ;;  %v3151_v12 = vsel %vm3119_vm7, %v3004_v36, %v15434_v58 }
 0x192   : > { %v2781_v20 = vrot.slane %v2767_v7, %v15373_v33  ;;  %v2782_v0 = vcombine.high %v2774_v2, %v2774_v2  ;;  %v2533_v5 = vmax.f32 %v2517_v4, 0.0  ;;  %v2049_v59 = vmul.f32 %v15191_v9, %v1938_v26 }
 0x193   : > { %v2365_v25 = vpop.permute.xlu1 %2364  ;;  %v2334_v56 = vpop.permute.xlu0 %2333  ;;  %v3016_v18 = vrot.slane %v2732_v22, %v15381_v38  ;;  %v3152_v14 = vsel %vm3121_vm8, %v3008_v50, %v3151_v12  ;;  %v3052_v58 = vrot.slane %v2774_v2, %v15381_v38  ;;  %v2289_v62 = vadd.f32 %v2273_v34, %v2073_v13 }
 0x194   : > { %v3153_v46 = vsel %vm3123_vm9, %v3012_v37, %v3152_v14  ;;  %v2783_v53 = vcombine.high %v2781_v20, %v2781_v20  ;;  %v3056_v31 = vrot.slane %v2782_v0, %v15381_v38  ;;  %v2597_v1 = vcombine.high %v2533_v5, %v2533_v5 }
 0x195   : > { %v3154_v23 = vsel %vm3125_vm10, %v3016_v18, %v3153_v46  ;;  %v2604_v57 = vrot.slane %v2533_v5, %v15373_v33  ;;  %v2480_v8 = vmul.f32 %v15350_v45, %v2365_v25  ;;  %v3060_v54 = vrot.slane %v2781_v20, %v15381_v38 }
 0x196   : > { %3189 = vst.msk [vmem:[#allocation3 + $0x51] sm:$0xff] %vm2835_vm2, %v3154_v23  ;;  %v2477_v9 = vmul.f32 %v15350_v45, %v2334_v56  ;;  %v3162_v30 = vsel %vm3113_vm4, %v3056_v31, %v3052_v58  ;;  %v15532_v16 = vrot.slane %v2597_v1, %v15373_v33  ;;  %v3064_v24 = vrot.slane %v2783_v53, %v15381_v38  ;;  %v15576_v53 = vld [vmem:[%s17941_s3 + $0x38] sm:$0xff] }
 0x197   : > { %v2424_v61 = vpop.permute.xlu1 %2423  ;;  %v2136_v15 = vpop.permute.xlu0 %2135  ;;  %v2612_v47 = vcombine.high %v2604_v57, %v2604_v57  ;;  %v2496_v60 = vadd.f32 %v2480_v8, %v2280_v3  ;;  %v2065_v48 = vadd.f32 %v2049_v59, %v15481_v39  ;;  %v3163_v26 = vsel %vm3115_vm5, %v3060_v54, %v3162_v30 }
 0x198   : > { %v2493_v63 = vadd.f32 %v2477_v9, %v2277_v42  ;;  %v2487_v55 = vmul.f32 %v15350_v45, %v2424_v61  ;;  %v2613_v51 = vcombine.high %v15532_v16, %v15532_v16  ;;  %v2263_v32 = vmul.f32 %v15217_v43, %v2136_v15 }
 0x199   : > { %v2519_v21 = vadd.f32 %v15363_v6, %v2496_v60  ;;  %v2892_v35 = vrot.slane %v2604_v57, %v15381_v38  ;;  %v2896_v36 = vrot.slane %v2612_v47, %v15381_v38  ;;  %v2900_v39 = vrot.slane %v15532_v16, %v15381_v38 }
 0x19a   : > { %v2516_v49 = vadd.f32 %v15363_v6, %v2493_v63  ;;  %v2503_v13 = vadd.f32 %v2487_v55, %v2287_v19  ;;  %v15552_v22 = vrot.slane %v2613_v51, %v15381_v38  ;;  %v15554_v50 = vadd.f32 %v2263_v32, %v2063_v11 }
 0x19b   : > { %v2442_v3 = vpop.permute.xlu1 %2441  ;;  %v2154_v42 = vpop.permute.xlu0 %2153  ;;  %v2535_v44 = vmax.f32 %v2519_v21, 0.0  ;;  %v15557_v12 = vsel %vm3117_vm6, %v3064_v24, %v3163_v26  ;;  %v15569_v14 = vsel %vm3113_vm4, %v2896_v36, %v2892_v35 }
 0x19c   : > { %v2489_v4 = vmul.f32 %v15350_v45, %v2442_v3  ;;  %v2265_v41 = vmul.f32 %v15217_v43, %v2154_v42  ;;  %v2532_v7 = vmax.f32 %v2516_v49, 0.0  ;;  %v2526_v2 = vadd.f32 %v15363_v6, %v2503_v13  ;;  %v3201_v43 = vld [vmem:[%s17941_s3] sm:$0xff] }
 0x19d   : > { %v15559_v20 = vld [vmem:[#allocation3 + $0x51] sm:$0xff]  ;;  %v2631_v0 = vcombine.high %v2535_v44, %v2535_v44  ;;  %v2638_v5 = vrot.slane %v2535_v44, %v15373_v33 }
 0x19e   : > { %v2505_v37 = vadd.f32 %v2489_v4, %v2289_v62  ;;  %v2580_v40 = vcombine.high %v2532_v7, %v2532_v7  ;;  %v2587_v25 = vrot.slane %v2532_v7, %v15373_v33  ;;  %13596 = vmatmul.mubr.msk.f32.vlgmr.msra.gmra.mxu1 %vm2835_vm2, %v15559_v20  ;;  %v2542_v34 = vmax.f32 %v2526_v2, 0.0 }
 0x19f   : > { %v2370_v56 = vpop.permute.xlu1 %2369  ;;  %v2352_v18 = vpop.permute.xlu0 %2351  ;;  %v2281_v46 = vadd.f32 %v2265_v41, %v2065_v48  ;;  %13602 = vmatpush3.msra.mxu1 %v15299_v52  ;;  %v2645_v58 = vrot.slane %v2631_v0, %v15373_v33  ;;  %v2646_v31 = vcombine.high %v2638_v5, %v2638_v5  ;;  %v2924_v52 = vrot.slane %v2638_v5, %v15381_v38 }
 0x1a0   : > { %v2528_v59 = vadd.f32 %v15363_v6, %v2505_v37  ;;  %v2594_v23 = vrot.slane %v2580_v40, %v15373_v33  ;;  %v2481_v1 = vmul.f32 %v15350_v45, %v2370_v56  ;;  %13603 = vmatprep.subr.mxu1 %v3201_v43  ;;  %v2595_v57 = vcombine.high %v2587_v25, %v2587_v25 }
 0x1a1   : > { %v2876_v8 = vrot.slane %v2587_v25, %v15381_v38  ;;  %v2750_v11 = vcombine.high %v2542_v34, %v2542_v34  ;;  %v2757_v54 = vrot.slane %v2542_v34, %v15373_v33  ;;  %13604 = vmatpush3.msra.mxu1 %v3201_v43  ;;  %v2928_v9 = vrot.slane %v2646_v31, %v15381_v38 }
 0x1a2   : > { %v2596_v61 = vcombine.high %v2594_v23, %v2594_v23  ;;  %v2479_v15 = vmul.f32 %v15350_v45, %v2352_v18  ;;  %13633 = vmatprep.subr.mxu1 %v15576_v53  ;;  %v2880_v19 = vrot.slane %v2595_v57, %v15381_v38  ;;  %v2884_v62 = vrot.slane %v2594_v23, %v15381_v38  ;;  %v15627_v57 = vld [vmem:[%s17939_s1] ss:$0 sm:$0xff] }
 0x1a3   : > { %v942_v30 = vpop.permute.xlu1 %941  ;;  %v726_v47 = vpop.permute.xlu0 %725  ;;  %v3120_v60 = vsel %vm3119_vm7, %v2876_v8, %v15488_v10  ;;  %v2764_v63 = vrot.slane %v2750_v11, %v15373_v33  ;;  %v2647_v55 = vcombine.high %v2645_v58, %v2645_v58  ;;  %v2932_v24 = vrot.slane %v2645_v58, %v15381_v38 }
 0x1a4   : > { %v2888_v51 = vrot.slane %v2596_v61, %v15381_v38  ;;  %v2765_v48 = vcombine.high %v2757_v54, %v2757_v54  ;;  %v3134_v32 = vsel %vm3113_vm4, %v2928_v9, %v2924_v52  ;;  %v3122_v26 = vsel %vm3121_vm8, %v2880_v19, %v3120_v60 }
 0x1a5   : > { %v2766_v21 = vcombine.high %v2764_v63, %v2764_v63  ;;  %v3036_v49 = vrot.slane %v2757_v54, %v15381_v38  ;;  %v3124_v13 = vsel %vm3123_vm9, %v2884_v62, %v3122_v26  ;;  %v3044_v10 = vrot.slane %v2764_v63, %v15381_v38 }
 0x1a6   : > { %v3040_v3 = vrot.slane %v2765_v48, %v15381_v38  ;;  %v2544_v42 = vmax.f32 %v2528_v59, 0.0  ;;  %v3126_v4 = vsel %vm3125_vm10, %v2888_v51, %v3124_v13  ;;  %v2497_v7 = vadd.f32 %v2481_v1, %v2281_v46  ;;  %v14434_v1 = vld [vmem:[%s17939_s1 + $0x1] ss:$0 sm:$0xff] }
 0x1a7   : > { %v15600_v35 = vpop.permute.xlu1 %730  ;;  %v1158_v36 = vpop.permute.xlu0 %1157  ;;  %v3048_v41 = vrot.slane %v2766_v21, %v15381_v38  ;;  %v3158_v44 = vsel %vm3119_vm7, %v3036_v49, %v15528_v28  ;;  %v2936_v2 = vrot.slane %v2647_v55, %v15381_v38  ;;  %3185 = vst.msk [vmem:[#allocation3 + $0x11] sm:$0xff] %vm2835_vm2, %v3126_v4  ;;  %v3135_v5 = vsel %vm3115_vm5, %v2932_v24, %v3134_v32  ;;  %v12867_v32 = vld [vmem:[%s17941_s3 + $0x20] sm:$0xff] }
 0x1a8   : > { %v3159_v37 = vsel %vm3121_vm8, %v3040_v3, %v3158_v44  ;;  %v2784_v43 = vcombine.high %v2544_v42, %v2544_v42  ;;  %v2791_v0 = vrot.slane %v2544_v42, %v15373_v33  ;;  %v2520_v25 = vadd.f32 %v15363_v6, %v2497_v7 }
 0x1a9   : > { %v3160_v40 = vsel %vm3123_vm9, %v3044_v10, %v3159_v37  ;;  %v2495_v56 = vadd.f32 %v2479_v15, %v15554_v50  ;;  %v977_v50 = vmul.f32 %v14434_v1, %v942_v30  ;;  %v761_v8 = vmul.f32 %v15627_v57, %v726_v47 }
 0x1aa   : > { %v3161_v28 = vsel %vm3125_vm10, %v3048_v41, %v3160_v40  ;;  %v2798_v18 = vrot.slane %v2784_v43, %v15373_v33  ;;  %v2799_v34 = vcombine.high %v2791_v0, %v2791_v0  ;;  %v3068_v59 = vrot.slane %v2791_v0, %v15381_v38  ;;  %v15672_v0 = vld [vmem:[%s17941_s3 + $0x48] sm:$0xff]  ;;  %v14437_v40 = vld [vmem:[%s17939_s1 + $0x3] ss:$0 sm:$0xff] }
 0x1ab   : > { %v1374_v46 = vpop.permute.xlu1 %1373  ;;  %v15617_v58 = vpop.permute.xlu0 %946  ;;  %3190 = vst.msk [vmem:[#allocation3 + $0x61] sm:$0xff] %vm2835_vm2, %v3161_v28  ;;  %v2536_v31 = vmax.f32 %v2520_v25, 0.0  ;;  %v2518_v23 = vadd.f32 %v15363_v6, %v2495_v56  ;;  %v3128_v61 = vsel %vm3115_vm5, %v2900_v39, %v15569_v14  ;;  %v3136_v60 = vsel %vm3117_vm6, %v2936_v2, %v3135_v5 }
 0x1ac   : > { %v2800_v11 = vcombine.high %v2798_v18, %v2798_v18  ;;  %v3072_v54 = vrot.slane %v2799_v34, %v15381_v38  ;;  %v3076_v52 = vrot.slane %v2798_v18, %v15381_v38  ;;  %v3165_v9 = vsel %vm3119_vm7, %v3068_v59, %v15557_v12  ;;  %v14436_v12 = vld [vmem:[%s17939_s1 + $0x2] ss:$0 sm:$0xff] }
 0x1ad   : > { %v2648_v15 = vcombine.high %v2536_v31, %v2536_v31  ;;  %v2655_v30 = vrot.slane %v2536_v31, %v15373_v33  ;;  %v2534_v19 = vmax.f32 %v2518_v23, 0.0  ;;  %v1193_v63 = vmul.f32 %v14436_v12, %v1158_v36 }
 0x1ae   : > { %v3080_v47 = vrot.slane %v2800_v11, %v15381_v38  ;;  %v3166_v62 = vsel %vm3121_vm8, %v3072_v54, %v3165_v9  ;;  %v15649_v48 = vld [vmem:[#allocation3 + $0x11] sm:$0xff]  ;;  %v993_v13 = vadd.f32 %v977_v50, %v761_v8  ;;  %v3129_v4 = vsel %vm3117_vm6, %v15552_v22, %v3128_v61 }
 0x1af   : > { %v1590_v55 = vpop.permute.xlu1 %1589  ;;  %v1163_v24 = vpop.permute.xlu0 %1162  ;;  %v3167_v16 = vsel %vm3123_vm9, %v3076_v52, %v3166_v62  ;;  %v2662_v39 = vrot.slane %v2648_v15, %v15373_v33  ;;  %v2663_v14 = vcombine.high %v2655_v30, %v2655_v30  ;;  %v2940_v51 = vrot.slane %v2655_v30, %v15381_v38  ;;  %13590 = vmatmul.mubr.msk.f32.vlgmr.msra.gmra.mxu0 %vm2835_vm2, %v15649_v48  ;;  %v14439_v15 = vld [vmem:[%s17939_s1 + $0x5] ss:$0 sm:$0xff] }
 0x1b0   : > { %v3168_v26 = vsel %vm3125_vm10, %v3080_v47, %v3167_v16  ;;  %v2614_v21 = vcombine.high %v2534_v19, %v2534_v19  ;;  %v2621_v49 = vrot.slane %v2534_v19, %v15373_v33  ;;  %13618 = vmatpush3.msra.mxu0 %v15317_v29  ;;  %v1209_v22 = vadd.f32 %v1193_v63, %v993_v13  ;;  %v3193_v19 = vld [vmem:[#allocation3] sm:$0xff] }
 0x1b1   : > { %3191 = vst.msk [vmem:[#allocation3 + $0x71] sm:$0xff] %vm2835_vm2, %v3168_v26  ;;  %v2664_v3 = vcombine.high %v2662_v39, %v2662_v39  ;;  %v2944_v10 = vrot.slane %v2663_v14, %v15381_v38  ;;  %v2948_v42 = vrot.slane %v2662_v39, %v15381_v38  ;;  %v3137_v36 = vsel %vm3119_vm7, %v2940_v51, %v3136_v60  ;;  %v14441_v51 = vld [vmem:[%s17939_s1 + $0x7] ss:$0 sm:$0xff] }
 0x1b2   : > { %v2628_v41 = vrot.slane %v2614_v21, %v15373_v33  ;;  %v2629_v44 = vcombine.high %v2621_v49, %v2621_v49  ;;  %v2908_v7 = vrot.slane %v2621_v49, %v15381_v38  ;;  %v15667_v2 = vld [vmem:[#allocation3 + $0x61] sm:$0xff]  ;;  %13619 = vmatprep.subr.mxu0 %v12867_v32  ;;  %v1409_v25 = vmul.f32 %v14437_v40, %v1374_v46  ;;  %v14438_v46 = vld [vmem:[%s17939_s1 + $0x4] ss:$0 sm:$0xff] }
 0x1b3   : > { %v1806_v37 = vpop.permute.xlu1 %1805  ;;  %v1379_v43 = vpop.permute.xlu0 %1378  ;;  %v2952_v29 = vrot.slane %v2664_v3, %v15381_v38  ;;  %v3138_v5 = vsel %vm3121_vm8, %v2944_v10, %v3137_v36  ;;  %13598 = vmatprep.mubr.msk.f32.mxu1 %vm2835_vm2, %v15667_v2  ;;  %13620 = vmatpush3.msra.mxu0 %v12867_v32  ;;  %v978_v23 = vmul.f32 %v14434_v1, %v15617_v58  ;;  %v15713_v26 = vld [vmem:[#allocation3 + $0x10] sm:$0xff]  ;;  %v12877_v21 = vld [vmem:[%s17941_s3 + $0x30] sm:$0xff] }
 0x1b4   : > { %v3139_v56 = vsel %vm3123_vm9, %v2948_v42, %v3138_v5  ;;  %v2630_v28 = vcombine.high %v2628_v41, %v2628_v41  ;;  %v2912_v18 = vrot.slane %v2629_v44, %v15381_v38  ;;  %v2916_v34 = vrot.slane %v2628_v41, %v15381_v38  ;;  %13649 = vmatprep.subr.mxu0 %v15672_v0 }
 0x1b5   : > { %v3140_v59 = vsel %vm3125_vm10, %v2952_v29, %v3139_v56  ;;  %v3130_v31 = vsel %vm3119_vm7, %v2908_v7, %v3129_v4  ;;  %v1625_v50 = vmul.f32 %v14438_v46, %v1590_v55  ;;  %v762_v54 = vmul.f32 %v15627_v57, %v15600_v35  ;;  %v3464_v29 = vld [vmem:[#allocation3 + $0x2] sm:$0xff] }
 0x1b6   : > { %3187 = vst.msk [vmem:[#allocation3 + $0x31] sm:$0xff] %vm2835_vm2, %v3140_v59  ;;  %v2920_v8 = vrot.slane %v2630_v28, %v15381_v38  ;;  %v3131_v11 = vsel %vm3121_vm8, %v2912_v18, %v3130_v31  ;;  %v1425_v1 = vadd.f32 %v1409_v25, %v1209_v22  ;;  %v1194_v61 = vmul.f32 %v14436_v12, %v1163_v24  ;;  %v14440_v12 = vld [vmem:[%s17939_s1 + $0x6] ss:$0 sm:$0xff]  ;;  %v15743_v25 = vld [vmem:[#allocation3 + $0x40] sm:$0xff] }
 0x1b7   : > { %v2023_v52 = vpop.permute.xlu1 %2022  ;;  %v1595_v9 = vpop.permute.xlu0 %1594  ;;  %v3132_v58 = vsel %vm3123_vm9, %v2916_v34, %v3131_v11  ;;  %v1841_v30 = vmul.f32 %v14439_v15, %v1806_v37  ;;  %v994_v60 = vadd.f32 %v978_v23, %v762_v54  ;;  %v1410_v57 = vmul.f32 %v14437_v40, %v1379_v43  ;;  %v15737_v40 = vld [vmem:[%s17941_s3 + $0x58] sm:$0xff]  ;;  %v15750_v31 = vld [vmem:[#allocation3 + $0x12] sm:$0xff]  ;;  %v15761_v54 = vld [vmem:[#allocation3 + $0x60] sm:$0xff] }
 0x1b8   : > { %v3133_v47 = vsel %vm3125_vm10, %v2920_v8, %v3132_v58  ;;  %v15701_v62 = vld [vmem:[#allocation3 + $0x71] sm:$0xff]  ;;  %v1641_v35 = vadd.f32 %v1625_v50, %v1425_v1  ;;  %v2058_v63 = vmul.f32 %v14440_v12, %v2023_v52  ;;  %v1626_v14 = vmul.f32 %v14438_v46, %v1595_v9 }
 0x1b9   : > { %3186 = vst.msk [vmem:[#allocation3 + $0x21] sm:$0xff] %vm2835_vm2, %v3133_v47  ;;  %13599 = vmatmul.mubr.msk.f32.gmra.mxu1 %vm2835_vm2, %v15701_v62  ;;  %v1210_v16 = vadd.f32 %v1194_v61, %v994_v60  ;;  %v15752_v46 = vld [vmem:[#allocation3 + $0x50] sm:$0xff]  ;;  %v15781_v60 = vld [vmem:[#allocation3 + $0x42] sm:$0xff] }
 0x1ba   : > { %13605 = vmatprep.mubr.msk.f32.mxu1 %vm2835_vm2, %v3193_v19  ;;  %v1857_v39 = vadd.f32 %v1841_v30, %v1641_v35  ;;  %v12887_v52 = vld [vmem:[%s17941_s3 + $0x40] sm:$0xff] }
 0x1bb   : > { %v2239_v55 = vpop.permute.xlu1 %2238  ;;  %v1811_v24 = vpop.permute.xlu0 %1810  ;;  %v1426_v49 = vadd.f32 %v1410_v57, %v1210_v16  ;;  %v15776_v19 = vld [vmem:[#allocation3 + $0x70] sm:$0xff] }
 0x1bc   : > { %v2274_v32 = vmul.f32 %v14441_v51, %v2239_v55  ;;  %v2074_v13 = vadd.f32 %v2058_v63, %v1857_v39  ;;  %v1842_v3 = vmul.f32 %v14439_v15, %v1811_v24  ;;  %v15797_v39 = vld [vmem:[#allocation3 + $0x52] sm:$0xff] }
 0x1bd   : > { %13606 = vmatmul.mubr.msk.f32.vlgmr.msra.gmra.mxu1 %vm2835_vm2, %v15713_v26  ;;  %v1642_v36 = vadd.f32 %v1626_v14, %v1426_v49  ;;  %v15721_v4 = vld [vmem:[#allocation3 + $0x31] sm:$0xff] }
 0x1be   : > { %13634 = vmatpush3.msra.mxu1 %v15576_v53  ;;  %v2290_v41 = vadd.f32 %v2274_v32, %v2074_v13  ;;  %v15732_v5 = vld [vmem:[#allocation3 + $0x30] sm:$0xff]  ;;  %v12897_v32 = vld [vmem:[%s17941_s3 + $0x50] sm:$0xff] }
 0x1bf   : > { %v2455_v10 = vpop.permute.xlu1 %2454  ;;  %v2028_v42 = vpop.permute.xlu0 %2027  ;;  %13635 = vmatprep.subr.mxu1 %v12877_v21  ;;  %v1858_v53 = vadd.f32 %v1842_v3, %v1642_v36  ;;  %v15773_v15 = vld [vmem:[#allocation3 + $0x32] sm:$0xff] }
 0x1c0   : > { %v2490_v44 = vmul.f32 %v15350_v45, %v2455_v10  ;;  %v2059_v7 = vmul.f32 %v14440_v12, %v2028_v42  ;;  %v15724_v37 = vld [vmem:[#allocation3 + $0x21] sm:$0xff]  ;;  %13636 = vmatpush3.msra.mxu1 %v12877_v21 }
 0x1c1   : > { %v15726_v43 = vld [vmem:[#allocation3 + $0x20] sm:$0xff]  ;;  %13592 = vmatprep.mubr.msk.f32.mxu0 %vm2835_vm2, %v15724_v37  ;;  %13665 = vmatprep.subr.mxu1 %v15737_v40 }
 0x1c2   : > { %13608 = vmatprep.mubr.msk.f32.mxu1 %vm2835_vm2, %v15726_v43  ;;  %v2506_v22 = vadd.f32 %v2490_v44, %v2290_v41  ;;  %13593 = vmatmul.mubr.msk.f32.gmra.mxu0 %vm2835_vm2, %v15721_v4  ;;  %v2075_v34 = vadd.f32 %v2059_v7, %v1858_v53  ;;  %v15757_v11 = vld [vmem:[#allocation3 + $0x22] sm:$0xff]  ;;  %v15820_v41 = vld [vmem:[#allocation3 + $0x72] sm:$0xff] }
 0x1c3   : > { %13609 = vmatmul.mubr.msk.f32.gmra.mxu1 %vm2835_vm2, %v15732_v5  ;;  %v2460_v56 = vpop.permute.xlu1 %2459  ;;  %v2244_v28 = vpop.permute.xlu0 %2243  ;;  %13621 = vmatprep.mubr.msk.f32.mxu0 %vm2835_vm2, %v3464_v29  ;;  %v12918_v44 = vld [vmem:[%s17941_s3 + $0x78] sm:$0xff] }
 0x1c4   : > { %13611 = vmatprep.mubr.msk.f32.mxu1 %vm2835_vm2, %v15743_v25  ;;  %v2529_v18 = vadd.f32 %v15363_v6, %v2506_v22  ;;  %v2275_v59 = vmul.f32 %v14441_v51, %v2244_v28  ;;  %v2491_v50 = vmul.f32 %v15350_v45, %v2460_v56  ;;  %v15802_v51 = vld [vmem:[#allocation3 + $0x62] sm:$0xff] }
 0x1c6   : > { %v2545_v23 = vmax.f32 %v2529_v18, 0.0  ;;  %v2291_v8 = vadd.f32 %v2275_v59, %v2075_v34  ;;  %13622 = vmatmul.mubr.msk.f32.vlgmr.msra.gmra.mxu0 %vm2835_vm2, %v15750_v31  ;;  %v12917_v18 = vld [vmem:[%s17941_s3 + $0x70] sm:$0xff]  ;;  %v12927_v34 = vld [vmem:[%s17941_s3 + $0x80] sm:$0xff]  ;;  %v12939_v59 = vld [vmem:[%s17943_s5 + $0x28] sm:$0xff] }
 0x1c7   : > { %13612 = vmatmul.mubr.msk.f32.gmra.mxu1 %vm2835_vm2, %v15752_v46  ;;  %13624 = vmatprep.mubr.msk.f32.mxu0 %vm2835_vm2, %v15757_v11 }
 0x1c8   : > { %v2801_v9 = vcombine.high %v2545_v23, %v2545_v23  ;;  %v2808_v58 = vrot.slane %v2545_v23, %v15373_v33  ;;  %13614 = vmatprep.mubr.msk.f32.mxu1 %vm2835_vm2, %v15761_v54  ;;  %v2507_v45 = vadd.f32 %v2491_v50, %v2291_v8  ;;  %13650 = vmatpush3.msra.mxu0 %v15672_v0  ;;  %v12908_v0 = vld [vmem:[%s17941_s3 + $0x68] sm:$0xff]  ;;  %v12938_v23 = vld [vmem:[%s17943_s5 + $0x20] sm:$0xff]  ;;  %v15958_v50 = vld [vmem:[%s17943_s5 + $0x18] sm:$0xff] }
 0x1c9   : > { %13651 = vmatprep.subr.mxu0 %v12887_v52  ;;  %v15963_v8 = vld [vmem:[%s17943_s5 + $0x98] sm:$0xff] }
 0x1ca   : > { %v2815_v1 = vrot.slane %v2801_v9, %v15373_v33  ;;  %v2816_v61 = vcombine.high %v2808_v58, %v2808_v58  ;;  %v2530_v30 = vadd.f32 %v15363_v6, %v2507_v45  ;;  %v3084_v47 = vrot.slane %v2808_v58, %v15381_v38  ;;  %13625 = vmatmul.mubr.msk.f32.gmra.mxu0 %vm2835_vm2, %v15773_v15 }
 0x1cb   : > { %13615 = vmatmul.mubr.msk.f32.gmra.mxu1 %vm2835_vm2, %v15776_v19  ;;  %13627 = vmatprep.mubr.msk.f32.mxu0 %vm2835_vm2, %v15781_v60 }
 0x1cc   : > { %v2817_v35 = vcombine.high %v2815_v1, %v2815_v1  ;;  %v3088_v6 = vrot.slane %v2816_v61, %v15381_v38  ;;  %v3092_v57 = vrot.slane %v2815_v1, %v15381_v38  ;;  %v2546_v12 = vmax.f32 %v2530_v30, 0.0  ;;  %13637 = vmatprep.mubr.msk.f32.mxu1 %vm2835_vm2, %v15713_v26  ;;  %13652 = vmatpush3.msra.mxu0 %v12887_v52 }
 0x1cd   : > { %13681 = vmatprep.subr.mxu0 %v12908_v0 }
 0x1ce   : > { %v3096_v63 = vrot.slane %v2817_v35, %v15381_v38  ;;  %v3169_v55 = vsel %vm3113_vm4, %v3088_v6, %v3084_v47  ;;  %v2818_v24 = vcombine.high %v2546_v12, %v2546_v12  ;;  %v2825_v16 = vrot.slane %v2546_v12, %v15373_v33  ;;  %13628 = vmatmul.mubr.msk.f32.gmra.mxu0 %vm2835_vm2, %v15797_v39 }
 0x1cf   : > { %v3170_v14 = vsel %vm3115_vm5, %v3092_v57, %v3169_v55  ;;  %13638 = vmatmul.mubr.msk.f32.vlgmr.msra.gmra.mxu1 %vm2835_vm2, %v15726_v43  ;;  %13630 = vmatprep.mubr.msk.f32.mxu0 %vm2835_vm2, %v15802_v51 }
 0x1d0   : > { %v3171_v26 = vsel %vm3117_vm6, %v3096_v63, %v3170_v14  ;;  %v2832_v21 = vrot.slane %v2818_v24, %v15373_v33  ;;  %v2833_v49 = vcombine.high %v2825_v16, %v2825_v16  ;;  %v3100_v13 = vrot.slane %v2825_v16, %v15381_v38  ;;  %13640 = vmatprep.mubr.msk.f32.mxu1 %vm2835_vm2, %v15732_v5 }
 0x1d1   : > { %13666 = vmatpush3.msra.mxu1 %v15737_v40  ;;  %v12928_v40 = vld [vmem:[%s17941_s3 + $0x88] sm:$0xff] }
 0x1d2   : > { %v2834_v3 = vcombine.high %v2832_v21, %v2832_v21  ;;  %v3104_v10 = vrot.slane %v2833_v49, %v15381_v38  ;;  %v3108_v42 = vrot.slane %v2832_v21, %v15381_v38  ;;  %v3172_v36 = vsel %vm3119_vm7, %v3100_v13, %v3171_v26  ;;  %13667 = vmatprep.subr.mxu1 %v12897_v32 }
 0x1d3   : > { %13631 = vmatmul.mubr.msk.f32.gmra.mxu0 %vm2835_vm2, %v15820_v41  ;;  %13641 = vmatmul.mubr.msk.f32.gmra.mxu1 %vm2835_vm2, %v15743_v25 }
 0x1d4   : > { %v3112_v7 = vrot.slane %v2834_v3, %v15381_v38  ;;  %v3173_v29 = vsel %vm3121_vm8, %v3104_v10, %v3172_v36  ;;  %13653 = vmatprep.mubr.msk.f32.mxu0 %vm2835_vm2, %v15649_v48  ;;  %13643 = vmatprep.mubr.msk.f32.mxu1 %vm2835_vm2, %v15752_v46  ;;  %v12907_v48 = vld [vmem:[%s17941_s3 + $0x60] sm:$0xff] }
 0x1d5   : > { %v3174_v53 = vsel %vm3123_vm9, %v3108_v42, %v3173_v29  ;;  %13668 = vmatpush3.msra.mxu1 %v12897_v32 }
 0x1d6   : > { %v3175_v22 = vsel %vm3125_vm10, %v3112_v7, %v3174_v53  ;;  %13697 = vmatprep.subr.mxu1 %v12918_v44 }
 0x1d7   : > { %3192 = vst.msk [vmem:[#allocation3 + $0x81] sm:$0xff] %vm2835_vm2, %v3175_v22  ;;  %13654 = vmatmul.mubr.msk.f32.vlgmr.msra.gmra.mxu0 %vm2835_vm2, %v15724_v37  ;;  %13644 = vmatmul.mubr.msk.f32.gmra.mxu1 %vm2835_vm2, %v15761_v54 }
 0x1d8   : > { %13656 = vmatprep.mubr.msk.f32.mxu0 %vm2835_vm2, %v15721_v4  ;;  %13646 = vmatprep.mubr.msk.f32.mxu1 %vm2835_vm2, %v15776_v19 }
 0x1d9   : > { %13682 = vmatpush3.msra.mxu0 %v12908_v0 }
 0x1da   : > { %13683 = vmatprep.subr.mxu0 %v12907_v48 }
 0x1db   : > { %13657 = vmatmul.mubr.msk.f32.gmra.mxu0 %vm2835_vm2, %v15501_v17 }
 0x1dc   : > { %13659 = vmatprep.mubr.msk.f32.mxu0 %vm2835_vm2, %v15559_v20  ;;  %13684 = vmatpush3.msra.mxu0 %v12907_v48 }
 0x1dd   : > { %13713 = vmatprep.subr.mxu0 %v12928_v40 }
 0x1de   : > { %v3611_v56 = vld [vmem:[#allocation3 + $0x80] sm:$0xff] }
 0x1df   : > { %13660 = vmatmul.mubr.msk.f32.gmra.mxu0 %vm2835_vm2, %v15667_v2  ;;  %13647 = vmatmul.mubr.msk.f32.gmra.mxu1 %vm2835_vm2, %v3611_v56  ;;  %v3751_v28 = vld [vmem:[#allocation3 + $0x81] sm:$0xff] }
 0x1e0   : > { %13662 = vmatprep.mubr.msk.f32.mxu0 %vm2835_vm2, %v15701_v62  ;;  %13669 = vmatprep.mubr.msk.f32.mxu1 %vm2835_vm2, %v15750_v31  ;;  %v12947_v31 = vld [vmem:[%s17943_s5 + $0x48] sm:$0xff] }
 0x1e3   : > { %13663 = vmatmul.mubr.msk.f32.gmra.mxu0 %vm2835_vm2, %v3751_v28  ;;  %13670 = vmatmul.mubr.msk.f32.vlgmr.msra.gmra.mxu1 %vm2835_vm2, %v15757_v11 }
 0x1e4   : > { %13685 = vmatprep.mubr.msk.f32.mxu0 %vm2835_vm2, %v15726_v43  ;;  %13698 = vmatpush3.msra.mxu1 %v12918_v44  ;;  %v3891_v43 = vld [vmem:[#allocation3 + $0x82] sm:$0xff] }
 0x1e5   : > { %13672 = vmatprep.mubr.msk.f32.mxu1 %vm2835_vm2, %v15773_v15  ;;  %13699 = vmatprep.subr.mxu1 %v12917_v18 }
 0x1e6   : > { %13700 = vmatpush3.msra.mxu1 %v12917_v18 }
 0x1e7   : > { %13686 = vmatmul.mubr.msk.f32.vlgmr.msra.gmra.mxu0 %vm2835_vm2, %v15732_v5  ;;  %13673 = vmatmul.mubr.msk.f32.gmra.mxu1 %vm2835_vm2, %v15781_v60  ;;  %v4032_v5 = vld [vmem:[#allocation3 + $0x90] sm:$0xff] }
 0x1e8   : > { %13688 = vmatprep.mubr.msk.f32.mxu0 %vm2835_vm2, %v15743_v25  ;;  %13714 = vmatpush3.msra.mxu0 %v12928_v40  ;;  %v12948_v25 = vld [vmem:[%s17943_s5 + $0x50] sm:$0xff] }
 0x1e9   : > { %13675 = vmatprep.mubr.msk.f32.mxu1 %vm2835_vm2, %v15797_v39  ;;  %13715 = vmatprep.subr.mxu0 %v12927_v34 }
 0x1ea   : > { %13716 = vmatpush3.msra.mxu0 %v12927_v34 }
 0x1eb   : > { %13689 = vmatmul.mubr.msk.f32.gmra.mxu0 %vm2835_vm2, %v15752_v46  ;;  %13676 = vmatmul.mubr.msk.f32.gmra.mxu1 %vm2835_vm2, %v15802_v51  ;;  %v12946_v46 = vld [vmem:[%s17943_s5 + $0x40] sm:$0xff] }
 0x1ec   : > { %13691 = vmatprep.mubr.msk.f32.mxu0 %vm2835_vm2, %v15761_v54  ;;  %13678 = vmatprep.mubr.msk.f32.mxu1 %vm2835_vm2, %v15820_v41 }
 0x1ef   : > { %13692 = vmatmul.mubr.msk.f32.gmra.mxu0 %vm2835_vm2, %v15776_v19  ;;  %13679 = vmatmul.mubr.msk.f32.gmra.mxu1 %vm2835_vm2, %v3891_v43 }
 0x1f0   : > { %13694 = vmatprep.mubr.msk.f32.mxu0 %vm2835_vm2, %v3611_v56  ;;  %13701 = vmatprep.mubr.msk.f32.mxu1 %vm2835_vm2, %v15724_v37  ;;  %v12949_v37 = vld [vmem:[%s17943_s5 + $0x58] sm:$0xff] }
 0x1f1   : > { %13751 = vmatprep.subr.mxu0 %v12949_v37 }
 0x1f3   : > { %13695 = vmatmul.mubr.msk.f32.gmra.mxu0 %vm2835_vm2, %v4032_v5  ;;  %13702 = vmatmul.mubr.msk.f32.vlgmr.msra.gmra.mxu1 %vm2835_vm2, %v15721_v4  ;;  %v12940_v4 = vld [vmem:[%s17943_s5 + $0x30] sm:$0xff] }
 0x1f4   : > { %13717 = vmatprep.mubr.msk.f32.mxu0 %vm2835_vm2, %v15757_v11  ;;  %13704 = vmatprep.mubr.msk.f32.mxu1 %vm2835_vm2, %v15501_v17  ;;  %v4172_v17 = vld [vmem:[#allocation3 + $0x91] sm:$0xff] }
 0x1f7   : > { %13718 = vmatmul.mubr.msk.f32.vlgmr.msra.gmra.mxu0 %vm2835_vm2, %v15773_v15  ;;  %13705 = vmatmul.mubr.msk.f32.gmra.mxu1 %vm2835_vm2, %v15559_v20  ;;  %v4312_v20 = vld [vmem:[#allocation3 + $0x92] sm:$0xff] }
 0x1f8   : > { %13720 = vmatprep.mubr.msk.f32.mxu0 %vm2835_vm2, %v15781_v60  ;;  %13707 = vmatprep.mubr.msk.f32.mxu1 %vm2835_vm2, %v15667_v2  ;;  %v17992_v2 = vmov 0.0  }
 0x1f9   : > { %4534 = vst.msk [vmem:[#allocation4 + $0x8] sm:$0x3f] %vm4532_vm11, %v17992_v2  ;;  %4538 = vst.msk [vmem:[#allocation4 + $0x28] sm:$0x3f] %vm4532_vm11, %v17992_v2  ;;  %13752 = vmatpush3.msra.mxu0 %v12949_v37 }
 0x1fa   : > { %4533 = vst.msk [vmem:[#allocation4] sm:$0x3f] %vm4532_vm11, %v17992_v2  ;;  %4535 = vst.msk [vmem:[#allocation4 + $0x10] sm:$0x3f] %vm4532_vm11, %v17992_v2  ;;  %13753 = vmatprep.subr.mxu0 %v12948_v25 }
 0x1fb   : > { %13721 = vmatmul.mubr.msk.f32.gmra.mxu0 %vm2835_vm2, %v15797_v39  ;;  %13708 = vmatmul.mubr.msk.f32.gmra.mxu1 %vm2835_vm2, %v15701_v62  ;;  %4536 = vst.msk [vmem:[#allocation4 + $0x18] sm:$0x3f] %vm4532_vm11, %v17992_v2  ;;  %4537 = vst.msk [vmem:[#allocation4 + $0x20] sm:$0x3f] %vm4532_vm11, %v17992_v2  ;;  %v12941_v62 = vld [vmem:[%s17943_s5 + $0x38] sm:$0xff] }
 0x1fc   : > { %13723 = vmatprep.mubr.msk.f32.mxu0 %vm2835_vm2, %v15802_v51  ;;  %13710 = vmatprep.mubr.msk.f32.mxu1 %vm2835_vm2, %v3751_v28  ;;  %5517 = vst.msk [vmem:[#allocation5 + $0x4] sm:$0x7] %vm5515_vm14, %v17992_v2  ;;  %5518 = vst.msk [vmem:[#allocation5 + $0x8] sm:$0x7] %vm5515_vm14, %v17992_v2 }
 0x1fd   : > { %13729 = vmatprep.subr.mxu1 %v12941_v62  ;;  %13754 = vmatpush3.msra.mxu0 %v12948_v25  ;;  %5516 = vst.msk [vmem:[#allocation5] sm:$0x7] %vm5515_vm14, %v17992_v2 }
 0x1fe   : > { %13730 = vmatpush3.msra.mxu1 %v12941_v62  ;;  %13755 = vmatprep.subr.mxu0 %v12947_v31 }
 0x1ff   : > { %13724 = vmatmul.mubr.msk.f32.gmra.mxu0 %vm2835_vm2, %v15820_v41  ;;  %13711 = vmatmul.mubr.msk.f32.gmra.mxu1 %vm2835_vm2, %v4172_v17 }
 0x200   : > { %13726 = vmatprep.mubr.msk.f32.mxu0 %vm2835_vm2, %v3891_v43  ;;  %13731 = vmatprep.subr.mxu1 %v12940_v4 }
 0x201   : > { %13732 = vmatpush3.msra.mxu1 %v12940_v4  ;;  %13756 = vmatpush3.msra.mxu0 %v12947_v31 }
 0x202   : > { %13733 = vmatprep.subr.mxu1 %v12939_v59  ;;  %13757 = vmatprep.subr.mxu0 %v12946_v46 }
 0x203   : > { %13727 = vmatmul.mubr.msk.f32.gmra.mxu0 %vm2835_vm2, %v4312_v20  ;;  %13734 = vmatpush3.msra.mxu1 %v12939_v59 }
 0x204   : > { %13735 = vmatprep.subr.mxu1 %v12938_v23  ;;  %13758 = vmatpush3.msra.mxu0 %v12946_v46 }
 0x205   : > { %13736 = vmatpush3.msra.mxu1 %v12938_v23  ;;  %13773 = vmatprep.subr.mxu0 %v15963_v8 }
 0x206   : > { %13740 = vmatprep.subr.mxu1 %v15958_v50 }
 0x25e   : > { %v13597_v11 = vpop.f32.mrf.mxu1 }
 0x260   : > { %v3322_v52 = vpop.f32.mrf.mxu1 }
 0x26f   : > { %v13591_v54 = vpop.f32.mrf.mxu0 }
 0x271   : > { %v3304_v61 = vpop.f32.mrf.mxu0 }
 0x279   : > { %v13600_v9 = vpop.f32.mrf.mxu1 }
 0x27b   : > { %v3331_v58 = vpop.f32.mrf.mxu1 }
 0x27d   : > { %v13607_v45 = vpop.f32.mrf.mxu1 }
 0x27f   : > { %v3429_v1 = vpop.f32.mrf.mxu1 }
 0x280   : > { %v3430_v18 = vadd.f32 %v3429_v1, %v3304_v61 }
 0x282   : > { %v13594_v15 = vpop.f32.mrf.mxu0 }
 0x283   : > { %v13610_v30 = vpop.f32.mrf.mxu1 }
 0x284   : > { %v3313_v19 = vpop.f32.mrf.mxu0 }
 0x285   : > { %v3438_v47 = vpop.f32.mrf.mxu1 }
 0x286   : > { %v13623_v60 = vpop.f32.mrf.mxu0  ;;  %v3439_v62 = vadd.f32 %v3438_v47, %v3313_v19 }
 0x287   : > { %v13613_v0 = vpop.f32.mrf.mxu1 }
 0x288   : > { %v3565_v35 = vpop.f32.mrf.mxu0 }
 0x289   : > { %v3447_v6 = vpop.f32.mrf.mxu1  ;;  %v3600_v5 = vadd.f32 %v3565_v35, %v3430_v18 }
 0x28a   : > { %v13626_v57 = vpop.f32.mrf.mxu0  ;;  %v3448_v9 = vadd.f32 %v3447_v6, %v3322_v52 }
 0x28b   : > { %v13616_v12 = vpop.f32.mrf.mxu1 }
 0x28c   : > { %v3574_v63 = vpop.f32.mrf.mxu0 }
 0x28d   : > { %v3456_v55 = vpop.f32.mrf.mxu1  ;;  %v3601_v59 = vadd.f32 %v3574_v63, %v3439_v62 }
 0x28e   : > { %v13629_v24 = vpop.f32.mrf.mxu0  ;;  %v3457_v1 = vadd.f32 %v3456_v55, %v3331_v58  ;;  %v12937_v58 = vld [vmem:[%s17942_s4] ss:$0 sm:$0xff] }
 0x28f   : > { %v13639_v16 = vpop.f32.mrf.mxu1 }
 0x290   : > { %v3583_v39 = vpop.f32.mrf.mxu0 }
 0x291   : > { %v3705_v14 = vpop.f32.mrf.mxu1  ;;  %v3602_v61 = vadd.f32 %v3583_v39, %v3448_v9 }
 0x292   : > { %v3740_v4 = vadd.f32 %v3705_v14, %v3600_v5 }
 0x293   : > { %v13632_v51 = vpop.f32.mrf.mxu0  ;;  %v13642_v32 = vpop.f32.mrf.mxu1 }
 0x295   : > { %v3592_v26 = vpop.f32.mrf.mxu0  ;;  %v3714_v21 = vpop.f32.mrf.mxu1 }
 0x296   : > { %v3741_v11 = vadd.f32 %v3714_v21, %v3601_v59  ;;  %v3603_v19 = vadd.f32 %v3592_v26, %v3457_v1 }
 0x297   : > { %v13655_v49 = vpop.f32.mrf.mxu0  ;;  %v13645_v13 = vpop.f32.mrf.mxu1 }
 0x299   : > { %v3845_v3 = vpop.f32.mrf.mxu0  ;;  %v3723_v42 = vpop.f32.mrf.mxu1 }
 0x29a   : > { %v3880_v31 = vadd.f32 %v3845_v3, %v3740_v4  ;;  %v3742_v47 = vadd.f32 %v3723_v42, %v3602_v61 }
 0x29b   : > { %v13658_v10 = vpop.f32.mrf.mxu0 }
 0x29d   : > { %v3854_v36 = vpop.f32.mrf.mxu0 }
 0x29e   : > { %v3881_v30 = vadd.f32 %v3854_v36, %v3741_v11 }
 0x29f   : > { %v13661_v41 = vpop.f32.mrf.mxu0  ;;  %v13648_v44 = vpop.f32.mrf.mxu1 }
 0x2a1   : > { %v3863_v7 = vpop.f32.mrf.mxu0  ;;  %v3732_v29 = vpop.f32.mrf.mxu1 }
 0x2a2   : > { %v3882_v16 = vadd.f32 %v3863_v7, %v3742_v47  ;;  %v3743_v14 = vadd.f32 %v3732_v29, %v3603_v19 }
 0x2a3   : > { %v13664_v53 = vpop.f32.mrf.mxu0  ;;  %v13671_v22 = vpop.f32.mrf.mxu1 }
 0x2a5   : > { %v3872_v48 = vpop.f32.mrf.mxu0  ;;  %v3985_v40 = vpop.f32.mrf.mxu1 }
 0x2a6   : > { %v4020_v54 = vadd.f32 %v3985_v40, %v3880_v31  ;;  %v3883_v13 = vadd.f32 %v3872_v48, %v3743_v14 }
 0x2a7   : > { %v13687_v56 = vpop.f32.mrf.mxu0  ;;  %v13674_v28 = vpop.f32.mrf.mxu1 }
 0x2a9   : > { %v4126_v34 = vpop.f32.mrf.mxu0  ;;  %v3994_v43 = vpop.f32.mrf.mxu1 }
 0x2aa   : > { %v4161_v35 = vadd.f32 %v4126_v34, %v4020_v54  ;;  %v4021_v57 = vadd.f32 %v3994_v43, %v3881_v30 }
 0x2ab   : > { %v13690_v17 = vpop.f32.mrf.mxu0  ;;  %v13677_v20 = vpop.f32.mrf.mxu1 }
 0x2ad   : > { %v4135_v37 = vpop.f32.mrf.mxu0  ;;  %v4003_v25 = vpop.f32.mrf.mxu1 }
 0x2ae   : > { %v4162_v21 = vadd.f32 %v4135_v37, %v4021_v57  ;;  %v4022_v52 = vadd.f32 %v4003_v25, %v3882_v16 }
 0x2af   : > { %v13693_v23 = vpop.f32.mrf.mxu0  ;;  %v13680_v46 = vpop.f32.mrf.mxu1 }
 0x2b1   : > { %v4144_v45 = vpop.f32.mrf.mxu0  ;;  %v4012_v15 = vpop.f32.mrf.mxu1 }
 0x2b2   : > { %v4163_v42 = vadd.f32 %v4144_v45, %v4022_v52  ;;  %v4023_v36 = vadd.f32 %v4012_v15, %v3883_v13 }
 0x2b3   : > { %v13696_v60 = vpop.f32.mrf.mxu0  ;;  %v13703_v0 = vpop.f32.mrf.mxu1 }
 0x2b5   : > { %v4153_v12 = vpop.f32.mrf.mxu0  ;;  %v4266_v24 = vpop.f32.mrf.mxu1 }
 0x2b6   : > { %v4301_v63 = vadd.f32 %v4266_v24, %v4161_v35  ;;  %v4164_v34 = vadd.f32 %v4153_v12, %v4023_v36 }
 0x2b7   : > { %v13719_v51 = vpop.f32.mrf.mxu0  ;;  %v13706_v32 = vpop.f32.mrf.mxu1 }
 0x2b9   : > { %v4406_v6 = vpop.f32.mrf.mxu0  ;;  %v4275_v55 = vpop.f32.mrf.mxu1 }
 0x2ba   : > { %v4441_v39 = vadd.f32 %v4406_v6, %v4301_v63  ;;  %v4302_v49 = vadd.f32 %v4275_v55, %v4162_v21 }
 0x2bb   : > { %v13722_v26 = vpop.f32.mrf.mxu0  ;;  %v13709_v3 = vpop.f32.mrf.mxu1 }
 0x2bc   : > { %v4452_v10 = vadd.f32 %v12937_v58, %v4441_v39 }
 0x2bd   : > { %v4415_v41 = vpop.f32.mrf.mxu0  ;;  %v4284_v44 = vpop.f32.mrf.mxu1 }
 0x2be   : > { %v4456_v7 = vmax.f32 %v4452_v10, 0.0  ;;  %v4442_v29 = vadd.f32 %v4415_v41, %v4302_v49  ;;  %v4303_v22 = vadd.f32 %v4284_v44, %v4163_v42 }
 0x2bf   : > { %v13725_v53 = vpop.f32.mrf.mxu0  ;;  %v13712_v40 = vpop.f32.mrf.mxu1 }
 0x2c0   : > { %v4464_v56 = vcombine.high %v4456_v7, %v4456_v7  ;;  %v4471_v28 = vrot.slane %v4456_v7, %v15373_v33  ;;  %v4453_v18 = vadd.f32 %v12937_v58, %v4442_v29 }
 0x2c1   : > { %v4424_v43 = vpop.f32.mrf.mxu0  ;;  %v4293_v5 = vpop.f32.mrf.mxu1 }
 0x2c2   : > { %v4478_v48 = vrot.slane %v4464_v56, %v15373_v33  ;;  %v4479_v17 = vcombine.high %v4471_v28, %v4471_v28  ;;  %v4457_v20 = vmax.f32 %v4453_v18, 0.0  ;;  %v4542_v62 = vrot.slane %v4471_v28, %v15381_v38 }
 0x2c3   : > { %v4443_v4 = vadd.f32 %v4424_v43, %v4303_v22  ;;  %v4304_v37 = vadd.f32 %v4293_v5, %v4164_v34  ;;  %v13728_v25 = vpop.f32.mrf.mxu0 }
 0x2c4   : > { %v4480_v59 = vcombine.high %v4478_v48, %v4478_v48  ;;  %v4546_v31 = vrot.slane %v4479_v17, %v15381_v38  ;;  %v4550_v23 = vrot.slane %v4478_v48, %v15381_v38  ;;  %v4481_v46 = vcombine.high %v4457_v20, %v4457_v20  ;;  %v4631_v48 = vld [vmem:[%s17943_s5 + $0x10] sm:$0xff] }
 0x2c5   : > { %v4488_v11 = vrot.slane %v4457_v20, %v15373_v33  ;;  %v4454_v54 = vadd.f32 %v12937_v58, %v4443_v4  ;;  %v4433_v9 = vpop.f32.mrf.mxu0  ;;  %v4630_v4 = vld [vmem:[%s17943_s5 + $0x8] sm:$0xff] }
 0x2c6   : > { %v4554_v45 = vrot.slane %v4480_v59, %v15381_v38  ;;  %v4603_v15 = vsel %vm3113_vm4, %v4546_v31, %v4542_v62  ;;  %v4495_v30 = vrot.slane %v4481_v46, %v15373_v33  ;;  %v4444_v1 = vadd.f32 %v4433_v9, %v4304_v37  ;;  %v12960_v62 = vld [vmem:[%s17943_s5 + $0x90] sm:$0xff]  ;;  %v12959_v59 = vld [vmem:[%s17943_s5 + $0x88] sm:$0xff] }
 0x2c7   : > { %v4604_v61 = vsel %vm3115_vm5, %v4550_v23, %v4603_v15  ;;  %v4496_v60 = vcombine.high %v4488_v11, %v4488_v11  ;;  %v4458_v0 = vmax.f32 %v4454_v54, 0.0  ;;  %v4558_v12 = vrot.slane %v4488_v11, %v15381_v38  ;;  %v12955_v23 = vld [vmem:[%s17943_s5 + $0x78] sm:$0xff]  ;;  %v12954_v9 = vld [vmem:[%s17943_s5 + $0x70] sm:$0xff] }
 0x2c8   : > { %v4605_v35 = vsel %vm3117_vm6, %v4554_v45, %v4604_v61  ;;  %v4497_v57 = vcombine.high %v4495_v30, %v4495_v30  ;;  %v4566_v19 = vrot.slane %v4495_v30, %v15381_v38  ;;  %v4455_v47 = vadd.f32 %v12937_v58, %v4444_v1  ;;  %v12973_v11 = vld [vmem:[%s17943_s5 + $0xd8] sm:$0xff]  ;;  %v12972_v15 = vld [vmem:[%s17943_s5 + $0xd0] sm:$0xff]  ;;  %v12953_v30 = vld [vmem:[%s17943_s5 + $0x68] sm:$0xff] }
 0x2c9   : > { %4621 = vst.msk [vmem:[#allocation4 + $0x9] sm:$0xf] %vm4620_vm12, %v4605_v35  ;;  %v4562_v24 = vrot.slane %v4496_v60, %v15381_v38  ;;  %v4498_v63 = vcombine.high %v4458_v0, %v4458_v0  ;;  %v4505_v16 = vrot.slane %v4458_v0, %v15373_v33  ;;  %v12971_v1 = vld [vmem:[%s17943_s5 + $0xc8] sm:$0xff]  ;;  %v12952_v61 = vld [vmem:[%s17943_s5 + $0x60] sm:$0xff]  ;;  %v12967_v35 = vld [vmem:[%s17943_s5 + $0xb8] sm:$0xff] }
 0x2ca   : > { %v4570_v14 = vrot.slane %v4497_v57, %v15381_v38  ;;  %v4459_v51 = vmax.f32 %v4455_v47, 0.0  ;;  %v12970_v60 = vld [vmem:[%s17943_s5 + $0xc0] sm:$0xff] }
 0x2cb   : > { %v4606_v32 = vsel %vm3113_vm4, %v4562_v24, %v4558_v12  ;;  %v4512_v21 = vrot.slane %v4498_v63, %v15373_v33  ;;  %v4513_v52 = vcombine.high %v4505_v16, %v4505_v16  ;;  %v4574_v58 = vrot.slane %v4505_v16, %v15381_v38  ;;  %v12966_v12 = vld [vmem:[%s17943_s5 + $0xb0] sm:$0xff]  ;;  %v12965_v16 = vld [vmem:[%s17943_s5 + $0xa8] sm:$0xff] }
 0x2cc   : > { %v4607_v6 = vsel %vm3115_vm5, %v4566_v19, %v4606_v32  ;;  %v4515_v55 = vcombine.high %v4459_v51, %v4459_v51  ;;  %v4522_v39 = vrot.slane %v4459_v51, %v15373_v33  ;;  %v12985_v19 = vld [vmem:[%s17943_s5 + $0x118] sm:$0xff]  ;;  %v12984_v63 = vld [vmem:[%s17943_s5 + $0x110] sm:$0xff]  ;;  %v12964_v51 = vld [vmem:[%s17943_s5 + $0xa0] sm:$0xff] }
 0x2cd   : > { %v4608_v49 = vsel %vm3117_vm6, %v4570_v14, %v4607_v6  ;;  %v4514_v13 = vcombine.high %v4512_v21, %v4512_v21  ;;  %v4578_v26 = vrot.slane %v4513_v52, %v15381_v38  ;;  %v4582_v3 = vrot.slane %v4512_v21, %v15381_v38  ;;  %v12983_v14 = vld [vmem:[%s17943_s5 + $0x108] sm:$0xff]  ;;  %v12982_v32 = vld [vmem:[%s17943_s5 + $0x100] sm:$0xff]  ;;  %v12979_v52 = vld [vmem:[%s17943_s5 + $0xf8] sm:$0xff] }
 0x2ce   : > { %4622 = vst.msk [vmem:[#allocation4 + $0x11] sm:$0xf] %vm4620_vm12, %v4608_v49  ;;  %v4529_v10 = vrot.slane %v4515_v55, %v15373_v33  ;;  %v4530_v42 = vcombine.high %v4522_v39, %v4522_v39  ;;  %v4590_v44 = vrot.slane %v4522_v39, %v15381_v38  ;;  %v12978_v55 = vld [vmem:[%s17943_s5 + $0xf0] sm:$0xff]  ;;  %v12977_v39 = vld [vmem:[%s17943_s5 + $0xe8] sm:$0xff]  ;;  %v12976_v49 = vld [vmem:[%s17943_s5 + $0xe0] sm:$0xff] }
 0x2cf   : > { %v4586_v36 = vrot.slane %v4514_v13, %v15381_v38  ;;  %v4609_v41 = vsel %vm3113_vm4, %v4578_v26, %v4574_v58  ;;  %v5551_v26 = vld [vmem:[%s17945_s7 + $0x38] sm:$0xff] }
 0x2d0   : > { %v4610_v7 = vsel %vm3115_vm5, %v4582_v3, %v4609_v41  ;;  %v4531_v29 = vcombine.high %v4529_v10, %v4529_v10  ;;  %v4594_v53 = vrot.slane %v4530_v42, %v15381_v38  ;;  %v4598_v22 = vrot.slane %v4529_v10, %v15381_v38  ;;  %v14261_v40 = vld [vmem:[#allocation4 + $0x1] ss:$8 sps:$4 sm:$0xff]   ;;  %v13004_v41 = vld [vmem:[%s17945_s7 + $0x168] sm:$0xff] }
 0x2d1   : > { %v4611_v56 = vsel %vm3117_vm6, %v4586_v36, %v4610_v7  ;;  %v14262_v28 = vld [vmem:[#allocation4 + $0x2] ss:$8 sps:$4 sm:$0xff]   ;;  %13737 = vmatprep.mubr.msk.f32.mxu1 %vm4648_vm13, %v14261_v40  ;;  %v5549_v36 = vld [vmem:[%s17945_s7 + $0x28] sm:$0xff]  ;;  %v13003_v7 = vld [vmem:[%s17945_s7 + $0x160] sm:$0xff] }
 0x2d2   : > { %4623 = vst.msk [vmem:[#allocation4 + $0x19] sm:$0xf] %vm4620_vm12, %v4611_v56  ;;  %v4602_v18 = vrot.slane %v4531_v29, %v15381_v38  ;;  %v4612_v34 = vsel %vm3113_vm4, %v4594_v53, %v4590_v44  ;;  %13759 = vmatprep.mubr.msk.f32.mxu0 %vm4648_vm13, %v14262_v28  ;;  %v14265_v37 = vld [vmem:[#allocation4] ss:$8 sps:$4 sm:$0xff]   ;;  %v5548_v44 = vld [vmem:[%s17945_s7 + $0x20] sm:$0xff]  ;;  %v5545_v56 = vld [vmem:[%s17945_s7 + $0x8] sm:$0xff] }
 0x2d3   : > { %v4613_v43 = vsel %vm3115_vm5, %v4598_v22, %v4612_v34  ;;  %v13006_v3 = vld [vmem:[%s17945_s7 + $0x178] sm:$0xff]  ;;  %v5550_v10 = vld [vmem:[%s17945_s7 + $0x30] sm:$0xff]  ;;  %v13000_v28 = vld [vmem:[%s17945_s7 + $0x148] sm:$0xff]  ;;  %vm5672_vm5 = vcmask 253952  }
 0x2d4   : > { %v4614_v5 = vsel %vm3117_vm6, %v4602_v18, %v4613_v43  ;;  %v13005_v42 = vld [vmem:[%s17945_s7 + $0x170] sm:$0xff]  ;;  %v5547_v29 = vld [vmem:[%s17945_s7 + $0x18] sm:$0xff]  ;;  %v5544_v18 = vld [vmem:[%s17945_s7] sm:$0xff]  ;;  %vm6831_vm6 = vcmask 122880  }
 0x2d5   : > { %4624 = vst.msk [vmem:[#allocation4 + $0x21] sm:$0xf] %vm4620_vm12, %v4614_v5  ;;  %v14266_v25 = vld [vmem:[#allocation4 + $0x9] ss:$8 sps:$4 sm:$0xff]   ;;  %v5546_v22 = vld [vmem:[%s17945_s7 + $0x10] sm:$0xff] }
 0x2d6   : > { %v14269_v54 = vld [vmem:[#allocation4 + $0x8] ss:$8 sps:$4 sm:$0xff]   ;;  %v13001_v40 = vld [vmem:[%s17945_s7 + $0x150] sm:$0xff]  ;;  %8068 = vst.msk [vmem:[#allocation7 + $0x8] sm:$0x1] %vm6831_vm6, %v17992_v2 }
 0x2d7   : > { %v14273_v47 = vld [vmem:[#allocation4 + $0xa] ss:$8 sps:$4 sm:$0xff]   ;;  %8070 = vst.msk [vmem:[#allocation7 + $0x18] sm:$0x1] %vm6831_vm6, %v17992_v2  ;;  %8072 = vst.msk [vmem:[#allocation7 + $0x28] sm:$0x1] %vm6831_vm6, %v17992_v2 }
 0x2d8   : > { %v13002_v53 = vld [vmem:[%s17945_s7 + $0x158] sm:$0xff]  ;;  %v12999_v34 = vld [vmem:[%s17945_s7 + $0x140] sm:$0xff]  ;;  %8074 = vst.msk [vmem:[#allocation7 + $0x38] sm:$0x1] %vm6831_vm6, %v17992_v2  ;;  %8076 = vst.msk [vmem:[#allocation7 + $0x48] sm:$0x1] %vm6831_vm6, %v17992_v2 }
 0x2d9   : > { %v14263_v17 = vld [vmem:[#allocation4 + $0x11] ss:$8 sps:$4 sm:$0xff]   ;;  %8078 = vst.msk [vmem:[#allocation7 + $0x58] sm:$0x1] %vm6831_vm6, %v17992_v2  ;;  %8080 = vst.msk [vmem:[#allocation7 + $0x68] sm:$0x1] %vm6831_vm6, %v17992_v2 }
 0x2da   : > { %v14264_v20 = vld [vmem:[#allocation4 + $0x12] ss:$8 sps:$4 sm:$0xff]   ;;  %13738 = vmatmul.mubr.msk.f32.vlgmr.msra.gmra.mxu1 %vm4648_vm13, %v14263_v17  ;;  %8082 = vst.msk [vmem:[#allocation7 + $0x78] sm:$0x1] %vm6831_vm6, %v17992_v2  ;;  %8084 = vst.msk [vmem:[#allocation7 + $0x88] sm:$0x1] %vm6831_vm6, %v17992_v2 }
 0x2db   : > { %13741 = vmatpush3.msra.mxu1 %v15958_v50  ;;  %13760 = vmatmul.mubr.msk.f32.vlgmr.msra.gmra.mxu0 %vm4648_vm13, %v14264_v20  ;;  %v4629_v50 = vld [vmem:[%s17943_s5] sm:$0xff] }
 0x2dc   : > { %13774 = vmatpush3.msra.mxu0 %v15963_v8  ;;  %13742 = vmatprep.subr.mxu1 %v4631_v48  ;;  %v12958_v8 = vld [vmem:[%s17943_s5 + $0x80] sm:$0xff]  ;;  %v14268_v46 = vld [vmem:[#allocation4 + $0x19] ss:$8 sps:$4 sm:$0xff]  }
 0x2dd   : > { %13748 = vmatprep.mubr.msk.f32.mxu1 %vm4648_vm13, %v14265_v37  ;;  %13775 = vmatprep.subr.mxu0 %v12960_v62  ;;  %v14267_v31 = vld [vmem:[#allocation4 + $0x10] ss:$8 sps:$4 sm:$0xff]   ;;  %v14272_v57 = vld [vmem:[#allocation4 + $0x20] ss:$8 sps:$4 sm:$0xff]  }
 0x2de   : > { %13781 = vmatprep.mubr.msk.f32.mxu0 %vm4648_vm13, %v14266_v25  ;;  %13743 = vmatpush3.msra.mxu1 %v4631_v48  ;;  %v14270_v45 = vld [vmem:[#allocation4 + $0x10] ss:$8 sps:$4 sm:$0xff]   ;;  %v14276_v6 = vld [vmem:[#allocation4 + $0x22] ss:$8 sps:$4 sm:$0xff]  }
 0x2df   : > { %13776 = vmatpush3.msra.mxu0 %v12960_v62  ;;  %13744 = vmatprep.subr.mxu1 %v4630_v4  ;;  %v14271_v0 = vld [vmem:[#allocation4 + $0x18] ss:$8 sps:$4 sm:$0xff]  }
 0x2e0   : > { %13777 = vmatprep.subr.mxu0 %v12959_v59  ;;  %13745 = vmatpush3.msra.mxu1 %v4630_v4  ;;  %v14274_v24 = vld [vmem:[#allocation4 + $0x12] ss:$8 sps:$4 sm:$0xff]   ;;  %v14278_v13 = vld [vmem:[#allocation4 + $0x21] ss:$8 sps:$4 sm:$0xff]  }
 0x2e1   : > { %13778 = vmatpush3.msra.mxu0 %v12959_v59  ;;  %13746 = vmatprep.subr.mxu1 %v4629_v50  ;;  %v14275_v21 = vld [vmem:[#allocation4 + $0x1a] ss:$8 sps:$4 sm:$0xff]  }
 0x2e2   : > { %13779 = vmatprep.subr.mxu0 %v12958_v8  ;;  %13747 = vmatpush3.msra.mxu1 %v4629_v50  ;;  %v14277_v58 = vld [vmem:[#allocation4 + $0x11] ss:$8 sps:$4 sm:$0xff]  }
 0x2e3   : > { %13780 = vmatpush3.msra.mxu0 %v12958_v8  ;;  %13749 = vmatmul.mubr.msk.f32.vlgmr.msra.gmra.mxu1 %vm4648_vm13, %v14267_v31 }
 0x2e4   : > { %13762 = vmatprep.subr.mxu1 %v12955_v23  ;;  %13782 = vmatmul.mubr.msk.f32.vlgmr.msra.gmra.mxu0 %vm4648_vm13, %v14268_v46 }
 0x2e5   : > { %13795 = vmatprep.subr.mxu0 %v12973_v11  ;;  %13763 = vmatpush3.msra.mxu1 %v12955_v23 }
 0x2e6   : > { %13770 = vmatprep.mubr.msk.f32.mxu1 %vm4648_vm13, %v14269_v54  ;;  %13796 = vmatpush3.msra.mxu0 %v12973_v11 }
 0x2e7   : > { %13803 = vmatprep.mubr.msk.f32.mxu0 %vm4648_vm13, %v14270_v45  ;;  %13764 = vmatprep.subr.mxu1 %v12954_v9 }
 0x2e8   : > { %13797 = vmatprep.subr.mxu0 %v12972_v15  ;;  %13765 = vmatpush3.msra.mxu1 %v12954_v9 }
 0x2e9   : > { %13798 = vmatpush3.msra.mxu0 %v12972_v15  ;;  %13766 = vmatprep.subr.mxu1 %v12953_v30 }
 0x2ea   : > { %13799 = vmatprep.subr.mxu0 %v12971_v1  ;;  %13767 = vmatpush3.msra.mxu1 %v12953_v30 }
 0x2eb   : > { %13800 = vmatpush3.msra.mxu0 %v12971_v1  ;;  %13768 = vmatprep.subr.mxu1 %v12952_v61 }
 0x2ec   : > { %13801 = vmatprep.subr.mxu0 %v12970_v60  ;;  %13769 = vmatpush3.msra.mxu1 %v12952_v61 }
 0x2ed   : > { %13802 = vmatpush3.msra.mxu0 %v12970_v60  ;;  %13771 = vmatmul.mubr.msk.f32.vlgmr.msra.gmra.mxu1 %vm4648_vm13, %v14271_v0 }
 0x2ee   : > { %13784 = vmatprep.subr.mxu1 %v12967_v35  ;;  %13804 = vmatmul.mubr.msk.f32.vlgmr.msra.gmra.mxu0 %vm4648_vm13, %v14272_v57 }
 0x2ef   : > { %13817 = vmatprep.subr.mxu0 %v12985_v19  ;;  %13785 = vmatpush3.msra.mxu1 %v12967_v35 }
 0x2f0   : > { %13792 = vmatprep.mubr.msk.f32.mxu1 %vm4648_vm13, %v14273_v47  ;;  %13818 = vmatpush3.msra.mxu0 %v12985_v19 }
 0x2f1   : > { %13825 = vmatprep.mubr.msk.f32.mxu0 %vm4648_vm13, %v14274_v24  ;;  %13786 = vmatprep.subr.mxu1 %v12966_v12 }
 0x2f2   : > { %13819 = vmatprep.subr.mxu0 %v12984_v63  ;;  %13787 = vmatpush3.msra.mxu1 %v12966_v12  ;;  %v12988_v12 = vld [vmem:[%s17944_s6] ss:$0 sm:$0xff] }
 0x2f3   : > { %13820 = vmatpush3.msra.mxu0 %v12984_v63  ;;  %13788 = vmatprep.subr.mxu1 %v12965_v16 }
 0x2f4   : > { %13821 = vmatprep.subr.mxu0 %v12983_v14  ;;  %13789 = vmatpush3.msra.mxu1 %v12965_v16 }
 0x2f5   : > { %13822 = vmatpush3.msra.mxu0 %v12983_v14  ;;  %13790 = vmatprep.subr.mxu1 %v12964_v51 }
 0x2f6   : > { %13823 = vmatprep.subr.mxu0 %v12982_v32  ;;  %13791 = vmatpush3.msra.mxu1 %v12964_v51 }
 0x2f7   : > { %13824 = vmatpush3.msra.mxu0 %v12982_v32  ;;  %13793 = vmatmul.mubr.msk.f32.vlgmr.msra.gmra.mxu1 %vm4648_vm13, %v14275_v21 }
 0x2f8   : > { %13806 = vmatprep.subr.mxu1 %v12979_v52  ;;  %13826 = vmatmul.mubr.msk.f32.vlgmr.msra.gmra.mxu0 %vm4648_vm13, %v14276_v6 }
 0x2f9   : > { %13807 = vmatpush3.msra.mxu1 %v12979_v52  ;;  %13814 = vmatprep.mubr.msk.f32.mxu1 %vm4648_vm13, %v14277_v58 }
 0x2fa   : > { %13808 = vmatprep.subr.mxu1 %v12978_v55  ;;  %13847 = vmatprep.subr.mxu0 %v17992_v2 }
 0x2fb   : > { %13809 = vmatpush3.msra.mxu1 %v12978_v55  ;;  %13848 = vmatpush3.msra.mxu0 %v13006_v3 }
 0x2fc   : > { %13810 = vmatprep.subr.mxu1 %v12977_v39  ;;  %13849 = vmatprep.subr.mxu0 %v17992_v2 }
 0x2fd   : > { %13811 = vmatpush3.msra.mxu1 %v12977_v39  ;;  %13850 = vmatpush3.msra.mxu0 %v13005_v42 }
 0x2fe   : > { %13812 = vmatprep.subr.mxu1 %v12976_v49  ;;  %13851 = vmatprep.subr.mxu0 %v17992_v2 }
 0x2ff   : > { %13813 = vmatpush3.msra.mxu1 %v12976_v49  ;;  %13852 = vmatpush3.msra.mxu0 %v13004_v41 }
 0x300   : > { %13815 = vmatmul.mubr.msk.f32.vlgmr.msra.gmra.mxu1 %vm4648_vm13, %v14278_v13  ;;  %13828 = vmatprep.subr.mxu1 %v17992_v2 }
 0x301   : > { %13829 = vmatpush3.msra.mxu1 %v5551_v26  ;;  %13853 = vmatprep.subr.mxu0 %v17992_v2 }
 0x302   : > { %13830 = vmatprep.subr.mxu1 %v17992_v2  ;;  %13854 = vmatpush3.msra.mxu0 %v13003_v7  ;;  %v12998_v7 = vld [vmem:[%s17945_s7 + $0x138] sm:$0xff] }
 0x303   : > { %13831 = vmatpush3.msra.mxu1 %v5550_v10  ;;  %13855 = vmatprep.subr.mxu0 %v17992_v2 }
 0x304   : > { %13832 = vmatprep.subr.mxu1 %v17992_v2  ;;  %13856 = vmatpush3.msra.mxu0 %v13002_v53  ;;  %v13024_v53 = vld [vmem:[%s17945_s7 + $0x2b0] sm:$0xff] }
 0x305   : > { %13833 = vmatpush3.msra.mxu1 %v5549_v36  ;;  %13857 = vmatprep.subr.mxu0 %v17992_v2 }
 0x306   : > { %13834 = vmatprep.subr.mxu1 %v17992_v2  ;;  %13858 = vmatpush3.msra.mxu0 %v13001_v40  ;;  %v13023_v40 = vld [vmem:[%s17945_s7 + $0x2a8] sm:$0xff] }
 0x307   : > { %13835 = vmatpush3.msra.mxu1 %v5548_v44  ;;  %13859 = vmatprep.subr.mxu0 %v17992_v2 }
 0x308   : > { %13836 = vmatprep.subr.mxu1 %v17992_v2  ;;  %13860 = vmatpush3.msra.mxu0 %v13000_v28  ;;  %v13022_v28 = vld [vmem:[%s17945_s7 + $0x2a0] sm:$0xff] }
 0x309   : > { %13837 = vmatpush3.msra.mxu1 %v5547_v29  ;;  %13861 = vmatprep.subr.mxu0 %v17992_v2  ;;  %v13025_v29 = vld [vmem:[%s17945_s7 + $0x2b8] sm:$0xff] }
 0x30a   : > { %13838 = vmatprep.subr.mxu1 %v17992_v2  ;;  %13862 = vmatpush3.msra.mxu0 %v12999_v34  ;;  %v13021_v34 = vld [vmem:[%s17945_s7 + $0x298] sm:$0xff] }
 0x30b   : > { %13839 = vmatpush3.msra.mxu1 %v5546_v22  ;;  %13844 = vmatprep.mubr.msk.f32.mxu1 %vm14463_vm15, %v17992_v2  ;;  %v12996_v22 = vld [vmem:[%s17945_s7 + $0x128] sm:$0xff] }
 0x30c   : > { %13840 = vmatprep.subr.mxu1 %v17992_v2  ;;  %13863 = vmatprep.mubr.msk.f32.mxu0 %vm14463_vm15, %v17992_v2 }
 0x30d   : > { %13841 = vmatpush3.msra.mxu1 %v5545_v56  ;;  %13885 = vmatprep.subr.mxu0 %v17992_v2  ;;  %v12995_v56 = vld [vmem:[%s17945_s7 + $0x120] sm:$0xff] }
 0x30e   : > { %13842 = vmatprep.subr.mxu1 %v17992_v2 }
 0x30f   : > { %13843 = vmatpush3.msra.mxu1 %v5544_v18  ;;  %v12994_v18 = vld [vmem:[%s17945_s7 + $0x118] sm:$0xff] }
 0x310   : > { %13866 = vmatprep.subr.mxu1 %v17992_v2 }
 0x39a   : > { %v13739_v43 = vpop.f32.mrf.mxu1 }
 0x39b   : > { %v13761_v17 = vpop.f32.mrf.mxu0 }
 0x39c   : > { %v4719_v5 = vpop.f32.mrf.mxu1 }
 0x39d   : > { %v4898_v25 = vpop.f32.mrf.mxu0 }
 0x3a3   : > { %v13750_v48 = vpop.f32.mrf.mxu1 }
 0x3a4   : > { %v4810_v62 = vadd.f32 %v13750_v48, %v13739_v43  ;;  %v13783_v50 = vpop.f32.mrf.mxu0  ;;  %v12993_v43 = vld [vmem:[%s17945_s7 + $0x110] sm:$0xff]  ;;  %v12992_v48 = vld [vmem:[%s17945_s7 + $0x108] sm:$0xff] }
 0x3a5   : > { %v4804_v20 = vpop.f32.mrf.mxu1 }
 0x3a6   : > { %v4805_v37 = vadd.f32 %v4804_v20, %v4719_v5  ;;  %v4908_v59 = vadd.f32 %v13761_v17, %v4810_v62  ;;  %v5090_v54 = vpop.f32.mrf.mxu0  ;;  %v13020_v5 = vld [vmem:[%s17945_s7 + $0x290] sm:$0xff]  ;;  %v13019_v17 = vld [vmem:[%s17945_s7 + $0x288] sm:$0xff]  ;;  %v12991_v62 = vld [vmem:[%s17945_s7 + $0x100] sm:$0xff] }
 0x3a8   : > { %v4907_v23 = vadd.f32 %v4898_v25, %v4805_v37  ;;  %v13018_v37 = vld [vmem:[%s17945_s7 + $0x280] sm:$0xff]  ;;  %v13017_v25 = vld [vmem:[%s17945_s7 + $0x238] sm:$0xff] }
 0x3ad   : > { %v13772_v4 = vpop.f32.mrf.mxu1 }
 0x3ae   : > { %v5004_v31 = vadd.f32 %v13772_v4, %v4908_v59  ;;  %v13805_v45 = vpop.f32.mrf.mxu0  ;;  %v13044_v59 = vld [vmem:[%s17945_s7 + $0x378] sm:$0xff] }
 0x3af   : > { %v4994_v8 = vpop.f32.mrf.mxu1 }
 0x3b0   : > { %v5003_v46 = vadd.f32 %v4994_v8, %v4907_v23  ;;  %v5100_v9 = vadd.f32 %v13783_v50, %v5004_v31  ;;  %v5283_v60 = vpop.f32.mrf.mxu0  ;;  %v13016_v50 = vld [vmem:[%s17945_s7 + $0x230] sm:$0xff]  ;;  %v13015_v31 = vld [vmem:[%s17945_s7 + $0x228] sm:$0xff] }
 0x3b1   : > { %v13043_v8 = vld [vmem:[%s17945_s7 + $0x370] sm:$0xff]  ;;  %v13042_v23 = vld [vmem:[%s17945_s7 + $0x368] sm:$0xff] }
 0x3b2   : > { %v5099_v1 = vadd.f32 %v5090_v54, %v5003_v46  ;;  %v13014_v46 = vld [vmem:[%s17945_s7 + $0x220] sm:$0xff]  ;;  %v13013_v54 = vld [vmem:[%s17945_s7 + $0x218] sm:$0xff] }
 0x3b7   : > { %v13794_v11 = vpop.f32.mrf.mxu1 }
 0x3b8   : > { %v5196_v30 = vadd.f32 %v13794_v11, %v5100_v9  ;;  %v13827_v35 = vpop.f32.mrf.mxu0  ;;  %v13041_v11 = vld [vmem:[%s17945_s7 + $0x360] sm:$0xff]  ;;  %v13040_v9 = vld [vmem:[%s17945_s7 + $0x358] sm:$0xff] }
 0x3b9   : > { %v5186_v15 = vpop.f32.mrf.mxu1 }
 0x3ba   : > { %v5195_v61 = vadd.f32 %v5186_v15, %v5099_v1  ;;  %v5293_v0 = vadd.f32 %v13805_v45, %v5196_v30  ;;  %v5475_v14 = vpop.f32.mrf.mxu0  ;;  %v13012_v45 = vld [vmem:[%s17945_s7 + $0x210] sm:$0xff]  ;;  %v13011_v30 = vld [vmem:[%s17945_s7 + $0x208] sm:$0xff] }
 0x3bb   : > { %v13039_v15 = vld [vmem:[%s17945_s7 + $0x350] sm:$0xff]  ;;  %v13038_v1 = vld [vmem:[%s17945_s7 + $0x348] sm:$0xff] }
 0x3bc   : > { %v5292_v47 = vadd.f32 %v5283_v60, %v5195_v61  ;;  %v13010_v60 = vld [vmem:[%s17945_s7 + $0x200] sm:$0xff] }
 0x3c0   : > { %v13816_v57 = vpop.f32.mrf.mxu1 }
 0x3c1   : > { %v5389_v19 = vadd.f32 %v13816_v57, %v5293_v0  ;;  %v13036_v57 = vld [vmem:[%s17945_s7 + $0x338] sm:$0xff] }
 0x3c2   : > { %v5379_v24 = vpop.f32.mrf.mxu1 }
 0x3c3   : > { %v5485_v63 = vadd.f32 %v13827_v35, %v5389_v19  ;;  %v5388_v16 = vadd.f32 %v5379_v24, %v5292_v47  ;;  %v13037_v35 = vld [vmem:[%s17945_s7 + $0x340] sm:$0xff]  ;;  %v13054_v19 = vld [vmem:[%s17945_s7 + $0x3b8] sm:$0xff]  ;;  %v13035_v47 = vld [vmem:[%s17945_s7 + $0x330] sm:$0xff] }
 0x3c4   : > { %v13034_v24 = vld [vmem:[%s17945_s7 + $0x328] sm:$0xff] }
 0x3c5   : > { %v5494_v51 = vadd.f32 %v12988_v12, %v5485_v63  ;;  %v5484_v32 = vadd.f32 %v5475_v14, %v5388_v16  ;;  %v13052_v63 = vld [vmem:[%s17945_s7 + $0x3a8] sm:$0xff]  ;;  %v13033_v16 = vld [vmem:[%s17945_s7 + $0x320] sm:$0xff] }
 0x3c6   : > { %v13051_v14 = vld [vmem:[%s17945_s7 + $0x3a0] sm:$0xff] }
 0x3c7   : > { %v5496_v21 = vmax.f32 %v5494_v51, 0.0  ;;  %v5493_v52 = vadd.f32 %v12988_v12, %v5484_v32  ;;  %v13053_v12 = vld [vmem:[%s17945_s7 + $0x3b0] sm:$0xff]  ;;  %v13032_v51 = vld [vmem:[%s17945_s7 + $0x318] sm:$0xff] }
 0x3c8   : > { %v13050_v32 = vld [vmem:[%s17945_s7 + $0x398] sm:$0xff] }
 0x3c9   : > { %v5513_v6 = vrot.slane %v5496_v21, %v15373_v33  ;;  %v5495_v58 = vmax.f32 %v5493_v52, 0.0  ;;  %v13031_v21 = vld [vmem:[%s17945_s7 + $0x310] sm:$0xff] }
 0x3ca   : > { %v13049_v52 = vld [vmem:[%s17945_s7 + $0x390] sm:$0xff] }
 0x3cb   : > { %v5514_v55 = vcombine.high %v5513_v6, %v5513_v6  ;;  %v5505_v39 = vrot.slane %v5495_v58, %v15373_v33  ;;  %v5530_v49 = vrot.slane %v5513_v6, %v15381_v38  ;;  %v13030_v6 = vld [vmem:[%s17945_s7 + $0x308] sm:$0xff] }
 0x3cc   : > { %v13048_v58 = vld [vmem:[%s17945_s7 + $0x388] sm:$0xff] }
 0x3cd   : > { %v5534_v13 = vrot.slane %v5514_v55, %v15381_v38  ;;  %v5506_v26 = vcombine.high %v5505_v39, %v5505_v39  ;;  %v5522_v10 = vrot.slane %v5505_v39, %v15381_v38  ;;  %v13029_v39 = vld [vmem:[%s17945_s7 + $0x300] sm:$0xff] }
 0x3cf   : > { %v5536_v3 = vsel %vm3113_vm4, %v5534_v13, %v5530_v49  ;;  %v5526_v42 = vrot.slane %v5506_v26, %v15381_v38  ;;  %v12997_v38 = vld [vmem:[%s17945_s7 + $0x130] sm:$0xff]  ;;  %v13047_v13 = vld [vmem:[%s17945_s7 + $0x380] sm:$0xff]  ;;  %v13063_v26 = vld [vmem:[%s17945_s7 + $0x3f8] sm:$0xff] }
 0x3d0   : > { %5541 = vst.msk [vmem:[#allocation5 + $0x4] sm:$0x3] %vm5539_vm1, %v5536_v3  ;;  %v13062_v3 = vld [vmem:[%s17945_s7 + $0x3f0] sm:$0xff] }
 0x3d1   : > { %v5535_v36 = vsel %vm3113_vm4, %v5526_v42, %v5522_v10  ;;  %v13061_v10 = vld [vmem:[%s17945_s7 + $0x3e8] sm:$0xff]  ;;  %v13060_v42 = vld [vmem:[%s17945_s7 + $0x3e0] sm:$0xff]  ;;  %vm6559_vm4 = vcmask 258048  }
 0x3d2   : > { %5540 = vst.msk [vmem:[#allocation5] sm:$0x3] %vm5539_vm1, %v5535_v36  ;;  %v13059_v36 = vld [vmem:[%s17945_s7 + $0x3d8] sm:$0xff] }
 0x3d3   : > { %6560 = vst.msk [vmem:[#allocation6] sm:$0x1f] %vm6559_vm4, %v17992_v2  ;;  %6561 = vst.msk [vmem:[#allocation6 + $0x8] sm:$0x1f] %vm6559_vm4, %v17992_v2 }
 0x3d4   : > { %6562 = vst.msk [vmem:[#allocation6 + $0x10] sm:$0x1f] %vm6559_vm4, %v17992_v2  ;;  %6563 = vst.msk [vmem:[#allocation6 + $0x18] sm:$0x1f] %vm6559_vm4, %v17992_v2 }
 0x3d5   : > { %6564 = vst.msk [vmem:[#allocation6 + $0x20] sm:$0x1f] %vm6559_vm4, %v17992_v2 }
 0x3d7   : > { %v14446_v4 = vld.sshfl [vmem:[#allocation5 + $0x4] sm:$0xf pattern:$0x76325410] }
 0x3d8   : > { %v14450_v49 = vld.sshfl [vmem:[#allocation5 + $0x4] sm:$0xf pattern:$0x76325410] }
 0x3d9   : > { %v14443_v41 = vld.sshfl [vmem:[#allocation5] sm:$0xf pattern:$0x76325410] }
 0x3da   : > { %v14444_v44 = vld.sshfl [vmem:[#allocation5 + $0x1] sm:$0xf pattern:$0x76325410]  ;;  %13845 = vmatmul.mubr.msk.f32.vlgmr.msra.gmra.mxu1 %vm5569_vm3, %v14443_v41  ;;  %v13058_v41 = vld [vmem:[%s17945_s7 + $0x3d0] sm:$0xff] }
 0x3db   : > { %13864 = vmatmul.mubr.msk.f32.vlgmr.msra.gmra.mxu0 %vm5569_vm3, %v14444_v44  ;;  %13867 = vmatpush3.msra.mxu1 %v12998_v7  ;;  %v14445_v20 = vld.sshfl [vmem:[#allocation5] sm:$0xf pattern:$0x76325410]  ;;  %v13057_v44 = vld [vmem:[%s17945_s7 + $0x3c8] sm:$0xff] }
 0x3dc   : > { %13886 = vmatpush3.msra.mxu0 %v13025_v29  ;;  %13868 = vmatprep.subr.mxu1 %v17992_v2  ;;  %v14447_v61 = vld.sshfl [vmem:[#allocation5] sm:$0xf pattern:$0x76325410] }
 0x3dd   : > { %13887 = vmatprep.subr.mxu0 %v17992_v2  ;;  %13869 = vmatpush3.msra.mxu1 %v12997_v38  ;;  %v14448_v0 = vld.sshfl [vmem:[#allocation5 + $0x1] sm:$0xf pattern:$0x76325410]  ;;  %v6620_v38 = vld [vmem:[%s17947_s9 + $0x18] sm:$0xff] }
 0x3de   : > { %13888 = vmatpush3.msra.mxu0 %v13024_v53  ;;  %13870 = vmatprep.subr.mxu1 %v17992_v2  ;;  %v14449_v55 = vld.sshfl [vmem:[#allocation5] sm:$0xf pattern:$0x76325410]  ;;  %v13072_v53 = vld [vmem:[%s17947_s9 + $0x98] sm:$0xff] }
 0x3df   : > { %13889 = vmatprep.subr.mxu0 %v17992_v2  ;;  %13871 = vmatpush3.msra.mxu1 %v12996_v22  ;;  %v14451_v7 = vld.sshfl [vmem:[#allocation5 + $0x5] sm:$0xf pattern:$0x76325410]  ;;  %v6619_v22 = vld [vmem:[%s17947_s9 + $0x10] sm:$0xff] }
 0x3e0   : > { %13890 = vmatpush3.msra.mxu0 %v13023_v40  ;;  %13872 = vmatprep.subr.mxu1 %v17992_v2  ;;  %v13056_v29 = vld [vmem:[%s17945_s7 + $0x3c0] sm:$0xff]  ;;  %v13071_v40 = vld [vmem:[%s17947_s9 + $0x90] sm:$0xff] }
 0x3e1   : > { %13891 = vmatprep.subr.mxu0 %v17992_v2  ;;  %13873 = vmatpush3.msra.mxu1 %v12995_v56  ;;  %v6618_v56 = vld [vmem:[%s17947_s9 + $0x8] sm:$0xff] }
 0x3e2   : > { %13892 = vmatpush3.msra.mxu0 %v13022_v28  ;;  %13874 = vmatprep.subr.mxu1 %v17992_v2  ;;  %v13070_v28 = vld [vmem:[%s17947_s9 + $0x88] sm:$0xff] }
 0x3e3   : > { %13893 = vmatprep.subr.mxu0 %v17992_v2  ;;  %13875 = vmatpush3.msra.mxu1 %v12994_v18  ;;  %v6617_v18 = vld [vmem:[%s17947_s9] sm:$0xff] }
 0x3e4   : > { %13894 = vmatpush3.msra.mxu0 %v13021_v34  ;;  %13876 = vmatprep.subr.mxu1 %v17992_v2  ;;  %v13069_v34 = vld [vmem:[%s17947_s9 + $0x80] sm:$0xff] }
 0x3e5   : > { %13895 = vmatprep.subr.mxu0 %v17992_v2  ;;  %13877 = vmatpush3.msra.mxu1 %v12993_v43  ;;  %v16469_v43 = vld [vmem:[%s17947_s9 + $0xb8] sm:$0xff] }
 0x3e6   : > { %13896 = vmatpush3.msra.mxu0 %v13020_v5  ;;  %13878 = vmatprep.subr.mxu1 %v17992_v2  ;;  %v16474_v5 = vld [vmem:[%s17947_s9 + $0x118] sm:$0xff] }
 0x3e7   : > { %13897 = vmatprep.subr.mxu0 %v17992_v2  ;;  %13879 = vmatpush3.msra.mxu1 %v12992_v48  ;;  %v14464_v48 = vmov 1966171168  }
 0x3e8   : > { %13898 = vmatpush3.msra.mxu0 %v13019_v17  ;;  %13880 = vmatprep.subr.mxu1 %v17992_v2  ;;  %v5645_v17 = vunpack.c.l.s4 %v14464_v48 }
 0x3e9   : > { %13899 = vmatprep.subr.mxu0 %v17992_v2  ;;  %13881 = vmatpush3.msra.mxu1 %v12991_v62  ;;  %v16481_v62 = vld [vmem:[%s17946_s8] ss:$0 sm:$0xff] }
 0x3ea   : > { %13882 = vmatprep.mubr.msk.f32.mxu1 %vm14463_vm15, %v17992_v2  ;;  %13900 = vmatpush3.msra.mxu0 %v13018_v37 }
 0x3eb   : > { %13901 = vmatprep.mubr.msk.f32.mxu0 %vm14463_vm15, %v17992_v2  ;;  %13883 = vmatmul.mubr.msk.f32.vlgmr.msra.gmra.mxu1 %vm5569_vm3, %v14445_v20  ;;  %v5646_v20 = vunpack.c.0.s8 %v5645_v17 }
 0x3ec   : > { %13902 = vmatmul.mubr.msk.f32.vlgmr.msra.gmra.mxu0 %vm5569_vm3, %v14446_v4  ;;  %13904 = vmatprep.subr.mxu1 %v17992_v2 }
 0x3ed   : > { %13923 = vmatprep.subr.mxu0 %v17992_v2  ;;  %13905 = vmatpush3.msra.mxu1 %v13017_v25  ;;  %v16484_v37 = vsub.s32 %v5646_v20, %v15366_v27 }
 0x3ee   : > { %13924 = vmatpush3.msra.mxu0 %v13044_v59  ;;  %13906 = vmatprep.subr.mxu1 %v17992_v2 }
 0x3ef   : > { %13925 = vmatprep.subr.mxu0 %v17992_v2  ;;  %13907 = vmatpush3.msra.mxu1 %v13016_v50 }
 0x3f0   : > { %13926 = vmatpush3.msra.mxu0 %v13043_v8  ;;  %13908 = vmatprep.subr.mxu1 %v17992_v2 }
 0x3f1   : > { %13927 = vmatprep.subr.mxu0 %v17992_v2  ;;  %13909 = vmatpush3.msra.mxu1 %v13015_v31 }
 0x3f2   : > { %13928 = vmatpush3.msra.mxu0 %v13042_v23  ;;  %13910 = vmatprep.subr.mxu1 %v17992_v2 }
 0x3f3   : > { %13929 = vmatprep.subr.mxu0 %v17992_v2  ;;  %13911 = vmatpush3.msra.mxu1 %v13014_v46 }
 0x3f4   : > { %13930 = vmatpush3.msra.mxu0 %v13041_v11  ;;  %13912 = vmatprep.subr.mxu1 %v17992_v2 }
 0x3f5   : > { %13931 = vmatprep.subr.mxu0 %v17992_v2  ;;  %13913 = vmatpush3.msra.mxu1 %v13013_v54 }
 0x3f6   : > { %13932 = vmatpush3.msra.mxu0 %v13040_v9  ;;  %13914 = vmatprep.subr.mxu1 %v17992_v2 }
 0x3f7   : > { %13933 = vmatprep.subr.mxu0 %v17992_v2  ;;  %13915 = vmatpush3.msra.mxu1 %v13012_v45 }
 0x3f8   : > { %13934 = vmatpush3.msra.mxu0 %v13039_v15  ;;  %13916 = vmatprep.subr.mxu1 %v17992_v2 }
 0x3f9   : > { %13935 = vmatprep.subr.mxu0 %v17992_v2  ;;  %13917 = vmatpush3.msra.mxu1 %v13011_v30 }
 0x3fa   : > { %13936 = vmatpush3.msra.mxu0 %v13038_v1  ;;  %13918 = vmatprep.subr.mxu1 %v17992_v2 }
 0x3fb   : > { %13937 = vmatprep.subr.mxu0 %v17992_v2  ;;  %13919 = vmatpush3.msra.mxu1 %v13010_v60 }
 0x3fc   : > { %13920 = vmatprep.mubr.msk.f32.mxu1 %vm14463_vm15, %v17992_v2  ;;  %13938 = vmatpush3.msra.mxu0 %v13037_v35 }
 0x3fd   : > { %13939 = vmatprep.mubr.msk.f32.mxu0 %vm14463_vm15, %v17992_v2  ;;  %13921 = vmatmul.mubr.msk.f32.vlgmr.msra.gmra.mxu1 %vm5569_vm3, %v14447_v61 }
 0x3fe   : > { %13940 = vmatmul.mubr.msk.f32.vlgmr.msra.gmra.mxu0 %vm5569_vm3, %v14448_v0  ;;  %13942 = vmatprep.subr.mxu1 %v17992_v2 }
 0x3ff   : > { %13961 = vmatprep.subr.mxu0 %v17992_v2  ;;  %13943 = vmatpush3.msra.mxu1 %v13036_v57 }
 0x400   : > { %13962 = vmatpush3.msra.mxu0 %v13054_v19  ;;  %13944 = vmatprep.subr.mxu1 %v17992_v2 }
 0x401   : > { %13963 = vmatprep.subr.mxu0 %v17992_v2  ;;  %13945 = vmatpush3.msra.mxu1 %v13035_v47 }
 0x402   : > { %13964 = vmatpush3.msra.mxu0 %v13053_v12  ;;  %13946 = vmatprep.subr.mxu1 %v17992_v2 }
 0x403   : > { %13965 = vmatprep.subr.mxu0 %v17992_v2  ;;  %13947 = vmatpush3.msra.mxu1 %v13034_v24 }
 0x404   : > { %13966 = vmatpush3.msra.mxu0 %v13052_v63  ;;  %13948 = vmatprep.subr.mxu1 %v17992_v2 }
 0x405   : > { %13967 = vmatprep.subr.mxu0 %v17992_v2  ;;  %13949 = vmatpush3.msra.mxu1 %v13033_v16 }
 0x406   : > { %13968 = vmatpush3.msra.mxu0 %v13051_v14  ;;  %13950 = vmatprep.subr.mxu1 %v17992_v2 }
 0x407   : > { %13969 = vmatprep.subr.mxu0 %v17992_v2  ;;  %13951 = vmatpush3.msra.mxu1 %v13032_v51 }
 0x408   : > { %13970 = vmatpush3.msra.mxu0 %v13050_v32  ;;  %13952 = vmatprep.subr.mxu1 %v17992_v2 }
 0x409   : > { %13971 = vmatprep.subr.mxu0 %v17992_v2  ;;  %13953 = vmatpush3.msra.mxu1 %v13031_v21 }
 0x40a   : > { %13972 = vmatpush3.msra.mxu0 %v13049_v52  ;;  %13954 = vmatprep.subr.mxu1 %v17992_v2 }
 0x40b   : > { %13973 = vmatprep.subr.mxu0 %v17992_v2  ;;  %13955 = vmatpush3.msra.mxu1 %v13030_v6 }
 0x40c   : > { %13974 = vmatpush3.msra.mxu0 %v13048_v58  ;;  %13956 = vmatprep.subr.mxu1 %v17992_v2 }
 0x40d   : > { %13975 = vmatprep.subr.mxu0 %v17992_v2  ;;  %13957 = vmatpush3.msra.mxu1 %v13029_v39 }
 0x40e   : > { %13958 = vmatprep.mubr.msk.f32.mxu1 %vm14463_vm15, %v17992_v2  ;;  %13976 = vmatpush3.msra.mxu0 %v13047_v13 }
 0x40f   : > { %13977 = vmatprep.mubr.msk.f32.mxu0 %vm14463_vm15, %v17992_v2  ;;  %13959 = vmatmul.mubr.msk.f32.vlgmr.msra.gmra.mxu1 %vm5569_vm3, %v14449_v55 }
 0x410   : > { %13978 = vmatmul.mubr.msk.f32.vlgmr.msra.gmra.mxu0 %vm5569_vm3, %v14450_v49  ;;  %13980 = vmatprep.subr.mxu1 %v17992_v2 }
 0x411   : > { %13981 = vmatpush3.msra.mxu1 %v13063_v26  ;;  %13996 = vmatprep.mubr.msk.f32.mxu1 %vm14463_vm15, %v17992_v2 }
 0x412   : > { %13982 = vmatprep.subr.mxu1 %v17992_v2  ;;  %13999 = vmatprep.subr.mxu0 %v6620_v38 }
 0x413   : > { %13983 = vmatpush3.msra.mxu1 %v13062_v3  ;;  %14000 = vmatpush3.msra.mxu0 %v6620_v38 }
 0x414   : > { %13984 = vmatprep.subr.mxu1 %v17992_v2  ;;  %14001 = vmatprep.subr.mxu0 %v6619_v22 }
 0x415   : > { %13985 = vmatpush3.msra.mxu1 %v13061_v10  ;;  %14002 = vmatpush3.msra.mxu0 %v6619_v22 }
 0x416   : > { %13986 = vmatprep.subr.mxu1 %v17992_v2  ;;  %14003 = vmatprep.subr.mxu0 %v6618_v56 }
 0x417   : > { %13987 = vmatpush3.msra.mxu1 %v13060_v42  ;;  %14004 = vmatpush3.msra.mxu0 %v6618_v56 }
 0x418   : > { %13988 = vmatprep.subr.mxu1 %v17992_v2  ;;  %14005 = vmatprep.subr.mxu0 %v6617_v18 }
 0x419   : > { %13989 = vmatpush3.msra.mxu1 %v13059_v36  ;;  %14006 = vmatpush3.msra.mxu0 %v6617_v18 }
 0x41a   : > { %13990 = vmatprep.subr.mxu1 %v17992_v2  ;;  %14010 = vmatprep.subr.mxu0 %v16469_v43 }
 0x41b   : > { %13991 = vmatpush3.msra.mxu1 %v13058_v41 }
 0x41c   : > { %13992 = vmatprep.subr.mxu1 %v17992_v2 }
 0x41d   : > { %13993 = vmatpush3.msra.mxu1 %v13057_v44 }
 0x41e   : > { %13994 = vmatprep.subr.mxu1 %v17992_v2  ;;  %v16657_v2 = vld [vmem:[%s17949_s11 + $0x48] sm:$0xff] }
 0x41f   : > { %13995 = vmatpush3.msra.mxu1 %v13056_v29 }
 0x420   : > { %13997 = vmatmul.mubr.msk.f32.vlgmr.msra.gmra.mxu1 %vm5569_vm3, %v14451_v7  ;;  %14021 = vmatprep.subr.mxu1 %v13072_v53 }
 0x421   : > { %14022 = vmatpush3.msra.mxu1 %v13072_v53 }
 0x422   : > { %14023 = vmatprep.subr.mxu1 %v13071_v40 }
 0x423   : > { %14024 = vmatpush3.msra.mxu1 %v13071_v40 }
 0x424   : > { %14025 = vmatprep.subr.mxu1 %v13070_v28 }
 0x425   : > { %14026 = vmatpush3.msra.mxu1 %v13070_v28 }
 0x426   : > { %14027 = vmatprep.subr.mxu1 %v13069_v34 }
 0x427   : > { %14028 = vmatpush3.msra.mxu1 %v13069_v34 }
 0x428   : > { %14043 = vmatprep.subr.mxu1 %v16474_v5 }
 0x49a   : > { %v5638_v4 = vpop.f32.mrf.mxu1 }
 0x49b   : > { %v5639_v25 = vadd.f32 %v16481_v62, %v5638_v4  ;;  %v5777_v59 = vpop.f32.mrf.mxu0 }
 0x49c   : > { %v13846_v50 = vpop.f32.mrf.mxu1 }
 0x49d   : > { %v5642_v8 = vmax.f32 %v5639_v25, 0.0  ;;  %v13865_v31 = vpop.f32.mrf.mxu0 }
 0x49f   : > { %v5650_v23 = vrot.slane %v5642_v8, %v16484_v37 }
 0x4a1   : > { %v5651_v46 = vcombine.high %v5650_v23, %v5650_v23  ;;  %v5658_v11 = vrot.slane %v5650_v23, %v16484_v37 }
 0x4a3   : > { %v5665_v54 = vrot.slane %v5651_v46, %v16484_v37  ;;  %v5666_v9 = vcombine.high %v5658_v11, %v5658_v11  ;;  %5673 = vst.msk [vmem:[#allocation8] sm:$0x1] %vm5672_vm5, %v5658_v11 }
 0x4a5   : > { %v5667_v45 = vcombine.high %v5665_v54, %v5665_v54  ;;  %5674 = vst.msk [vmem:[#allocation8 + $0x2] sm:$0x1] %vm5672_vm5, %v5665_v54  ;;  %5675 = vst.msk [vmem:[#allocation8 + $0x8] sm:$0x1] %vm5672_vm5, %v5666_v9 }
 0x4a7   : > { %5676 = vst.msk [vmem:[#allocation8 + $0xa] sm:$0x1] %vm5672_vm5, %v5667_v45 }
 0x4ab   : > { %v5859_v27 = vpop.f32.mrf.mxu1 }
 0x4ac   : > { %v5860_v15 = vadd.f32 %v5859_v27, %v5777_v59  ;;  %v6006_v30 = vpop.f32.mrf.mxu0 }
 0x4ad   : > { %v13884_v1 = vpop.f32.mrf.mxu1 }
 0x4ae   : > { %v5870_v61 = vadd.f32 %v16481_v62, %v5860_v15  ;;  %v13903_v60 = vpop.f32.mrf.mxu0 }
 0x4af   : > { %v13084_v60 = vld [vmem:[%s17947_s9 + $0x110] sm:$0xff] }
 0x4b0   : > { %v5871_v0 = vmax.f32 %v5870_v61, 0.0  ;;  %v13075_v61 = vld [vmem:[%s17947_s9 + $0xb0] sm:$0xff] }
 0x4b2   : > { %v5879_v35 = vrot.slane %v5871_v0, %v16484_v37 }
 0x4b4   : > { %v5880_v57 = vcombine.high %v5879_v35, %v5879_v35  ;;  %v5887_v19 = vrot.slane %v5879_v35, %v16484_v37  ;;  %v13074_v35 = vld [vmem:[%s17947_s9 + $0xa8] sm:$0xff] }
 0x4b6   : > { %v5894_v47 = vrot.slane %v5880_v57, %v16484_v37  ;;  %v5895_v12 = vcombine.high %v5887_v19, %v5887_v19  ;;  %5901 = vst.msk [vmem:[#allocation8 + $0x1] sm:$0x1] %vm5672_vm5, %v5887_v19  ;;  %v13083_v19 = vld [vmem:[%s17947_s9 + $0x108] sm:$0xff] }
 0x4b8   : > { %v5896_v24 = vcombine.high %v5894_v47, %v5894_v47  ;;  %5902 = vst.msk [vmem:[#allocation8 + $0x3] sm:$0x1] %vm5672_vm5, %v5894_v47  ;;  %5903 = vst.msk [vmem:[#allocation8 + $0x9] sm:$0x1] %vm5672_vm5, %v5895_v12  ;;  %v13089_v12 = vld [vmem:[%s17947_s9 + $0x158] sm:$0xff] }
 0x4ba   : > { %5904 = vst.msk [vmem:[#allocation8 + $0xb] sm:$0x1] %vm5672_vm5, %v5896_v24 }
 0x4bd   : > { %v6088_v63 = vpop.f32.mrf.mxu1  ;;  %v6551_v51 = vld [vmem:[#allocation8] sm:$0x3] }
 0x4be   : > { %v6089_v16 = vadd.f32 %v6088_v63, %v6006_v30  ;;  %v6235_v14 = vpop.f32.mrf.mxu0  ;;  %v13098_v63 = vld [vmem:[%s17947_s9 + $0x198] sm:$0xff] }
 0x4bf   : > { %v6552_v32 = vld [vmem:[#allocation8 + $0x2] sm:$0x3]  ;;  %v13922_v21 = vpop.f32.mrf.mxu1  ;;  %v6555_v55 = vld [vmem:[#allocation8 + $0x8] sm:$0x3] }
 0x4c0   : > { %v6573_v52 = vcombine.low %v6551_v51, %v6552_v32  ;;  %v6099_v6 = vadd.f32 %v16481_v62, %v6089_v16  ;;  %v13941_v58 = vpop.f32.mrf.mxu0  ;;  %v13097_v32 = vld [vmem:[%s17947_s9 + $0x190] sm:$0xff]  ;;  %v13087_v21 = vld [vmem:[%s17947_s9 + $0x148] sm:$0xff] }
 0x4c1   : > { %v6556_v39 = vld [vmem:[#allocation8 + $0xa] sm:$0x3]  ;;  %v13095_v58 = vld [vmem:[%s17947_s9 + $0x180] sm:$0xff] }
 0x4c2   : > { %v6580_v49 = vrot.slane %v6573_v52, %v15373_v33  ;;  %v6589_v13 = vcombine.low %v6555_v55, %v6556_v39  ;;  %v6100_v26 = vmax.f32 %v6099_v6, 0.0  ;;  %v13096_v52 = vld [vmem:[%s17947_s9 + $0x188] sm:$0xff]  ;;  %v13086_v6 = vld [vmem:[%s17947_s9 + $0x140] sm:$0xff]  ;;  %v13102_v39 = vld [vmem:[%s17947_s9 + $0x1b8] sm:$0xff] }
 0x4c4   : > { %v6596_v3 = vrot.slane %v6589_v13, %v15373_v33  ;;  %v6108_v10 = vrot.slane %v6100_v26, %v16484_v37  ;;  %6609 = vst.msk [vmem:[#allocation6] sm:$0xf] %vm4620_vm12, %v6580_v49  ;;  %v13116_v13 = vld [vmem:[%s17947_s9 + $0x1f8] sm:$0xff] }
 0x4c6   : > { %v6109_v42 = vcombine.high %v6108_v10, %v6108_v10  ;;  %v6116_v36 = vrot.slane %v6108_v10, %v16484_v37  ;;  %6611 = vst.msk [vmem:[#allocation6 + $0x10] sm:$0xf] %vm4620_vm12, %v6596_v3  ;;  %v13101_v3 = vld [vmem:[%s17947_s9 + $0x1b0] sm:$0xff] }
 0x4c8   : > { %v6123_v41 = vrot.slane %v6109_v42, %v16484_v37  ;;  %v6124_v44 = vcombine.high %v6116_v36, %v6116_v36  ;;  %6131 = vst.msk [vmem:[#allocation8 + $0x4] sm:$0x1] %vm5672_vm5, %v6116_v36  ;;  %v13115_v42 = vld [vmem:[%s17947_s9 + $0x1f0] sm:$0xff]  ;;  %v13100_v36 = vld [vmem:[%s17947_s9 + $0x1a8] sm:$0xff] }
 0x4ca   : > { %v6125_v7 = vcombine.high %v6123_v41, %v6123_v41  ;;  %6132 = vst.msk [vmem:[#allocation8 + $0x6] sm:$0x1] %vm5672_vm5, %v6123_v41  ;;  %6133 = vst.msk [vmem:[#allocation8 + $0xc] sm:$0x1] %vm5672_vm5, %v6124_v44  ;;  %v13114_v41 = vld [vmem:[%s17947_s9 + $0x1e8] sm:$0xff]  ;;  %v13099_v44 = vld [vmem:[%s17947_s9 + $0x1a0] sm:$0xff] }
 0x4cc   : > { %6134 = vst.msk [vmem:[#allocation8 + $0xe] sm:$0x1] %vm5672_vm5, %v6125_v7  ;;  %v13113_v7 = vld [vmem:[%s17947_s9 + $0x1e0] sm:$0xff] }
 0x4cf   : > { %v6317_v29 = vpop.f32.mrf.mxu1 }
 0x4d0   : > { %v6410_v38 = vpop.f32.mrf.mxu0  ;;  %v6318_v40 = vadd.f32 %v6317_v29, %v6235_v14  ;;  %v13088_v14 = vld [vmem:[%s17947_s9 + $0x150] sm:$0xff] }
 0x4d1   : > { %v13960_v53 = vpop.f32.mrf.mxu1 }
 0x4d2   : > { %v13979_v22 = vpop.f32.mrf.mxu0  ;;  %v6414_v56 = vadd.f32 %v6410_v38, %v6318_v40  ;;  %v13110_v38 = vld [vmem:[%s17947_s9 + $0x1d8] sm:$0xff]  ;;  %v13109_v40 = vld [vmem:[%s17947_s9 + $0x1d0] sm:$0xff] }
 0x4e0   : > { %v6504_v28 = vpop.f32.mrf.mxu1 }
 0x4e1   : > { %v6508_v18 = vadd.f32 %v6504_v28, %v6414_v56  ;;  %v13108_v56 = vld [vmem:[%s17947_s9 + $0x1c8] sm:$0xff]  ;;  %v13107_v28 = vld [vmem:[%s17947_s9 + $0x1c0] sm:$0xff] }
 0x4e2   : > { %v13998_v34 = vpop.f32.mrf.mxu1 }
 0x4e3   : > { %v6516_v48 = vadd.f32 %v16481_v62, %v6508_v18  ;;  %v8278_v34 = vld [vmem:[%s17949_s11 + $0x8] sm:$0xff] }
 0x4e5   : > { %v6517_v17 = vmax.f32 %v6516_v48, 0.0  ;;  %v13132_v48 = vld [vmem:[%s17949_s11 + $0x58] sm:$0xff] }
 0x4e7   : > { %v6525_v20 = vrot.slane %v6517_v17, %v16484_v37  ;;  %v8277_v17 = vld [vmem:[%s17949_s11] sm:$0xff] }
 0x4e9   : > { %v6526_v4 = vcombine.high %v6525_v20, %v6525_v20  ;;  %v6533_v25 = vrot.slane %v6525_v20, %v16484_v37  ;;  %v13131_v20 = vld [vmem:[%s17949_s11 + $0x50] sm:$0xff] }
 0x4eb   : > { %v6540_v59 = vrot.slane %v6526_v4, %v16484_v37  ;;  %v6541_v50 = vcombine.high %v6533_v25, %v6533_v25  ;;  %6547 = vst.msk [vmem:[#allocation8 + $0x5] sm:$0x1] %vm5672_vm5, %v6533_v25  ;;  %v16663_v4 = vld [vmem:[%s17949_s11 + $0xa8] sm:$0xff]  ;;  %v16669_v25 = vld [vmem:[%s17948_s10] ss:$0 sm:$0xff] }
 0x4ed   : > { %v6542_v8 = vcombine.high %v6540_v59, %v6540_v59  ;;  %6548 = vst.msk [vmem:[#allocation8 + $0x7] sm:$0x1] %vm5672_vm5, %v6540_v59  ;;  %6549 = vst.msk [vmem:[#allocation8 + $0xd] sm:$0x1] %vm5672_vm5, %v6541_v50 }
 0x4ef   : > { %6550 = vst.msk [vmem:[#allocation8 + $0xf] sm:$0x1] %vm5672_vm5, %v6542_v8 }
 0x4f2   : > { %v6553_v31 = vld [vmem:[#allocation8 + $0x4] sm:$0x3] }
 0x4f4   : > { %v6554_v62 = vld [vmem:[#allocation8 + $0x6] sm:$0x3]  ;;  %v6557_v46 = vld [vmem:[#allocation8 + $0xc] sm:$0x3] }
 0x4f5   : > { %v6581_v23 = vcombine.low %v6553_v31, %v6554_v62 }
 0x4f6   : > { %v6558_v11 = vld [vmem:[#allocation8 + $0xe] sm:$0x3] }
 0x4f7   : > { %v6588_v54 = vrot.slane %v6581_v23, %v15373_v33  ;;  %v6597_v9 = vcombine.low %v6557_v46, %v6558_v11 }
 0x4f9   : > { %v6604_v45 = vrot.slane %v6597_v9, %v15373_v33  ;;  %6610 = vst.msk [vmem:[#allocation6 + $0x8] sm:$0xf] %vm4620_vm12, %v6588_v54 }
 0x4fb   : > { %6612 = vst.msk [vmem:[#allocation6 + $0x18] sm:$0xf] %vm4620_vm12, %v6604_v45 }
 0x500   : > { %v14288_v27 = vld [vmem:[#allocation6] ss:$8 sps:$4 sm:$0xff]  }
 0x501   : > { %v14289_v15 = vld [vmem:[#allocation6] ss:$8 sps:$4 sm:$0xff]   ;;  %14007 = vmatprep.mubr.msk.f32.mxu0 %vm4648_vm13, %v14288_v27 }
 0x502   : > { %v14290_v30 = vld [vmem:[#allocation6 + $0x10] ss:$8 sps:$4 sm:$0xff]   ;;  %14029 = vmatprep.mubr.msk.f32.mxu1 %vm4648_vm13, %v14289_v15  ;;  %v14292_v0 = vld [vmem:[#allocation6 + $0x1] ss:$8 sps:$4 sm:$0xff]  }
 0x503   : > { %v14291_v1 = vld [vmem:[#allocation6 + $0x10] ss:$8 sps:$4 sm:$0xff]   ;;  %14008 = vmatmul.mubr.msk.f32.vlgmr.msra.gmra.mxu0 %vm4648_vm13, %v14290_v30  ;;  %v14293_v57 = vld [vmem:[#allocation6] ss:$8 sps:$4 sm:$0xff]  }
 0x504   : > { %14011 = vmatpush3.msra.mxu0 %v16469_v43  ;;  %14030 = vmatmul.mubr.msk.f32.vlgmr.msra.gmra.mxu1 %vm4648_vm13, %v14291_v1  ;;  %v13073_v43 = vld [vmem:[%s17947_s9 + $0xa0] sm:$0xff]  ;;  %v14296_v16 = vld [vmem:[#allocation6 + $0x8] ss:$8 sps:$4 sm:$0xff]  }
 0x505   : > { %14044 = vmatpush3.msra.mxu1 %v16474_v5  ;;  %14012 = vmatprep.subr.mxu0 %v13075_v61  ;;  %v13082_v5 = vld [vmem:[%s17947_s9 + $0x100] sm:$0xff]  ;;  %v14297_v51 = vld [vmem:[#allocation6] ss:$8 sps:$4 sm:$0xff]  }
 0x506   : > { %14018 = vmatprep.mubr.msk.f32.mxu0 %vm4648_vm13, %v14292_v0  ;;  %14045 = vmatprep.subr.mxu1 %v13084_v60  ;;  %v14294_v47 = vld [vmem:[#allocation6 + $0x11] ss:$8 sps:$4 sm:$0xff]   ;;  %v14300_v26 = vld [vmem:[#allocation6 + $0x1] ss:$8 sps:$4 sm:$0xff]  }
 0x507   : > { %14051 = vmatprep.mubr.msk.f32.mxu1 %vm4648_vm13, %v14293_v57  ;;  %14013 = vmatpush3.msra.mxu0 %v13075_v61  ;;  %v14295_v24 = vld [vmem:[#allocation6 + $0x10] ss:$8 sps:$4 sm:$0xff]  }
 0x508   : > { %14046 = vmatpush3.msra.mxu1 %v13084_v60  ;;  %14014 = vmatprep.subr.mxu0 %v13074_v35  ;;  %v14298_v55 = vld [vmem:[#allocation6 + $0x18] ss:$8 sps:$4 sm:$0xff]   ;;  %v14301_v10 = vld [vmem:[#allocation6 + $0x9] ss:$8 sps:$4 sm:$0xff]  }
 0x509   : > { %14047 = vmatprep.subr.mxu1 %v13083_v19  ;;  %14015 = vmatpush3.msra.mxu0 %v13074_v35  ;;  %v14299_v49 = vld [vmem:[#allocation6 + $0x10] ss:$8 sps:$4 sm:$0xff]  }
 0x50a   : > { %14048 = vmatpush3.msra.mxu1 %v13083_v19  ;;  %14016 = vmatprep.subr.mxu0 %v13073_v43  ;;  %v14302_v29 = vld [vmem:[#allocation6 + $0x11] ss:$8 sps:$4 sm:$0xff]  }
 0x50b   : > { %14049 = vmatprep.subr.mxu1 %v13082_v5  ;;  %14017 = vmatpush3.msra.mxu0 %v13073_v43  ;;  %v14303_v53 = vld [vmem:[#allocation6 + $0x19] ss:$8 sps:$4 sm:$0xff]   ;;  %v14304_v22 = vld [vmem:[#allocation6 + $0x8] ss:$8 sps:$4 sm:$0xff]  }
 0x50c   : > { %14050 = vmatpush3.msra.mxu1 %v13082_v5  ;;  %14019 = vmatmul.mubr.msk.f32.vlgmr.msra.gmra.mxu0 %vm4648_vm13, %v14294_v47  ;;  %v14305_v18 = vld [vmem:[#allocation6 + $0x18] ss:$8 sps:$4 sm:$0xff]  }
 0x50d   : > { %14032 = vmatprep.subr.mxu0 %v13089_v12  ;;  %14052 = vmatmul.mubr.msk.f32.vlgmr.msra.gmra.mxu1 %vm4648_vm13, %v14295_v24 }
 0x50e   : > { %14065 = vmatprep.subr.mxu1 %v13098_v63  ;;  %14033 = vmatpush3.msra.mxu0 %v13089_v12 }
 0x50f   : > { %14040 = vmatprep.mubr.msk.f32.mxu0 %vm4648_vm13, %v14296_v16  ;;  %14066 = vmatpush3.msra.mxu1 %v13098_v63 }
 0x510   : > { %14073 = vmatprep.mubr.msk.f32.mxu1 %vm4648_vm13, %v14297_v51  ;;  %14034 = vmatprep.subr.mxu0 %v13088_v14 }
 0x511   : > { %14067 = vmatprep.subr.mxu1 %v13097_v32  ;;  %14035 = vmatpush3.msra.mxu0 %v13088_v14 }
 0x512   : > { %14068 = vmatpush3.msra.mxu1 %v13097_v32  ;;  %14036 = vmatprep.subr.mxu0 %v13087_v21 }
 0x513   : > { %14069 = vmatprep.subr.mxu1 %v13096_v52  ;;  %14037 = vmatpush3.msra.mxu0 %v13087_v21 }
 0x514   : > { %14070 = vmatpush3.msra.mxu1 %v13096_v52  ;;  %14038 = vmatprep.subr.mxu0 %v13086_v6 }
 0x515   : > { %14071 = vmatprep.subr.mxu1 %v13095_v58  ;;  %14039 = vmatpush3.msra.mxu0 %v13086_v6 }
 0x516   : > { %14072 = vmatpush3.msra.mxu1 %v13095_v58  ;;  %14041 = vmatmul.mubr.msk.f32.vlgmr.msra.gmra.mxu0 %vm4648_vm13, %v14298_v55 }
 0x517   : > { %14054 = vmatprep.subr.mxu0 %v13102_v39  ;;  %14074 = vmatmul.mubr.msk.f32.vlgmr.msra.gmra.mxu1 %vm4648_vm13, %v14299_v49 }
 0x518   : > { %14087 = vmatprep.subr.mxu1 %v13116_v13  ;;  %14055 = vmatpush3.msra.mxu0 %v13102_v39 }
 0x519   : > { %14062 = vmatprep.mubr.msk.f32.mxu0 %vm4648_vm13, %v14300_v26  ;;  %14088 = vmatpush3.msra.mxu1 %v13116_v13 }
 0x51a   : > { %14095 = vmatprep.mubr.msk.f32.mxu1 %vm4648_vm13, %v14301_v10  ;;  %14056 = vmatprep.subr.mxu0 %v13101_v3 }
 0x51b   : > { %14089 = vmatprep.subr.mxu1 %v13115_v42  ;;  %14057 = vmatpush3.msra.mxu0 %v13101_v3 }
 0x51c   : > { %14090 = vmatpush3.msra.mxu1 %v13115_v42  ;;  %14058 = vmatprep.subr.mxu0 %v13100_v36 }
 0x51d   : > { %14091 = vmatprep.subr.mxu1 %v13114_v41  ;;  %14059 = vmatpush3.msra.mxu0 %v13100_v36 }
 0x51e   : > { %14092 = vmatpush3.msra.mxu1 %v13114_v41  ;;  %14060 = vmatprep.subr.mxu0 %v13099_v44 }
 0x51f   : > { %14093 = vmatprep.subr.mxu1 %v13113_v7  ;;  %14061 = vmatpush3.msra.mxu0 %v13099_v44 }
 0x520   : > { %14094 = vmatpush3.msra.mxu1 %v13113_v7  ;;  %14063 = vmatmul.mubr.msk.f32.vlgmr.msra.gmra.mxu0 %vm4648_vm13, %v14302_v29 }
 0x521   : > { %14076 = vmatprep.subr.mxu0 %v13110_v38  ;;  %14096 = vmatmul.mubr.msk.f32.vlgmr.msra.gmra.mxu1 %vm4648_vm13, %v14303_v53 }
 0x522   : > { %14077 = vmatpush3.msra.mxu0 %v13110_v38  ;;  %14084 = vmatprep.mubr.msk.f32.mxu0 %vm4648_vm13, %v14304_v22 }
 0x523   : > { %14078 = vmatprep.subr.mxu0 %v13109_v40  ;;  %14114 = vmatprep.subr.mxu1 %v13132_v48 }
 0x524   : > { %14079 = vmatpush3.msra.mxu0 %v13109_v40  ;;  %14115 = vmatpush3.msra.mxu1 %v13132_v48 }
 0x525   : > { %14080 = vmatprep.subr.mxu0 %v13108_v56  ;;  %14116 = vmatprep.subr.mxu1 %v13131_v20 }
 0x526   : > { %14081 = vmatpush3.msra.mxu0 %v13108_v56  ;;  %14117 = vmatpush3.msra.mxu1 %v13131_v20 }
 0x527   : > { %14082 = vmatprep.subr.mxu0 %v13107_v28  ;;  %14146 = vmatprep.subr.mxu1 %v16663_v4 }
 0x528   : > { %14083 = vmatpush3.msra.mxu0 %v13107_v28 }
 0x529   : > { %14085 = vmatmul.mubr.msk.f32.vlgmr.msra.gmra.mxu0 %vm4648_vm13, %v14305_v18  ;;  %14098 = vmatprep.subr.mxu0 %v8278_v34 }
 0x52a   : > { %14099 = vmatpush3.msra.mxu0 %v8278_v34 }
 0x52b   : > { %14100 = vmatprep.subr.mxu0 %v8277_v17 }
 0x52c   : > { %14101 = vmatpush3.msra.mxu0 %v8277_v17 }
 0x52d   : > { %14130 = vmatprep.subr.mxu0 %v16657_v2 }
 0x5c3   : > { %v14009_v59 = vpop.f32.mrf.mxu0 }
 0x5c4   : > { %v6710_v50 = vadd.f32 %v14009_v59, %v16669_v25  ;;  %v14031_v15 = vpop.f32.mrf.mxu1 }
 0x5c5   : > { %v6704_v8 = vpop.f32.mrf.mxu0 }
 0x5c6   : > { %v6714_v31 = vmax.f32 %v6710_v50, 0.0  ;;  %v6705_v62 = vadd.f32 %v16669_v25, %v6704_v8  ;;  %v7027_v21 = vpop.f32.mrf.mxu1 }
 0x5c8   : > { %v6766_v23 = vcombine.high %v6714_v31, %v6714_v31  ;;  %v6773_v46 = vrot.slane %v6714_v31, %v16484_v37  ;;  %v6713_v11 = vmax.f32 %v6705_v62, 0.0 }
 0x5ca   : > { %v6780_v54 = vrot.slane %v6766_v23, %v16484_v37  ;;  %v6781_v9 = vcombine.high %v6773_v46, %v6773_v46  ;;  %v6789_v45 = vrot.slane %v6773_v46, %v16484_v37  ;;  %v6717_v27 = vcombine.high %v6713_v11, %v6713_v11 }
 0x5cb   : > { %v6724_v30 = vrot.slane %v6713_v11, %v16484_v37 }
 0x5cc   : > { %v6782_v1 = vcombine.high %v6780_v54, %v6780_v54  ;;  %v6796_v61 = vrot.slane %v6780_v54, %v16484_v37  ;;  %v6803_v60 = vrot.slane %v6781_v9, %v16484_v37  ;;  %v6811_v0 = vcombine.high %v6789_v45, %v6789_v45  ;;  %6840 = vst.msk [vmem:[#allocation9 + $0x20] sm:$0x1] %vm6831_vm6, %v6789_v45  ;;  %v14020_v35 = vpop.f32.mrf.mxu0 }
 0x5cd   : > { %v6731_v57 = vrot.slane %v6717_v27, %v16484_v37  ;;  %v6732_v19 = vcombine.high %v6724_v30, %v6724_v30  ;;  %v6740_v43 = vrot.slane %v6724_v30, %v16484_v37  ;;  %v7033_v5 = vadd.f32 %v14031_v15, %v14020_v35  ;;  %v14053_v41 = vpop.f32.mrf.mxu1 }
 0x5ce   : > { %v6810_v47 = vrot.slane %v6782_v1, %v16484_v37  ;;  %v6812_v12 = vcombine.high %v6796_v61, %v6796_v61  ;;  %v6813_v24 = vcombine.high %v6803_v60, %v6803_v60  ;;  %6841 = vst.msk [vmem:[#allocation9 + $0x22] sm:$0x1] %vm6831_vm6, %v6803_v60  ;;  %6842 = vst.msk [vmem:[#allocation9 + $0x24] sm:$0x1] %vm6831_vm6, %v6811_v0  ;;  %v6942_v63 = vpop.f32.mrf.mxu0 }
 0x5cf   : > { %6844 = vst.msk [vmem:[#allocation9 + $0x30] sm:$0x1] %vm6831_vm6, %v6796_v61  ;;  %v6733_v16 = vcombine.high %v6731_v57, %v6731_v57  ;;  %v6747_v14 = vrot.slane %v6731_v57, %v16484_v37  ;;  %v6754_v51 = vrot.slane %v6732_v19, %v16484_v37  ;;  %v6762_v32 = vcombine.high %v6740_v43, %v6740_v43  ;;  %v7359_v50 = vpop.f32.mrf.mxu1 }
 0x5d0   : > { %6832 = vst.msk [vmem:[#allocation9] sm:$0x1] %vm6831_vm6, %v6740_v43  ;;  %v6814_v52 = vcombine.high %v6810_v47, %v6810_v47  ;;  %6843 = vst.msk [vmem:[#allocation9 + $0x26] sm:$0x1] %vm6831_vm6, %v6813_v24  ;;  %v7044_v6 = vadd.f32 %v16669_v25, %v7033_v5  ;;  %v7028_v58 = vadd.f32 %v7027_v21, %v6942_v63 }
 0x5d1   : > { %6845 = vst.msk [vmem:[#allocation9 + $0x32] sm:$0x1] %vm6831_vm6, %v6810_v47  ;;  %6846 = vst.msk [vmem:[#allocation9 + $0x34] sm:$0x1] %vm6831_vm6, %v6812_v12  ;;  %v6761_v55 = vrot.slane %v6733_v16, %v16484_v37  ;;  %v6763_v39 = vcombine.high %v6747_v14, %v6747_v14  ;;  %v6764_v49 = vcombine.high %v6754_v51, %v6754_v51 }
 0x5d2   : > { %6833 = vst.msk [vmem:[#allocation9 + $0x2] sm:$0x1] %vm6831_vm6, %v6754_v51  ;;  %6834 = vst.msk [vmem:[#allocation9 + $0x4] sm:$0x1] %vm6831_vm6, %v6762_v32  ;;  %v7046_v13 = vmax.f32 %v7044_v6, 0.0  ;;  %v7043_v26 = vadd.f32 %v16669_v25, %v7028_v58 }
 0x5d3   : > { %6836 = vst.msk [vmem:[#allocation9 + $0x10] sm:$0x1] %vm6831_vm6, %v6747_v14  ;;  %6847 = vst.msk [vmem:[#allocation9 + $0x36] sm:$0x1] %vm6831_vm6, %v6814_v52  ;;  %v6765_v3 = vcombine.high %v6761_v55, %v6761_v55 }
 0x5d4   : > { %6835 = vst.msk [vmem:[#allocation9 + $0x6] sm:$0x1] %vm6831_vm6, %v6764_v49  ;;  %6837 = vst.msk [vmem:[#allocation9 + $0x12] sm:$0x1] %vm6831_vm6, %v6761_v55  ;;  %v7098_v10 = vcombine.high %v7046_v13, %v7046_v13  ;;  %v7105_v42 = vrot.slane %v7046_v13, %v16484_v37  ;;  %v7045_v36 = vmax.f32 %v7043_v26, 0.0 }
 0x5d5   : > { %6838 = vst.msk [vmem:[#allocation9 + $0x14] sm:$0x1] %vm6831_vm6, %v6763_v39  ;;  %6839 = vst.msk [vmem:[#allocation9 + $0x16] sm:$0x1] %vm6831_vm6, %v6765_v3 }
 0x5d6   : > { %v7112_v44 = vrot.slane %v7098_v10, %v16484_v37  ;;  %v7113_v7 = vcombine.high %v7105_v42, %v7105_v42  ;;  %v7121_v29 = vrot.slane %v7105_v42, %v16484_v37  ;;  %v7049_v38 = vcombine.high %v7045_v36, %v7045_v36  ;;  %v14042_v53 = vpop.f32.mrf.mxu0 }
 0x5d7   : > { %v7056_v22 = vrot.slane %v7045_v36, %v16484_v37  ;;  %v7365_v40 = vadd.f32 %v14053_v41, %v14042_v53  ;;  %v14075_v58 = vpop.f32.mrf.mxu1 }
 0x5d8   : > { %v7114_v56 = vcombine.high %v7112_v44, %v7112_v44  ;;  %v7128_v28 = vrot.slane %v7112_v44, %v16484_v37  ;;  %v7135_v18 = vrot.slane %v7113_v7, %v16484_v37  ;;  %v7143_v34 = vcombine.high %v7121_v29, %v7121_v29  ;;  %7171 = vst.msk [vmem:[#allocation9 + $0x21] sm:$0x1] %vm6831_vm6, %v7121_v29  ;;  %v7274_v48 = vpop.f32.mrf.mxu0 }
 0x5d9   : > { %v7063_v17 = vrot.slane %v7049_v38, %v16484_v37  ;;  %v7064_v20 = vcombine.high %v7056_v22, %v7056_v22  ;;  %v7072_v59 = vrot.slane %v7056_v22, %v16484_v37  ;;  %v7376_v8 = vadd.f32 %v16669_v25, %v7365_v40 }
 0x5da   : > { %v7142_v31 = vrot.slane %v7114_v56, %v16484_v37  ;;  %v7144_v62 = vcombine.high %v7128_v28, %v7128_v28  ;;  %v7145_v23 = vcombine.high %v7135_v18, %v7135_v18  ;;  %7172 = vst.msk [vmem:[#allocation9 + $0x23] sm:$0x1] %vm6831_vm6, %v7135_v18  ;;  %7173 = vst.msk [vmem:[#allocation9 + $0x25] sm:$0x1] %vm6831_vm6, %v7143_v34 }
 0x5db   : > { %7175 = vst.msk [vmem:[#allocation9 + $0x31] sm:$0x1] %vm6831_vm6, %v7128_v28  ;;  %v7360_v46 = vadd.f32 %v7359_v50, %v7274_v48  ;;  %v7065_v11 = vcombine.high %v7063_v17, %v7063_v17  ;;  %v7079_v54 = vrot.slane %v7063_v17, %v16484_v37  ;;  %v7086_v9 = vrot.slane %v7064_v20, %v16484_v37 }
 0x5dc   : > { %v7094_v45 = vcombine.high %v7072_v59, %v7072_v59  ;;  %7163 = vst.msk [vmem:[#allocation9 + $0x1] sm:$0x1] %vm6831_vm6, %v7072_v59  ;;  %v7146_v27 = vcombine.high %v7142_v31, %v7142_v31  ;;  %7174 = vst.msk [vmem:[#allocation9 + $0x27] sm:$0x1] %vm6831_vm6, %v7145_v23  ;;  %v7378_v15 = vmax.f32 %v7376_v8, 0.0  ;;  %v7691_v23 = vpop.f32.mrf.mxu1 }
 0x5dd   : > { %7176 = vst.msk [vmem:[#allocation9 + $0x33] sm:$0x1] %vm6831_vm6, %v7142_v31  ;;  %7177 = vst.msk [vmem:[#allocation9 + $0x35] sm:$0x1] %vm6831_vm6, %v7144_v62  ;;  %v7375_v30 = vadd.f32 %v16669_v25, %v7360_v46  ;;  %v7093_v1 = vrot.slane %v7065_v11, %v16484_v37  ;;  %v7095_v61 = vcombine.high %v7079_v54, %v7079_v54 }
 0x5de   : > { %v7096_v60 = vcombine.high %v7086_v9, %v7086_v9  ;;  %7164 = vst.msk [vmem:[#allocation9 + $0x3] sm:$0x1] %vm6831_vm6, %v7086_v9  ;;  %7165 = vst.msk [vmem:[#allocation9 + $0x5] sm:$0x1] %vm6831_vm6, %v7094_v45  ;;  %v7430_v0 = vcombine.high %v7378_v15, %v7378_v15  ;;  %v7437_v35 = vrot.slane %v7378_v15, %v16484_v37 }
 0x5df   : > { %7167 = vst.msk [vmem:[#allocation9 + $0x11] sm:$0x1] %vm6831_vm6, %v7079_v54  ;;  %7178 = vst.msk [vmem:[#allocation9 + $0x37] sm:$0x1] %vm6831_vm6, %v7146_v27  ;;  %v7377_v57 = vmax.f32 %v7375_v30, 0.0  ;;  %v7097_v19 = vcombine.high %v7093_v1, %v7093_v1 }
 0x5e0   : > { %7166 = vst.msk [vmem:[#allocation9 + $0x7] sm:$0x1] %vm6831_vm6, %v7096_v60  ;;  %7168 = vst.msk [vmem:[#allocation9 + $0x13] sm:$0x1] %vm6831_vm6, %v7093_v1  ;;  %v7444_v43 = vrot.slane %v7430_v0, %v16484_v37  ;;  %v7445_v5 = vcombine.high %v7437_v35, %v7437_v35  ;;  %v7453_v47 = vrot.slane %v7437_v35, %v16484_v37  ;;  %v8051_v24 = vld [vmem:[#allocation9 + $0x20] sm:$0x3]  ;;  %v14064_v14 = vpop.f32.mrf.mxu0 }
 0x5e1   : > { %7169 = vst.msk [vmem:[#allocation9 + $0x15] sm:$0x1] %vm6831_vm6, %v7095_v61  ;;  %v7381_v12 = vcombine.high %v7377_v57, %v7377_v57  ;;  %v8052_v63 = vld [vmem:[#allocation9 + $0x22] sm:$0x3]  ;;  %7170 = vst.msk [vmem:[#allocation9 + $0x17] sm:$0x1] %vm6831_vm6, %v7097_v19  ;;  %v7388_v16 = vrot.slane %v7377_v57, %v16484_v37  ;;  %v7697_v41 = vadd.f32 %v14075_v58, %v14064_v14  ;;  %v14097_v60 = vpop.f32.mrf.mxu1 }
 0x5e2   : > { %v8185_v51 = vcombine.low %v8051_v24, %v8052_v63  ;;  %v7446_v32 = vcombine.high %v7444_v43, %v7444_v43  ;;  %v7460_v21 = vrot.slane %v7444_v43, %v16484_v37  ;;  %v7467_v52 = vrot.slane %v7445_v5, %v16484_v37  ;;  %7504 = vst.msk [vmem:[#allocation9 + $0x28] sm:$0x1] %vm6831_vm6, %v7453_v47  ;;  %v8053_v44 = vld [vmem:[#allocation9 + $0x24] sm:$0x3]  ;;  %v8059_v59 = vld [vmem:[#allocation9 + $0x30] sm:$0x3]  ;;  %v7606_v46 = vpop.f32.mrf.mxu0 }
 0x5e3   : > { %v7475_v6 = vcombine.high %v7453_v47, %v7453_v47  ;;  %v7395_v55 = vrot.slane %v7381_v12, %v16484_v37  ;;  %v7396_v39 = vcombine.high %v7388_v16, %v7388_v16  ;;  %v7404_v49 = vrot.slane %v7388_v16, %v16484_v37  ;;  %v8054_v13 = vld [vmem:[#allocation9 + $0x26] sm:$0x3]  ;;  %v8035_v26 = vld [vmem:[#allocation9] sm:$0x3] }
 0x5e4   : > { %v7474_v10 = vrot.slane %v7446_v32, %v16484_v37  ;;  %v7476_v42 = vcombine.high %v7460_v21, %v7460_v21  ;;  %v7477_v36 = vcombine.high %v7467_v52, %v7467_v52  ;;  %7505 = vst.msk [vmem:[#allocation9 + $0x2a] sm:$0x1] %vm6831_vm6, %v7467_v52  ;;  %7508 = vst.msk [vmem:[#allocation9 + $0x38] sm:$0x1] %vm6831_vm6, %v7460_v21  ;;  %v8060_v40 = vld [vmem:[#allocation9 + $0x32] sm:$0x3]  ;;  %v7881_v52 = vpop.f32.mrf.mxu1 }
 0x5e5   : > { %v8036_v3 = vld [vmem:[#allocation9 + $0x2] sm:$0x3]  ;;  %v8037_v7 = vld [vmem:[#allocation9 + $0x4] sm:$0x3]  ;;  %7506 = vst.msk [vmem:[#allocation9 + $0x2c] sm:$0x1] %vm6831_vm6, %v7475_v6  ;;  %v7397_v38 = vcombine.high %v7395_v55, %v7395_v55  ;;  %v7411_v53 = vrot.slane %v7395_v55, %v16484_v37  ;;  %v7418_v22 = vrot.slane %v7396_v39, %v16484_v37  ;;  %v7426_v28 = vcombine.high %v7404_v49, %v7404_v49 }
 0x5e6   : > { %v8117_v29 = vcombine.low %v8035_v26, %v8036_v3  ;;  %7496 = vst.msk [vmem:[#allocation9 + $0x8] sm:$0x1] %vm6831_vm6, %v7404_v49  ;;  %v7478_v56 = vcombine.high %v7474_v10, %v7474_v10  ;;  %7507 = vst.msk [vmem:[#allocation9 + $0x2e] sm:$0x1] %vm6831_vm6, %v7477_v36  ;;  %v8186_v48 = vcombine.low %v8053_v44, %v8054_v13  ;;  %v8062_v20 = vld [vmem:[#allocation9 + $0x36] sm:$0x3] }
 0x5e7   : > { %7509 = vst.msk [vmem:[#allocation9 + $0x3a] sm:$0x1] %vm6831_vm6, %v7474_v10  ;;  %7510 = vst.msk [vmem:[#allocation9 + $0x3c] sm:$0x1] %vm6831_vm6, %v7476_v42  ;;  %v8038_v18 = vld [vmem:[#allocation9 + $0x6] sm:$0x3]  ;;  %v8193_v17 = vrot.slane %v8185_v51, %v15373_v33  ;;  %v7425_v8 = vrot.slane %v7397_v38, %v16484_v37  ;;  %v7427_v31 = vcombine.high %v7411_v53, %v7411_v53 }
 0x5e8   : > { %v8044_v34 = vld [vmem:[#allocation9 + $0x12] sm:$0x3]  ;;  %v8043_v50 = vld [vmem:[#allocation9 + $0x10] sm:$0x3]  ;;  %v7428_v62 = vcombine.high %v7418_v22, %v7418_v22  ;;  %7497 = vst.msk [vmem:[#allocation9 + $0xa] sm:$0x1] %vm6831_vm6, %v7418_v22  ;;  %v8118_v11 = vcombine.low %v8037_v7, %v8038_v18  ;;  %v8125_v54 = vrot.slane %v8117_v29, %v15373_v33  ;;  %v8200_v15 = vrot.slane %v8186_v48, %v15373_v33 }
 0x5e9   : > { %7500 = vst.msk [vmem:[#allocation9 + $0x18] sm:$0x1] %vm6831_vm6, %v7411_v53  ;;  %7511 = vst.msk [vmem:[#allocation9 + $0x3e] sm:$0x1] %vm6831_vm6, %v7478_v56  ;;  %v8045_v9 = vld [vmem:[#allocation9 + $0x14] sm:$0x3]  ;;  %v8151_v27 = vcombine.low %v8043_v50, %v8044_v34  ;;  %v8219_v1 = vcombine.low %v8059_v59, %v8060_v40  ;;  %v7429_v61 = vcombine.high %v7425_v8, %v7425_v8  ;;  %v14086_v0 = vpop.f32.mrf.mxu0 }
 0x5ea   : > { %7498 = vst.msk [vmem:[#allocation9 + $0xc] sm:$0x1] %vm6831_vm6, %v7426_v28  ;;  %v8046_v45 = vld [vmem:[#allocation9 + $0x16] sm:$0x3]  ;;  %v8061_v30 = vld [vmem:[#allocation9 + $0x34] sm:$0x3]  ;;  %v8132_v35 = vrot.slane %v8118_v11, %v15373_v33  ;;  %v7692_v43 = vadd.f32 %v7691_v23, %v7606_v46  ;;  %v7795_v5 = vadd.f32 %v14086_v0, %v7697_v41  ;;  %v8201_v12 = vcombine.low %v8193_v17, %v8200_v15 }
 0x5eb   : > { %7499 = vst.msk [vmem:[#allocation9 + $0xe] sm:$0x1] %vm6831_vm6, %v7428_v62  ;;  %7501 = vst.msk [vmem:[#allocation9 + $0x1a] sm:$0x1] %vm6831_vm6, %v7425_v8  ;;  %v8152_v57 = vcombine.low %v8045_v9, %v8046_v45  ;;  %v8220_v19 = vcombine.low %v8061_v30, %v8062_v20  ;;  %v8159_v47 = vrot.slane %v8151_v27, %v15373_v33  ;;  %v7785_v24 = vpop.f32.mrf.mxu0 }
 0x5ec   : > { %7502 = vst.msk [vmem:[#allocation9 + $0x1c] sm:$0x1] %vm6831_vm6, %v7427_v31  ;;  %7503 = vst.msk [vmem:[#allocation9 + $0x1e] sm:$0x1] %vm6831_vm6, %v7429_v61  ;;  %v8133_v63 = vcombine.low %v8125_v54, %v8132_v35  ;;  %v8227_v14 = vrot.slane %v8219_v1, %v15373_v33  ;;  %v7891_v32 = vadd.f32 %v14097_v60, %v7795_v5 }
 0x5ed   : > { %v8166_v16 = vrot.slane %v8152_v57, %v15373_v33  ;;  %v8234_v51 = vrot.slane %v8220_v19, %v15373_v33  ;;  %v7794_v21 = vadd.f32 %v7785_v24, %v7692_v43  ;;  %8265 = vst.msk [vmem:[#allocation7 + $0x40] sm:$0xff] %vm2835_vm2, %v8201_v12 }
 0x5ee   : > { %8261 = vst.msk [vmem:[#allocation7] sm:$0xff] %vm2835_vm2, %v8133_v63  ;;  %v7900_v55 = vadd.f32 %v16669_v25, %v7891_v32 }
 0x5ef   : > { %v8167_v6 = vcombine.low %v8159_v47, %v8166_v16  ;;  %v8235_v58 = vcombine.low %v8227_v14, %v8234_v51  ;;  %v7890_v39 = vadd.f32 %v7881_v52, %v7794_v21 }
 0x5f0   : > { %v7902_v49 = vmax.f32 %v7900_v55, 0.0 }
 0x5f1   : > { %8263 = vst.msk [vmem:[#allocation7 + $0x20] sm:$0xff] %vm2835_vm2, %v8167_v6  ;;  %8267 = vst.msk [vmem:[#allocation7 + $0x60] sm:$0xff] %vm2835_vm2, %v8235_v58  ;;  %v7899_v13 = vadd.f32 %v16669_v25, %v7890_v39 }
 0x5f2   : > { %v7954_v26 = vcombine.high %v7902_v49, %v7902_v49  ;;  %v7961_v3 = vrot.slane %v7902_v49, %v16484_v37 }
 0x5f3   : > { %v7901_v10 = vmax.f32 %v7899_v13, 0.0 }
 0x5f4   : > { %v7968_v42 = vrot.slane %v7954_v26, %v16484_v37  ;;  %v7969_v36 = vcombine.high %v7961_v3, %v7961_v3  ;;  %v7977_v41 = vrot.slane %v7961_v3, %v16484_v37 }
 0x5f5   : > { %v7905_v44 = vcombine.high %v7901_v10, %v7901_v10  ;;  %v16778_v7 = vld [vmem:[#allocation7] sm:$0xff]  ;;  %v7912_v38 = vrot.slane %v7901_v10, %v16484_v37 }
 0x5f6   : > { %v16780_v29 = vld [vmem:[#allocation7 + $0x1] sm:$0xff]  ;;  %14102 = vmatprep.mubr.msk.f32.mxu0 %vm2835_vm2, %v16778_v7  ;;  %v7970_v25 = vcombine.high %v7968_v42, %v7968_v42  ;;  %v7984_v53 = vrot.slane %v7968_v42, %v16484_v37  ;;  %v7991_v22 = vrot.slane %v7969_v36, %v16484_v37  ;;  %v7999_v40 = vcombine.high %v7977_v41, %v7977_v41 }
 0x5f7   : > { %14118 = vmatprep.mubr.msk.f32.mxu1 %vm2835_vm2, %v16780_v29  ;;  %8027 = vst.msk [vmem:[#allocation9 + $0x29] sm:$0x1] %vm6831_vm6, %v7977_v41  ;;  %v7919_v56 = vrot.slane %v7905_v44, %v16484_v37  ;;  %v7920_v28 = vcombine.high %v7912_v38, %v7912_v38  ;;  %v7928_v18 = vrot.slane %v7912_v38, %v16484_v37  ;;  %v13129_v38 = vld [vmem:[%s17949_s11 + $0x40] sm:$0xff] }
 0x5f8   : > { %v7998_v34 = vrot.slane %v7970_v25, %v16484_v37  ;;  %v8000_v48 = vcombine.high %v7984_v53, %v7984_v53  ;;  %v8001_v17 = vcombine.high %v7991_v22, %v7991_v22  ;;  %8028 = vst.msk [vmem:[#allocation9 + $0x2b] sm:$0x1] %vm6831_vm6, %v7991_v22  ;;  %8029 = vst.msk [vmem:[#allocation9 + $0x2d] sm:$0x1] %vm6831_vm6, %v7999_v40  ;;  %v16834_v25 = vld [vmem:[#allocation7 + $0x20] sm:$0xff]  ;;  %v13152_v22 = vld [vmem:[%s17949_s11 + $0xa0] sm:$0xff] }
 0x5f9   : > { %8031 = vst.msk [vmem:[#allocation9 + $0x39] sm:$0x1] %vm6831_vm6, %v7984_v53  ;;  %v7921_v20 = vcombine.high %v7919_v56, %v7919_v56  ;;  %v7935_v59 = vrot.slane %v7919_v56, %v16484_v37  ;;  %v7942_v50 = vrot.slane %v7920_v28, %v16484_v37  ;;  %v7950_v8 = vcombine.high %v7928_v18, %v7928_v18  ;;  %v16839_v53 = vld [vmem:[#allocation7 + $0x21] sm:$0xff] }
 0x5fa   : > { %8019 = vst.msk [vmem:[#allocation9 + $0x9] sm:$0x1] %vm6831_vm6, %v7928_v18  ;;  %v8002_v31 = vcombine.high %v7998_v34, %v7998_v34  ;;  %8030 = vst.msk [vmem:[#allocation9 + $0x2f] sm:$0x1] %vm6831_vm6, %v8001_v17  ;;  %v16858_v28 = vld [vmem:[#allocation7 + $0x40] sm:$0xff] }
 0x5fb   : > { %8032 = vst.msk [vmem:[#allocation9 + $0x3b] sm:$0x1] %vm6831_vm6, %v7998_v34  ;;  %8033 = vst.msk [vmem:[#allocation9 + $0x3d] sm:$0x1] %vm6831_vm6, %v8000_v48  ;;  %v7949_v62 = vrot.slane %v7921_v20, %v16484_v37  ;;  %v7951_v23 = vcombine.high %v7935_v59, %v7935_v59  ;;  %v7952_v46 = vcombine.high %v7942_v50, %v7942_v50  ;;  %v16860_v18 = vld [vmem:[#allocation7 + $0x41] sm:$0xff] }
 0x5fc   : > { %8020 = vst.msk [vmem:[#allocation9 + $0xb] sm:$0x1] %vm6831_vm6, %v7942_v50  ;;  %8021 = vst.msk [vmem:[#allocation9 + $0xd] sm:$0x1] %vm6831_vm6, %v7950_v8  ;;  %v13174_v48 = vld [vmem:[%s17949_s11 + $0xd8] sm:$0xff]  ;;  %v13150_v8 = vld [vmem:[%s17949_s11 + $0x80] sm:$0xff] }
 0x5fd   : > { %8023 = vst.msk [vmem:[#allocation9 + $0x19] sm:$0x1] %vm6831_vm6, %v7935_v59  ;;  %8034 = vst.msk [vmem:[#allocation9 + $0x3f] sm:$0x1] %vm6831_vm6, %v8002_v31  ;;  %v7953_v11 = vcombine.high %v7949_v62, %v7949_v62  ;;  %v16877_v17 = vld [vmem:[#allocation7 + $0x60] sm:$0xff] }
 0x5fe   : > { %8022 = vst.msk [vmem:[#allocation9 + $0xf] sm:$0x1] %vm6831_vm6, %v7952_v46  ;;  %8024 = vst.msk [vmem:[#allocation9 + $0x1b] sm:$0x1] %vm6831_vm6, %v7949_v62  ;;  %v8055_v54 = vld [vmem:[#allocation9 + $0x28] sm:$0x3] }
 0x5ff   : > { %8025 = vst.msk [vmem:[#allocation9 + $0x1d] sm:$0x1] %vm6831_vm6, %v7951_v23  ;;  %8026 = vst.msk [vmem:[#allocation9 + $0x1f] sm:$0x1] %vm6831_vm6, %v7953_v11  ;;  %v8056_v9 = vld [vmem:[#allocation9 + $0x2a] sm:$0x3] }
 0x600   : > { %v8057_v45 = vld [vmem:[#allocation9 + $0x2c] sm:$0x3]  ;;  %v8202_v27 = vcombine.low %v8055_v54, %v8056_v9  ;;  %v8063_v30 = vld [vmem:[#allocation9 + $0x38] sm:$0x3]  ;;  %v16879_v20 = vld [vmem:[#allocation7 + $0x61] sm:$0xff] }
 0x601   : > { %v8058_v15 = vld [vmem:[#allocation9 + $0x2e] sm:$0x3]  ;;  %v8039_v61 = vld [vmem:[#allocation9 + $0x8] sm:$0x3]  ;;  %v13173_v31 = vld [vmem:[%s17949_s11 + $0xd0] sm:$0xff] }
 0x602   : > { %v8064_v1 = vld [vmem:[#allocation9 + $0x3a] sm:$0x3]  ;;  %v8203_v0 = vcombine.low %v8057_v45, %v8058_v15  ;;  %v8065_v43 = vld [vmem:[#allocation9 + $0x3c] sm:$0x3]  ;;  %v8210_v63 = vrot.slane %v8202_v27, %v15373_v33  ;;  %v9882_v46 = vld [vmem:[#allocation7 + $0x80] sm:$0xff] }
 0x603   : > { %v8040_v60 = vld [vmem:[#allocation9 + $0xa] sm:$0x3]  ;;  %v8236_v35 = vcombine.low %v8063_v30, %v8064_v1  ;;  %v8041_v57 = vld [vmem:[#allocation9 + $0xc] sm:$0x3]  ;;  %v13172_v62 = vld [vmem:[%s17949_s11 + $0xc8] sm:$0xff] }
 0x604   : > { %v8134_v19 = vcombine.low %v8039_v61, %v8040_v60  ;;  %v8066_v5 = vld [vmem:[#allocation9 + $0x3e] sm:$0x3]  ;;  %v8047_v12 = vld [vmem:[#allocation9 + $0x18] sm:$0x3]  ;;  %v8217_v16 = vrot.slane %v8203_v0, %v15373_v33  ;;  %v13171_v11 = vld [vmem:[%s17949_s11 + $0xc0] sm:$0xff] }
 0x605   : > { %v8042_v47 = vld [vmem:[#allocation9 + $0xe] sm:$0x3]  ;;  %v8048_v24 = vld [vmem:[#allocation9 + $0x1a] sm:$0x3]  ;;  %v8237_v14 = vcombine.low %v8065_v43, %v8066_v5  ;;  %v8244_v58 = vrot.slane %v8236_v35, %v15373_v33  ;;  %v13202_v54 = vld [vmem:[%s17949_s11 + $0xf8] sm:$0xff] }
 0x606   : > { %v8135_v51 = vcombine.low %v8041_v57, %v8042_v47  ;;  %v8168_v32 = vcombine.low %v8047_v12, %v8048_v24  ;;  %v8049_v21 = vld [vmem:[#allocation9 + $0x1c] sm:$0x3]  ;;  %v8050_v52 = vld [vmem:[#allocation9 + $0x1e] sm:$0x3]  ;;  %v8218_v6 = vcombine.low %v8210_v63, %v8217_v16  ;;  %v8142_v39 = vrot.slane %v8134_v19, %v15373_v33  ;;  %v13192_v23 = vld [vmem:[%s17949_s11 + $0xe8] sm:$0xff] }
 0x607   : > { %v8251_v55 = vrot.slane %v8237_v14, %v15373_v33  ;;  %v8169_v13 = vcombine.low %v8049_v21, %v8050_v52  ;;  %v13201_v9 = vld [vmem:[%s17949_s11 + $0xf0] sm:$0xff] }
 0x608   : > { %v8149_v49 = vrot.slane %v8135_v51, %v15373_v33  ;;  %8266 = vst.msk [vmem:[#allocation7 + $0x50] sm:$0xff] %vm2835_vm2, %v8218_v6  ;;  %v8176_v10 = vrot.slane %v8168_v32, %v15373_v33  ;;  %v17026_v45 = vld [vmem:[#allocation11] ss:$0 sm:$0xff] }
 0x609   : > { %v8252_v26 = vcombine.low %v8244_v58, %v8251_v55  ;;  %v8183_v42 = vrot.slane %v8169_v13, %v15373_v33 }
 0x60a   : > { %v8150_v3 = vcombine.low %v8142_v39, %v8149_v49 }
 0x60b   : > { %8268 = vst.msk [vmem:[#allocation7 + $0x70] sm:$0xff] %vm2835_vm2, %v8252_v26  ;;  %v8184_v36 = vcombine.low %v8176_v10, %v8183_v42 }
 0x60c   : > { %8262 = vst.msk [vmem:[#allocation7 + $0x10] sm:$0xff] %vm2835_vm2, %v8150_v3 }
 0x60d   : > { %8264 = vst.msk [vmem:[#allocation7 + $0x30] sm:$0xff] %vm2835_vm2, %v8184_v36 }
 0x60f   : > { %v16868_v34 = vld [vmem:[#allocation7 + $0x51] sm:$0xff] }
 0x612   : > { %v16885_v59 = vld [vmem:[#allocation7 + $0x70] sm:$0xff] }
 0x613   : > { %v16823_v41 = vld [vmem:[#allocation7 + $0x10] sm:$0xff] }
 0x614   : > { %v16825_v44 = vld [vmem:[#allocation7 + $0x11] sm:$0xff]  ;;  %14103 = vmatmul.mubr.msk.f32.vlgmr.msra.gmra.mxu0 %vm2835_vm2, %v16823_v41 }
 0x615   : > { %14119 = vmatmul.mubr.msk.f32.vlgmr.msra.gmra.mxu1 %vm2835_vm2, %v16825_v44  ;;  %14131 = vmatpush3.msra.mxu0 %v16657_v2  ;;  %v16846_v40 = vld [vmem:[#allocation7 + $0x30] sm:$0xff] }
 0x616   : > { %14105 = vmatprep.mubr.msk.f32.mxu0 %vm2835_vm2, %v16834_v25  ;;  %14121 = vmatprep.mubr.msk.f32.mxu1 %vm2835_vm2, %v16839_v53  ;;  %v16848_v56 = vld [vmem:[#allocation7 + $0x31] sm:$0xff] }
 0x617   : > { %14132 = vmatprep.subr.mxu0 %v13129_v38  ;;  %14147 = vmatpush3.msra.mxu1 %v16663_v4  ;;  %v13151_v2 = vld [vmem:[%s17949_s11 + $0x88] sm:$0xff] }
 0x618   : > { %14133 = vmatpush3.msra.mxu0 %v13129_v38  ;;  %14148 = vmatprep.subr.mxu1 %v13152_v22  ;;  %v16866_v4 = vld [vmem:[#allocation7 + $0x50] sm:$0xff] }
 0x619   : > { %14106 = vmatmul.mubr.msk.f32.gmra.mxu0 %vm2835_vm2, %v16846_v40  ;;  %14122 = vmatmul.mubr.msk.f32.gmra.mxu1 %vm2835_vm2, %v16848_v56  ;;  %v16887_v50 = vld [vmem:[#allocation7 + $0x71] sm:$0xff] }
 0x61a   : > { %14108 = vmatprep.mubr.msk.f32.mxu0 %vm2835_vm2, %v16858_v28  ;;  %14124 = vmatprep.mubr.msk.f32.mxu1 %vm2835_vm2, %v16860_v18 }
 0x61b   : > { %14162 = vmatprep.subr.mxu0 %v13151_v2  ;;  %14149 = vmatpush3.msra.mxu1 %v13152_v22 }
 0x61c   : > { %14178 = vmatprep.subr.mxu1 %v13174_v48 }
 0x61d   : > { %14109 = vmatmul.mubr.msk.f32.gmra.mxu0 %vm2835_vm2, %v16866_v4  ;;  %14125 = vmatmul.mubr.msk.f32.gmra.mxu1 %vm2835_vm2, %v16868_v34 }
 0x61e   : > { %14111 = vmatprep.mubr.msk.f32.mxu0 %vm2835_vm2, %v16877_v17  ;;  %14127 = vmatprep.mubr.msk.f32.mxu1 %vm2835_vm2, %v16879_v20 }
 0x621   : > { %14112 = vmatmul.mubr.msk.f32.gmra.mxu0 %vm2835_vm2, %v16885_v59  ;;  %14128 = vmatmul.mubr.msk.f32.gmra.mxu1 %vm2835_vm2, %v16887_v50 }
 0x622   : > { %14134 = vmatprep.mubr.msk.f32.mxu0 %vm2835_vm2, %v16778_v7  ;;  %14150 = vmatprep.mubr.msk.f32.mxu1 %vm2835_vm2, %v16823_v41 }
 0x625   : > { %14135 = vmatmul.mubr.msk.f32.vlgmr.msra.gmra.mxu0 %vm2835_vm2, %v16823_v41  ;;  %14151 = vmatmul.mubr.msk.f32.vlgmr.msra.gmra.mxu1 %vm2835_vm2, %v16834_v25 }
 0x626   : > { %14163 = vmatpush3.msra.mxu0 %v13151_v2  ;;  %14137 = vmatprep.mubr.msk.f32.mxu0 %vm2835_vm2, %v16834_v25 }
 0x627   : > { %14153 = vmatprep.mubr.msk.f32.mxu1 %vm2835_vm2, %v16846_v40  ;;  %14164 = vmatprep.subr.mxu0 %v13150_v8 }
 0x628   : > { %14165 = vmatpush3.msra.mxu0 %v13150_v8  ;;  %14179 = vmatpush3.msra.mxu1 %v13174_v48 }
 0x629   : > { %14138 = vmatmul.mubr.msk.f32.gmra.mxu0 %vm2835_vm2, %v16846_v40  ;;  %14154 = vmatmul.mubr.msk.f32.gmra.mxu1 %vm2835_vm2, %v16858_v28 }
 0x62a   : > { %14140 = vmatprep.mubr.msk.f32.mxu0 %vm2835_vm2, %v16858_v28  ;;  %14156 = vmatprep.mubr.msk.f32.mxu1 %vm2835_vm2, %v16866_v4 }
 0x62b   : > { %14180 = vmatprep.subr.mxu1 %v13173_v31  ;;  %14194 = vmatprep.subr.mxu0 %v13172_v62 }
 0x62c   : > { %14181 = vmatpush3.msra.mxu1 %v13173_v31 }
 0x62d   : > { %14141 = vmatmul.mubr.msk.f32.gmra.mxu0 %vm2835_vm2, %v16866_v4  ;;  %14157 = vmatmul.mubr.msk.f32.gmra.mxu1 %vm2835_vm2, %v16877_v17 }
 0x62e   : > { %14143 = vmatprep.mubr.msk.f32.mxu0 %vm2835_vm2, %v16877_v17  ;;  %14159 = vmatprep.mubr.msk.f32.mxu1 %vm2835_vm2, %v16885_v59 }
 0x62f   : > { %14210 = vmatprep.subr.mxu1 %v13192_v23 }
 0x631   : > { %14144 = vmatmul.mubr.msk.f32.gmra.mxu0 %vm2835_vm2, %v16885_v59  ;;  %14160 = vmatmul.mubr.msk.f32.gmra.mxu1 %vm2835_vm2, %v9882_v46 }
 0x632   : > { %14166 = vmatprep.mubr.msk.f32.mxu0 %vm2835_vm2, %v16778_v7  ;;  %14182 = vmatprep.mubr.msk.f32.mxu1 %vm2835_vm2, %v16780_v29  ;;  %v13191_v29 = vld [vmem:[%s17949_s11 + $0xe0] sm:$0xff] }
 0x635   : > { %14167 = vmatmul.mubr.msk.f32.vlgmr.msra.gmra.mxu0 %vm2835_vm2, %v16823_v41  ;;  %14183 = vmatmul.mubr.msk.f32.vlgmr.msra.gmra.mxu1 %vm2835_vm2, %v16825_v44 }
 0x636   : > { %14195 = vmatpush3.msra.mxu0 %v13172_v62  ;;  %14169 = vmatprep.mubr.msk.f32.mxu0 %vm2835_vm2, %v16834_v25 }
 0x637   : > { %14185 = vmatprep.mubr.msk.f32.mxu1 %vm2835_vm2, %v16839_v53  ;;  %14196 = vmatprep.subr.mxu0 %v13171_v11 }
 0x638   : > { %14197 = vmatpush3.msra.mxu0 %v13171_v11  ;;  %14211 = vmatpush3.msra.mxu1 %v13192_v23 }
 0x639   : > { %14170 = vmatmul.mubr.msk.f32.gmra.mxu0 %vm2835_vm2, %v16846_v40  ;;  %14186 = vmatmul.mubr.msk.f32.gmra.mxu1 %vm2835_vm2, %v16848_v56 }
 0x63a   : > { %14172 = vmatprep.mubr.msk.f32.mxu0 %vm2835_vm2, %v16858_v28  ;;  %14188 = vmatprep.mubr.msk.f32.mxu1 %vm2835_vm2, %v16860_v18 }
 0x63b   : > { %14212 = vmatprep.subr.mxu1 %v13191_v29  ;;  %14226 = vmatprep.subr.mxu0 %v13202_v54 }
 0x63c   : > { %14213 = vmatpush3.msra.mxu1 %v13191_v29 }
 0x63d   : > { %14173 = vmatmul.mubr.msk.f32.gmra.mxu0 %vm2835_vm2, %v16866_v4  ;;  %14189 = vmatmul.mubr.msk.f32.gmra.mxu1 %vm2835_vm2, %v16868_v34 }
 0x63e   : > { %14175 = vmatprep.mubr.msk.f32.mxu0 %vm2835_vm2, %v16877_v17  ;;  %14191 = vmatprep.mubr.msk.f32.mxu1 %vm2835_vm2, %v16879_v20 }
 0x641   : > { %14176 = vmatmul.mubr.msk.f32.gmra.mxu0 %vm2835_vm2, %v16885_v59  ;;  %14192 = vmatmul.mubr.msk.f32.gmra.mxu1 %vm2835_vm2, %v16887_v50 }
 0x642   : > { %14198 = vmatprep.mubr.msk.f32.mxu0 %vm2835_vm2, %v16778_v7  ;;  %14214 = vmatprep.mubr.msk.f32.mxu1 %vm2835_vm2, %v16823_v41  ;;  %v11171_v7 = vld [vmem:[#allocation7 + $0x81] sm:$0xff] }
 0x645   : > { %14199 = vmatmul.mubr.msk.f32.vlgmr.msra.gmra.mxu0 %vm2835_vm2, %v16823_v41  ;;  %14215 = vmatmul.mubr.msk.f32.vlgmr.msra.gmra.mxu1 %vm2835_vm2, %v16834_v25 }
 0x646   : > { %14227 = vmatpush3.msra.mxu0 %v13202_v54  ;;  %14201 = vmatprep.mubr.msk.f32.mxu0 %vm2835_vm2, %v16834_v25 }
 0x647   : > { %14217 = vmatprep.mubr.msk.f32.mxu1 %vm2835_vm2, %v16846_v40  ;;  %14228 = vmatprep.subr.mxu0 %v13201_v9 }
 0x648   : > { %14229 = vmatpush3.msra.mxu0 %v13201_v9 }
 0x649   : > { %14202 = vmatmul.mubr.msk.f32.gmra.mxu0 %vm2835_vm2, %v16846_v40  ;;  %14218 = vmatmul.mubr.msk.f32.gmra.mxu1 %vm2835_vm2, %v16858_v28 }
 0x64a   : > { %14204 = vmatprep.mubr.msk.f32.mxu0 %vm2835_vm2, %v16858_v28  ;;  %14220 = vmatprep.mubr.msk.f32.mxu1 %vm2835_vm2, %v16866_v4 }
 0x64d   : > { %14205 = vmatmul.mubr.msk.f32.gmra.mxu0 %vm2835_vm2, %v16866_v4  ;;  %14221 = vmatmul.mubr.msk.f32.gmra.mxu1 %vm2835_vm2, %v16877_v17 }
 0x64e   : > { %14207 = vmatprep.mubr.msk.f32.mxu0 %vm2835_vm2, %v16877_v17  ;;  %14223 = vmatprep.mubr.msk.f32.mxu1 %vm2835_vm2, %v16885_v59 }
 0x651   : > { %14208 = vmatmul.mubr.msk.f32.gmra.mxu0 %vm2835_vm2, %v16885_v59  ;;  %14224 = vmatmul.mubr.msk.f32.gmra.mxu1 %vm2835_vm2, %v9882_v46 }
 0x652   : > { %14230 = vmatprep.mubr.msk.f32.mxu0 %vm2835_vm2, %v16825_v44 }
 0x655   : > { %14231 = vmatmul.mubr.msk.f32.vlgmr.msra.gmra.mxu0 %vm2835_vm2, %v16839_v53 }
 0x656   : > { %14233 = vmatprep.mubr.msk.f32.mxu0 %vm2835_vm2, %v16848_v56 }
 0x659   : > { %14234 = vmatmul.mubr.msk.f32.gmra.mxu0 %vm2835_vm2, %v16860_v18 }
 0x65a   : > { %14236 = vmatprep.mubr.msk.f32.mxu0 %vm2835_vm2, %v16868_v34 }
 0x65d   : > { %14237 = vmatmul.mubr.msk.f32.gmra.mxu0 %vm2835_vm2, %v16879_v20 }
 0x65e   : > { %14239 = vmatprep.mubr.msk.f32.mxu0 %vm2835_vm2, %v16887_v50 }
 0x661   : > { %14240 = vmatmul.mubr.msk.f32.gmra.mxu0 %vm2835_vm2, %v11171_v7  ;;  %vm8927_vm2 = vcmask 0  }
 0x6d4   : > { %v14104_v27 = vpop.f32.mrf.mxu0 }
 0x6d5   : > { %v14120_v15 = vpop.f32.mrf.mxu1  ;;  %v8382_v30 = vadd.f32 %v14104_v27, %v17026_v45 }
 0x6d6   : > { %v8376_v1 = vpop.f32.mrf.mxu0 }
 0x6d7   : > { %v9104_v61 = vpop.f32.mrf.mxu1  ;;  %v8416_v60 = vsub.f32 0.0, %v8382_v30  ;;  %v8377_v0 = vadd.f32 %v17026_v45, %v8376_v1 }
 0x6d9   : > { %v14107_v35 = vpop.f32.mrf.mxu0  ;;  %v14123_v57 = vpop.f32.mrf.mxu1  ;;  %v8425_v19 = vmul.f32 1.442695, %v8416_v60  ;;  %v8415_v43 = vsub.f32 0.0, %v8377_v0 }
 0x6da   : > { %v8392_v5 = vadd.f32 %v14107_v35, %v17026_v45 }
 0x6db   : > { %v8386_v47 = vpop.f32.mrf.mxu0  ;;  %v9114_v12 = vpop.f32.mrf.mxu1  ;;  %14306 = vpow2.f32 %v8425_v19  ;;  %v8423_v24 = vmul.f32 1.442695, %v8415_v43 }
 0x6dc   : > { %v8418_v63 = vsub.f32 0.0, %v8392_v5  ;;  %v8387_v16 = vadd.f32 %v17026_v45, %v8386_v47 }
 0x6dd   : > { %v14110_v14 = vpop.f32.mrf.mxu0  ;;  %v14126_v51 = vpop.f32.mrf.mxu1  ;;  %14308 = vpow2.f32 %v8423_v24 }
 0x6de   : > { %v8429_v32 = vmul.f32 1.442695, %v8418_v63  ;;  %v8417_v21 = vsub.f32 0.0, %v8387_v16  ;;  %v8402_v52 = vadd.f32 %v14110_v14, %v17026_v45 }
 0x6df   : > { %v8396_v6 = vpop.f32.mrf.mxu0  ;;  %v9124_v58 = vpop.f32.mrf.mxu1 }
 0x6e0   : > { %14310 = vpow2.f32 %v8429_v32  ;;  %v8427_v55 = vmul.f32 1.442695, %v8417_v21  ;;  %v8420_v39 = vsub.f32 0.0, %v8402_v52  ;;  %v8397_v49 = vadd.f32 %v17026_v45, %v8396_v6 }
 0x6e1   : > { %v14113_v13 = vpop.f32.mrf.mxu0  ;;  %v17034_v26 = vpop.f32.mrf.mxu1 }
 0x6e2   : > { %14312 = vpow2.f32 %v8427_v55  ;;  %v8433_v3 = vmul.f32 1.442695, %v8420_v39  ;;  %v8419_v10 = vsub.f32 0.0, %v8397_v49  ;;  %v8412_v42 = vadd.f32 %v14113_v13, %v17026_v45 }
 0x6e3   : > { %v8406_v36 = vpop.f32.mrf.mxu0  ;;  %v17037_v41 = vpop.f32.mrf.mxu1 }
 0x6e4   : > { %14314 = vpow2.f32 %v8433_v3  ;;  %v8431_v44 = vmul.f32 1.442695, %v8419_v10  ;;  %v8422_v38 = vsub.f32 0.0, %v8412_v42  ;;  %v8407_v25 = vadd.f32 %v17026_v45, %v8406_v36 }
 0x6e5   : > { %v14136_v53 = vpop.f32.mrf.mxu0  ;;  %v17040_v22 = vpop.f32.mrf.mxu1 }
 0x6e6   : > { %14316 = vpow2.f32 %v8431_v44  ;;  %v8437_v40 = vmul.f32 1.442695, %v8422_v38  ;;  %v8421_v56 = vsub.f32 0.0, %v8407_v25  ;;  %v9239_v2 = vadd.f32 %v14136_v53, %v14120_v15  ;;  %v17065_v53 = vld [vmem:[#allocation11] ss:$0 sm:$0xff] }
 0x6e7   : > { %v9233_v28 = vpop.f32.mrf.mxu0  ;;  %v17042_v18 = vpop.f32.mrf.mxu1 }
 0x6e8   : > { %14318 = vpow2.f32 %v8437_v40  ;;  %v8435_v4 = vmul.f32 1.442695, %v8421_v56  ;;  %v9280_v34 = vadd.f32 %v17026_v45, %v9239_v2  ;;  %v9234_v48 = vadd.f32 %v9233_v28, %v9104_v61  ;;  %v14307_v17 = vpop.eup %14306 }
 0x6e9   : > { %v14139_v20 = vpop.f32.mrf.mxu0  ;;  %v17045_v59 = vpop.f32.mrf.mxu1  ;;  %v8440_v50 = vadd.f32 1.0, %v14307_v17 }
 0x6ea   : > { %14320 = vpow2.f32 %v8435_v4  ;;  %v9288_v8 = vsub.f32 0.0, %v9280_v34  ;;  %v9279_v31 = vadd.f32 %v17026_v45, %v9234_v48  ;;  %v14309_v62 = vpop.eup %14308  ;;  %v9249_v23 = vadd.f32 %v14139_v20, %v14123_v57 }
 0x6eb   : > { %v9243_v46 = vpop.f32.mrf.mxu0  ;;  %v17048_v11 = vpop.f32.mrf.mxu1  ;;  %14322 = vrcp.f32 %v8440_v50  ;;  %v8439_v29 = vadd.f32 1.0, %v14309_v62 }
 0x6ec   : > { %v9297_v54 = vmul.f32 1.442695, %v9288_v8  ;;  %v9287_v9 = vsub.f32 0.0, %v9279_v31  ;;  %v9282_v27 = vadd.f32 %v17026_v45, %v9249_v23  ;;  %v9244_v15 = vadd.f32 %v9243_v46, %v9114_v12 }
 0x6ed   : > { %v14311_v7 = vpop.eup %14310  ;;  %v14142_v30 = vpop.f32.mrf.mxu0  ;;  %14324 = vrcp.f32 %v8439_v29 }
 0x6ee   : > { %v17051_v1 = vpop.f32.mrf.mxu1  ;;  %v8442_v61 = vadd.f32 1.0, %v14311_v7  ;;  %v9295_v60 = vmul.f32 1.442695, %v9287_v9  ;;  %v9259_v0 = vadd.f32 %v14142_v30, %v14126_v51  ;;  %14326 = vpow2.f32 %v9297_v54 }
 0x6ef   : > { %v14313_v35 = vpop.eup %14312  ;;  %v9290_v57 = vsub.f32 0.0, %v9282_v27  ;;  %v9281_v19 = vadd.f32 %v17026_v45, %v9244_v15  ;;  %v9253_v43 = vpop.f32.mrf.mxu0 }
 0x6f0   : > { %v17054_v5 = vpop.f32.mrf.mxu1  ;;  %14328 = vrcp.f32 %v8442_v61  ;;  %v8441_v47 = vadd.f32 1.0, %v14313_v35  ;;  %v9284_v24 = vadd.f32 %v17026_v45, %v9259_v0  ;;  %v9254_v12 = vadd.f32 %v9253_v43, %v9124_v58 }
 0x6f1   : > { %v14315_v63 = vpop.eup %14314  ;;  %14330 = vpow2.f32 %v9295_v60  ;;  %v9301_v16 = vmul.f32 1.442695, %v9290_v57  ;;  %v9289_v14 = vsub.f32 0.0, %v9281_v19  ;;  %v14145_v32 = vpop.f32.mrf.mxu0 }
 0x6f2   : > { %v17057_v21 = vpop.f32.mrf.mxu1  ;;  %14332 = vrcp.f32 %v8441_v47  ;;  %v8444_v51 = vadd.f32 1.0, %v14315_v63  ;;  %v9292_v52 = vsub.f32 0.0, %v9284_v24  ;;  %v9283_v6 = vadd.f32 %v17026_v45, %v9254_v12 }
 0x6f3   : > { %v14317_v55 = vpop.eup %14316  ;;  %14334 = vpow2.f32 %v9301_v16  ;;  %v9299_v39 = vmul.f32 1.442695, %v9289_v14  ;;  %v9269_v49 = vadd.f32 %v14145_v32, %v17034_v26  ;;  %v9263_v13 = vpop.f32.mrf.mxu0 }
 0x6f4   : > { %14336 = vrcp.f32 %v8444_v51  ;;  %v8443_v58 = vadd.f32 1.0, %v14317_v55  ;;  %v9305_v3 = vmul.f32 1.442695, %v9292_v52  ;;  %v9291_v10 = vsub.f32 0.0, %v9283_v6  ;;  %v17061_v42 = vpop.f32.mrf.mxu1 }
 0x6f5   : > { %v14319_v36 = vpop.eup %14318  ;;  %14338 = vpow2.f32 %v9299_v39  ;;  %v9286_v44 = vadd.f32 %v17026_v45, %v9269_v49  ;;  %v9264_v38 = vadd.f32 %v9263_v13, %v17037_v41  ;;  %v14168_v25 = vpop.f32.mrf.mxu0 }
 0x6f6   : > { %14340 = vrcp.f32 %v8443_v58  ;;  %v8446_v40 = vadd.f32 1.0, %v14319_v36  ;;  %v9303_v56 = vmul.f32 1.442695, %v9291_v10  ;;  %v10111_v26 = vadd.f32 %v14168_v25, %v17040_v22  ;;  %v17070_v20 = vpop.f32.mrf.mxu1 }
 0x6f7   : > { %v14321_v2 = vpop.eup %14320  ;;  %14342 = vpow2.f32 %v9305_v3  ;;  %v9294_v28 = vsub.f32 0.0, %v9286_v44  ;;  %v9285_v4 = vadd.f32 %v17026_v45, %v9264_v38  ;;  %v10105_v34 = vpop.f32.mrf.mxu0 }
 0x6f8   : > { %14344 = vrcp.f32 %v8446_v40  ;;  %v8445_v48 = vadd.f32 1.0, %v14321_v2  ;;  %v10152_v17 = vadd.f32 %v17065_v53, %v10111_v26  ;;  %v10106_v41 = vadd.f32 %v10105_v34, %v17042_v18  ;;  %v14323_v50 = vpop.eup %14322  ;;  %v17082_v61 = vpop.f32.mrf.mxu1 }
 0x6f9   : > { %14346 = vpow2.f32 %v9303_v56  ;;  %v9309_v8 = vmul.f32 1.442695, %v9294_v28  ;;  %v9293_v31 = vsub.f32 0.0, %v9285_v4  ;;  %v14171_v22 = vpop.f32.mrf.mxu0  ;;  %v8520_v62 = vcombine.high %v14323_v50, %v14323_v50 }
 0x6fa   : > { %v8527_v23 = vrot.slane %v14323_v50, %v16484_v37  ;;  %14348 = vrcp.f32 %v8445_v48  ;;  %v10160_v45 = vsub.f32 0.0, %v10152_v17  ;;  %v14325_v46 = vpop.eup %14324  ;;  %v17075_v54 = vadd.f32 %v17065_v53, %v10106_v41  ;;  %v17103_v49 = vpop.f32.mrf.mxu1 }
 0x6fb   : > { %14350 = vpow2.f32 %v9309_v8  ;;  %v9307_v29 = vmul.f32 1.442695, %v9293_v31  ;;  %v17078_v9 = vadd.f32 %v14171_v22, %v17045_v59  ;;  %v14327_v18 = vpop.eup %14326  ;;  %v8534_v7 = vrot.slane %v8520_v62, %v16484_v37  ;;  %v17105_v13 = vpop.f32.mrf.mxu0 }
 0x6fc   : > { %v8535_v27 = vcombine.high %v8527_v23, %v8527_v23  ;;  %v8543_v15 = vrot.slane %v8527_v23, %v16484_v37  ;;  %v8471_v30 = vcombine.high %v14325_v46, %v14325_v46  ;;  %v8478_v0 = vrot.slane %v14325_v46, %v16484_v37  ;;  %v17129_v22 = vpop.f32.mrf.mxu1 }
 0x6fd   : > { %v14329_v60 = vpop.eup %14328  ;;  %v17085_v35 = vadd.f32 1.0, %v14327_v18  ;;  %14352 = vpow2.f32 %v9307_v29  ;;  %v17087_v57 = vmul.f32 1.442695, %v10160_v45  ;;  %v8536_v59 = vcombine.high %v8534_v7, %v8534_v7  ;;  %v17131_v62 = vpop.f32.mrf.mxu0 }
 0x6fe   : > { %v17089_v19 = vpop.eup %14330  ;;  %v8550_v43 = vrot.slane %v8534_v7, %v16484_v37  ;;  %v8557_v47 = vrot.slane %v8535_v27, %v16484_v37  ;;  %v8565_v24 = vcombine.high %v8543_v15, %v8543_v15  ;;  %8936 = vst.msk [vmem:[#allocation10 + $0x20] sm:$0x1] %vm8927_vm2, %v8543_v15  ;;  %v8485_v63 = vrot.slane %v8471_v30, %v16484_v37 }
 0x6ff   : > { %v14333_v12 = vpop.eup %14332  ;;  %v8486_v16 = vcombine.high %v8478_v0, %v8478_v0  ;;  %v8494_v14 = vrot.slane %v8478_v0, %v16484_v37  ;;  %v8618_v32 = vcombine.high %v14329_v60, %v14329_v60  ;;  %v8564_v52 = vrot.slane %v8536_v59, %v16484_v37 }
 0x700   : > { %v17096_v51 = vpop.eup %14334  ;;  %v8566_v6 = vcombine.high %v8550_v43, %v8550_v43  ;;  %v8567_v55 = vcombine.high %v8557_v47, %v8557_v47  ;;  %8937 = vst.msk [vmem:[#allocation10 + $0x22] sm:$0x1] %vm8927_vm2, %v8557_v47  ;;  %8938 = vst.msk [vmem:[#allocation10 + $0x24] sm:$0x1] %vm8927_vm2, %v8565_v24  ;;  %v8625_v39 = vrot.slane %v14329_v60, %v16484_v37  ;;  %14354 = vrcp.f32 %v17085_v35 }
 0x701   : > { %8940 = vst.msk [vmem:[#allocation10 + $0x28] sm:$0x1] %vm8927_vm2, %v8550_v43  ;;  %v14337_v58 = vpop.eup %14336  ;;  %v8487_v3 = vcombine.high %v8485_v63, %v8485_v63  ;;  %v8501_v10 = vrot.slane %v8485_v63, %v16484_v37  ;;  %v8508_v36 = vrot.slane %v8486_v16, %v16484_v37  ;;  %v8516_v44 = vcombine.high %v8494_v14, %v8494_v14 }
 0x702   : > { %8928 = vst.msk [vmem:[#allocation10] sm:$0x1] %vm8927_vm2, %v8494_v14  ;;  %v17110_v38 = vpop.eup %14338  ;;  %v8568_v25 = vcombine.high %v8564_v52, %v8564_v52  ;;  %8939 = vst.msk [vmem:[#allocation10 + $0x26] sm:$0x1] %vm8927_vm2, %v8567_v55  ;;  %v8632_v40 = vrot.slane %v8618_v32, %v16484_v37  ;;  %v8633_v56 = vcombine.high %v8625_v39, %v8625_v39  ;;  %v9314_v35 = vadd.f32 1.0, %v17096_v51 }
 0x703   : > { %8941 = vst.msk [vmem:[#allocation10 + $0x2a] sm:$0x1] %vm8927_vm2, %v8564_v52  ;;  %8942 = vst.msk [vmem:[#allocation10 + $0x2c] sm:$0x1] %vm8927_vm2, %v8566_v6  ;;  %v8641_v26 = vrot.slane %v8625_v39, %v16484_v37  ;;  %v17117_v2 = vpop.eup %14340  ;;  %v8515_v28 = vrot.slane %v8487_v3, %v16484_v37  ;;  %v8517_v4 = vcombine.high %v8501_v10, %v8501_v10  ;;  %v17159_v52 = vpop.f32.mrf.mxu1 }
 0x704   : > { %v8518_v34 = vcombine.high %v8508_v36, %v8508_v36  ;;  %8929 = vst.msk [vmem:[#allocation10 + $0x2] sm:$0x1] %vm8927_vm2, %v8508_v36  ;;  %8930 = vst.msk [vmem:[#allocation10 + $0x4] sm:$0x1] %vm8927_vm2, %v8516_v44  ;;  %v8569_v48 = vcombine.high %v14333_v12, %v14333_v12  ;;  %v17123_v17 = vpop.eup %14342  ;;  %v8634_v41 = vcombine.high %v8632_v40, %v8632_v40  ;;  %v17161_v6 = vpop.f32.mrf.mxu0 }
 0x705   : > { %8932 = vst.msk [vmem:[#allocation10 + $0x8] sm:$0x1] %vm8927_vm2, %v8501_v10  ;;  %8943 = vst.msk [vmem:[#allocation10 + $0x2e] sm:$0x1] %vm8927_vm2, %v8568_v25  ;;  %v8648_v50 = vrot.slane %v8632_v40, %v16484_v37  ;;  %v8655_v8 = vrot.slane %v8633_v56, %v16484_v37  ;;  %v8663_v31 = vcombine.high %v8641_v26, %v8641_v26  ;;  %v17133_v23 = vpop.eup %14344 }
 0x706   : > { %8952 = vst.msk [vmem:[#allocation10 + $0x60] sm:$0x1] %vm8927_vm2, %v8641_v26  ;;  %v8519_v45 = vcombine.high %v8515_v28, %v8515_v28  ;;  %8931 = vst.msk [vmem:[#allocation10 + $0x6] sm:$0x1] %vm8927_vm2, %v8518_v34  ;;  %v8576_v46 = vrot.slane %v14333_v12, %v16484_v37  ;;  %v8583_v29 = vrot.slane %v8569_v48, %v16484_v37  ;;  %v17140_v7 = vpop.eup %14346 }
 0x707   : > { %8933 = vst.msk [vmem:[#allocation10 + $0xa] sm:$0x1] %vm8927_vm2, %v8515_v28  ;;  %8934 = vst.msk [vmem:[#allocation10 + $0xc] sm:$0x1] %vm8927_vm2, %v8517_v4  ;;  %v8716_v18 = vcombine.high %v14337_v58, %v14337_v58  ;;  %v8662_v27 = vrot.slane %v8634_v41, %v16484_v37  ;;  %v8664_v15 = vcombine.high %v8648_v50, %v8648_v50  ;;  %v17147_v0 = vpop.eup %14348 }
 0x708   : > { %v8665_v30 = vcombine.high %v8655_v8, %v8655_v8  ;;  %8953 = vst.msk [vmem:[#allocation10 + $0x62] sm:$0x1] %vm8927_vm2, %v8655_v8  ;;  %8954 = vst.msk [vmem:[#allocation10 + $0x64] sm:$0x1] %vm8927_vm2, %v8663_v31  ;;  %v8723_v60 = vrot.slane %v14337_v58, %v16484_v37  ;;  %v8584_v59 = vcombine.high %v8576_v46, %v8576_v46  ;;  %v17152_v12 = vpop.eup %14350  ;;  %v17187_v8 = vpop.f32.mrf.mxu1 }
 0x709   : > { %8956 = vst.msk [vmem:[#allocation10 + $0x68] sm:$0x1] %vm8927_vm2, %v8648_v50  ;;  %8935 = vst.msk [vmem:[#allocation10 + $0xe] sm:$0x1] %vm8927_vm2, %v8519_v45  ;;  %v8585_v43 = vcombine.high %v8583_v29, %v8583_v29  ;;  %v8592_v47 = vrot.slane %v8576_v46, %v16484_v37  ;;  %v8599_v24 = vrot.slane %v8583_v29, %v16484_v37  ;;  %v17189_v31 = vpop.f32.mrf.mxu0  ;;  %v9318_v51 = vadd.f32 1.0, %v17152_v12 }
 0x70a   : > { %v8666_v63 = vcombine.high %v8662_v27, %v8662_v27  ;;  %8955 = vst.msk [vmem:[#allocation10 + $0x66] sm:$0x1] %vm8927_vm2, %v8665_v30  ;;  %8957 = vst.msk [vmem:[#allocation10 + $0x6a] sm:$0x1] %vm8927_vm2, %v8662_v27  ;;  %v8730_v16 = vrot.slane %v8716_v18, %v16484_v37  ;;  %v8731_v14 = vcombine.high %v8723_v60, %v8723_v60  ;;  %v17167_v10 = vpop.eup %14352 }
 0x70b   : > { %8958 = vst.msk [vmem:[#allocation10 + $0x6c] sm:$0x1] %vm8927_vm2, %v8664_v15  ;;  %v8739_v32 = vrot.slane %v8723_v60, %v16484_v37  ;;  %v8606_v55 = vrot.slane %v8584_v59, %v16484_v37  ;;  %v8613_v39 = vrot.slane %v8585_v43, %v16484_v37  ;;  %v8614_v58 = vcombine.high %v8592_v47, %v8592_v47 }
 0x70c   : > { %v8615_v3 = vcombine.high %v8599_v24, %v8599_v24  ;;  %8944 = vst.msk [vmem:[#allocation10 + $0x40] sm:$0x1] %vm8927_vm2, %v8592_v47  ;;  %8948 = vst.msk [vmem:[#allocation10 + $0x48] sm:$0x1] %vm8927_vm2, %v8599_v24  ;;  %v8732_v36 = vcombine.high %v8730_v16, %v8730_v16  ;;  %v8746_v44 = vrot.slane %v8730_v16, %v16484_v37 }
 0x70d   : > { %8959 = vst.msk [vmem:[#allocation10 + $0x6e] sm:$0x1] %vm8927_vm2, %v8666_v63  ;;  %v8753_v25 = vrot.slane %v8731_v14, %v16484_v37  ;;  %v8761_v40 = vcombine.high %v8739_v32, %v8739_v32  ;;  %8968 = vst.msk [vmem:[#allocation10 + $0xa0] sm:$0x1] %vm8927_vm2, %v8739_v32  ;;  %v8616_v56 = vcombine.high %v8606_v55, %v8606_v55  ;;  %v17211_v14 = vpop.f32.mrf.mxu1  ;;  %v17213_v32 = vpop.f32.mrf.mxu0 }
 0x70e   : > { %v8617_v26 = vcombine.high %v8613_v39, %v8613_v39  ;;  %8945 = vst.msk [vmem:[#allocation10 + $0x42] sm:$0x1] %vm8927_vm2, %v8606_v55  ;;  %8946 = vst.msk [vmem:[#allocation10 + $0x44] sm:$0x1] %vm8927_vm2, %v8614_v58  ;;  %v8667_v28 = vcombine.high %v17117_v2, %v17117_v2  ;;  %v8674_v4 = vrot.slane %v17117_v2, %v16484_v37 }
 0x70f   : > { %8949 = vst.msk [vmem:[#allocation10 + $0x4a] sm:$0x1] %vm8927_vm2, %v8613_v39  ;;  %8950 = vst.msk [vmem:[#allocation10 + $0x4c] sm:$0x1] %vm8927_vm2, %v8615_v3  ;;  %v8760_v34 = vrot.slane %v8732_v36, %v16484_v37  ;;  %v8762_v48 = vcombine.high %v8746_v44, %v8746_v44  ;;  %v8763_v41 = vcombine.high %v8753_v25, %v8753_v25 }
 0x710   : > { %8969 = vst.msk [vmem:[#allocation10 + $0xa2] sm:$0x1] %vm8927_vm2, %v8753_v25  ;;  %8970 = vst.msk [vmem:[#allocation10 + $0xa4] sm:$0x1] %vm8927_vm2, %v8761_v40  ;;  %v8814_v50 = vcombine.high %v17133_v23, %v17133_v23  ;;  %v8681_v2 = vrot.slane %v8667_v28, %v16484_v37  ;;  %v8682_v45 = vcombine.high %v8674_v4, %v8674_v4 }
 0x711   : > { %8972 = vst.msk [vmem:[#allocation10 + $0xa8] sm:$0x1] %vm8927_vm2, %v8746_v44  ;;  %8947 = vst.msk [vmem:[#allocation10 + $0x46] sm:$0x1] %vm8927_vm2, %v8616_v56  ;;  %v8690_v46 = vrot.slane %v8674_v4, %v16484_v37  ;;  %v8821_v29 = vrot.slane %v17133_v23, %v16484_v37  ;;  %v8764_v18 = vcombine.high %v8760_v34, %v8760_v34 }
 0x712   : > { %8951 = vst.msk [vmem:[#allocation10 + $0x4e] sm:$0x1] %vm8927_vm2, %v8617_v26  ;;  %8971 = vst.msk [vmem:[#allocation10 + $0xa6] sm:$0x1] %vm8927_vm2, %v8763_v41  ;;  %v8828_v27 = vrot.slane %v8814_v50, %v16484_v37  ;;  %v8765_v15 = vcombine.high %v17147_v0, %v17147_v0  ;;  %v8772_v30 = vrot.slane %v17147_v0, %v16484_v37  ;;  %v17234_v41 = vpop.f32.mrf.mxu1  ;;  %v14200_v50 = vpop.f32.mrf.mxu0 }
 0x713   : > { %8973 = vst.msk [vmem:[#allocation10 + $0xaa] sm:$0x1] %vm8927_vm2, %v8760_v34  ;;  %8974 = vst.msk [vmem:[#allocation10 + $0xac] sm:$0x1] %vm8927_vm2, %v8762_v48  ;;  %v8683_v60 = vcombine.high %v8681_v2, %v8681_v2  ;;  %v8697_v59 = vrot.slane %v8681_v2, %v16484_v37  ;;  %v8704_v23 = vrot.slane %v8682_v45, %v16484_v37 }
 0x714   : > { %v8712_v43 = vcombine.high %v8690_v46, %v8690_v46  ;;  %8960 = vst.msk [vmem:[#allocation10 + $0x80] sm:$0x1] %vm8927_vm2, %v8690_v46  ;;  %8975 = vst.msk [vmem:[#allocation10 + $0xae] sm:$0x1] %vm8927_vm2, %v8764_v18  ;;  %v8829_v47 = vcombine.high %v8821_v29, %v8821_v29  ;;  %v8830_v24 = vcombine.high %v8828_v27, %v8828_v27 }
 0x715   : > { %v8837_v63 = vrot.slane %v8821_v29, %v16484_v37  ;;  %v8844_v16 = vrot.slane %v8828_v27, %v16484_v37  ;;  %v8711_v0 = vrot.slane %v8683_v60, %v16484_v37  ;;  %v8713_v55 = vcombine.high %v8697_v59, %v8697_v59  ;;  %8961 = vst.msk [vmem:[#allocation10 + $0x82] sm:$0x1] %vm8927_vm2, %v8704_v23 }
 0x716   : > { %v8714_v39 = vcombine.high %v8704_v23, %v8704_v23  ;;  %8962 = vst.msk [vmem:[#allocation10 + $0x84] sm:$0x1] %vm8927_vm2, %v8712_v43  ;;  %8964 = vst.msk [vmem:[#allocation10 + $0x88] sm:$0x1] %vm8927_vm2, %v8697_v59  ;;  %v8779_v58 = vrot.slane %v8765_v15, %v16484_v37  ;;  %v8851_v3 = vrot.slane %v8829_v47, %v16484_v37  ;;  %v9311_v29 = vadd.f32 1.0, %v17089_v19  ;;  %v14216_v59 = vpop.f32.mrf.mxu1  ;;  %v10977_v23 = vpop.f32.mrf.mxu0 }
 0x717   : > { %v8858_v36 = vrot.slane %v8830_v24, %v16484_v37  ;;  %v8859_v44 = vcombine.high %v8837_v63, %v8837_v63  ;;  %v8860_v25 = vcombine.high %v8844_v16, %v8844_v16  ;;  %8984 = vst.msk [vmem:[#allocation10 + $0xe0] sm:$0x1] %vm8927_vm2, %v8837_v63  ;;  %8988 = vst.msk [vmem:[#allocation10 + $0xe8] sm:$0x1] %vm8927_vm2, %v8844_v16  ;;  %v9313_v27 = vadd.f32 1.0, %v17110_v38 }
 0x718   : > { %v8715_v40 = vcombine.high %v8711_v0, %v8711_v0  ;;  %8963 = vst.msk [vmem:[#allocation10 + $0x86] sm:$0x1] %vm8927_vm2, %v8714_v39  ;;  %8965 = vst.msk [vmem:[#allocation10 + $0x8a] sm:$0x1] %vm8927_vm2, %v8711_v0  ;;  %v8780_v56 = vcombine.high %v8772_v30, %v8772_v30  ;;  %v8781_v26 = vcombine.high %v8779_v58, %v8779_v58  ;;  %v9316_v15 = vadd.f32 1.0, %v17123_v17  ;;  %v14203_v16 = vpop.f32.mrf.mxu0 }
 0x719   : > { %8966 = vst.msk [vmem:[#allocation10 + $0x8c] sm:$0x1] %vm8927_vm2, %v8713_v55  ;;  %v8788_v28 = vrot.slane %v8772_v30, %v16484_v37  ;;  %v8861_v4 = vcombine.high %v8851_v3, %v8851_v3  ;;  %v8862_v34 = vcombine.high %v8858_v36, %v8858_v36  ;;  %8985 = vst.msk [vmem:[#allocation10 + $0xe2] sm:$0x1] %vm8927_vm2, %v8851_v3  ;;  %14356 = vrcp.f32 %v9311_v29 }
 0x71a   : > { %8986 = vst.msk [vmem:[#allocation10 + $0xe4] sm:$0x1] %vm8927_vm2, %v8859_v44  ;;  %8989 = vst.msk [vmem:[#allocation10 + $0xea] sm:$0x1] %vm8927_vm2, %v8858_v36  ;;  %v8795_v48 = vrot.slane %v8779_v58, %v16484_v37  ;;  %v8802_v2 = vrot.slane %v8780_v56, %v16484_v37  ;;  %v8809_v45 = vrot.slane %v8781_v26, %v16484_v37  ;;  %v9315_v19 = vadd.f32 1.0, %v17140_v7 }
 0x71b   : > { %8990 = vst.msk [vmem:[#allocation10 + $0xec] sm:$0x1] %vm8927_vm2, %v8860_v25  ;;  %8967 = vst.msk [vmem:[#allocation10 + $0x8e] sm:$0x1] %vm8927_vm2, %v8715_v40  ;;  %v8810_v46 = vcombine.high %v8788_v28, %v8788_v28  ;;  %14358 = vrcp.f32 %v9314_v35  ;;  %v9317_v38 = vadd.f32 1.0, %v17167_v10  ;;  %v10159_v17 = vsub.f32 0.0, %v17075_v54  ;;  %v10987_v25 = vpop.f32.mrf.mxu0  ;;  %v14355_v40 = vpop.eup %14354 }
 0x71c   : > { %8976 = vst.msk [vmem:[#allocation10 + $0xc0] sm:$0x1] %vm8927_vm2, %v8788_v28  ;;  %8987 = vst.msk [vmem:[#allocation10 + $0xe6] sm:$0x1] %vm8927_vm2, %v8861_v4  ;;  %v8811_v18 = vcombine.high %v8795_v48, %v8795_v48  ;;  %v8812_v30 = vcombine.high %v8802_v2, %v8802_v2  ;;  %v8813_v60 = vcombine.high %v8809_v45, %v8809_v45  ;;  %14360 = vrcp.f32 %v9313_v27 }
 0x71d   : > { %8991 = vst.msk [vmem:[#allocation10 + $0xee] sm:$0x1] %vm8927_vm2, %v8862_v34  ;;  %8980 = vst.msk [vmem:[#allocation10 + $0xc8] sm:$0x1] %vm8927_vm2, %v8795_v48  ;;  %v10154_v43 = vadd.f32 %v17065_v53, %v17078_v9  ;;  %v10116_v7 = vadd.f32 %v17105_v13, %v17048_v11  ;;  %v10131_v12 = vadd.f32 %v17131_v62, %v17051_v1  ;;  %14362 = vrcp.f32 %v9316_v15  ;;  %v11117_v62 = vpop.f32.mrf.mxu1 }
 0x71e   : > { %8977 = vst.msk [vmem:[#allocation10 + $0xc2] sm:$0x1] %vm8927_vm2, %v8802_v2  ;;  %8978 = vst.msk [vmem:[#allocation10 + $0xc4] sm:$0x1] %vm8927_vm2, %v8810_v46  ;;  %v10167_v10 = vmul.f32 1.442695, %v10159_v17  ;;  %v10126_v54 = vadd.f32 %v17161_v6, %v17054_v5  ;;  %v10141_v47 = vadd.f32 %v17189_v31, %v17057_v21  ;;  %14364 = vrcp.f32 %v9315_v19 }
 0x71f   : > { %8981 = vst.msk [vmem:[#allocation10 + $0xca] sm:$0x1] %vm8927_vm2, %v8809_v45  ;;  %8982 = vst.msk [vmem:[#allocation10 + $0xcc] sm:$0x1] %vm8927_vm2, %v8811_v18  ;;  %v10162_v24 = vsub.f32 0.0, %v10154_v43  ;;  %v10153_v63 = vadd.f32 %v17065_v53, %v10116_v7  ;;  %v10156_v9 = vadd.f32 %v17065_v53, %v10131_v12  ;;  %14366 = vrcp.f32 %v9318_v51  ;;  %v14219_v44 = vpop.f32.mrf.mxu1 }
 0x720   : > { %8979 = vst.msk [vmem:[#allocation10 + $0xc6] sm:$0x1] %vm8927_vm2, %v8812_v30  ;;  %8983 = vst.msk [vmem:[#allocation10 + $0xce] sm:$0x1] %vm8927_vm2, %v8813_v60  ;;  %v10155_v11 = vadd.f32 %v17065_v53, %v10126_v54  ;;  %v10158_v13 = vadd.f32 %v17065_v53, %v10141_v47  ;;  %v10136_v1 = vadd.f32 %v17213_v32, %v17061_v42  ;;  %14368 = vrcp.f32 %v9317_v38 }
 0x721   : > { %v10173_v5 = vmul.f32 1.442695, %v10162_v24  ;;  %v10161_v6 = vsub.f32 0.0, %v10153_v63  ;;  %v10164_v21 = vsub.f32 0.0, %v10156_v9  ;;  %14370 = vpow2.f32 %v17087_v57 }
 0x722   : > { %v10163_v31 = vsub.f32 0.0, %v10155_v11  ;;  %v10166_v0 = vsub.f32 0.0, %v10158_v13  ;;  %v10157_v55 = vadd.f32 %v17065_v53, %v10136_v1  ;;  %14372 = vpow2.f32 %v10167_v10 }
 0x723   : > { %v10171_v39 = vmul.f32 1.442695, %v10161_v6  ;;  %v10177_v58 = vmul.f32 1.442695, %v10164_v21  ;;  %v10983_v3 = vadd.f32 %v14200_v50, %v17070_v20  ;;  %14374 = vpow2.f32 %v10173_v5 }
 0x724   : > { %v10175_v36 = vmul.f32 1.442695, %v10163_v31  ;;  %v10181_v42 = vmul.f32 1.442695, %v10166_v0  ;;  %v10165_v32 = vsub.f32 0.0, %v10157_v55  ;;  %v10978_v57 = vadd.f32 %v10977_v23, %v17082_v61 }
 0x725   : > { %14376 = vpow2.f32 %v10171_v39  ;;  %v17276_v56 = vadd.f32 %v14216_v59, %v10983_v3  ;;  %v10993_v26 = vadd.f32 %v14203_v16, %v17103_v49  ;;  %v9392_v53 = vcombine.high %v14355_v40, %v14355_v40  ;;  %v11127_v49 = vpop.f32.mrf.mxu1 }
 0x726   : > { %v9399_v28 = vrot.slane %v14355_v40, %v16484_v37  ;;  %14378 = vpow2.f32 %v10177_v58  ;;  %v10179_v4 = vmul.f32 1.442695, %v10165_v32  ;;  %v17281_v20 = vadd.f32 %v11117_v62, %v10978_v57  ;;  %v14357_v50 = vpop.eup %14356 }
 0x727   : > { %14380 = vpow2.f32 %v10175_v36  ;;  %v17283_v34 = vadd.f32 %v14219_v44, %v10993_v26  ;;  %v10988_v48 = vadd.f32 %v10987_v25, %v17129_v22  ;;  %v9406_v2 = vrot.slane %v9392_v53, %v16484_v37 }
 0x728   : > { %v9407_v45 = vcombine.high %v9399_v28, %v9399_v28  ;;  %v9415_v61 = vrot.slane %v9399_v28, %v16484_v37  ;;  %14382 = vpow2.f32 %v10181_v42  ;;  %v14359_v46 = vpop.eup %14358  ;;  %v9343_v29 = vcombine.high %v14357_v50, %v14357_v50 }
 0x729   : > { %v9350_v18 = vrot.slane %v14357_v50, %v16484_v37  ;;  %14384 = vpow2.f32 %v10179_v4  ;;  %v17289_v35 = vadd.f32 %v11127_v49, %v10988_v48  ;;  %v14361_v27 = vpop.eup %14360  ;;  %v9408_v15 = vcombine.high %v9406_v2, %v9406_v2 }
 0x72a   : > { %v9422_v30 = vrot.slane %v9406_v2, %v16484_v37  ;;  %v9429_v22 = vrot.slane %v9407_v45, %v16484_v37  ;;  %v9437_v60 = vcombine.high %v9415_v61, %v9415_v61  ;;  %9807 = vst.msk [vmem:[#allocation10 + $0x21] sm:$0x1] %vm8927_vm2, %v9415_v61  ;;  %v17294_v19 = vpop.eup %14362  ;;  %v9357_v51 = vrot.slane %v9343_v29, %v16484_v37 }
 0x72b   : > { %v9358_v38 = vcombine.high %v9350_v18, %v9350_v18  ;;  %v9366_v17 = vrot.slane %v9350_v18, %v16484_v37  ;;  %v9490_v59 = vcombine.high %v14359_v46, %v14359_v46  ;;  %v17298_v23 = vpop.eup %14364  ;;  %v9436_v43 = vrot.slane %v9408_v15, %v16484_v37 }
 0x72c   : > { %v9438_v7 = vcombine.high %v9422_v30, %v9422_v30  ;;  %v9439_v12 = vcombine.high %v9429_v22, %v9429_v22  ;;  %9808 = vst.msk [vmem:[#allocation10 + $0x23] sm:$0x1] %vm8927_vm2, %v9429_v22  ;;  %9809 = vst.msk [vmem:[#allocation10 + $0x25] sm:$0x1] %vm8927_vm2, %v9437_v60  ;;  %v9497_v10 = vrot.slane %v14359_v46, %v16484_v37  ;;  %v17305_v54 = vpop.eup %14366 }
 0x72d   : > { %9811 = vst.msk [vmem:[#allocation10 + $0x29] sm:$0x1] %vm8927_vm2, %v9422_v30  ;;  %v9359_v47 = vcombine.high %v9357_v51, %v9357_v51  ;;  %v9373_v24 = vrot.slane %v9357_v51, %v16484_v37  ;;  %v9380_v63 = vrot.slane %v9358_v38, %v16484_v37  ;;  %v9388_v9 = vcombine.high %v9366_v17, %v9366_v17  ;;  %v17310_v11 = vpop.eup %14368 }
 0x72e   : > { %9799 = vst.msk [vmem:[#allocation10 + $0x1] sm:$0x1] %vm8927_vm2, %v9366_v17  ;;  %v9440_v13 = vcombine.high %v9436_v43, %v9436_v43  ;;  %9810 = vst.msk [vmem:[#allocation10 + $0x27] sm:$0x1] %vm8927_vm2, %v9439_v12  ;;  %v9504_v1 = vrot.slane %v9490_v59, %v16484_v37  ;;  %v9505_v62 = vcombine.high %v9497_v10, %v9497_v10  ;;  %v17317_v5 = vpop.eup %14370 }
 0x72f   : > { %9812 = vst.msk [vmem:[#allocation10 + $0x2b] sm:$0x1] %vm8927_vm2, %v9436_v43  ;;  %9813 = vst.msk [vmem:[#allocation10 + $0x2d] sm:$0x1] %vm8927_vm2, %v9438_v7  ;;  %v9513_v16 = vrot.slane %v9497_v10, %v16484_v37  ;;  %v9387_v6 = vrot.slane %v9359_v47, %v16484_v37  ;;  %v9389_v21 = vcombine.high %v9373_v24, %v9373_v24  ;;  %v17323_v55 = vpop.eup %14372 }
 0x730   : > { %v9390_v31 = vcombine.high %v9380_v63, %v9380_v63  ;;  %9800 = vst.msk [vmem:[#allocation10 + $0x3] sm:$0x1] %vm8927_vm2, %v9380_v63  ;;  %9801 = vst.msk [vmem:[#allocation10 + $0x5] sm:$0x1] %vm8927_vm2, %v9388_v9  ;;  %v9441_v0 = vcombine.high %v14361_v27, %v14361_v27  ;;  %v9506_v39 = vcombine.high %v9504_v1, %v9504_v1  ;;  %v17329_v42 = vpop.eup %14374 }
 0x731   : > { %9803 = vst.msk [vmem:[#allocation10 + $0x9] sm:$0x1] %vm8927_vm2, %v9373_v24  ;;  %9814 = vst.msk [vmem:[#allocation10 + $0x2f] sm:$0x1] %vm8927_vm2, %v9440_v13  ;;  %v9520_v58 = vrot.slane %v9504_v1, %v16484_v37  ;;  %v9527_v3 = vrot.slane %v9505_v62, %v16484_v37  ;;  %v9535_v36 = vcombine.high %v9513_v16, %v9513_v16  ;;  %v11919_v50 = vld [vmem:[#allocation10 + $0x20] sm:$0x3] }
 0x732   : > { %9823 = vst.msk [vmem:[#allocation10 + $0x61] sm:$0x1] %vm8927_vm2, %v9513_v16  ;;  %v9391_v32 = vcombine.high %v9387_v6, %v9387_v6  ;;  %9802 = vst.msk [vmem:[#allocation10 + $0x7] sm:$0x1] %vm8927_vm2, %v9390_v31  ;;  %v9448_v44 = vrot.slane %v14361_v27, %v16484_v37  ;;  %v9455_v25 = vrot.slane %v9441_v0, %v16484_v37  ;;  %v17338_v57 = vpop.eup %14376 }
 0x733   : > { %9804 = vst.msk [vmem:[#allocation10 + $0xb] sm:$0x1] %vm8927_vm2, %v9387_v6  ;;  %9805 = vst.msk [vmem:[#allocation10 + $0xd] sm:$0x1] %vm8927_vm2, %v9389_v21  ;;  %v9588_v40 = vcombine.high %v17294_v19, %v17294_v19  ;;  %v9534_v26 = vrot.slane %v9506_v39, %v16484_v37  ;;  %v9536_v53 = vcombine.high %v9520_v58, %v9520_v58  ;;  %v17348_v48 = vpop.eup %14378  ;;  %v11920_v2 = vld [vmem:[#allocation10 + $0x22] sm:$0x3] }
 0x734   : > { %v9537_v28 = vcombine.high %v9527_v3, %v9527_v3  ;;  %9824 = vst.msk [vmem:[#allocation10 + $0x63] sm:$0x1] %vm8927_vm2, %v9527_v3  ;;  %9825 = vst.msk [vmem:[#allocation10 + $0x65] sm:$0x1] %vm8927_vm2, %v9535_v36  ;;  %v17346_v4 = vrot.slane %v17294_v19, %v16484_v37  ;;  %v9456_v45 = vcombine.high %v9448_v44, %v9448_v44  ;;  %v17353_v29 = vpop.eup %14380  ;;  %v11921_v18 = vld [vmem:[#allocation10 + $0x24] sm:$0x3] }
 0x735   : > { %9827 = vst.msk [vmem:[#allocation10 + $0x69] sm:$0x1] %vm8927_vm2, %v9520_v58  ;;  %9806 = vst.msk [vmem:[#allocation10 + $0xf] sm:$0x1] %vm8927_vm2, %v9391_v32  ;;  %v9457_v61 = vcombine.high %v9455_v25, %v9455_v25  ;;  %v9464_v49 = vrot.slane %v9448_v44, %v16484_v37  ;;  %v9471_v46 = vrot.slane %v9455_v25, %v16484_v37  ;;  %v17361_v60 = vpop.eup %14382  ;;  %v11922_v19 = vld [vmem:[#allocation10 + $0x26] sm:$0x3] }
 0x736   : > { %v12227_v27 = vcombine.low %v11919_v50, %v11920_v2  ;;  %v9538_v15 = vcombine.high %v9534_v26, %v9534_v26  ;;  %9826 = vst.msk [vmem:[#allocation10 + $0x67] sm:$0x1] %vm8927_vm2, %v9537_v28  ;;  %9828 = vst.msk [vmem:[#allocation10 + $0x6b] sm:$0x1] %vm8927_vm2, %v9534_v26  ;;  %v9602_v30 = vrot.slane %v9588_v40, %v16484_v37  ;;  %v11923_v51 = vld [vmem:[#allocation10 + $0x28] sm:$0x3]  ;;  %v17367_v12 = vpop.eup %14384  ;;  %v17392_v2 = vpop.f32.mrf.mxu0 }
 0x737   : > { %9829 = vst.msk [vmem:[#allocation10 + $0x6d] sm:$0x1] %vm8927_vm2, %v9536_v53  ;;  %v9603_v22 = vcombine.high %v17346_v4, %v17346_v4  ;;  %v11924_v38 = vld [vmem:[#allocation10 + $0x2a] sm:$0x3]  ;;  %v9478_v17 = vrot.slane %v9456_v45, %v16484_v37  ;;  %v9485_v59 = vrot.slane %v9457_v61, %v16484_v37  ;;  %v9486_v43 = vcombine.high %v9464_v49, %v9464_v49  ;;  %v11903_v63 = vld [vmem:[#allocation10] sm:$0x3] }
 0x738   : > { %v9487_v7 = vcombine.high %v9471_v46, %v9471_v46  ;;  %9815 = vst.msk [vmem:[#allocation10 + $0x41] sm:$0x1] %vm8927_vm2, %v9464_v49  ;;  %9819 = vst.msk [vmem:[#allocation10 + $0x49] sm:$0x1] %vm8927_vm2, %v9471_v46  ;;  %v12228_v10 = vcombine.low %v11921_v18, %v11922_v19  ;;  %v12235_v47 = vrot.slane %v12227_v27, %v15373_v33  ;;  %v11904_v9 = vld [vmem:[#allocation10 + $0x2] sm:$0x3] }
 0x739   : > { %v12244_v24 = vcombine.low %v11923_v51, %v11924_v38  ;;  %9830 = vst.msk [vmem:[#allocation10 + $0x6f] sm:$0x1] %vm8927_vm2, %v9538_v15  ;;  %v9604_v13 = vcombine.high %v9602_v30, %v9602_v30  ;;  %v11925_v1 = vld [vmem:[#allocation10 + $0x2c] sm:$0x3]  ;;  %v11926_v62 = vld [vmem:[#allocation10 + $0x2e] sm:$0x3]  ;;  %v12159_v6 = vcombine.low %v11903_v63, %v11904_v9  ;;  %v9488_v21 = vcombine.high %v9478_v17, %v9478_v17 }
 0x73a   : > { %v11905_v16 = vld [vmem:[#allocation10 + $0x4] sm:$0x3]  ;;  %v9489_v31 = vcombine.high %v9485_v59, %v9485_v59  ;;  %9816 = vst.msk [vmem:[#allocation10 + $0x43] sm:$0x1] %vm8927_vm2, %v9478_v17  ;;  %9817 = vst.msk [vmem:[#allocation10 + $0x45] sm:$0x1] %vm8927_vm2, %v9486_v43  ;;  %v9611_v0 = vrot.slane %v17346_v4, %v16484_v37  ;;  %v12242_v39 = vrot.slane %v12228_v10, %v15373_v33 }
 0x73b   : > { %9820 = vst.msk [vmem:[#allocation10 + $0x4b] sm:$0x1] %vm8927_vm2, %v9485_v59  ;;  %9821 = vst.msk [vmem:[#allocation10 + $0x4d] sm:$0x1] %vm8927_vm2, %v9487_v7  ;;  %v12245_v58 = vcombine.low %v11925_v1, %v11926_v62  ;;  %v12252_v3 = vrot.slane %v12244_v24, %v15373_v33  ;;  %v11906_v36 = vld [vmem:[#allocation10 + $0x6] sm:$0x3]  ;;  %v9618_v25 = vrot.slane %v9602_v30, %v16484_v37 }
 0x73c   : > { %v11907_v32 = vld [vmem:[#allocation10 + $0x8] sm:$0x3]  ;;  %v11908_v44 = vld [vmem:[#allocation10 + $0xa] sm:$0x3]  ;;  %v12160_v40 = vcombine.low %v11905_v16, %v11906_v36  ;;  %v12167_v26 = vrot.slane %v12159_v6, %v15373_v33  ;;  %v11951_v28 = vld [vmem:[#allocation10 + $0x60] sm:$0x3]  ;;  %v9625_v50 = vrot.slane %v9603_v22, %v16484_v37  ;;  %v12243_v45 = vcombine.low %v12235_v47, %v12242_v39  ;;  %v17406_v6 = vpop.f32.mrf.mxu0 }
 0x73d   : > { %v12176_v53 = vcombine.low %v11907_v32, %v11908_v44  ;;  %v11952_v4 = vld [vmem:[#allocation10 + $0x62] sm:$0x3]  ;;  %9818 = vst.msk [vmem:[#allocation10 + $0x47] sm:$0x1] %vm8927_vm2, %v9488_v21  ;;  %9822 = vst.msk [vmem:[#allocation10 + $0x4f] sm:$0x1] %vm8927_vm2, %v9489_v31  ;;  %v12259_v61 = vrot.slane %v12245_v58, %v15373_v33  ;;  %v9632_v15 = vrot.slane %v9604_v13, %v16484_v37 }
 0x73e   : > { %9839 = vst.msk [vmem:[#allocation10 + $0xa1] sm:$0x1] %vm8927_vm2, %v9611_v0  ;;  %v11909_v49 = vld [vmem:[#allocation10 + $0xc] sm:$0x3]  ;;  %v11910_v46 = vld [vmem:[#allocation10 + $0xe] sm:$0x3]  ;;  %v12363_v27 = vcombine.low %v11951_v28, %v11952_v4  ;;  %v12174_v30 = vrot.slane %v12160_v40, %v15373_v33  ;;  %v9633_v59 = vcombine.high %v9611_v0, %v9611_v0  ;;  %v9634_v62 = vcombine.high %v9618_v25, %v9618_v25 }
 0x73f   : > { %v11953_v18 = vld [vmem:[#allocation10 + $0x64] sm:$0x3]  ;;  %9843 = vst.msk [vmem:[#allocation10 + $0xa9] sm:$0x1] %vm8927_vm2, %v9618_v25  ;;  %v12177_v19 = vcombine.low %v11909_v49, %v11910_v46  ;;  %v12184_v22 = vrot.slane %v12176_v53, %v15373_v33  ;;  %v11954_v51 = vld [vmem:[#allocation10 + $0x66] sm:$0x3]  ;;  %v12260_v43 = vcombine.low %v12252_v3, %v12259_v61  ;;  %v9635_v16 = vcombine.high %v9625_v50, %v9625_v50 }
 0x740   : > { %v11955_v38 = vld [vmem:[#allocation10 + $0x68] sm:$0x3]  ;;  %v11956_v17 = vld [vmem:[#allocation10 + $0x6a] sm:$0x3]  ;;  %9840 = vst.msk [vmem:[#allocation10 + $0xa3] sm:$0x1] %vm8927_vm2, %v9625_v50  ;;  %v12364_v7 = vcombine.low %v11953_v18, %v11954_v51  ;;  %v12371_v10 = vrot.slane %v12363_v27, %v15373_v33  ;;  %v12175_v24 = vcombine.low %v12167_v26, %v12174_v30  ;;  %v9636_v36 = vcombine.high %v9632_v15, %v9632_v15  ;;  %v17428_v30 = vpop.f32.mrf.mxu0 }
 0x741   : > { %12739 = vst.msk [vmem:[%s17385_s17 + $0x20] sm:$0xff] %vm475_vm0, %v12243_v45  ;;  %v12380_v47 = vcombine.low %v11955_v38, %v11956_v17  ;;  %v12191_v63 = vrot.slane %v12177_v19, %v15373_v33  ;;  %v11957_v9 = vld [vmem:[#allocation10 + $0x6c] sm:$0x3]  ;;  %v11958_v13 = vld [vmem:[#allocation10 + $0x6e] sm:$0x3]  ;;  %12740 = vst.msk [vmem:[%s17385_s17 + $0x28] sm:$0xff] %vm475_vm0, %v12260_v43  ;;  %v9539_v26 = vcombine.high %v17298_v23, %v17298_v23 }
 0x742   : > { %9844 = vst.msk [vmem:[#allocation10 + $0xab] sm:$0x1] %vm8927_vm2, %v9632_v15  ;;  %v11935_v1 = vld [vmem:[#allocation10 + $0x40] sm:$0x3]  ;;  %9841 = vst.msk [vmem:[#allocation10 + $0xa5] sm:$0x1] %vm8927_vm2, %v9633_v59  ;;  %v12378_v21 = vrot.slane %v12364_v7, %v15373_v33  ;;  %v12381_v31 = vcombine.low %v11957_v9, %v11958_v13  ;;  %v9546_v61 = vrot.slane %v17298_v23, %v16484_v37 }
 0x743   : > { %v12388_v0 = vrot.slane %v12380_v47, %v15373_v33  ;;  %v11936_v39 = vld [vmem:[#allocation10 + $0x42] sm:$0x3]  ;;  %v11939_v58 = vld [vmem:[#allocation10 + $0x48] sm:$0x3]  ;;  %v11940_v3 = vld [vmem:[#allocation10 + $0x4a] sm:$0x3]  ;;  %v12192_v32 = vcombine.low %v12184_v22, %v12191_v63  ;;  %v9686_v49 = vcombine.high %v17305_v54, %v17305_v54  ;;  %v9553_v23 = vrot.slane %v9539_v26, %v16484_v37 }
 0x744   : > { %12735 = vst.msk [vmem:[%s17385_s17] sm:$0xff] %vm475_vm0, %v12175_v24  ;;  %v11937_v44 = vld [vmem:[#allocation10 + $0x44] sm:$0x3]  ;;  %v12295_v25 = vcombine.low %v11935_v1, %v11936_v39  ;;  %v12312_v40 = vcombine.low %v11939_v58, %v11940_v3  ;;  %v12379_v53 = vcombine.low %v12371_v10, %v12378_v21  ;;  %v12395_v28 = vrot.slane %v12381_v31, %v15373_v33  ;;  %v11938_v4 = vld [vmem:[#allocation10 + $0x46] sm:$0x3] }
 0x745   : > { %9842 = vst.msk [vmem:[#allocation10 + $0xa7] sm:$0x1] %vm8927_vm2, %v9635_v16  ;;  %9845 = vst.msk [vmem:[#allocation10 + $0xad] sm:$0x1] %vm8927_vm2, %v9634_v62  ;;  %v11941_v50 = vld [vmem:[#allocation10 + $0x4c] sm:$0x3]  ;;  %v12296_v46 = vcombine.low %v11937_v44, %v11938_v4  ;;  %v9554_v38 = vcombine.high %v9546_v61, %v9546_v61  ;;  %v9562_v17 = vrot.slane %v9546_v61, %v16484_v37 }
 0x746   : > { %v11942_v45 = vld [vmem:[#allocation10 + $0x4e] sm:$0x3]  ;;  %9846 = vst.msk [vmem:[#allocation10 + $0xaf] sm:$0x1] %vm8927_vm2, %v9636_v36  ;;  %v12303_v18 = vrot.slane %v12295_v25, %v15373_v33  ;;  %v12320_v15 = vrot.slane %v12312_v40, %v15373_v33  ;;  %v12396_v19 = vcombine.low %v12388_v0, %v12395_v28  ;;  %v11983_v22 = vld [vmem:[#allocation10 + $0xa0] sm:$0x3]  ;;  %v9693_v24 = vrot.slane %v17305_v54, %v16484_v37  ;;  %v17444_v0 = vpop.f32.mrf.mxu0 }
 0x747   : > { %12736 = vst.msk [vmem:[%s17385_s17 + $0x8] sm:$0xff] %vm475_vm0, %v12192_v32  ;;  %v12313_v27 = vcombine.low %v11941_v50, %v11942_v45  ;;  %12747 = vst.msk [vmem:[%s17385_s17 + $0x60] sm:$0xff] %vm475_vm0, %v12379_v53  ;;  %v11984_v51 = vld [vmem:[#allocation10 + $0xa2] sm:$0x3]  ;;  %v12310_v59 = vrot.slane %v12296_v46, %v15373_v33  ;;  %v11987_v7 = vld [vmem:[#allocation10 + $0xa8] sm:$0x3]  ;;  %v9555_v9 = vcombine.high %v9553_v23, %v9553_v23 }
 0x748   : > { %v12499_v47 = vcombine.low %v11983_v22, %v11984_v51  ;;  %12748 = vst.msk [vmem:[%s17385_s17 + $0x68] sm:$0xff] %vm475_vm0, %v12396_v19  ;;  %v9569_v13 = vrot.slane %v9553_v23, %v16484_v37  ;;  %v9576_v1 = vrot.slane %v9554_v38, %v16484_v37  ;;  %v9584_v31 = vcombine.high %v9562_v17, %v9562_v17 }
 0x749   : > { %v12327_v43 = vrot.slane %v12313_v27, %v15373_v33  ;;  %v11988_v10 = vld [vmem:[#allocation10 + $0xaa] sm:$0x3]  ;;  %9831 = vst.msk [vmem:[#allocation10 + $0x81] sm:$0x1] %vm8927_vm2, %v9562_v17  ;;  %v12311_v62 = vcombine.low %v12303_v18, %v12310_v59  ;;  %v11985_v54 = vld [vmem:[#allocation10 + $0xa4] sm:$0x3]  ;;  %v9583_v3 = vrot.slane %v9555_v9, %v16484_v37  ;;  %v9700_v26 = vrot.slane %v9686_v49, %v16484_v37 }
 0x74a   : > { %v12516_v63 = vcombine.low %v11987_v7, %v11988_v10  ;;  %v12507_v21 = vrot.slane %v12499_v47, %v15373_v33  ;;  %v9585_v36 = vcombine.high %v9569_v13, %v9569_v13  ;;  %v9586_v32 = vcombine.high %v9576_v1, %v9576_v1  ;;  %9832 = vst.msk [vmem:[#allocation10 + $0x83] sm:$0x1] %vm8927_vm2, %v9576_v1 }
 0x74b   : > { %v12328_v16 = vcombine.low %v12320_v15, %v12327_v43  ;;  %9835 = vst.msk [vmem:[#allocation10 + $0x89] sm:$0x1] %vm8927_vm2, %v9569_v13  ;;  %9833 = vst.msk [vmem:[#allocation10 + $0x85] sm:$0x1] %vm8927_vm2, %v9584_v31  ;;  %v9701_v53 = vcombine.high %v9693_v24, %v9693_v24  ;;  %v9709_v28 = vrot.slane %v9693_v24, %v16484_v37  ;;  %v17468_v15 = vpop.f32.mrf.mxu0  ;;  %v10184_v1 = vadd.f32 1.0, %v17317_v5 }
 0x74c   : > { %v11986_v39 = vld [vmem:[#allocation10 + $0xa6] sm:$0x3]  ;;  %v12524_v58 = vrot.slane %v12516_v63, %v15373_v33  ;;  %12743 = vst.msk [vmem:[%s17385_s17 + $0x40] sm:$0xff] %vm475_vm0, %v12311_v62  ;;  %v11989_v44 = vld [vmem:[#allocation10 + $0xac] sm:$0x3]  ;;  %v9587_v50 = vcombine.high %v9583_v3, %v9583_v3  ;;  %v9637_v45 = vcombine.high %v17310_v11, %v17310_v11  ;;  %v9644_v61 = vrot.slane %v17310_v11, %v16484_v37 }
 0x74d   : > { %12744 = vst.msk [vmem:[%s17385_s17 + $0x48] sm:$0xff] %vm475_vm0, %v12328_v16  ;;  %v11990_v25 = vld [vmem:[#allocation10 + $0xae] sm:$0x3]  ;;  %v12500_v40 = vcombine.low %v11985_v54, %v11986_v39  ;;  %v9702_v49 = vcombine.high %v9700_v26, %v9700_v26  ;;  %v9716_v18 = vrot.slane %v9700_v26, %v16484_v37  ;;  %v9723_v27 = vrot.slane %v9701_v53, %v16484_v37  ;;  %v14222_v16 = vpop.f32.mrf.mxu1 }
 0x74e   : > { %v12517_v4 = vcombine.low %v11989_v44, %v11990_v25  ;;  %9834 = vst.msk [vmem:[#allocation10 + $0x87] sm:$0x1] %vm8927_vm2, %v9586_v32  ;;  %9836 = vst.msk [vmem:[#allocation10 + $0x8b] sm:$0x1] %vm8927_vm2, %v9583_v3  ;;  %v9731_v22 = vcombine.high %v9709_v28, %v9709_v28  ;;  %v9651_v51 = vrot.slane %v9637_v45, %v16484_v37  ;;  %v10183_v62 = vadd.f32 1.0, %v17323_v55 }
 0x74f   : > { %9837 = vst.msk [vmem:[#allocation10 + $0x8d] sm:$0x1] %vm8927_vm2, %v9585_v36  ;;  %v12514_v46 = vrot.slane %v12500_v40, %v15373_v33  ;;  %9855 = vst.msk [vmem:[#allocation10 + $0xe1] sm:$0x1] %vm8927_vm2, %v9709_v28  ;;  %v9652_v11 = vcombine.high %v9644_v61, %v9644_v61  ;;  %v9730_v38 = vrot.slane %v9702_v49, %v16484_v37  ;;  %14386 = vrcp.f32 %v10184_v1 }
 0x750   : > { %v12531_v19 = vrot.slane %v12517_v4, %v15373_v33  ;;  %9838 = vst.msk [vmem:[#allocation10 + $0x8f] sm:$0x1] %vm8927_vm2, %v9587_v50  ;;  %v9732_v17 = vcombine.high %v9716_v18, %v9716_v18  ;;  %v9733_v59 = vcombine.high %v9723_v27, %v9723_v27  ;;  %9856 = vst.msk [vmem:[#allocation10 + $0xe3] sm:$0x1] %vm8927_vm2, %v9723_v27  ;;  %v11967_v24 = vld [vmem:[#allocation10 + $0x80] sm:$0x3]  ;;  %14388 = vrcp.f32 %v10183_v62 }
 0x751   : > { %v12515_v23 = vcombine.low %v12507_v21, %v12514_v46  ;;  %9859 = vst.msk [vmem:[#allocation10 + $0xe9] sm:$0x1] %vm8927_vm2, %v9716_v18  ;;  %9857 = vst.msk [vmem:[#allocation10 + $0xe5] sm:$0x1] %vm8927_vm2, %v9731_v22  ;;  %v9653_v7 = vcombine.high %v9651_v51, %v9651_v51  ;;  %v9660_v10 = vrot.slane %v9644_v61, %v16484_v37  ;;  %v11968_v63 = vld [vmem:[#allocation10 + $0x82] sm:$0x3]  ;;  %v17487_v21 = vpop.f32.mrf.mxu0 }
 0x752   : > { %v12532_v43 = vcombine.low %v12524_v58, %v12531_v19  ;;  %v9667_v47 = vrot.slane %v9651_v51, %v16484_v37  ;;  %v9734_v9 = vcombine.high %v9730_v38, %v9730_v38  ;;  %9858 = vst.msk [vmem:[#allocation10 + $0xe7] sm:$0x1] %vm8927_vm2, %v9733_v59  ;;  %9860 = vst.msk [vmem:[#allocation10 + $0xeb] sm:$0x1] %vm8927_vm2, %v9730_v38  ;;  %v11971_v31 = vld [vmem:[#allocation10 + $0x88] sm:$0x3] }
 0x753   : > { %12755 = vst.msk [vmem:[%s17385_s17 + $0xa0] sm:$0xff] %vm475_vm0, %v12515_v23  ;;  %v9674_v13 = vrot.slane %v9652_v11, %v16484_v37  ;;  %v12431_v54 = vcombine.low %v11967_v24, %v11968_v63  ;;  %v9681_v39 = vrot.slane %v9653_v7, %v16484_v37  ;;  %v9682_v58 = vcombine.high %v9660_v10, %v9660_v10  ;;  %v11969_v36 = vld [vmem:[#allocation10 + $0x84] sm:$0x3]  ;;  %v17508_v45 = vpop.f32.mrf.mxu0 }
 0x754   : > { %9861 = vst.msk [vmem:[#allocation10 + $0xed] sm:$0x1] %vm8927_vm2, %v9732_v17  ;;  %v9683_v3 = vcombine.high %v9667_v47, %v9667_v47  ;;  %9847 = vst.msk [vmem:[#allocation10 + $0xc1] sm:$0x1] %vm8927_vm2, %v9660_v10  ;;  %v11003_v44 = vadd.f32 %v17392_v2, %v17159_v52  ;;  %v10998_v25 = vadd.f32 %v17406_v6, %v17187_v8  ;;  %v10186_v52 = vadd.f32 1.0, %v17329_v42  ;;  %v11137_v6 = vpop.f32.mrf.mxu1 }
 0x755   : > { %12756 = vst.msk [vmem:[%s17385_s17 + $0xa8] sm:$0xff] %vm475_vm0, %v12532_v43  ;;  %v11970_v32 = vld [vmem:[#allocation10 + $0x86] sm:$0x3]  ;;  %v11972_v5 = vld [vmem:[#allocation10 + $0x8a] sm:$0x3]  ;;  %v9684_v55 = vcombine.high %v9674_v13, %v9674_v13  ;;  %v12439_v53 = vrot.slane %v12431_v54, %v15373_v33  ;;  %v9685_v4 = vcombine.high %v9681_v39, %v9681_v39  ;;  %v10185_v8 = vadd.f32 1.0, %v17338_v57  ;;  %v11275_v24 = vpop.f32.mrf.mxu0 }
 0x756   : > { %9851 = vst.msk [vmem:[#allocation10 + $0xc9] sm:$0x1] %vm8927_vm2, %v9667_v47  ;;  %9862 = vst.msk [vmem:[#allocation10 + $0xef] sm:$0x1] %vm8927_vm2, %v9734_v9  ;;  %v11973_v40 = vld [vmem:[#allocation10 + $0x8c] sm:$0x3]  ;;  %v12432_v26 = vcombine.low %v11969_v36, %v11970_v32  ;;  %v12448_v28 = vcombine.low %v11971_v31, %v11972_v5  ;;  %14390 = vrcp.f32 %v10186_v52  ;;  %v14225_v51 = vpop.f32.mrf.mxu1  ;;  %v11161_v43 = vadd.f32 %v14222_v16, %v11003_v44 }
 0x757   : > { %9848 = vst.msk [vmem:[#allocation10 + $0xc3] sm:$0x1] %vm8927_vm2, %v9674_v13  ;;  %9849 = vst.msk [vmem:[#allocation10 + $0xc5] sm:$0x1] %vm8927_vm2, %v9682_v58  ;;  %v11974_v50 = vld [vmem:[#allocation10 + $0x8e] sm:$0x3]  ;;  %14392 = vrcp.f32 %v10185_v8  ;;  %v17520_v13 = vadd.f32 %v11137_v6, %v10998_v25  ;;  %v11013_v1 = vadd.f32 %v17428_v30, %v17211_v14 }
 0x758   : > { %9852 = vst.msk [vmem:[#allocation10 + $0xcb] sm:$0x1] %vm8927_vm2, %v9681_v39  ;;  %9853 = vst.msk [vmem:[#allocation10 + $0xcd] sm:$0x1] %vm8927_vm2, %v9683_v3  ;;  %v10188_v2 = vadd.f32 1.0, %v17348_v48  ;;  %v12446_v61 = vrot.slane %v12432_v26, %v15373_v33  ;;  %v12449_v46 = vcombine.low %v11973_v40, %v11974_v50  ;;  %v12456_v49 = vrot.slane %v12448_v28, %v15373_v33  ;;  %v11147_v3 = vpop.f32.mrf.mxu1  ;;  %v14238_v28 = vpop.f32.mrf.mxu0 }
 0x759   : > { %9850 = vst.msk [vmem:[#allocation10 + $0xc7] sm:$0x1] %vm8927_vm2, %v9684_v55  ;;  %v12015_v18 = vld [vmem:[#allocation10 + $0xe0] sm:$0x3]  ;;  %v12016_v27 = vld [vmem:[#allocation10 + $0xe2] sm:$0x3]  ;;  %v11008_v55 = vadd.f32 %v17444_v0, %v17234_v41  ;;  %v17530_v14 = vadd.f32 %v14225_v51, %v11013_v1  ;;  %v11305_v0 = vadd.f32 %v17468_v15, %v17276_v56 }
 0x75a   : > { %9854 = vst.msk [vmem:[#allocation10 + $0xcf] sm:$0x1] %vm8927_vm2, %v9685_v4  ;;  %v10187_v19 = vadd.f32 1.0, %v17353_v29  ;;  %v12019_v22 = vld [vmem:[#allocation10 + $0xe8] sm:$0x3]  ;;  %v12635_v42 = vcombine.low %v12015_v18, %v12016_v27  ;;  %v10190_v57 = vadd.f32 1.0, %v17361_v60  ;;  %v12447_v11 = vcombine.low %v12439_v53, %v12446_v61 }
 0x75b   : > { %v10189_v48 = vadd.f32 1.0, %v17367_v12  ;;  %v12463_v23 = vrot.slane %v12449_v46, %v15373_v33  ;;  %v12017_v38 = vld [vmem:[#allocation10 + $0xe4] sm:$0x3]  ;;  %v12018_v17 = vld [vmem:[#allocation10 + $0xe6] sm:$0x3]  ;;  %14394 = vrcp.f32 %v10188_v2  ;;  %v17535_v52 = vadd.f32 %v11147_v3, %v11008_v55 }
 0x75c   : > { %v12020_v59 = vld [vmem:[#allocation10 + $0xea] sm:$0x3]  ;;  %v12021_v7 = vld [vmem:[#allocation10 + $0xec] sm:$0x3]  ;;  %v12636_v10 = vcombine.low %v12017_v38, %v12018_v17  ;;  %v12643_v29 = vrot.slane %v12635_v42, %v15373_v33  ;;  %12751 = vst.msk [vmem:[%s17385_s17 + $0x80] sm:$0xff] %vm475_vm0, %v12447_v11  ;;  %14396 = vrcp.f32 %v10187_v19  ;;  %v11304_v2 = vadd.f32 %v17487_v21, %v17281_v20  ;;  %v14387_v6 = vpop.eup %14386 }
 0x75d   : > { %v12652_v47 = vcombine.low %v12019_v22, %v12020_v59  ;;  %v12464_v60 = vcombine.low %v12456_v49, %v12463_v23  ;;  %v12022_v12 = vld [vmem:[#allocation10 + $0xee] sm:$0x3]  ;;  %v11999_v63 = vld [vmem:[#allocation10 + $0xc0] sm:$0x3]  ;;  %v12003_v54 = vld [vmem:[#allocation10 + $0xc8] sm:$0x3]  ;;  %14398 = vrcp.f32 %v10190_v57  ;;  %v11307_v46 = vadd.f32 %v17508_v45, %v17283_v34  ;;  %v14389_v21 = vpop.eup %14388 }
 0x75e   : > { %v12000_v9 = vld [vmem:[#allocation10 + $0xc2] sm:$0x3]  ;;  %v12650_v62 = vrot.slane %v12636_v10, %v15373_v33  ;;  %v12653_v16 = vcombine.low %v12021_v7, %v12022_v12  ;;  %v12001_v36 = vld [vmem:[#allocation10 + $0xc4] sm:$0x3]  ;;  %14400 = vrcp.f32 %v10189_v48  ;;  %v11306_v49 = vadd.f32 %v11275_v24, %v17289_v35  ;;  %v17553_v15 = vld [vmem:[#allocation11] ss:$0 sm:$0xff] }
 0x75f   : > { %v12660_v31 = vrot.slane %v12652_v47, %v15373_v33  ;;  %v12004_v39 = vld [vmem:[#allocation10 + $0xca] sm:$0x3]  ;;  %v12567_v58 = vcombine.low %v11999_v63, %v12000_v9  ;;  %12752 = vst.msk [vmem:[%s17385_s17 + $0x88] sm:$0xff] %vm475_vm0, %v12464_v60  ;;  %v12005_v25 = vld [vmem:[#allocation10 + $0xcc] sm:$0x3]  ;;  %v17548_v18 = vadd.f32 %v14238_v28, %v11161_v43  ;;  %v10264_v19 = vcombine.high %v14387_v6, %v14387_v6 }
 0x760   : > { %v12002_v32 = vld [vmem:[#allocation10 + $0xc6] sm:$0x3]  ;;  %v12584_v5 = vcombine.low %v12003_v54, %v12004_v39  ;;  %v12651_v30 = vcombine.low %v12643_v29, %v12650_v62  ;;  %v12667_v44 = vrot.slane %v12653_v16, %v15373_v33  ;;  %v10271_v56 = vrot.slane %v14387_v6, %v16484_v37 }
 0x761   : > { %v12006_v40 = vld [vmem:[#allocation10 + $0xce] sm:$0x3]  ;;  %v12568_v26 = vcombine.low %v12001_v36, %v12002_v32  ;;  %v12575_v53 = vrot.slane %v12567_v58, %v15373_v33  ;;  %v17556_v20 = vadd.f32 %v17553_v15, %v11305_v0  ;;  %v17559_v34 = vadd.f32 %v17553_v15, %v11304_v2 }
 0x762   : > { %v12585_v4 = vcombine.low %v12005_v25, %v12006_v40  ;;  %v12592_v50 = vrot.slane %v12584_v5, %v15373_v33  ;;  %v12668_v8 = vcombine.low %v12660_v31, %v12667_v44  ;;  %12763 = vst.msk [vmem:[%s17385_s17 + $0xe0] sm:$0xff] %vm475_vm0, %v12651_v30  ;;  %v17562_v35 = vadd.f32 %v17553_v15, %v11307_v46 }
 0x763   : > { %v12582_v41 = vrot.slane %v12568_v26, %v15373_v33  ;;  %v17565_v45 = vadd.f32 %v17553_v15, %v11306_v49  ;;  %v10278_v42 = vrot.slane %v10264_v19, %v16484_v37  ;;  %v10279_v57 = vcombine.high %v10271_v56, %v10271_v56  ;;  %v14391_v11 = vpop.eup %14390 }
 0x764   : > { %v12599_v61 = vrot.slane %v12585_v4, %v15373_v33  ;;  %12764 = vst.msk [vmem:[%s17385_s17 + $0xe8] sm:$0xff] %vm475_vm0, %v12668_v8  ;;  %v10287_v48 = vrot.slane %v10271_v56, %v16484_v37  ;;  %v10215_v51 = vcombine.high %v14389_v21, %v14389_v21  ;;  %v10222_v23 = vrot.slane %v14389_v21, %v16484_v37  ;;  %v14393_v43 = vpop.eup %14392 }
 0x765   : > { %v12583_v27 = vcombine.low %v12575_v53, %v12582_v41  ;;  %v11328_v38 = vsub.f32 0.0, %v17556_v20  ;;  %v11327_v17 = vsub.f32 0.0, %v17559_v34  ;;  %v11330_v59 = vsub.f32 0.0, %v17562_v35 }
 0x766   : > { %v12600_v22 = vcombine.low %v12592_v50, %v12599_v61  ;;  %v10280_v7 = vcombine.high %v10278_v42, %v10278_v42  ;;  %v10294_v10 = vrot.slane %v10278_v42, %v16484_v37  ;;  %v10301_v29 = vrot.slane %v10279_v57, %v16484_v37  ;;  %10680 = vst.msk [vmem:[#allocation10 + $0x30] sm:$0x1] %vm8927_vm2, %v10287_v48 }
 0x767   : > { %12759 = vst.msk [vmem:[%s17385_s17 + $0xc0] sm:$0xff] %vm475_vm0, %v12583_v27  ;;  %v10309_v47 = vcombine.high %v10287_v48, %v10287_v48  ;;  %v10229_v60 = vrot.slane %v10215_v51, %v16484_v37  ;;  %v10230_v12 = vcombine.high %v10222_v23, %v10222_v23  ;;  %v10238_v63 = vrot.slane %v10222_v23, %v16484_v37 }
 0x768   : > { %12760 = vst.msk [vmem:[%s17385_s17 + $0xc8] sm:$0xff] %vm475_vm0, %v12600_v22  ;;  %v17580_v24 = vpop.eup %14394  ;;  %v10362_v9 = vcombine.high %v14391_v11, %v14391_v11  ;;  %v10308_v62 = vrot.slane %v10280_v7, %v16484_v37  ;;  %v10310_v16 = vcombine.high %v10294_v10, %v10294_v10  ;;  %v10311_v31 = vcombine.high %v10301_v29, %v10301_v29 }
 0x769   : > { %v17584_v1 = vpop.eup %14396  ;;  %10681 = vst.msk [vmem:[#allocation10 + $0x32] sm:$0x1] %vm8927_vm2, %v10301_v29  ;;  %10682 = vst.msk [vmem:[#allocation10 + $0x34] sm:$0x1] %vm8927_vm2, %v10309_v47  ;;  %v10369_v54 = vrot.slane %v14391_v11, %v16484_v37  ;;  %v10231_v39 = vcombine.high %v10229_v60, %v10229_v60  ;;  %v10245_v58 = vrot.slane %v10229_v60, %v16484_v37  ;;  %v11341_v20 = vmul.f32 1.442695, %v11330_v59 }
 0x76a   : > { %10684 = vst.msk [vmem:[#allocation10 + $0x38] sm:$0x1] %vm8927_vm2, %v10294_v10  ;;  %v10252_v3 = vrot.slane %v10230_v12, %v16484_v37  ;;  %v10260_v36 = vcombine.high %v10238_v63, %v10238_v63  ;;  %10672 = vst.msk [vmem:[#allocation10 + $0x10] sm:$0x1] %vm8927_vm2, %v10238_v63  ;;  %v17594_v32 = vpop.eup %14398  ;;  %v10312_v5 = vcombine.high %v10308_v62, %v10308_v62 }
 0x76b   : > { %10683 = vst.msk [vmem:[#allocation10 + $0x36] sm:$0x1] %vm8927_vm2, %v10311_v31  ;;  %10685 = vst.msk [vmem:[#allocation10 + $0x3a] sm:$0x1] %vm8927_vm2, %v10308_v62  ;;  %v10376_v55 = vrot.slane %v10362_v9, %v16484_v37  ;;  %v10377_v30 = vcombine.high %v10369_v54, %v10369_v54  ;;  %v10385_v44 = vrot.slane %v10369_v54, %v16484_v37  ;;  %v17605_v28 = vpop.eup %14400 }
 0x76c   : > { %10686 = vst.msk [vmem:[#allocation10 + $0x3c] sm:$0x1] %vm8927_vm2, %v10310_v16  ;;  %v10259_v25 = vrot.slane %v10231_v39, %v16484_v37  ;;  %v10261_v40 = vcombine.high %v10245_v58, %v10245_v58  ;;  %v10262_v26 = vcombine.high %v10252_v3, %v10252_v3  ;;  %10673 = vst.msk [vmem:[#allocation10 + $0x12] sm:$0x1] %vm8927_vm2, %v10252_v3 }
 0x76d   : > { %10674 = vst.msk [vmem:[#allocation10 + $0x14] sm:$0x1] %vm8927_vm2, %v10260_v36  ;;  %10676 = vst.msk [vmem:[#allocation10 + $0x18] sm:$0x1] %vm8927_vm2, %v10245_v58  ;;  %v10313_v53 = vcombine.high %v14393_v43, %v14393_v43  ;;  %v10378_v4 = vcombine.high %v10376_v55, %v10376_v55  ;;  %v10392_v50 = vrot.slane %v10376_v55, %v16484_v37 }
 0x76e   : > { %10687 = vst.msk [vmem:[#allocation10 + $0x3e] sm:$0x1] %vm8927_vm2, %v10312_v5  ;;  %v10399_v8 = vrot.slane %v10377_v30, %v16484_v37  ;;  %v10407_v41 = vcombine.high %v10385_v44, %v10385_v44  ;;  %10696 = vst.msk [vmem:[#allocation10 + $0x70] sm:$0x1] %vm8927_vm2, %v10385_v44  ;;  %v10263_v0 = vcombine.high %v10259_v25, %v10259_v25 }
 0x76f   : > { %10675 = vst.msk [vmem:[#allocation10 + $0x16] sm:$0x1] %vm8927_vm2, %v10262_v26  ;;  %10677 = vst.msk [vmem:[#allocation10 + $0x1a] sm:$0x1] %vm8927_vm2, %v10259_v25  ;;  %v10320_v2 = vrot.slane %v14393_v43, %v16484_v37  ;;  %v10327_v6 = vrot.slane %v10313_v53, %v16484_v37  ;;  %v10460_v61 = vcombine.high %v17580_v24, %v17580_v24  ;;  %v17668_v25 = vpop.f32.mrf.mxu0 }
 0x770   : > { %10678 = vst.msk [vmem:[#allocation10 + $0x1c] sm:$0x1] %vm8927_vm2, %v10261_v40  ;;  %v10406_v46 = vrot.slane %v10378_v4, %v16484_v37  ;;  %v10408_v49 = vcombine.high %v10392_v50, %v10392_v50  ;;  %v10409_v27 = vcombine.high %v10399_v8, %v10399_v8  ;;  %10697 = vst.msk [vmem:[#allocation10 + $0x72] sm:$0x1] %vm8927_vm2, %v10399_v8 }
 0x771   : > { %10698 = vst.msk [vmem:[#allocation10 + $0x74] sm:$0x1] %vm8927_vm2, %v10407_v41  ;;  %10700 = vst.msk [vmem:[#allocation10 + $0x78] sm:$0x1] %vm8927_vm2, %v10392_v50  ;;  %v10467_v19 = vrot.slane %v17580_v24, %v16484_v37  ;;  %v10328_v56 = vcombine.high %v10320_v2, %v10320_v2  ;;  %v10329_v21 = vcombine.high %v10327_v6, %v10327_v6 }
 0x772   : > { %10679 = vst.msk [vmem:[#allocation10 + $0x1e] sm:$0x1] %vm8927_vm2, %v10263_v0  ;;  %v10336_v22 = vrot.slane %v10320_v2, %v16484_v37  ;;  %v10343_v42 = vrot.slane %v10327_v6, %v16484_v37  ;;  %v10410_v57 = vcombine.high %v10406_v46, %v10406_v46  ;;  %10699 = vst.msk [vmem:[#allocation10 + $0x76] sm:$0x1] %vm8927_vm2, %v10409_v27 }
 0x773   : > { %10701 = vst.msk [vmem:[#allocation10 + $0x7a] sm:$0x1] %vm8927_vm2, %v10406_v46  ;;  %10702 = vst.msk [vmem:[#allocation10 + $0x7c] sm:$0x1] %vm8927_vm2, %v10408_v49  ;;  %v10474_v48 = vrot.slane %v10460_v61, %v16484_v37  ;;  %v10475_v51 = vcombine.high %v10467_v19, %v10467_v19  ;;  %v10483_v11 = vrot.slane %v10467_v19, %v16484_v37  ;;  %v14241_v19 = vpop.f32.mrf.mxu0 }
 0x774   : > { %v10350_v23 = vrot.slane %v10328_v56, %v16484_v37  ;;  %v10357_v43 = vrot.slane %v10329_v21, %v16484_v37  ;;  %v10358_v7 = vcombine.high %v10336_v22, %v10336_v22  ;;  %v10359_v10 = vcombine.high %v10343_v42, %v10343_v42  ;;  %10688 = vst.msk [vmem:[#allocation10 + $0x50] sm:$0x1] %vm8927_vm2, %v10336_v22 }
 0x775   : > { %10692 = vst.msk [vmem:[#allocation10 + $0x58] sm:$0x1] %vm8927_vm2, %v10343_v42  ;;  %10703 = vst.msk [vmem:[#allocation10 + $0x7e] sm:$0x1] %vm8927_vm2, %v10410_v57  ;;  %v10476_v29 = vcombine.high %v10474_v48, %v10474_v48  ;;  %v10490_v47 = vrot.slane %v10474_v48, %v16484_v37  ;;  %v10497_v24 = vrot.slane %v10475_v51, %v16484_v37 }
 0x776   : > { %v10505_v60 = vcombine.high %v10483_v11, %v10483_v11  ;;  %10712 = vst.msk [vmem:[#allocation10 + $0xb0] sm:$0x1] %vm8927_vm2, %v10483_v11  ;;  %v10360_v12 = vcombine.high %v10350_v23, %v10350_v23  ;;  %v10361_v63 = vcombine.high %v10357_v43, %v10357_v43  ;;  %10689 = vst.msk [vmem:[#allocation10 + $0x52] sm:$0x1] %vm8927_vm2, %v10350_v23  ;;  %v11337_v11 = vmul.f32 1.442695, %v11328_v38 }
 0x777   : > { %10690 = vst.msk [vmem:[#allocation10 + $0x54] sm:$0x1] %vm8927_vm2, %v10358_v7  ;;  %10693 = vst.msk [vmem:[#allocation10 + $0x5a] sm:$0x1] %vm8927_vm2, %v10357_v43  ;;  %v10411_v9 = vcombine.high %v17584_v1, %v17584_v1  ;;  %v10418_v62 = vrot.slane %v17584_v1, %v16484_v37  ;;  %v10504_v16 = vrot.slane %v10476_v29, %v16484_v37  ;;  %v11329_v38 = vsub.f32 0.0, %v17565_v45 }
 0x778   : > { %10694 = vst.msk [vmem:[#allocation10 + $0x5c] sm:$0x1] %vm8927_vm2, %v10359_v10  ;;  %v10506_v31 = vcombine.high %v10490_v47, %v10490_v47  ;;  %v10507_v54 = vcombine.high %v10497_v24, %v10497_v24  ;;  %10713 = vst.msk [vmem:[#allocation10 + $0xb2] sm:$0x1] %vm8927_vm2, %v10497_v24  ;;  %v10558_v39 = vcombine.high %v17594_v32, %v17594_v32  ;;  %v11335_v10 = vmul.f32 1.442695, %v11327_v17 }
 0x779   : > { %10714 = vst.msk [vmem:[#allocation10 + $0xb4] sm:$0x1] %vm8927_vm2, %v10505_v60  ;;  %10716 = vst.msk [vmem:[#allocation10 + $0xb8] sm:$0x1] %vm8927_vm2, %v10490_v47  ;;  %v10425_v58 = vrot.slane %v10411_v9, %v16484_v37  ;;  %v10426_v1 = vcombine.high %v10418_v62, %v10418_v62  ;;  %v10434_v3 = vrot.slane %v10418_v62, %v16484_v37  ;;  %14402 = vpow2.f32 %v11337_v11  ;;  %v11295_v47 = vpop.f32.mrf.mxu0 }
 0x77a   : > { %10691 = vst.msk [vmem:[#allocation10 + $0x56] sm:$0x1] %vm8927_vm2, %v10360_v12  ;;  %10695 = vst.msk [vmem:[#allocation10 + $0x5e] sm:$0x1] %vm8927_vm2, %v10361_v63  ;;  %v10565_v36 = vrot.slane %v17594_v32, %v16484_v37  ;;  %v10508_v5 = vcombine.high %v10504_v16, %v10504_v16  ;;  %v10572_v55 = vrot.slane %v10558_v39, %v16484_v37  ;;  %14404 = vpow2.f32 %v11335_v10 }
 0x77b   : > { %10715 = vst.msk [vmem:[#allocation10 + $0xb6] sm:$0x1] %vm8927_vm2, %v10507_v54  ;;  %10717 = vst.msk [vmem:[#allocation10 + $0xba] sm:$0x1] %vm8927_vm2, %v10504_v16  ;;  %v10509_v30 = vcombine.high %v17605_v28, %v17605_v28  ;;  %v10516_v44 = vrot.slane %v17605_v28, %v16484_v37  ;;  %v10427_v40 = vcombine.high %v10425_v58, %v10425_v58  ;;  %14406 = vpow2.f32 %v11341_v20 }
 0x77c   : > { %10718 = vst.msk [vmem:[#allocation10 + $0xbc] sm:$0x1] %vm8927_vm2, %v10506_v31  ;;  %v10441_v32 = vrot.slane %v10425_v58, %v16484_v37  ;;  %v10448_v26 = vrot.slane %v10426_v1, %v16484_v37  ;;  %v10456_v53 = vcombine.high %v10434_v3, %v10434_v3  ;;  %10704 = vst.msk [vmem:[#allocation10 + $0x90] sm:$0x1] %vm8927_vm2, %v10434_v3  ;;  %v11339_v35 = vmul.f32 1.442695, %v11329_v38 }
 0x77d   : > { %10719 = vst.msk [vmem:[#allocation10 + $0xbe] sm:$0x1] %vm8927_vm2, %v10508_v5  ;;  %v10573_v4 = vcombine.high %v10565_v36, %v10565_v36  ;;  %v10574_v50 = vcombine.high %v10572_v55, %v10572_v55  ;;  %v10581_v8 = vrot.slane %v10565_v36, %v16484_v37  ;;  %v10588_v41 = vrot.slane %v10572_v55, %v16484_v37 }
 0x77e   : > { %v10455_v28 = vrot.slane %v10427_v40, %v16484_v37  ;;  %v10457_v0 = vcombine.high %v10441_v32, %v10441_v32  ;;  %v10458_v2 = vcombine.high %v10448_v26, %v10448_v26  ;;  %10705 = vst.msk [vmem:[#allocation10 + $0x92] sm:$0x1] %vm8927_vm2, %v10448_v26  ;;  %10706 = vst.msk [vmem:[#allocation10 + $0x94] sm:$0x1] %vm8927_vm2, %v10456_v53  ;;  %14408 = vpow2.f32 %v11339_v35 }
 0x77f   : > { %10708 = vst.msk [vmem:[#allocation10 + $0x98] sm:$0x1] %vm8927_vm2, %v10441_v32  ;;  %v10523_v6 = vrot.slane %v10509_v30, %v16484_v37  ;;  %v10595_v61 = vrot.slane %v10573_v4, %v16484_v37  ;;  %v10602_v46 = vrot.slane %v10574_v50, %v16484_v37  ;;  %v10603_v49 = vcombine.high %v10581_v8, %v10581_v8 }
 0x780   : > { %v10604_v27 = vcombine.high %v10588_v41, %v10588_v41  ;;  %10728 = vst.msk [vmem:[#allocation10 + $0xf0] sm:$0x1] %vm8927_vm2, %v10581_v8  ;;  %10732 = vst.msk [vmem:[#allocation10 + $0xf8] sm:$0x1] %vm8927_vm2, %v10588_v41  ;;  %v10459_v56 = vcombine.high %v10455_v28, %v10455_v28  ;;  %v10524_v21 = vcombine.high %v10516_v44, %v10516_v44 }
 0x781   : > { %10707 = vst.msk [vmem:[#allocation10 + $0x96] sm:$0x1] %vm8927_vm2, %v10458_v2  ;;  %10709 = vst.msk [vmem:[#allocation10 + $0x9a] sm:$0x1] %vm8927_vm2, %v10455_v28  ;;  %v10525_v22 = vcombine.high %v10523_v6, %v10523_v6  ;;  %v10532_v42 = vrot.slane %v10516_v44, %v16484_v37  ;;  %v10605_v57 = vcombine.high %v10595_v61, %v10595_v61 }
 0x782   : > { %10710 = vst.msk [vmem:[#allocation10 + $0x9c] sm:$0x1] %vm8927_vm2, %v10457_v0  ;;  %v10606_v48 = vcombine.high %v10602_v46, %v10602_v46  ;;  %10729 = vst.msk [vmem:[#allocation10 + $0xf2] sm:$0x1] %vm8927_vm2, %v10595_v61  ;;  %v10539_v51 = vrot.slane %v10523_v6, %v16484_v37  ;;  %v10546_v23 = vrot.slane %v10524_v21, %v16484_v37 }
 0x783   : > { %10730 = vst.msk [vmem:[#allocation10 + $0xf4] sm:$0x1] %vm8927_vm2, %v10603_v49  ;;  %10733 = vst.msk [vmem:[#allocation10 + $0xfa] sm:$0x1] %vm8927_vm2, %v10602_v46  ;;  %v10553_v43 = vrot.slane %v10525_v22, %v16484_v37  ;;  %v10554_v7 = vcombine.high %v10532_v42, %v10532_v42  ;;  %v11324_v34 = vadd.f32 %v17553_v15, %v17548_v18 }
 0x784   : > { %10734 = vst.msk [vmem:[#allocation10 + $0xfc] sm:$0x1] %vm8927_vm2, %v10604_v27  ;;  %10711 = vst.msk [vmem:[#allocation10 + $0x9e] sm:$0x1] %vm8927_vm2, %v10459_v56  ;;  %v10555_v29 = vcombine.high %v10539_v51, %v10539_v51  ;;  %v10556_v24 = vcombine.high %v10546_v23, %v10546_v23  ;;  %v11308_v45 = vadd.f32 %v17668_v25, %v17520_v13 }
 0x785   : > { %10720 = vst.msk [vmem:[#allocation10 + $0xd0] sm:$0x1] %vm8927_vm2, %v10532_v42  ;;  %10731 = vst.msk [vmem:[#allocation10 + $0xf6] sm:$0x1] %vm8927_vm2, %v10605_v57  ;;  %v10557_v60 = vcombine.high %v10553_v43, %v10553_v43  ;;  %v11311_v17 = vadd.f32 %v14241_v19, %v17530_v14  ;;  %v11332_v59 = vsub.f32 0.0, %v11324_v34  ;;  %v11310_v12 = vadd.f32 %v11295_v47, %v17535_v52 }
 0x786   : > { %10735 = vst.msk [vmem:[#allocation10 + $0xfe] sm:$0x1] %vm8927_vm2, %v10606_v48  ;;  %10724 = vst.msk [vmem:[#allocation10 + $0xd8] sm:$0x1] %vm8927_vm2, %v10539_v51  ;;  %v11323_v63 = vadd.f32 %v17553_v15, %v11308_v45  ;;  %v14403_v58 = vpop.eup %14402 }
 0x787   : > { %10721 = vst.msk [vmem:[#allocation10 + $0xd2] sm:$0x1] %vm8927_vm2, %v10546_v23  ;;  %10722 = vst.msk [vmem:[#allocation10 + $0xd4] sm:$0x1] %vm8927_vm2, %v10554_v7  ;;  %v11326_v18 = vadd.f32 %v17553_v15, %v11311_v17  ;;  %v11345_v9 = vmul.f32 1.442695, %v11332_v59  ;;  %v11325_v62 = vadd.f32 %v17553_v15, %v11310_v12  ;;  %v14405_v52 = vpop.eup %14404 }
 0x788   : > { %10725 = vst.msk [vmem:[#allocation10 + $0xda] sm:$0x1] %vm8927_vm2, %v10553_v43  ;;  %10726 = vst.msk [vmem:[#allocation10 + $0xdc] sm:$0x1] %vm8927_vm2, %v10555_v29  ;;  %v11331_v16 = vsub.f32 0.0, %v11323_v63  ;;  %v11352_v1 = vadd.f32 1.0, %v14403_v58  ;;  %v14407_v3 = vpop.eup %14406 }
 0x789   : > { %10723 = vst.msk [vmem:[#allocation10 + $0xd6] sm:$0x1] %vm8927_vm2, %v10556_v24  ;;  %10727 = vst.msk [vmem:[#allocation10 + $0xde] sm:$0x1] %vm8927_vm2, %v10557_v60  ;;  %v11334_v31 = vsub.f32 0.0, %v11326_v18  ;;  %14410 = vpow2.f32 %v11345_v9  ;;  %v11333_v13 = vsub.f32 0.0, %v11325_v62 }
 0x78a   : > { %v11343_v14 = vmul.f32 1.442695, %v11331_v16  ;;  %v11351_v36 = vadd.f32 1.0, %v14405_v52  ;;  %v11354_v5 = vadd.f32 1.0, %v14407_v3 }
 0x78b   : > { %v11349_v54 = vmul.f32 1.442695, %v11334_v31  ;;  %v11347_v39 = vmul.f32 1.442695, %v11333_v13  ;;  %v14409_v55 = vpop.eup %14408 }
 0x78c   : > { %14412 = vpow2.f32 %v11343_v14  ;;  %v11353_v15 = vadd.f32 1.0, %v14409_v55 }
 0x78d   : > { %14414 = vpow2.f32 %v11349_v54 }
 0x78e   : > { %14416 = vpow2.f32 %v11347_v39 }
 0x78f   : > { %14418 = vrcp.f32 %v11352_v1 }
 0x790   : > { %14420 = vrcp.f32 %v11351_v36 }
 0x791   : > { %14422 = vrcp.f32 %v11354_v5 }
 0x792   : > { %14424 = vrcp.f32 %v11353_v15 }
 0x796   : > { %v14411_v30 = vpop.eup %14410 }
 0x797   : > { %v11356_v44 = vadd.f32 1.0, %v14411_v30 }
 0x799   : > { %v14413_v25 = vpop.eup %14412  ;;  %14426 = vrcp.f32 %v11356_v44 }
 0x79a   : > { %v14415_v40 = vpop.eup %14414  ;;  %v11355_v32 = vadd.f32 1.0, %v14413_v25 }
 0x79b   : > { %v14417_v26 = vpop.eup %14416  ;;  %v11358_v53 = vadd.f32 1.0, %v14415_v40 }
 0x79c   : > { %14428 = vrcp.f32 %v11355_v32  ;;  %v11357_v4 = vadd.f32 1.0, %v14417_v26  ;;  %v14419_v50 = vpop.eup %14418 }
 0x79d   : > { %v14421_v8 = vpop.eup %14420  ;;  %v11432_v41 = vcombine.high %v14419_v50, %v14419_v50  ;;  %v11439_v28 = vrot.slane %v14419_v50, %v16484_v37  ;;  %14430 = vrcp.f32 %v11358_v53 }
 0x79e   : > { %v14423_v0 = vpop.eup %14422  ;;  %v11383_v2 = vcombine.high %v14421_v8, %v14421_v8  ;;  %v11390_v6 = vrot.slane %v14421_v8, %v16484_v37  ;;  %14432 = vrcp.f32 %v11357_v4 }
 0x79f   : > { %v11446_v61 = vrot.slane %v11432_v41, %v16484_v37  ;;  %v11447_v46 = vcombine.high %v11439_v28, %v11439_v28  ;;  %v11455_v49 = vrot.slane %v11439_v28, %v16484_v37  ;;  %v11530_v27 = vcombine.high %v14423_v0, %v14423_v0  ;;  %v14425_v10 = vpop.eup %14424 }
 0x7a0   : > { %v11397_v19 = vrot.slane %v11383_v2, %v16484_v37  ;;  %v11398_v56 = vcombine.high %v11390_v6, %v11390_v6  ;;  %v11406_v21 = vrot.slane %v11390_v6, %v16484_v37  ;;  %v11537_v22 = vrot.slane %v14423_v0, %v16484_v37 }
 0x7a1   : > { %v11448_v42 = vcombine.high %v11446_v61, %v11446_v61  ;;  %v11462_v57 = vrot.slane %v11446_v61, %v16484_v37  ;;  %v11469_v48 = vrot.slane %v11447_v46, %v16484_v37  ;;  %v11477_v51 = vcombine.high %v11455_v49, %v11455_v49  ;;  %11847 = vst.msk [vmem:[#allocation10 + $0x31] sm:$0x1] %vm8927_vm2, %v11455_v49 }
 0x7a2   : > { %v11399_v11 = vcombine.high %v11397_v19, %v11397_v19  ;;  %v11413_v23 = vrot.slane %v11397_v19, %v16484_v37  ;;  %v11420_v43 = vrot.slane %v11398_v56, %v16484_v37  ;;  %v11428_v7 = vcombine.high %v11406_v21, %v11406_v21  ;;  %11839 = vst.msk [vmem:[#allocation10 + $0x11] sm:$0x1] %vm8927_vm2, %v11406_v21 }
 0x7a3   : > { %v11476_v29 = vrot.slane %v11448_v42, %v16484_v37  ;;  %v11478_v20 = vcombine.high %v11462_v57, %v11462_v57  ;;  %v11479_v38 = vcombine.high %v11469_v48, %v11469_v48  ;;  %11848 = vst.msk [vmem:[#allocation10 + $0x33] sm:$0x1] %vm8927_vm2, %v11469_v48  ;;  %11849 = vst.msk [vmem:[#allocation10 + $0x35] sm:$0x1] %vm8927_vm2, %v11477_v51 }
 0x7a4   : > { %11851 = vst.msk [vmem:[#allocation10 + $0x39] sm:$0x1] %vm8927_vm2, %v11462_v57  ;;  %v11544_v47 = vrot.slane %v11530_v27, %v16484_v37  ;;  %v11427_v60 = vrot.slane %v11399_v11, %v16484_v37  ;;  %v11429_v34 = vcombine.high %v11413_v23, %v11413_v23  ;;  %v11430_v35 = vcombine.high %v11420_v43, %v11420_v43 }
 0x7a5   : > { %11840 = vst.msk [vmem:[#allocation10 + $0x13] sm:$0x1] %vm8927_vm2, %v11420_v43  ;;  %11841 = vst.msk [vmem:[#allocation10 + $0x15] sm:$0x1] %vm8927_vm2, %v11428_v7  ;;  %v11545_v45 = vcombine.high %v11537_v22, %v11537_v22  ;;  %v11480_v17 = vcombine.high %v11476_v29, %v11476_v29  ;;  %v11553_v12 = vrot.slane %v11537_v22, %v16484_v37 }
 0x7a6   : > { %v14427_v24 = vpop.eup %14426  ;;  %11843 = vst.msk [vmem:[#allocation10 + $0x19] sm:$0x1] %vm8927_vm2, %v11413_v23  ;;  %11850 = vst.msk [vmem:[#allocation10 + $0x37] sm:$0x1] %vm8927_vm2, %v11479_v38  ;;  %v11546_v59 = vcombine.high %v11544_v47, %v11544_v47  ;;  %v11560_v63 = vrot.slane %v11544_v47, %v16484_v37  ;;  %v11431_v9 = vcombine.high %v11427_v60, %v11427_v60 }
 0x7a7   : > { %11852 = vst.msk [vmem:[#allocation10 + $0x3b] sm:$0x1] %vm8927_vm2, %v11476_v29  ;;  %11853 = vst.msk [vmem:[#allocation10 + $0x3d] sm:$0x1] %vm8927_vm2, %v11478_v20  ;;  %v11567_v62 = vrot.slane %v11545_v45, %v16484_v37  ;;  %v11481_v16 = vcombine.high %v14425_v10, %v14425_v10  ;;  %v11488_v31 = vrot.slane %v14425_v10, %v16484_v37 }
 0x7a8   : > { %11842 = vst.msk [vmem:[#allocation10 + $0x17] sm:$0x1] %vm8927_vm2, %v11430_v35  ;;  %11844 = vst.msk [vmem:[#allocation10 + $0x1b] sm:$0x1] %vm8927_vm2, %v11427_v60  ;;  %v11574_v13 = vrot.slane %v11546_v59, %v16484_v37  ;;  %v11575_v14 = vcombine.high %v11553_v12, %v11553_v12  ;;  %v11576_v54 = vcombine.high %v11560_v63, %v11560_v63  ;;  %v11927_v44 = vld [vmem:[#allocation10 + $0x30] sm:$0x3] }
 0x7a9   : > { %v17750_v18 = vpop.eup %14428  ;;  %11845 = vst.msk [vmem:[#allocation10 + $0x1d] sm:$0x1] %vm8927_vm2, %v11429_v34  ;;  %11854 = vst.msk [vmem:[#allocation10 + $0x3f] sm:$0x1] %vm8927_vm2, %v11480_v17  ;;  %v11628_v39 = vcombine.high %v14427_v24, %v14427_v24  ;;  %v11577_v58 = vcombine.high %v11567_v62, %v11567_v62  ;;  %v11495_v52 = vrot.slane %v11481_v16, %v16484_v37  ;;  %v11911_v40 = vld [vmem:[#allocation10 + $0x10] sm:$0x3] }
 0x7aa   : > { %11863 = vst.msk [vmem:[#allocation10 + $0x71] sm:$0x1] %vm8927_vm2, %v11553_v12  ;;  %11867 = vst.msk [vmem:[#allocation10 + $0x79] sm:$0x1] %vm8927_vm2, %v11560_v63  ;;  %v11496_v1 = vcombine.high %v11488_v31, %v11488_v31  ;;  %v11504_v3 = vrot.slane %v11488_v31, %v16484_v37  ;;  %v11578_v36 = vcombine.high %v11574_v13, %v11574_v13  ;;  %v17774_v30 = vpop.eup %14430  ;;  %v11928_v25 = vld [vmem:[#allocation10 + $0x32] sm:$0x3] }
 0x7ab   : > { %11846 = vst.msk [vmem:[#allocation10 + $0x1f] sm:$0x1] %vm8927_vm2, %v11431_v9  ;;  %11864 = vst.msk [vmem:[#allocation10 + $0x73] sm:$0x1] %vm8927_vm2, %v11567_v62  ;;  %v11635_v5 = vrot.slane %v14427_v24, %v16484_v37  ;;  %v17770_v55 = vrot.slane %v11628_v39, %v16484_v37  ;;  %v11579_v15 = vcombine.high %v17750_v18, %v17750_v18  ;;  %v17780_v50 = vpop.eup %14432  ;;  %v11929_v8 = vld [vmem:[#allocation10 + $0x34] sm:$0x3] }
 0x7ac   : > { %11865 = vst.msk [vmem:[#allocation10 + $0x75] sm:$0x1] %vm8927_vm2, %v11575_v14  ;;  %11868 = vst.msk [vmem:[#allocation10 + $0x7b] sm:$0x1] %vm8927_vm2, %v11574_v13  ;;  %v11497_v32 = vcombine.high %v11495_v52, %v11495_v52  ;;  %v11511_v26 = vrot.slane %v11495_v52, %v16484_v37  ;;  %v11518_v53 = vrot.slane %v11496_v1, %v16484_v37  ;;  %v11931_v41 = vld [vmem:[#allocation10 + $0x38] sm:$0x3] }
 0x7ad   : > { %11869 = vst.msk [vmem:[#allocation10 + $0x7d] sm:$0x1] %vm8927_vm2, %v11576_v54  ;;  %11866 = vst.msk [vmem:[#allocation10 + $0x77] sm:$0x1] %vm8927_vm2, %v11577_v58  ;;  %v11526_v4 = vcombine.high %v11504_v3, %v11504_v3  ;;  %v12261_v28 = vcombine.low %v11927_v44, %v11928_v25  ;;  %v11912_v0 = vld [vmem:[#allocation10 + $0x12] sm:$0x3]  ;;  %v11643_v2 = vcombine.high %v11635_v5, %v11635_v5 }
 0x7ae   : > { %11855 = vst.msk [vmem:[#allocation10 + $0x51] sm:$0x1] %vm8927_vm2, %v11504_v3  ;;  %11870 = vst.msk [vmem:[#allocation10 + $0x7f] sm:$0x1] %vm8927_vm2, %v11578_v36  ;;  %v11644_v6 = vcombine.high %v17770_v55, %v17770_v55  ;;  %v17786_v61 = vrot.slane %v11635_v5, %v16484_v37  ;;  %v11930_v46 = vld [vmem:[#allocation10 + $0x36] sm:$0x3]  ;;  %v12193_v19 = vcombine.low %v11911_v40, %v11912_v0 }
 0x7af   : > { %v11932_v49 = vld [vmem:[#allocation10 + $0x3a] sm:$0x3]  ;;  %v11913_v27 = vld [vmem:[#allocation10 + $0x14] sm:$0x3]  ;;  %v11525_v56 = vrot.slane %v11497_v32, %v16484_v37  ;;  %v11527_v21 = vcombine.high %v11511_v26, %v11511_v26  ;;  %v11528_v22 = vcombine.high %v11518_v53, %v11518_v53  ;;  %11856 = vst.msk [vmem:[#allocation10 + $0x53] sm:$0x1] %vm8927_vm2, %v11518_v53  ;;  %v12262_v42 = vcombine.low %v11929_v8, %v11930_v46 }
 0x7b0   : > { %11857 = vst.msk [vmem:[#allocation10 + $0x55] sm:$0x1] %vm8927_vm2, %v11526_v4  ;;  %11859 = vst.msk [vmem:[#allocation10 + $0x59] sm:$0x1] %vm8927_vm2, %v11511_v26  ;;  %v12269_v57 = vrot.slane %v12261_v28, %v15373_v33  ;;  %v12278_v48 = vcombine.low %v11931_v41, %v11932_v49  ;;  %v11914_v51 = vld [vmem:[#allocation10 + $0x16] sm:$0x3]  ;;  %v17795_v43 = vrot.slane %v17770_v55, %v16484_v37 }
 0x7b1   : > { %v11915_v11 = vld [vmem:[#allocation10 + $0x18] sm:$0x3]  ;;  %v11916_v23 = vld [vmem:[#allocation10 + $0x1a] sm:$0x3]  ;;  %11879 = vst.msk [vmem:[#allocation10 + $0xb1] sm:$0x1] %vm8927_vm2, %v17786_v61  ;;  %v12194_v20 = vcombine.low %v11913_v27, %v11914_v51  ;;  %v12201_v38 = vrot.slane %v12193_v19, %v15373_v33  ;;  %v11529_v24 = vcombine.high %v11525_v56, %v11525_v56  ;;  %v12276_v60 = vrot.slane %v12262_v42, %v15373_v33 }
 0x7b2   : > { %v11933_v7 = vld [vmem:[#allocation10 + $0x3c] sm:$0x3]  ;;  %v11934_v10 = vld [vmem:[#allocation10 + $0x3e] sm:$0x3]  ;;  %v12210_v47 = vcombine.low %v11915_v11, %v11916_v23  ;;  %11858 = vst.msk [vmem:[#allocation10 + $0x57] sm:$0x1] %vm8927_vm2, %v11528_v22  ;;  %v12286_v35 = vrot.slane %v12278_v48, %v15373_v33  ;;  %v11665_v12 = vrot.slane %v11643_v2, %v16484_v37  ;;  %v11672_v1 = vrot.slane %v11644_v6, %v16484_v37 }
 0x7b3   : > { %v11917_v29 = vld [vmem:[#allocation10 + $0x1c] sm:$0x3]  ;;  %11860 = vst.msk [vmem:[#allocation10 + $0x5b] sm:$0x1] %vm8927_vm2, %v11525_v56  ;;  %11861 = vst.msk [vmem:[#allocation10 + $0x5d] sm:$0x1] %vm8927_vm2, %v11527_v21  ;;  %v12279_v34 = vcombine.low %v11933_v7, %v11934_v10  ;;  %v12208_v63 = vrot.slane %v12194_v20, %v15373_v33  ;;  %v12277_v14 = vcombine.low %v12269_v57, %v12276_v60 }
 0x7b4   : > { %v11918_v45 = vld [vmem:[#allocation10 + $0x1e] sm:$0x3]  ;;  %v11959_v17 = vld [vmem:[#allocation10 + $0x70] sm:$0x3]  ;;  %v11960_v59 = vld [vmem:[#allocation10 + $0x72] sm:$0x3]  ;;  %v12218_v62 = vrot.slane %v12210_v47, %v15373_v33  ;;  %v11673_v8 = vcombine.high %v17786_v61, %v17786_v61  ;;  %v11674_v6 = vcombine.high %v17795_v43, %v17795_v43  ;;  %v11675_v19 = vcombine.high %v11665_v12, %v11665_v12 }
 0x7b5   : > { %11883 = vst.msk [vmem:[#allocation10 + $0xb9] sm:$0x1] %vm8927_vm2, %v17795_v43  ;;  %v12211_v9 = vcombine.low %v11917_v29, %v11918_v45  ;;  %v11963_v16 = vld [vmem:[#allocation10 + $0x78] sm:$0x3]  ;;  %v11964_v31 = vld [vmem:[#allocation10 + $0x7a] sm:$0x3]  ;;  %v12397_v13 = vcombine.low %v11959_v17, %v11960_v59  ;;  %v12293_v54 = vrot.slane %v12279_v34, %v15373_v33  ;;  %v12209_v3 = vcombine.low %v12201_v38, %v12208_v63 }
 0x7b6   : > { %11862 = vst.msk [vmem:[#allocation10 + $0x5f] sm:$0x1] %vm8927_vm2, %v11529_v24  ;;  %v11961_v39 = vld [vmem:[#allocation10 + $0x74] sm:$0x3]  ;;  %v11962_v58 = vld [vmem:[#allocation10 + $0x76] sm:$0x3]  ;;  %v12414_v52 = vcombine.low %v11963_v16, %v11964_v31  ;;  %v11676_v56 = vcombine.high %v11672_v1, %v11672_v1  ;;  %v11586_v21 = vrot.slane %v17750_v18, %v16484_v37  ;;  %v11593_v43 = vrot.slane %v11579_v15, %v16484_v37 }
 0x7b7   : > { %11880 = vst.msk [vmem:[#allocation10 + $0xb3] sm:$0x1] %vm8927_vm2, %v11665_v12  ;;  %v12225_v36 = vrot.slane %v12211_v9, %v15373_v33  ;;  %v11965_v5 = vld [vmem:[#allocation10 + $0x7c] sm:$0x3]  ;;  %v11966_v55 = vld [vmem:[#allocation10 + $0x7e] sm:$0x3]  ;;  %v12398_v44 = vcombine.low %v11961_v39, %v11962_v58  ;;  %v12405_v25 = vrot.slane %v12397_v13, %v15373_v33  ;;  %v12294_v40 = vcombine.low %v12286_v35, %v12293_v54 }
 0x7b8   : > { %12741 = vst.msk [vmem:[%s17385_s17 + $0x30] sm:$0xff] %vm475_vm0, %v12277_v14  ;;  %v12415_v32 = vcombine.low %v11965_v5, %v11966_v55  ;;  %v12422_v26 = vrot.slane %v12414_v52, %v15373_v33  ;;  %v11943_v53 = vld [vmem:[#allocation10 + $0x50] sm:$0x3]  ;;  %v11944_v4 = vld [vmem:[#allocation10 + $0x52] sm:$0x3]  ;;  %12737 = vst.msk [vmem:[%s17385_s17 + $0x10] sm:$0xff] %vm475_vm0, %v12209_v3  ;;  %v11594_v7 = vcombine.high %v11586_v21, %v11586_v21 }
 0x7b9   : > { %11884 = vst.msk [vmem:[#allocation10 + $0xbb] sm:$0x1] %vm8927_vm2, %v11672_v1  ;;  %v12226_v41 = vcombine.low %v12218_v62, %v12225_v36  ;;  %v12412_v28 = vrot.slane %v12398_v44, %v15373_v33  ;;  %v11945_v0 = vld [vmem:[#allocation10 + $0x54] sm:$0x3]  ;;  %v12329_v2 = vcombine.low %v11943_v53, %v11944_v4  ;;  %v11946_v49 = vld [vmem:[#allocation10 + $0x56] sm:$0x3]  ;;  %v11602_v10 = vrot.slane %v11586_v21, %v16484_v37 }
 0x7ba   : > { %12742 = vst.msk [vmem:[%s17385_s17 + $0x38] sm:$0xff] %vm475_vm0, %v12294_v40  ;;  %v12429_v46 = vrot.slane %v12415_v32, %v15373_v33  ;;  %v11947_v27 = vld [vmem:[#allocation10 + $0x58] sm:$0x3]  ;;  %v11948_v61 = vld [vmem:[#allocation10 + $0x5a] sm:$0x3]  ;;  %v12330_v42 = vcombine.low %v11945_v0, %v11946_v49  ;;  %v11726_v60 = vcombine.high %v17774_v30, %v17774_v30  ;;  %v11595_v18 = vcombine.high %v11593_v43, %v11593_v43 }
 0x7bb   : > { %11881 = vst.msk [vmem:[#allocation10 + $0xb5] sm:$0x1] %vm8927_vm2, %v11673_v8  ;;  %v12413_v22 = vcombine.low %v12405_v25, %v12412_v28  ;;  %v12337_v57 = vrot.slane %v12329_v2, %v15373_v33  ;;  %v12346_v48 = vcombine.low %v11947_v27, %v11948_v61  ;;  %11885 = vst.msk [vmem:[#allocation10 + $0xbd] sm:$0x1] %vm8927_vm2, %v11674_v6  ;;  %v11949_v11 = vld [vmem:[#allocation10 + $0x5c] sm:$0x3] }
 0x7bc   : > { %12738 = vst.msk [vmem:[%s17385_s17 + $0x18] sm:$0xff] %vm475_vm0, %v12226_v41  ;;  %v12430_v51 = vcombine.low %v12422_v26, %v12429_v46  ;;  %v12344_v29 = vrot.slane %v12330_v42, %v15373_v33  ;;  %v11991_v47 = vld [vmem:[#allocation10 + $0xb0] sm:$0x3]  ;;  %v11609_v15 = vrot.slane %v11593_v43, %v16484_v37  ;;  %v11616_v35 = vrot.slane %v11594_v7, %v16484_v37  ;;  %v11995_v59 = vld [vmem:[#allocation10 + $0xb8] sm:$0x3] }
 0x7bd   : > { %v11950_v23 = vld [vmem:[#allocation10 + $0x5e] sm:$0x3]  ;;  %11882 = vst.msk [vmem:[#allocation10 + $0xb7] sm:$0x1] %vm8927_vm2, %v11675_v19  ;;  %11886 = vst.msk [vmem:[#allocation10 + $0xbf] sm:$0x1] %vm8927_vm2, %v11676_v56  ;;  %v12354_v38 = vrot.slane %v12346_v48, %v15373_v33  ;;  %v11624_v63 = vcombine.high %v11602_v10, %v11602_v10  ;;  %v11733_v9 = vrot.slane %v17774_v30, %v16484_v37 }
 0x7be   : > { %12749 = vst.msk [vmem:[%s17385_s17 + $0x70] sm:$0xff] %vm475_vm0, %v12413_v22  ;;  %v12347_v20 = vcombine.low %v11949_v11, %v11950_v23  ;;  %v11992_v24 = vld [vmem:[#allocation10 + $0xb2] sm:$0x3]  ;;  %12750 = vst.msk [vmem:[%s17385_s17 + $0x78] sm:$0xff] %vm475_vm0, %v12430_v51  ;;  %v12345_v45 = vcombine.low %v12337_v57, %v12344_v29  ;;  %v11623_v31 = vrot.slane %v11595_v18, %v16484_v37 }
 0x7bf   : > { %v12533_v34 = vcombine.low %v11991_v47, %v11992_v24  ;;  %11871 = vst.msk [vmem:[#allocation10 + $0x91] sm:$0x1] %vm8927_vm2, %v11602_v10  ;;  %v11625_v13 = vcombine.high %v11609_v15, %v11609_v15  ;;  %11872 = vst.msk [vmem:[#allocation10 + $0x93] sm:$0x1] %vm8927_vm2, %v11616_v35  ;;  %v11626_v54 = vcombine.high %v11616_v35, %v11616_v35 }
 0x7c0   : > { %v12361_v17 = vrot.slane %v12347_v20, %v15373_v33  ;;  %v11996_v12 = vld [vmem:[#allocation10 + $0xba] sm:$0x3]  ;;  %11875 = vst.msk [vmem:[#allocation10 + $0x99] sm:$0x1] %vm8927_vm2, %v11609_v15  ;;  %11873 = vst.msk [vmem:[#allocation10 + $0x95] sm:$0x1] %vm8927_vm2, %v11624_v63  ;;  %v11740_v30 = vrot.slane %v11726_v60, %v16484_v37  ;;  %v11741_v39 = vcombine.high %v11733_v9, %v11733_v9 }
 0x7c1   : > { %v17859_v62 = vrot.slane %v12533_v34, %v15373_v33  ;;  %v12550_v16 = vcombine.low %v11995_v59, %v11996_v12  ;;  %12745 = vst.msk [vmem:[%s17385_s17 + $0x50] sm:$0xff] %vm475_vm0, %v12345_v45  ;;  %v11627_v1 = vcombine.high %v11623_v31, %v11623_v31  ;;  %v11749_v3 = vrot.slane %v11733_v9, %v16484_v37 }
 0x7c2   : > { %v12362_v14 = vcombine.low %v12354_v38, %v12361_v17  ;;  %v11993_v58 = vld [vmem:[#allocation10 + $0xb4] sm:$0x3]  ;;  %11876 = vst.msk [vmem:[#allocation10 + $0x9b] sm:$0x1] %vm8927_vm2, %v11623_v31  ;;  %11877 = vst.msk [vmem:[#allocation10 + $0x9d] sm:$0x1] %vm8927_vm2, %v11625_v13  ;;  %v11677_v36 = vcombine.high %v17780_v50, %v17780_v50  ;;  %v11742_v25 = vcombine.high %v11740_v30, %v11740_v30 }
 0x7c3   : > { %v12558_v52 = vrot.slane %v12550_v16, %v15373_v33  ;;  %v11997_v55 = vld [vmem:[#allocation10 + $0xbc] sm:$0x3]  ;;  %11874 = vst.msk [vmem:[#allocation10 + $0x97] sm:$0x1] %vm8927_vm2, %v11626_v54  ;;  %v11756_v40 = vrot.slane %v11740_v30, %v16484_v37  ;;  %v11763_v32 = vrot.slane %v11741_v39, %v16484_v37  ;;  %v11684_v26 = vrot.slane %v17780_v50, %v16484_v37 }
 0x7c4   : > { %12746 = vst.msk [vmem:[%s17385_s17 + $0x58] sm:$0xff] %vm475_vm0, %v12362_v14  ;;  %v11994_v5 = vld [vmem:[#allocation10 + $0xb6] sm:$0x3]  ;;  %v11998_v44 = vld [vmem:[#allocation10 + $0xbe] sm:$0x3]  ;;  %v11771_v8 = vcombine.high %v11749_v3, %v11749_v3  ;;  %v11691_v41 = vrot.slane %v11677_v36, %v16484_v37  ;;  %v11770_v28 = vrot.slane %v11742_v25, %v16484_v37 }
 0x7c5   : > { %v12534_v53 = vcombine.low %v11993_v58, %v11994_v5  ;;  %v12551_v4 = vcombine.low %v11997_v55, %v11998_v44  ;;  %11878 = vst.msk [vmem:[#allocation10 + $0x9f] sm:$0x1] %vm8927_vm2, %v11627_v1  ;;  %11895 = vst.msk [vmem:[#allocation10 + $0xf1] sm:$0x1] %vm8927_vm2, %v11749_v3  ;;  %v11772_v0 = vcombine.high %v11756_v40, %v11756_v40 }
 0x7c6   : > { %v11773_v2 = vcombine.high %v11763_v32, %v11763_v32  ;;  %11896 = vst.msk [vmem:[#allocation10 + $0xf3] sm:$0x1] %vm8927_vm2, %v11763_v32  ;;  %11899 = vst.msk [vmem:[#allocation10 + $0xf9] sm:$0x1] %vm8927_vm2, %v11756_v40  ;;  %v11692_v6 = vcombine.high %v11684_v26, %v11684_v26  ;;  %v11693_v49 = vcombine.high %v11691_v41, %v11691_v41  ;;  %v11976_v61 = vld [vmem:[#allocation10 + $0x92] sm:$0x3] }
 0x7c7   : > { %v12548_v50 = vrot.slane %v12534_v53, %v15373_v33  ;;  %v12565_v46 = vrot.slane %v12551_v4, %v15373_v33  ;;  %11897 = vst.msk [vmem:[#allocation10 + $0xf5] sm:$0x1] %vm8927_vm2, %v11771_v8  ;;  %v11700_v27 = vrot.slane %v11684_v26, %v16484_v37  ;;  %v11774_v19 = vcombine.high %v11770_v28, %v11770_v28  ;;  %v11975_v57 = vld [vmem:[#allocation10 + $0x90] sm:$0x3]  ;;  %v11979_v51 = vld [vmem:[#allocation10 + $0x98] sm:$0x3] }
 0x7c8   : > { %11898 = vst.msk [vmem:[#allocation10 + $0xf7] sm:$0x1] %vm8927_vm2, %v11773_v2  ;;  %11900 = vst.msk [vmem:[#allocation10 + $0xfb] sm:$0x1] %vm8927_vm2, %v11770_v28  ;;  %v11707_v56 = vrot.slane %v11691_v41, %v16484_v37  ;;  %v11714_v21 = vrot.slane %v11692_v6, %v16484_v37  ;;  %v11721_v48 = vrot.slane %v11693_v49, %v16484_v37  ;;  %v11977_v29 = vld [vmem:[#allocation10 + $0x94] sm:$0x3] }
 0x7c9   : > { %11901 = vst.msk [vmem:[#allocation10 + $0xfd] sm:$0x1] %vm8927_vm2, %v11772_v0  ;;  %v12549_v22 = vcombine.low %v17859_v62, %v12548_v50  ;;  %v12566_v42 = vcombine.low %v12558_v52, %v12565_v46  ;;  %11887 = vst.msk [vmem:[#allocation10 + $0xd1] sm:$0x1] %vm8927_vm2, %v11700_v27  ;;  %v11980_v11 = vld [vmem:[#allocation10 + $0x9a] sm:$0x3]  ;;  %v12465_v23 = vcombine.low %v11975_v57, %v11976_v61 }
 0x7ca   : > { %11902 = vst.msk [vmem:[#allocation10 + $0xff] sm:$0x1] %vm8927_vm2, %v11774_v19  ;;  %v11722_v43 = vcombine.high %v11700_v27, %v11700_v27  ;;  %v11723_v7 = vcombine.high %v11707_v56, %v11707_v56  ;;  %v11724_v10 = vcombine.high %v11714_v21, %v11714_v21  ;;  %11888 = vst.msk [vmem:[#allocation10 + $0xd3] sm:$0x1] %vm8927_vm2, %v11714_v21  ;;  %v11978_v37 = vld [vmem:[#allocation10 + $0x96] sm:$0x3] }
 0x7cb   : > { %11891 = vst.msk [vmem:[#allocation10 + $0xd9] sm:$0x1] %vm8927_vm2, %v11707_v56  ;;  %v12482_v20 = vcombine.low %v11979_v51, %v11980_v11  ;;  %v11725_v38 = vcombine.high %v11721_v48, %v11721_v48  ;;  %11892 = vst.msk [vmem:[#allocation10 + $0xdb] sm:$0x1] %vm8927_vm2, %v11721_v48  ;;  %v11981_v47 = vld [vmem:[#allocation10 + $0x9c] sm:$0x3]  ;;  %v12466_v60 = vcombine.low %v11977_v29, %v11978_v37 }
 0x7cc   : > { %12757 = vst.msk [vmem:[%s17385_s17 + $0xb0] sm:$0xff] %vm475_vm0, %v12549_v22  ;;  %12758 = vst.msk [vmem:[%s17385_s17 + $0xb8] sm:$0xff] %vm475_vm0, %v12566_v42  ;;  %v11982_v24 = vld [vmem:[#allocation10 + $0x9e] sm:$0x3]  ;;  %v12023_v18 = vld [vmem:[#allocation10 + $0xf0] sm:$0x3]  ;;  %v12473_v35 = vrot.slane %v12465_v23, %v15373_v33 }
 0x7cd   : > { %11889 = vst.msk [vmem:[#allocation10 + $0xd5] sm:$0x1] %vm8927_vm2, %v11722_v43  ;;  %11890 = vst.msk [vmem:[#allocation10 + $0xd7] sm:$0x1] %vm8927_vm2, %v11724_v10  ;;  %v12483_v34 = vcombine.low %v11981_v47, %v11982_v24  ;;  %v12024_v15 = vld [vmem:[#allocation10 + $0xf2] sm:$0x3]  ;;  %v12480_v45 = vrot.slane %v12466_v60, %v15373_v33  ;;  %v12490_v12 = vrot.slane %v12482_v20, %v15373_v33 }
 0x7ce   : > { %11893 = vst.msk [vmem:[#allocation10 + $0xdd] sm:$0x1] %vm8927_vm2, %v11723_v7  ;;  %11894 = vst.msk [vmem:[#allocation10 + $0xdf] sm:$0x1] %vm8927_vm2, %v11725_v38  ;;  %v12027_v17 = vld [vmem:[#allocation10 + $0xf8] sm:$0x3]  ;;  %v12669_v59 = vcombine.low %v12023_v18, %v12024_v15 }
 0x7cf   : > { %v12497_v63 = vrot.slane %v12483_v34, %v15373_v33  ;;  %v12025_v9 = vld [vmem:[#allocation10 + $0xf4] sm:$0x3]  ;;  %v12026_v62 = vld [vmem:[#allocation10 + $0xf6] sm:$0x3]  ;;  %v12028_v16 = vld [vmem:[#allocation10 + $0xfa] sm:$0x3]  ;;  %v12481_v31 = vcombine.low %v12473_v35, %v12480_v45 }
 0x7d0   : > { %v12029_v13 = vld [vmem:[#allocation10 + $0xfc] sm:$0x3]  ;;  %v12670_v14 = vcombine.low %v12025_v9, %v12026_v62  ;;  %v12686_v54 = vcombine.low %v12027_v17, %v12028_v16  ;;  %v12007_v58 = vld [vmem:[#allocation10 + $0xd0] sm:$0x3]  ;;  %v12677_v1 = vrot.slane %v12669_v59, %v15373_v33 }
 0x7d1   : > { %v12498_v30 = vcombine.low %v12490_v12, %v12497_v63  ;;  %v12030_v39 = vld [vmem:[#allocation10 + $0xfe] sm:$0x3]  ;;  %v12008_v52 = vld [vmem:[#allocation10 + $0xd2] sm:$0x3]  ;;  %12753 = vst.msk [vmem:[%s17385_s17 + $0x90] sm:$0xff] %vm475_vm0, %v12481_v31 }
 0x7d2   : > { %v12684_v3 = vrot.slane %v12670_v14, %v15373_v33  ;;  %v12687_v36 = vcombine.low %v12029_v13, %v12030_v39  ;;  %v12011_v5 = vld [vmem:[#allocation10 + $0xd8] sm:$0x3]  ;;  %v12012_v55 = vld [vmem:[#allocation10 + $0xda] sm:$0x3]  ;;  %v12601_v44 = vcombine.low %v12007_v58, %v12008_v52  ;;  %v12694_v53 = vrot.slane %v12686_v54, %v15373_v33 }
 0x7d3   : > { %12754 = vst.msk [vmem:[%s17385_s17 + $0x98] sm:$0xff] %vm475_vm0, %v12498_v30  ;;  %v12618_v32 = vcombine.low %v12011_v5, %v12012_v55 }
 0x7d4   : > { %v12009_v25 = vld [vmem:[#allocation10 + $0xd4] sm:$0x3]  ;;  %v12010_v40 = vld [vmem:[#allocation10 + $0xd6] sm:$0x3]  ;;  %v12685_v26 = vcombine.low %v12677_v1, %v12684_v3  ;;  %v12701_v4 = vrot.slane %v12687_v36, %v15373_v33  ;;  %v12609_v6 = vrot.slane %v12601_v44, %v15373_v33 }
 0x7d5   : > { %v12013_v8 = vld [vmem:[#allocation10 + $0xdc] sm:$0x3]  ;;  %v12014_v41 = vld [vmem:[#allocation10 + $0xde] sm:$0x3]  ;;  %v12602_v28 = vcombine.low %v12009_v25, %v12010_v40  ;;  %v12626_v46 = vrot.slane %v12618_v32, %v15373_v33 }
 0x7d6   : > { %v12619_v0 = vcombine.low %v12013_v8, %v12014_v41  ;;  %v12702_v2 = vcombine.low %v12694_v53, %v12701_v4  ;;  %12765 = vst.msk [vmem:[%s17385_s17 + $0xf0] sm:$0xff] %vm475_vm0, %v12685_v26 }
 0x7d7   : > { %v12616_v50 = vrot.slane %v12602_v28, %v15373_v33 }
 0x7d8   : > { %v12633_v49 = vrot.slane %v12619_v0, %v15373_v33  ;;  %12766 = vst.msk [vmem:[%s17385_s17 + $0xf8] sm:$0xff] %vm475_vm0, %v12702_v2 }
 0x7d9   : > { %v12617_v27 = vcombine.low %v12609_v6, %v12616_v50 }
 0x7da   : > { %v12634_v61 = vcombine.low %v12626_v46, %v12633_v49 }
 0x7db   : > { %12761 = vst.msk [vmem:[%s17385_s17 + $0xd0] sm:$0xff] %vm475_vm0, %v12617_v27 }
 0x7dc   : > { %12762 = vst.msk [vmem:[%s17385_s17 + $0xd8] sm:$0xff] %vm475_vm0, %v12634_v61 }
 0x7dd PF: > { %s25_s27 = sadd.s32 1, %s14458_s27  }
 0x7de   : > { %p22_p4 = scmp.ge.s32.totalorder %s25_s27, 4  }
 0x7e0   :  { %24 = sbr.rel (!%p22_p4) target bundleno = 3 (0x3), region = 162 }

</bundles_post_ra>
